<compile_context>
chip_gen: v5e
topology: v5e:2x2
jax: 0.10.0
libtpu: 0.0.40
codegen_flags: <defaults>
</compile_context>

<pallas_src>
import functools

import jax
import jax.numpy as jnp
import numpy as np
from jax.experimental import pallas as pl
from jax.experimental.pallas import tpu as pltpu

IN_DIM = 64 * 64 * 3  # 12288

# (fan_in, fan_out) for each Linear: encoder then decoder, with its activation.
LAYER_DIMS = [
    (IN_DIM, 128), (128, 64), (64, 12), (12, 3),      # encoder
    (3, 12), (12, 64), (64, 128), (128, IN_DIM),      # decoder
]
LAYER_ACTS = ("relu", "relu", "relu", "none",
              "relu", "relu", "relu", "tanh")

# Weights with at least this many elements are stored bf16 in HBM (only the
# two 12288x128 matrices qualify); they are consumed by the MXU as bf16.
_BF16_THRESHOLD = 1 << 16


def _fused_kernel(*refs, acts):
    """refs = (x, w0, b0, w1, b1, ..., w7, b7, out). Entire forward pass."""
    x_ref = refs[0]
    o_ref = refs[-1]
    params = refs[1:-1]

    h = x_ref[...]                                    # (M, IN_DIM) f32
    for li, act in enumerate(acts):
        w = params[2 * li][...]
        b = params[2 * li + 1][...]                   # (1, N) f32
        if w.dtype == jnp.bfloat16:
            # Big layers: feed the MXU bf16 directly, accumulate in f32.
            y = jnp.dot(h.astype(jnp.bfloat16), w,
                        preferred_element_type=jnp.float32)
        else:
            # Small layers: f32 operands, default MXU precision.
            y = jnp.dot(h, w, preferred_element_type=jnp.float32)
        h = y + b                                     # f32 elementwise
        if act == "relu":
            h = jnp.maximum(h, 0.0)
        elif act == "tanh":
            h = jnp.tanh(h)
    o_ref[...] = h.astype(o_ref.dtype)


def preprocess_params(params):
    """One-time prep (hoisted out of the hot path): transpose PyTorch (out,in)
    weights to (in,out), cast the two big weights to bf16, biases to (1,N)."""
    prepped = []
    for w, b in params:
        wt = jnp.asarray(w, jnp.float32).T            # (in, out)
        if wt.size >= _BF16_THRESHOLD:
            wt = wt.astype(jnp.bfloat16)
        b2 = jnp.asarray(b, jnp.float32).reshape(1, -1)
        prepped.append((wt, b2))
    return prepped


@jax.jit
def fcn_autoencoder_forward(x, prepped):
    M, K = x.shape
    assert K == IN_DIM
    xp = x.astype(jnp.float32)                        # no host-side padding

    operands = [xp]
    for wt, b2 in prepped:
        operands += [wt, b2]

    # Single fused step (no grid): every operand is a full-array VMEM block,
    # so there is no double-buffering and no pipeline overhead.
    vmem_spec = pl.BlockSpec(memory_space=pltpu.MemorySpace.VMEM)
    in_specs = [vmem_spec] * len(operands)

    out = pl.pallas_call(
        functools.partial(_fused_kernel, acts=LAYER_ACTS),
        out_shape=jax.ShapeDtypeStruct((M, IN_DIM), jnp.float32),
        in_specs=in_specs,
        out_specs=vmem_spec,
        compiler_params=pltpu.CompilerParams(
            vmem_limit_bytes=16 * 1024 * 1024,        # ~8 MB resident, headroom
        ),
    )(*operands)

    return out


# ---------------------------------------------------------------------------
# Parameter construction (deterministic, PyTorch-style uniform init).
# ---------------------------------------------------------------------------
def init_params(key):
    params = []
    for fan_in, fan_out in LAYER_DIMS:
        key, kw, kb = jax.random.split(key, 3)
        bound = 1.0 / np.sqrt(fan_in)
        w = jax.random.uniform(kw, (fan_out, fan_in), jnp.float32, -bound, bound)
        b = jax.random.uniform(kb, (fan_out,), jnp.float32, -bound, bound)
        params.append((w, b))
    return params


def fcn_autoencoder_ref(x, prepped):
    """Pure-JAX reference using the same stored params / same dot dtypes."""
    h = x.astype(jnp.float32)
    for (wt, b2), act in zip(prepped, LAYER_ACTS):
        if wt.dtype == jnp.bfloat16:
            h = jnp.dot(h.astype(jnp.bfloat16), wt,
                        preferred_element_type=jnp.float32) + b2
        else:
            h = jnp.dot(h, wt, preferred_element_type=jnp.float32) + b2
        if act == "relu":
            h = jnp.maximum(h, 0.0)
        elif act == "tanh":
            h = jnp.tanh(h)
    return h


if __name__ == "__main__":
    key = jax.random.PRNGKey(0)
    kx, kp = jax.random.split(key)

    batch = 2
    # Flattened 64x64x3 "image" batch, values in [-1, 1] like a normalized input.
    x = jax.random.uniform(kx, (batch, IN_DIM), jnp.float32, -1.0, 1.0)
    params = init_params(kp)
    prepped = preprocess_params(params)   # one-time: transpose / bf16 / (1,N) bias

    out = fcn_autoencoder_forward(x, prepped)
    out = jax.block_until_ready(out)

    ref = fcn_autoencoder_ref(x, prepped)
    assert out.shape == (batch, IN_DIM), out.shape
    np.testing.assert_allclose(np.asarray(out), np.asarray(ref),
                               atol=1e-3, rtol=1e-3)

    print("KERNEL_OK")
</pallas_src>

<mosaic_0001>
module attributes {stable_mosaic.version = 11 : i64} {
  func.func @_fused_kernel(%arg0: memref<2x12288xf32, #tpu.memory_space<vmem>>, %arg1: memref<12288x128xbf16, #tpu.memory_space<vmem>>, %arg2: memref<1x128xf32, #tpu.memory_space<vmem>>, %arg3: memref<128x64xf32, #tpu.memory_space<vmem>>, %arg4: memref<1x64xf32, #tpu.memory_space<vmem>>, %arg5: memref<64x12xf32, #tpu.memory_space<vmem>>, %arg6: memref<1x12xf32, #tpu.memory_space<vmem>>, %arg7: memref<12x3xf32, #tpu.memory_space<vmem>>, %arg8: memref<1x3xf32, #tpu.memory_space<vmem>>, %arg9: memref<3x12xf32, #tpu.memory_space<vmem>>, %arg10: memref<1x12xf32, #tpu.memory_space<vmem>>, %arg11: memref<12x64xf32, #tpu.memory_space<vmem>>, %arg12: memref<1x64xf32, #tpu.memory_space<vmem>>, %arg13: memref<64x128xf32, #tpu.memory_space<vmem>>, %arg14: memref<1x128xf32, #tpu.memory_space<vmem>>, %arg15: memref<128x12288xbf16, #tpu.memory_space<vmem>>, %arg16: memref<1x12288xf32, #tpu.memory_space<vmem>>, %arg17: memref<2x12288xf32, #tpu.memory_space<vmem>>) attributes {dimension_semantics = [], scalar_prefetch = 0 : i64, scratch_operands = 0 : i64, tpu.core_type = #tpu.core_type<tc>} {
    %c0 = arith.constant 0 : index
    %c0_0 = arith.constant 0 : index
    %0 = vector.load %arg0[%c0, %c0_0] : memref<2x12288xf32, #tpu.memory_space<vmem>>, vector<2x12288xf32>
    %c0_1 = arith.constant 0 : index
    %c0_2 = arith.constant 0 : index
    %1 = vector.load %arg1[%c0_1, %c0_2] : memref<12288x128xbf16, #tpu.memory_space<vmem>>, vector<12288x128xbf16>
    %c0_3 = arith.constant 0 : index
    %c0_4 = arith.constant 0 : index
    %2 = vector.load %arg2[%c0_3, %c0_4] : memref<1x128xf32, #tpu.memory_space<vmem>>, vector<1x128xf32>
    %3 = arith.truncf %0 : vector<2x12288xf32> to vector<2x12288xbf16>
    %cst = arith.constant dense<0.000000e+00> : vector<2x128xf32>
    %4 = tpu.matmul %3, %1, %cst {dimension_numbers = #tpu.dot_dimension_numbers<[1], [0], [0], [1], [0, 0, 1, 1], [], []>} : vector<2x12288xbf16>, vector<12288x128xbf16>, vector<2x128xf32> -> vector<2x128xf32>
    %5 = vector.broadcast %2 : vector<1x128xf32> to vector<2x128xf32>
    %6 = arith.addf %4, %5 : vector<2x128xf32>
    %cst_5 = arith.constant 0.000000e+00 : f32
    %7 = vector.broadcast %cst_5 : f32 to vector<2x128xf32>
    %8 = arith.maximumf %6, %7 : vector<2x128xf32>
    %c0_6 = arith.constant 0 : index
    %c0_7 = arith.constant 0 : index
    %9 = vector.load %arg3[%c0_6, %c0_7] : memref<128x64xf32, #tpu.memory_space<vmem>>, vector<128x64xf32>
    %c0_8 = arith.constant 0 : index
    %c0_9 = arith.constant 0 : index
    %10 = vector.load %arg4[%c0_8, %c0_9] : memref<1x64xf32, #tpu.memory_space<vmem>>, vector<1x64xf32>
    %cst_10 = arith.constant dense<0.000000e+00> : vector<2x64xf32>
    %11 = tpu.matmul %8, %9, %cst_10 {dimension_numbers = #tpu.dot_dimension_numbers<[1], [0], [0], [1], [0, 0, 1, 1], [], []>} : vector<2x128xf32>, vector<128x64xf32>, vector<2x64xf32> -> vector<2x64xf32>
    %12 = vector.broadcast %10 : vector<1x64xf32> to vector<2x64xf32>
    %13 = arith.addf %11, %12 : vector<2x64xf32>
    %cst_11 = arith.constant 0.000000e+00 : f32
    %14 = vector.broadcast %cst_11 : f32 to vector<2x64xf32>
    %15 = arith.maximumf %13, %14 : vector<2x64xf32>
    %c0_12 = arith.constant 0 : index
    %c0_13 = arith.constant 0 : index
    %16 = vector.load %arg5[%c0_12, %c0_13] : memref<64x12xf32, #tpu.memory_space<vmem>>, vector<64x12xf32>
    %c0_14 = arith.constant 0 : index
    %c0_15 = arith.constant 0 : index
    %17 = vector.load %arg6[%c0_14, %c0_15] : memref<1x12xf32, #tpu.memory_space<vmem>>, vector<1x12xf32>
    %cst_16 = arith.constant dense<0.000000e+00> : vector<2x12xf32>
    %18 = tpu.matmul %15, %16, %cst_16 {dimension_numbers = #tpu.dot_dimension_numbers<[1], [0], [0], [1], [0, 0, 1, 1], [], []>} : vector<2x64xf32>, vector<64x12xf32>, vector<2x12xf32> -> vector<2x12xf32>
    %19 = vector.broadcast %17 : vector<1x12xf32> to vector<2x12xf32>
    %20 = arith.addf %18, %19 : vector<2x12xf32>
    %cst_17 = arith.constant 0.000000e+00 : f32
    %21 = vector.broadcast %cst_17 : f32 to vector<2x12xf32>
    %22 = arith.maximumf %20, %21 : vector<2x12xf32>
    %c0_18 = arith.constant 0 : index
    %c0_19 = arith.constant 0 : index
    %23 = vector.load %arg7[%c0_18, %c0_19] : memref<12x3xf32, #tpu.memory_space<vmem>>, vector<12x3xf32>
    %c0_20 = arith.constant 0 : index
    %c0_21 = arith.constant 0 : index
    %24 = vector.load %arg8[%c0_20, %c0_21] : memref<1x3xf32, #tpu.memory_space<vmem>>, vector<1x3xf32>
    %cst_22 = arith.constant dense<0.000000e+00> : vector<2x3xf32>
    %25 = tpu.matmul %22, %23, %cst_22 {dimension_numbers = #tpu.dot_dimension_numbers<[1], [0], [0], [1], [0, 0, 1, 1], [], []>} : vector<2x12xf32>, vector<12x3xf32>, vector<2x3xf32> -> vector<2x3xf32>
    %26 = vector.broadcast %24 : vector<1x3xf32> to vector<2x3xf32>
    %27 = arith.addf %25, %26 : vector<2x3xf32>
    %c0_23 = arith.constant 0 : index
    %c0_24 = arith.constant 0 : index
    %28 = vector.load %arg9[%c0_23, %c0_24] : memref<3x12xf32, #tpu.memory_space<vmem>>, vector<3x12xf32>
    %c0_25 = arith.constant 0 : index
    %c0_26 = arith.constant 0 : index
    %29 = vector.load %arg10[%c0_25, %c0_26] : memref<1x12xf32, #tpu.memory_space<vmem>>, vector<1x12xf32>
    %cst_27 = arith.constant dense<0.000000e+00> : vector<2x12xf32>
    %30 = tpu.matmul %27, %28, %cst_27 {dimension_numbers = #tpu.dot_dimension_numbers<[1], [0], [0], [1], [0, 0, 1, 1], [], []>} : vector<2x3xf32>, vector<3x12xf32>, vector<2x12xf32> -> vector<2x12xf32>
    %31 = vector.broadcast %29 : vector<1x12xf32> to vector<2x12xf32>
    %32 = arith.addf %30, %31 : vector<2x12xf32>
    %cst_28 = arith.constant 0.000000e+00 : f32
    %33 = vector.broadcast %cst_28 : f32 to vector<2x12xf32>
    %34 = arith.maximumf %32, %33 : vector<2x12xf32>
    %c0_29 = arith.constant 0 : index
    %c0_30 = arith.constant 0 : index
    %35 = vector.load %arg11[%c0_29, %c0_30] : memref<12x64xf32, #tpu.memory_space<vmem>>, vector<12x64xf32>
    %c0_31 = arith.constant 0 : index
    %c0_32 = arith.constant 0 : index
    %36 = vector.load %arg12[%c0_31, %c0_32] : memref<1x64xf32, #tpu.memory_space<vmem>>, vector<1x64xf32>
    %cst_33 = arith.constant dense<0.000000e+00> : vector<2x64xf32>
    %37 = tpu.matmul %34, %35, %cst_33 {dimension_numbers = #tpu.dot_dimension_numbers<[1], [0], [0], [1], [0, 0, 1, 1], [], []>} : vector<2x12xf32>, vector<12x64xf32>, vector<2x64xf32> -> vector<2x64xf32>
    %38 = vector.broadcast %36 : vector<1x64xf32> to vector<2x64xf32>
    %39 = arith.addf %37, %38 : vector<2x64xf32>
    %cst_34 = arith.constant 0.000000e+00 : f32
    %40 = vector.broadcast %cst_34 : f32 to vector<2x64xf32>
    %41 = arith.maximumf %39, %40 : vector<2x64xf32>
    %c0_35 = arith.constant 0 : index
    %c0_36 = arith.constant 0 : index
    %42 = vector.load %arg13[%c0_35, %c0_36] : memref<64x128xf32, #tpu.memory_space<vmem>>, vector<64x128xf32>
    %c0_37 = arith.constant 0 : index
    %c0_38 = arith.constant 0 : index
    %43 = vector.load %arg14[%c0_37, %c0_38] : memref<1x128xf32, #tpu.memory_space<vmem>>, vector<1x128xf32>
    %cst_39 = arith.constant dense<0.000000e+00> : vector<2x128xf32>
    %44 = tpu.matmul %41, %42, %cst_39 {dimension_numbers = #tpu.dot_dimension_numbers<[1], [0], [0], [1], [0, 0, 1, 1], [], []>} : vector<2x64xf32>, vector<64x128xf32>, vector<2x128xf32> -> vector<2x128xf32>
    %45 = vector.broadcast %43 : vector<1x128xf32> to vector<2x128xf32>
    %46 = arith.addf %44, %45 : vector<2x128xf32>
    %cst_40 = arith.constant 0.000000e+00 : f32
    %47 = vector.broadcast %cst_40 : f32 to vector<2x128xf32>
    %48 = arith.maximumf %46, %47 : vector<2x128xf32>
    %c0_41 = arith.constant 0 : index
    %c0_42 = arith.constant 0 : index
    %49 = vector.load %arg15[%c0_41, %c0_42] : memref<128x12288xbf16, #tpu.memory_space<vmem>>, vector<128x12288xbf16>
    %c0_43 = arith.constant 0 : index
    %c0_44 = arith.constant 0 : index
    %50 = vector.load %arg16[%c0_43, %c0_44] : memref<1x12288xf32, #tpu.memory_space<vmem>>, vector<1x12288xf32>
    %51 = arith.truncf %48 : vector<2x128xf32> to vector<2x128xbf16>
    %cst_45 = arith.constant dense<0.000000e+00> : vector<2x12288xf32>
    %52 = tpu.matmul %51, %49, %cst_45 {dimension_numbers = #tpu.dot_dimension_numbers<[1], [0], [0], [1], [0, 0, 1, 1], [], []>} : vector<2x128xbf16>, vector<128x12288xbf16>, vector<2x12288xf32> -> vector<2x12288xf32>
    %53 = vector.broadcast %50 : vector<1x12288xf32> to vector<2x12288xf32>
    %54 = arith.addf %52, %53 : vector<2x12288xf32>
    %55 = math.tanh %54 : vector<2x12288xf32>
    %c0_46 = arith.constant 0 : index
    %c0_47 = arith.constant 0 : index
    %56 = vector.load %arg17[%c0_46, %c0_47] : memref<2x12288xf32, #tpu.memory_space<vmem>>, vector<2x12288xf32>
    tpu.vector_store %arg17[%c0_46, %c0_47], %55 {strides = array<i32>} : memref<2x12288xf32, #tpu.memory_space<vmem>>, vector<2x12288xf32>,
    return
  }
}

</mosaic_0001>

<bundles_post_ra>
// kernel: fcn_autoencoder_forward.1
= control target key start
LH: loop header
LB: loop body
LE: loop exit
PB: predicated region body
PF: predicated region fallthrough
CT: control target
= control target key end

     0   :  { %s23576_s0 = inlined_call_operand.hbm [shape: f32[2,12288], index: 0, kind: input, shape index: {}]   ;;  %s23577_s1 = inlined_call_operand.hbm [shape: bf16[12288,128], index: 1, kind: input, shape index: {}]   ;;  %s23578_s2 = inlined_call_operand.hbm [shape: f32[1,128], index: 2, kind: input, shape index: {}]   ;;  %s23579_s3 = inlined_call_operand.vmem [shape: f32[128,64], index: 3, kind: input, shape index: {}]   ;;  %s23580_s4 = inlined_call_operand.hbm [shape: f32[1,64], index: 4, kind: input, shape index: {}]   ;;  %s23581_s5 = inlined_call_operand.vmem [shape: f32[64,12], index: 5, kind: input, shape index: {}]   ;;  %s23582_s6 = inlined_call_operand.hbm [shape: f32[1,12], index: 6, kind: input, shape index: {}]   ;;  %s23583_s7 = inlined_call_operand.vmem [shape: f32[12,3], index: 7, kind: input, shape index: {}]   ;;  %s23584_s8 = inlined_call_operand.hbm [shape: f32[1,3], index: 8, kind: input, shape index: {}]   ;;  %s23585_s9 = inlined_call_operand.hbm [shape: f32[3,12], index: 9, kind: input, shape index: {}]   ;;  %s23586_s10 = inlined_call_operand.hbm [shape: f32[1,12], index: 10, kind: input, shape index: {}]   ;;  %s23587_s11 = inlined_call_operand.hbm [shape: f32[12,64], index: 11, kind: input, shape index: {}]   ;;  %s23588_s12 = inlined_call_operand.hbm [shape: f32[1,64], index: 12, kind: input, shape index: {}]   ;;  %s23589_s13 = inlined_call_operand.hbm [shape: f32[64,128], index: 13, kind: input, shape index: {}]   ;;  %s23590_s14 = inlined_call_operand.hbm [shape: f32[1,128], index: 14, kind: input, shape index: {}]   ;;  %s23591_s15 = inlined_call_operand.hbm [shape: bf16[128,12288], index: 15, kind: input, shape index: {}]   ;;  %s23592_s16 = inlined_call_operand.hbm [shape: f32[1,12288], index: 16, kind: input, shape index: {}]   ;;  %s23593_s17 = inlined_call_operand.hbm [shape: f32[2,12288], index: 17, kind: output, shape index: {}]  }
   0x1   :  { %23594 = sst [smem:[#allocation35_spill]] %s23576_s0 }
   0x2   :  { %23595 = sst [smem:[#allocation36_spill]] %s23577_s1 }
   0x3   :  { %23596 = sst [smem:[#allocation37_spill]] %s23593_s17 }
   0x4   :  { %22 = vsyncpa [#allocation3], 0 }
   0x5   :  { %23 = vsyncpa [#allocation6], 0 }
   0x6   :  { %24 = vsyncpa [#allocation9], 0 }
   0x7   :  { %25 = vsyncpa [#allocation12], 0 }
   0x8   :  { %26 = vsyncpa [#allocation15], 0 }
   0x9   :  { %27 = vsyncpa [#allocation18], 0 }
   0xa   :  { %28 = vsyncpa [#allocation21], 0 }
   0xb   :  { %29 = vsyncpa [#allocation24], 0  ;;  %s23597_s26 = sld [smem:[#allocation36_spill]] }
  0x11   :  { %s46_s27 = sshll.u32 %s23597_s26, 4  ;;  %s47_s27 = int_to_ptr.hbm [resolvable:$true] %s46_s27 }
  0x12   :  { %30 = vsyncpa [#allocation4], 0  ;;  %s22997_s28 = smov [#allocation5]   ;;  %s73_s18 = sshll.u32 %s23580_s4, 4  ;;  %s74_s18 = int_to_ptr.hbm [resolvable:$true] %s73_s18 }
  0x13   :  { %s48_s29 = sshll.u32 %s22997_s28, 4  ;;  %s22998_s19 = smov 64   ;;  %s49_s29 = int_to_ptr.vmem [resolvable:$true] %s48_s29 }
  0x14   :  { %s22999_s1 = smov 4   ;;  %s23000_s20 = smov [#allocation8]  }
  0x15   :  { %54 = dma.hbm_to_vmem [thread:$0]  %s47_s27, 98304, %s49_s29, [#allocation6], %s22998_s19, %s22998_s19, %s22999_s1  }
  0x16   :  { %s75_s21 = sshll.u32 %s23000_s20, 4  ;;  %s99_s24 = sshll.u32 %s23584_s8, 4  ;;  %s76_s21 = int_to_ptr.vmem [resolvable:$true] %s75_s21  ;;  %s100_s24 = int_to_ptr.hbm [resolvable:$true] %s99_s24 }
  0x17   :  { %78 = dma.hbm_to_vmem [thread:$0]  %s74_s18, 16, %s76_s21, [#allocation9]  }
  0x18   :  { %s121_s28 = sshll.u32 %s23586_s10, 4  ;;  %s23001_s17 = smov [#allocation11]   ;;  %s122_s28 = int_to_ptr.hbm [resolvable:$true] %s121_s28 }
  0x19   :  { %s101_s0 = sshll.u32 %s23001_s17, 4  ;;  %s23002_s4 = smov [#allocation14]   ;;  %s102_s0 = int_to_ptr.vmem [resolvable:$true] %s101_s0 }
  0x1a   :  { %104 = dma.hbm_to_vmem [thread:$0]  %s100_s24, 16, %s102_s0, [#allocation12]  }
  0x1b   :  { %s123_s27 = sshll.u32 %s23002_s4, 4  ;;  %s145_s19 = sshll.u32 %s23588_s12, 4  ;;  %s124_s27 = int_to_ptr.vmem [resolvable:$true] %s123_s27  ;;  %s146_s19 = int_to_ptr.hbm [resolvable:$true] %s145_s19 }
  0x1c   :  { %126 = dma.hbm_to_vmem [thread:$0]  %s122_s28, 16, %s124_s27, [#allocation15]  }
  0x1d   :  { %s169_s1 = sshll.u32 %s23590_s14, 4  ;;  %s23003_s20 = smov [#allocation17]   ;;  %s170_s1 = int_to_ptr.hbm [resolvable:$true] %s169_s1 }
  0x1e   :  { %s147_s10 = sshll.u32 %s23003_s20, 4  ;;  %s23004_s17 = smov [#allocation20]   ;;  %s148_s10 = int_to_ptr.vmem [resolvable:$true] %s147_s10 }
  0x1f   :  { %150 = dma.hbm_to_vmem [thread:$0]  %s146_s19, 16, %s148_s10, [#allocation18]  }
  0x20   :  { %s171_s21 = sshll.u32 %s23004_s17, 4  ;;  %s23598_s24 = sld [smem:[#allocation35_spill]]  ;;  %s172_s21 = int_to_ptr.vmem [resolvable:$true] %s171_s21 }
  0x21   :  { %174 = dma.hbm_to_vmem [thread:$0]  %s170_s1, 16, %s172_s21, [#allocation21]  }
  0x22   :  { %s60_s28 = sshll.u32 %s23578_s2, 4  ;;  %s23005_s0 = smov [#allocation2]   ;;  %s61_s28 = int_to_ptr.hbm [resolvable:$true] %s60_s28 }
  0x23   :  { %s38_s14 = sshll.u32 %s23005_s0, 4  ;;  %s23006_s4 = smov [#allocation7]   ;;  %s39_s14 = int_to_ptr.vmem [resolvable:$true] %s38_s14 }
  0x24   :  { %s62_s27 = sshll.u32 %s23006_s4, 4  ;;  %s86_s19 = sshll.u32 %s23582_s6, 4  ;;  %s63_s27 = int_to_ptr.vmem [resolvable:$true] %s62_s27  ;;  %s87_s19 = int_to_ptr.hbm [resolvable:$true] %s86_s19 }
  0x25   :  { %65 = dma.hbm_to_vmem [thread:$0]  %s61_s28, 16, %s63_s27, [#allocation6]  }
  0x26   :  { %s36_s25 = sshll.u32 %s23598_s24, 4  ;;  %s110_s1 = sshll.u32 %s23585_s9, 4  ;;  %s37_s25 = int_to_ptr.hbm [resolvable:$true] %s36_s25  ;;  %s111_s1 = int_to_ptr.hbm [resolvable:$true] %s110_s1 }
  0x27   :  { %41 = dma.hbm_to_vmem [thread:$0]  %s37_s25, 3072, %s39_s14, [#allocation3]  }
  0x28   :  { %s23007_s20 = smov [#allocation10]   ;;  %s23008_s10 = smov [#allocation13]  }
  0x29   :  { %s88_s2 = sshll.u32 %s23007_s20, 4  ;;  %s112_s17 = sshll.u32 %s23008_s10, 4  ;;  %s89_s2 = int_to_ptr.vmem [resolvable:$true] %s88_s2  ;;  %s113_s17 = int_to_ptr.vmem [resolvable:$true] %s112_s17 }
  0x2a   :  { %91 = dma.hbm_to_vmem [thread:$0]  %s87_s19, 16, %s89_s2, [#allocation9]  }
  0x2b   :  { %s131_s23 = sshll.u32 %s23587_s11, 4  ;;  %s23009_s6 = smov [#allocation16]   ;;  %s132_s23 = int_to_ptr.hbm [resolvable:$true] %s131_s23 }
  0x2c   :  { %115 = dma.hbm_to_vmem [thread:$0]  %s111_s1, 64, %s113_s17, [#allocation12]  }
  0x2d   :  { %s133_s24 = sshll.u32 %s23009_s6, 4  ;;  %s155_s9 = sshll.u32 %s23589_s13, 4  ;;  %s134_s24 = int_to_ptr.vmem [resolvable:$true] %s133_s24  ;;  %s156_s9 = int_to_ptr.hbm [resolvable:$true] %s155_s9 }
  0x2e   :  { %s23010_s26 = smov 128   ;;  %s23011_s28 = smov 8  }
  0x2f   :  { %139 = dma.hbm_to_vmem [thread:$0]  %s132_s23, 256, %s134_s24, [#allocation15], %s23010_s26, %s23010_s26, %s23011_s28  }
  0x30   :  { %s23012_s0 = smov [#allocation19]   ;;  %s179_s11 = sshll.u32 %s23591_s15, 4  ;;  %s180_s11 = int_to_ptr.hbm [resolvable:$true] %s179_s11 }
  0x31   :  { %s157_s14 = sshll.u32 %s23012_s0, 4  ;;  %s23013_s29 = smov [#allocation22]   ;;  %s158_s14 = int_to_ptr.vmem [resolvable:$true] %s157_s14 }
  0x32   :  { %163 = dma.hbm_to_vmem [thread:$0]  %s156_s9, 1024, %s158_s14, [#allocation18], %s23010_s26, %s23010_s26, %s23011_s28  }
  0x33   :  { %s181_s30 = sshll.u32 %s23013_s29, 4  ;;  %s193_s13 = sshll.u32 %s23592_s16, 4  ;;  %s182_s30 = int_to_ptr.vmem [resolvable:$true] %s181_s30  ;;  %s194_s13 = int_to_ptr.hbm [resolvable:$true] %s193_s13 }
  0x34   :  { %s23014_s18 = smov 6144   ;;  %s23015_s1 = smov 384  }
  0x35   :  { %187 = dma.hbm_to_vmem [thread:$0]  %s180_s11, 98304, %s182_s30, [#allocation21], %s23014_s18, %s23014_s18, %s23015_s1  }
  0x36   :  { %s23016_s20 = smov [#allocation23]  }
  0x37   :  { %s195_s2 = sshll.u32 %s23016_s20, 4  ;;  %s196_s2 = int_to_ptr.vmem [resolvable:$true] %s195_s2 }
  0x38   :  { %198 = dma.hbm_to_vmem [thread:$0]  %s194_s13, 1536, %s196_s2, [#allocation24]  }
  0x39   :  { %22979 = dma.done.wait [#allocation3], 3072  }
  0x3a   :  { %22980 = vsyncadd [#allocation3], 4294964224 }
  0x3b   :  { %22981 = dma.done.wait [#allocation6], 98320  }
  0x3c   :  { %22982 = vsyncadd [#allocation6], 4294868976 }
  0x3d   :  { %22983 = dma.done.wait [#allocation9], 32  }
  0x3e   :  { %22984 = vsyncadd [#allocation9], 4294967264 }
  0x3f   :  { %22985 = dma.done.wait [#allocation12], 80  }
  0x40   :  { %22986 = vsyncadd [#allocation12], 4294967216 }
  0x41   :  { %22987 = dma.done.wait [#allocation15], 272  }
  0x42   :  { %22988 = vsyncadd [#allocation15], 4294967024 }
  0x43   :  { %22989 = dma.done.wait [#allocation18], 1040  }
  0x44   :  { %22990 = vsyncadd [#allocation18], 4294966256 }
  0x45   :  { %22991 = dma.done.wait [#allocation21], 98320  }
  0x46   :  { %22992 = vsyncadd [#allocation21], 4294868976 }
  0x47   :  { %22993 = dma.done.wait [#allocation24], 1536  }
  0x48   :  { %22994 = vsyncadd [#allocation24], 4294965760  ;;  %v20870_v0 = vld [vmem:[#allocation5 + $0x38] sm:$0xff]  ;;  %v20869_v4 = vld [vmem:[#allocation5 + $0x30] sm:$0xff]  ;;  %vm8066_vm0 = vcmask 523264   ;;  %vm8101_vm1 = vcmask 1043456  }
  0x49   :  { %v20878_v1 = vld [vmem:[#allocation5 + $0x78] sm:$0xff]  ;;  %6764 = vmatpush.bf16.msra.mxu0 %v20870_v0  ;;  %v20877_v5 = vld [vmem:[#allocation5 + $0x70] sm:$0xff]  ;;  %v20868_v8 = vld [vmem:[#allocation5 + $0x28] sm:$0xff]  ;;  %vm8097_vm2 = vcmask 97280   ;;  %vm8134_vm3 = vcmask 1042432   ;;  %vm8130_vm4 = vcmask 23552  }
  0x4a   :  { %v20886_v2 = vld [vmem:[#allocation5 + $0xb8] sm:$0xff]  ;;  %6777 = vmatpush.bf16.msra.mxu1 %v20878_v1  ;;  %v20885_v6 = vld [vmem:[#allocation5 + $0xb0] sm:$0xff]  ;;  %v20876_v9 = vld [vmem:[#allocation5 + $0x68] sm:$0xff]  ;;  %vm14565_vm5 = vcmask 1041408   ;;  %vm14567_vm6 = vcmask 1045508   ;;  %s23599_s1 = sld [smem:[#allocation37_spill]] }
  0x4b   :  { %v20894_v3 = vld [vmem:[#allocation5 + $0xf8] sm:$0xff]  ;;  %6790 = vmatpush.bf16.msra.mxu2 %v20886_v2  ;;  %v20893_v7 = vld [vmem:[#allocation5 + $0xf0] sm:$0xff]  ;;  %v20884_v10 = vld [vmem:[#allocation5 + $0xa8] sm:$0xff] }
  0x4c   :  { %6803 = vmatpush.bf16.msra.mxu3 %v20894_v3  ;;  %v20892_v11 = vld [vmem:[#allocation5 + $0xe8] sm:$0xff]  ;;  %v20867_v12 = vld [vmem:[#allocation5 + $0x20] sm:$0xff]  ;;  %v20866_v16 = vld [vmem:[#allocation5 + $0x18] sm:$0xff] }
  0x4d   :  { %6765 = vmatpush.bf16.msra.mxu0 %v20869_v4  ;;  %v20875_v13 = vld [vmem:[#allocation5 + $0x60] sm:$0xff]  ;;  %v20874_v17 = vld [vmem:[#allocation5 + $0x58] sm:$0xff]  ;;  %v20865_v20 = vld [vmem:[#allocation5 + $0x10] sm:$0xff] }
  0x4e   :  { %6778 = vmatpush.bf16.msra.mxu1 %v20877_v5  ;;  %v20883_v14 = vld [vmem:[#allocation5 + $0xa0] sm:$0xff]  ;;  %v20882_v18 = vld [vmem:[#allocation5 + $0x98] sm:$0xff]  ;;  %v20873_v21 = vld [vmem:[#allocation5 + $0x50] sm:$0xff] }
  0x4f   :  { %6791 = vmatpush.bf16.msra.mxu2 %v20885_v6  ;;  %v20891_v15 = vld [vmem:[#allocation5 + $0xe0] sm:$0xff]  ;;  %v20890_v19 = vld [vmem:[#allocation5 + $0xd8] sm:$0xff]  ;;  %v20881_v23 = vld [vmem:[#allocation5 + $0x90] sm:$0xff] }
  0x50   :  { %6804 = vmatpush.bf16.msra.mxu3 %v20893_v7  ;;  %v255_v22 = vld [vmem:[#allocation2] sm:$0xff]  ;;  %v20889_v24 = vld [vmem:[#allocation5 + $0xd0] sm:$0xff]  ;;  %v20864_v25 = vld [vmem:[#allocation5 + $0x8] sm:$0xff]  ;;  %s14694_s20 = sshll.u32 %s23599_s1, 4  ;;  %s14695_s20 = int_to_ptr.hbm [resolvable:$true] %s14694_s20 }
  0x51   :  { %6766 = vmatpush.bf16.msra.mxu0 %v20868_v8  ;;  %1840 = vst [vmem:[#allocation1] ss:$4 sm:$0xff] %v255_v22  ;;  %v20872_v26 = vld [vmem:[#allocation5 + $0x48] sm:$0xff]  ;;  %v20863_v29 = vld [vmem:[#allocation5] sm:$0xff]  ;;  %v20902_v33 = vld [vmem:[#allocation5 + $0x138] sm:$0xff] }
  0x52   :  { %6779 = vmatpush.bf16.msra.mxu1 %v20876_v9  ;;  %v20880_v27 = vld [vmem:[#allocation5 + $0x88] sm:$0xff]  ;;  %v20871_v30 = vld [vmem:[#allocation5 + $0x40] sm:$0xff]  ;;  %v20910_v34 = vld [vmem:[#allocation5 + $0x178] sm:$0xff] }
  0x53   :  { %6792 = vmatpush.bf16.msra.mxu2 %v20884_v10  ;;  %v20888_v28 = vld [vmem:[#allocation5 + $0xc8] sm:$0xff]  ;;  %v20879_v31 = vld [vmem:[#allocation5 + $0x80] sm:$0xff]  ;;  %v20918_v39 = vld [vmem:[#allocation5 + $0x1b8] sm:$0xff] }
  0x54   :  { %6805 = vmatpush.bf16.msra.mxu3 %v20892_v11  ;;  %v20887_v32 = vld [vmem:[#allocation5 + $0xc0] sm:$0xff]  ;;  %v20926_v40 = vld [vmem:[#allocation5 + $0x1f8] sm:$0xff]  ;;  %v256_v41 = vld [vmem:[#allocation2 + $0x8] sm:$0xff] }
  0x55   :  { %6767 = vmatpush.bf16.msra.mxu0 %v20867_v12  ;;  %1842 = vst [vmem:[#allocation1 + $0x20] ss:$4 sm:$0xff] %v256_v41  ;;  %v20901_v46 = vld [vmem:[#allocation5 + $0x130] sm:$0xff]  ;;  %v20900_v50 = vld [vmem:[#allocation5 + $0x128] sm:$0xff]  ;;  %v20899_v54 = vld [vmem:[#allocation5 + $0x120] sm:$0xff] }
  0x56   :  { %6780 = vmatpush.bf16.msra.mxu1 %v20875_v13  ;;  %v20909_v47 = vld [vmem:[#allocation5 + $0x170] sm:$0xff]  ;;  %v20908_v51 = vld [vmem:[#allocation5 + $0x168] sm:$0xff]  ;;  %v20907_v55 = vld [vmem:[#allocation5 + $0x160] sm:$0xff] }
  0x57   :  { %6793 = vmatpush.bf16.msra.mxu2 %v20883_v14  ;;  %v20917_v48 = vld [vmem:[#allocation5 + $0x1b0] sm:$0xff]  ;;  %v20916_v52 = vld [vmem:[#allocation5 + $0x1a8] sm:$0xff]  ;;  %v20915_v56 = vld [vmem:[#allocation5 + $0x1a0] sm:$0xff] }
  0x58   :  { %6806 = vmatpush.bf16.msra.mxu3 %v20891_v15  ;;  %v1845_v35 = vld.sshfl [vmem:[#allocation1 + $0x10] sm:$0xff pattern:$0x73625140]  ;;  %v1843_v36 = vld.sshfl [vmem:[#allocation1] sm:$0xff pattern:$0x73625140] }
  0x59   :  { %6768 = vmatpush.bf16.msra.mxu0 %v20866_v16  ;;  %v1846_v37 = vld.sshfl [vmem:[#allocation1 + $0x18] sm:$0xff pattern:$0x73625140]  ;;  %v1844_v38 = vld.sshfl [vmem:[#allocation1 + $0x8] sm:$0xff pattern:$0x73625140]  ;;  %v2059_v42 = vpack.c.bf16 %v1845_v35, %v1845_v35  ;;  %v2057_v43 = vpack.c.bf16 %v1843_v36, %v1843_v36 }
  0x5a   :  { %6781 = vmatpush.bf16.msra.mxu1 %v20874_v17  ;;  %v2060_v44 = vpack.c.bf16 %v1846_v37, %v1846_v37  ;;  %v2058_v45 = vpack.c.bf16 %v1844_v38, %v1844_v38  ;;  %v20925_v49 = vld [vmem:[#allocation5 + $0x1f0] sm:$0xff]  ;;  %v20924_v53 = vld [vmem:[#allocation5 + $0x1e8] sm:$0xff]  ;;  %v20923_v57 = vld [vmem:[#allocation5 + $0x1e0] sm:$0xff] }
  0x5b   :  { %6794 = vmatpush.bf16.msra.mxu2 %v20882_v18  ;;  %v20898_v58 = vld [vmem:[#allocation5 + $0x118] sm:$0xff]  ;;  %v20897_v62 = vld [vmem:[#allocation5 + $0x110] sm:$0xff]  ;;  %v20896_v2 = vld [vmem:[#allocation5 + $0x108] sm:$0xff] }
  0x5c   :  { %6807 = vmatpush.bf16.msra.mxu3 %v20890_v19  ;;  %v20906_v59 = vld [vmem:[#allocation5 + $0x158] sm:$0xff]  ;;  %v20905_v63 = vld [vmem:[#allocation5 + $0x150] sm:$0xff]  ;;  %v20904_v3 = vld [vmem:[#allocation5 + $0x148] sm:$0xff] }
  0x5d   :  { %6769 = vmatpush.bf16.msra.mxu0 %v20865_v20  ;;  %v20914_v60 = vld [vmem:[#allocation5 + $0x198] sm:$0xff]  ;;  %v20913_v0 = vld [vmem:[#allocation5 + $0x190] sm:$0xff]  ;;  %v20912_v5 = vld [vmem:[#allocation5 + $0x188] sm:$0xff] }
  0x5e   :  { %6782 = vmatpush.bf16.msra.mxu1 %v20873_v21  ;;  %v20922_v61 = vld [vmem:[#allocation5 + $0x1d8] sm:$0xff]  ;;  %v20921_v1 = vld [vmem:[#allocation5 + $0x1d0] sm:$0xff]  ;;  %v20920_v6 = vld [vmem:[#allocation5 + $0x1c8] sm:$0xff] }
  0x5f   :  { %6795 = vmatpush.bf16.msra.mxu2 %v20881_v23  ;;  %v257_v4 = vld [vmem:[#allocation2 + $0x10] sm:$0xff]  ;;  %v20895_v7 = vld [vmem:[#allocation5 + $0x100] sm:$0xff]  ;;  %v20934_v11 = vld [vmem:[#allocation5 + $0x238] sm:$0xff] }
  0x60   :  { %6808 = vmatpush.bf16.msra.mxu3 %v20889_v24  ;;  %1851 = vst [vmem:[#allocation1] ss:$4 sm:$0xff] %v257_v4  ;;  %v20903_v8 = vld [vmem:[#allocation5 + $0x140] sm:$0xff]  ;;  %v20942_v12 = vld [vmem:[#allocation5 + $0x278] sm:$0xff]  ;;  %v20933_v23 = vld [vmem:[#allocation5 + $0x230] sm:$0xff] }
  0x61   :  { %6770 = vmatpush.bf16.msra.mxu0 %v20864_v25  ;;  %v20911_v9 = vld [vmem:[#allocation5 + $0x180] sm:$0xff]  ;;  %v1849_v13 = vld.sshfl [vmem:[#allocation1 + $0x30] sm:$0xff pattern:$0x73625140]  ;;  %v20950_v17 = vld [vmem:[#allocation5 + $0x2b8] sm:$0xff] }
  0x62   :  { %6783 = vmatpush.bf16.msra.mxu1 %v20872_v26  ;;  %v20919_v10 = vld [vmem:[#allocation5 + $0x1c0] sm:$0xff]  ;;  %v1847_v14 = vld.sshfl [vmem:[#allocation1 + $0x20] sm:$0xff pattern:$0x73625140]  ;;  %v2063_v19 = vpack.c.bf16 %v1849_v13, %v1849_v13  ;;  %v20941_v24 = vld [vmem:[#allocation5 + $0x270] sm:$0xff] }
  0x63   :  { %6796 = vmatpush.bf16.msra.mxu2 %v20880_v27  ;;  %v1850_v15 = vld.sshfl [vmem:[#allocation1 + $0x38] sm:$0xff pattern:$0x73625140]  ;;  %v1848_v16 = vld.sshfl [vmem:[#allocation1 + $0x28] sm:$0xff pattern:$0x73625140]  ;;  %v2061_v20 = vpack.c.bf16 %v1847_v14, %v1847_v14 }
  0x64   :  { %6809 = vmatpush.bf16.msra.mxu3 %v20888_v28  ;;  %v20958_v18 = vld [vmem:[#allocation5 + $0x2f8] sm:$0xff]  ;;  %v2064_v21 = vpack.c.bf16 %v1850_v15, %v1850_v15  ;;  %v2062_v22 = vpack.c.bf16 %v1848_v16, %v1848_v16  ;;  %v20949_v25 = vld [vmem:[#allocation5 + $0x2b0] sm:$0xff]  ;;  %v20932_v27 = vld [vmem:[#allocation5 + $0x228] sm:$0xff] }
  0x65   :  { %6771 = vmatpush.bf16.msra.mxu0 %v20863_v29  ;;  %v20957_v26 = vld [vmem:[#allocation5 + $0x2f0] sm:$0xff]  ;;  %v20940_v28 = vld [vmem:[#allocation5 + $0x268] sm:$0xff]  ;;  %v20930_v35 = vld [vmem:[#allocation5 + $0x218] sm:$0xff] }
  0x66   :  { %6784 = vmatpush.bf16.msra.mxu1 %v20871_v30  ;;  %v20948_v29 = vld [vmem:[#allocation5 + $0x2a8] sm:$0xff]  ;;  %v20938_v36 = vld [vmem:[#allocation5 + $0x258] sm:$0xff]  ;;  %v20945_v41 = vld [vmem:[#allocation5 + $0x290] sm:$0xff] }
  0x67   :  { %6797 = vmatpush.bf16.msra.mxu2 %v20879_v31  ;;  %v20956_v30 = vld [vmem:[#allocation5 + $0x2e8] sm:$0xff]  ;;  %v20931_v31 = vld [vmem:[#allocation5 + $0x220] sm:$0xff]  ;;  %v20946_v37 = vld [vmem:[#allocation5 + $0x298] sm:$0xff] }
  0x68   :  { %6810 = vmatpush.bf16.msra.mxu3 %v20887_v32  ;;  %6772 = vmatmul.bf16.vlgmr.msra.gmra.mxu0 %v2057_v43  ;;  %v20939_v32 = vld [vmem:[#allocation5 + $0x260] sm:$0xff]  ;;  %v20954_v38 = vld [vmem:[#allocation5 + $0x2d8] sm:$0xff]  ;;  %v20928_v43 = vld [vmem:[#allocation5 + $0x208] sm:$0xff] }
  0x69   :  { %6816 = vmatpush.bf16.msrb.mxu0 %v20902_v33  ;;  %6785 = vmatmul.bf16.vlgmr.msra.gmra.mxu1 %v2058_v45  ;;  %v20947_v33 = vld [vmem:[#allocation5 + $0x2a0] sm:$0xff]  ;;  %v258_v45 = vld [vmem:[#allocation2 + $0x18] sm:$0xff]  ;;  %v20964_v4 = vld [vmem:[#allocation5 + $0x328] sm:$0xff] }
  0x6a   :  { %6829 = vmatpush.bf16.msrb.mxu1 %v20910_v34  ;;  %6798 = vmatmul.bf16.vlgmr.msra.gmra.mxu2 %v2059_v42  ;;  %v20955_v34 = vld [vmem:[#allocation5 + $0x2e0] sm:$0xff]  ;;  %v20953_v42 = vld [vmem:[#allocation5 + $0x2d0] sm:$0xff]  ;;  %1852 = vst [vmem:[#allocation1 + $0x20] ss:$4 sm:$0xff] %v258_v45  ;;  %v20970_v13 = vld [vmem:[#allocation5 + $0x358] sm:$0xff] }
  0x6b   :  { %6842 = vmatpush.bf16.msrb.mxu2 %v20918_v39  ;;  %6811 = vmatmul.bf16.vlgmr.msra.gmra.mxu3 %v2060_v44  ;;  %v20929_v39 = vld [vmem:[#allocation5 + $0x210] sm:$0xff]  ;;  %v20936_v44 = vld [vmem:[#allocation5 + $0x248] sm:$0xff]  ;;  %v20978_v14 = vld [vmem:[#allocation5 + $0x398] sm:$0xff] }
  0x6c   :  { %6855 = vmatpush.bf16.msrb.mxu3 %v20926_v40  ;;  %v20937_v40 = vld [vmem:[#allocation5 + $0x250] sm:$0xff]  ;;  %v20986_v15 = vld [vmem:[#allocation5 + $0x3d8] sm:$0xff]  ;;  %v20996_v45 = vld [vmem:[#allocation5 + $0x428] sm:$0xff] }
  0x6d   :  { %6817 = vmatpush.bf16.msrb.mxu0 %v20901_v46  ;;  %v20944_v46 = vld [vmem:[#allocation5 + $0x288] sm:$0xff]  ;;  %v20961_v16 = vld [vmem:[#allocation5 + $0x310] sm:$0xff] }
  0x6e   :  { %6830 = vmatpush.bf16.msrb.mxu1 %v20909_v47  ;;  %v20952_v47 = vld [vmem:[#allocation5 + $0x2c8] sm:$0xff] }
  0x6f   :  { %6843 = vmatpush.bf16.msrb.mxu2 %v20917_v48  ;;  %v20927_v48 = vld [vmem:[#allocation5 + $0x200] sm:$0xff] }
  0x70   :  { %6856 = vmatpush.bf16.msrb.mxu3 %v20925_v49  ;;  %v20935_v49 = vld [vmem:[#allocation5 + $0x240] sm:$0xff] }
  0x71   :  { %6818 = vmatpush.bf16.msrb.mxu0 %v20900_v50  ;;  %v20943_v50 = vld [vmem:[#allocation5 + $0x280] sm:$0xff] }
  0x72   :  { %6831 = vmatpush.bf16.msrb.mxu1 %v20908_v51  ;;  %v20951_v51 = vld [vmem:[#allocation5 + $0x2c0] sm:$0xff] }
  0x73   :  { %6844 = vmatpush.bf16.msrb.mxu2 %v20916_v52  ;;  %v20966_v52 = vld [vmem:[#allocation5 + $0x338] sm:$0xff] }
  0x74   :  { %6857 = vmatpush.bf16.msrb.mxu3 %v20924_v53  ;;  %v20974_v53 = vld [vmem:[#allocation5 + $0x378] sm:$0xff] }
  0x75   :  { %6819 = vmatpush.bf16.msrb.mxu0 %v20899_v54  ;;  %v1853_v54 = vld.sshfl [vmem:[#allocation1] sm:$0xff pattern:$0x73625140] }
  0x76   :  { %6832 = vmatpush.bf16.msrb.mxu1 %v20907_v55  ;;  %v1855_v55 = vld.sshfl [vmem:[#allocation1 + $0x10] sm:$0xff pattern:$0x73625140] }
  0x77   :  { %6845 = vmatpush.bf16.msrb.mxu2 %v20915_v56  ;;  %v1854_v56 = vld.sshfl [vmem:[#allocation1 + $0x8] sm:$0xff pattern:$0x73625140] }
  0x78   :  { %6858 = vmatpush.bf16.msrb.mxu3 %v20923_v57  ;;  %v1856_v57 = vld.sshfl [vmem:[#allocation1 + $0x18] sm:$0xff pattern:$0x73625140] }
  0x79   :  { %6820 = vmatpush.bf16.msrb.mxu0 %v20898_v58  ;;  %v20982_v58 = vld [vmem:[#allocation5 + $0x3b8] sm:$0xff] }
  0x7a   :  { %6833 = vmatpush.bf16.msrb.mxu1 %v20906_v59  ;;  %v20990_v59 = vld [vmem:[#allocation5 + $0x3f8] sm:$0xff] }
  0x7b   :  { %6846 = vmatpush.bf16.msrb.mxu2 %v20914_v60  ;;  %v2065_v60 = vpack.c.bf16 %v1853_v54, %v1853_v54  ;;  %v21002_v54 = vld [vmem:[#allocation5 + $0x458] sm:$0xff] }
  0x7c   :  { %6859 = vmatpush.bf16.msrb.mxu3 %v20922_v61  ;;  %v2067_v61 = vpack.c.bf16 %v1855_v55, %v1855_v55  ;;  %v21010_v55 = vld [vmem:[#allocation5 + $0x498] sm:$0xff] }
  0x7d   :  { %6821 = vmatpush.bf16.msrb.mxu0 %v20897_v62  ;;  %v2066_v62 = vpack.c.bf16 %v1854_v56, %v1854_v56  ;;  %v21018_v56 = vld [vmem:[#allocation5 + $0x4d8] sm:$0xff] }
  0x7e   :  { %6834 = vmatpush.bf16.msrb.mxu1 %v20905_v63  ;;  %v2068_v63 = vpack.c.bf16 %v1856_v57, %v1856_v57  ;;  %v20993_v57 = vld [vmem:[#allocation5 + $0x410] sm:$0xff] }
  0x7f   :  { %6847 = vmatpush.bf16.msrb.mxu2 %v20913_v0  ;;  %v20965_v0 = vld [vmem:[#allocation5 + $0x330] sm:$0xff] }
  0x80   :  { %6860 = vmatpush.bf16.msrb.mxu3 %v20921_v1  ;;  %v20973_v1 = vld [vmem:[#allocation5 + $0x370] sm:$0xff] }
  0x81   :  { %6822 = vmatpush.bf16.msrb.mxu0 %v20896_v2  ;;  %v20981_v2 = vld [vmem:[#allocation5 + $0x3b0] sm:$0xff] }
  0x82   :  { %6835 = vmatpush.bf16.msrb.mxu1 %v20904_v3  ;;  %v20989_v3 = vld [vmem:[#allocation5 + $0x3f0] sm:$0xff] }
  0x83   :  { %6848 = vmatpush.bf16.msrb.mxu2 %v20912_v5  ;;  %v20972_v5 = vld [vmem:[#allocation5 + $0x368] sm:$0xff] }
  0x84   :  { %6861 = vmatpush.bf16.msrb.mxu3 %v20920_v6  ;;  %v20980_v6 = vld [vmem:[#allocation5 + $0x3a8] sm:$0xff] }
  0x85   :  { %6823 = vmatpush.bf16.msrb.mxu0 %v20895_v7  ;;  %v20988_v7 = vld [vmem:[#allocation5 + $0x3e8] sm:$0xff] }
  0x86   :  { %6836 = vmatpush.bf16.msrb.mxu1 %v20903_v8  ;;  %v20963_v8 = vld [vmem:[#allocation5 + $0x320] sm:$0xff] }
  0x87   :  { %6849 = vmatpush.bf16.msrb.mxu2 %v20911_v9  ;;  %v20971_v9 = vld [vmem:[#allocation5 + $0x360] sm:$0xff] }
  0x88   :  { %6862 = vmatpush.bf16.msrb.mxu3 %v20919_v10  ;;  %6824 = vmatmul.bf16.vlgmr.msrb.gmra.mxu0 %v2061_v20  ;;  %v20979_v10 = vld [vmem:[#allocation5 + $0x3a0] sm:$0xff]  ;;  %v20960_v20 = vld [vmem:[#allocation5 + $0x308] sm:$0xff] }
  0x89   :  { %6868 = vmatpush.bf16.msra.mxu0 %v20934_v11  ;;  %6837 = vmatmul.bf16.vlgmr.msrb.gmra.mxu1 %v2062_v22  ;;  %v20987_v11 = vld [vmem:[#allocation5 + $0x3e0] sm:$0xff] }
  0x8a   :  { %6881 = vmatpush.bf16.msra.mxu1 %v20942_v12  ;;  %6850 = vmatmul.bf16.vlgmr.msrb.gmra.mxu2 %v2063_v19  ;;  %v20962_v12 = vld [vmem:[#allocation5 + $0x318] sm:$0xff]  ;;  %v20985_v19 = vld [vmem:[#allocation5 + $0x3d0] sm:$0xff]  ;;  %v259_v22 = vld [vmem:[#allocation2 + $0x20] sm:$0xff] }
  0x8b   :  { %6894 = vmatpush.bf16.msra.mxu2 %v20950_v17  ;;  %6863 = vmatmul.bf16.vlgmr.msrb.gmra.mxu3 %v2064_v21  ;;  %v20969_v17 = vld [vmem:[#allocation5 + $0x350] sm:$0xff]  ;;  %v20968_v21 = vld [vmem:[#allocation5 + $0x348] sm:$0xff]  ;;  %1861 = vst [vmem:[#allocation1] ss:$4 sm:$0xff] %v259_v22 }
  0x8c   :  { %6907 = vmatpush.bf16.msra.mxu3 %v20958_v18  ;;  %v20977_v18 = vld [vmem:[#allocation5 + $0x390] sm:$0xff]  ;;  %v21028_v22 = vld [vmem:[#allocation5 + $0x528] sm:$0xff] }
  0x8d   :  { %6869 = vmatpush.bf16.msra.mxu0 %v20933_v23  ;;  %v20976_v23 = vld [vmem:[#allocation5 + $0x388] sm:$0xff] }
  0x8e   :  { %6882 = vmatpush.bf16.msra.mxu1 %v20941_v24  ;;  %v20984_v24 = vld [vmem:[#allocation5 + $0x3c8] sm:$0xff] }
  0x8f   :  { %6895 = vmatpush.bf16.msra.mxu2 %v20949_v25  ;;  %v20959_v25 = vld [vmem:[#allocation5 + $0x300] sm:$0xff] }
  0x90   :  { %6908 = vmatpush.bf16.msra.mxu3 %v20957_v26  ;;  %v20967_v26 = vld [vmem:[#allocation5 + $0x340] sm:$0xff] }
  0x91   :  { %6870 = vmatpush.bf16.msra.mxu0 %v20932_v27  ;;  %v20975_v27 = vld [vmem:[#allocation5 + $0x380] sm:$0xff] }
  0x92   :  { %6883 = vmatpush.bf16.msra.mxu1 %v20940_v28  ;;  %v20983_v28 = vld [vmem:[#allocation5 + $0x3c0] sm:$0xff] }
  0x93   :  { %6896 = vmatpush.bf16.msra.mxu2 %v20948_v29  ;;  %v20998_v29 = vld [vmem:[#allocation5 + $0x438] sm:$0xff] }
  0x94   :  { %6909 = vmatpush.bf16.msra.mxu3 %v20956_v30  ;;  %v21006_v30 = vld [vmem:[#allocation5 + $0x478] sm:$0xff] }
  0x95   :  { %6871 = vmatpush.bf16.msra.mxu0 %v20931_v31  ;;  %v1857_v31 = vld.sshfl [vmem:[#allocation1 + $0x20] sm:$0xff pattern:$0x73625140] }
  0x96   :  { %6884 = vmatpush.bf16.msra.mxu1 %v20939_v32  ;;  %v1859_v32 = vld.sshfl [vmem:[#allocation1 + $0x30] sm:$0xff pattern:$0x73625140] }
  0x97   :  { %6897 = vmatpush.bf16.msra.mxu2 %v20947_v33  ;;  %v1858_v33 = vld.sshfl [vmem:[#allocation1 + $0x28] sm:$0xff pattern:$0x73625140] }
  0x98   :  { %6910 = vmatpush.bf16.msra.mxu3 %v20955_v34  ;;  %v1860_v34 = vld.sshfl [vmem:[#allocation1 + $0x38] sm:$0xff pattern:$0x73625140] }
  0x99   :  { %6872 = vmatpush.bf16.msra.mxu0 %v20930_v35  ;;  %v21014_v35 = vld [vmem:[#allocation5 + $0x4b8] sm:$0xff] }
  0x9a   :  { %6885 = vmatpush.bf16.msra.mxu1 %v20938_v36  ;;  %v21022_v36 = vld [vmem:[#allocation5 + $0x4f8] sm:$0xff] }
  0x9b   :  { %6898 = vmatpush.bf16.msra.mxu2 %v20946_v37  ;;  %v2069_v37 = vpack.c.bf16 %v1857_v31, %v1857_v31 }
  0x9c   :  { %6911 = vmatpush.bf16.msra.mxu3 %v20954_v38  ;;  %v2071_v38 = vpack.c.bf16 %v1859_v32, %v1859_v32  ;;  %v21043_v32 = vld [vmem:[#allocation5 + $0x5a0] sm:$0xff] }
  0x9d   :  { %6873 = vmatpush.bf16.msra.mxu0 %v20929_v39  ;;  %v2070_v39 = vpack.c.bf16 %v1858_v33, %v1858_v33  ;;  %v21051_v33 = vld [vmem:[#allocation5 + $0x5e0] sm:$0xff] }
  0x9e   :  { %6886 = vmatpush.bf16.msra.mxu1 %v20937_v40  ;;  %v2072_v40 = vpack.c.bf16 %v1860_v34, %v1860_v34 }
  0x9f   :  { %6899 = vmatpush.bf16.msra.mxu2 %v20945_v41  ;;  %v20997_v41 = vld [vmem:[#allocation5 + $0x430] sm:$0xff] }
  0xa0   :  { %6912 = vmatpush.bf16.msra.mxu3 %v20953_v42  ;;  %v21005_v42 = vld [vmem:[#allocation5 + $0x470] sm:$0xff] }
  0xa1   :  { %6874 = vmatpush.bf16.msra.mxu0 %v20928_v43  ;;  %v21013_v43 = vld [vmem:[#allocation5 + $0x4b0] sm:$0xff] }
  0xa2   :  { %6887 = vmatpush.bf16.msra.mxu1 %v20936_v44  ;;  %v21021_v44 = vld [vmem:[#allocation5 + $0x4f0] sm:$0xff] }
  0xa3   :  { %6900 = vmatpush.bf16.msra.mxu2 %v20944_v46  ;;  %v21004_v46 = vld [vmem:[#allocation5 + $0x468] sm:$0xff] }
  0xa4   :  { %6913 = vmatpush.bf16.msra.mxu3 %v20952_v47  ;;  %v21012_v47 = vld [vmem:[#allocation5 + $0x4a8] sm:$0xff] }
  0xa5   :  { %6875 = vmatpush.bf16.msra.mxu0 %v20927_v48  ;;  %v21020_v48 = vld [vmem:[#allocation5 + $0x4e8] sm:$0xff] }
  0xa6   :  { %6888 = vmatpush.bf16.msra.mxu1 %v20935_v49  ;;  %v20995_v49 = vld [vmem:[#allocation5 + $0x420] sm:$0xff] }
  0xa7   :  { %6901 = vmatpush.bf16.msra.mxu2 %v20943_v50  ;;  %v21003_v50 = vld [vmem:[#allocation5 + $0x460] sm:$0xff] }
  0xa8   :  { %6914 = vmatpush.bf16.msra.mxu3 %v20951_v51  ;;  %6876 = vmatmul.bf16.vlgmr.msra.gmra.mxu0 %v2065_v60  ;;  %v21011_v51 = vld [vmem:[#allocation5 + $0x4a0] sm:$0xff]  ;;  %v21017_v60 = vld [vmem:[#allocation5 + $0x4d0] sm:$0xff] }
  0xa9   :  { %6920 = vmatpush.bf16.msrb.mxu0 %v20966_v52  ;;  %6889 = vmatmul.bf16.vlgmr.msra.gmra.mxu1 %v2066_v62  ;;  %v21019_v52 = vld [vmem:[#allocation5 + $0x4e0] sm:$0xff]  ;;  %v21000_v62 = vld [vmem:[#allocation5 + $0x448] sm:$0xff] }
  0xaa   :  { %6933 = vmatpush.bf16.msrb.mxu1 %v20974_v53  ;;  %6902 = vmatmul.bf16.vlgmr.msra.gmra.mxu2 %v2067_v61  ;;  %v20994_v53 = vld [vmem:[#allocation5 + $0x418] sm:$0xff]  ;;  %v20992_v61 = vld [vmem:[#allocation5 + $0x408] sm:$0xff] }
  0xab   :  { %6946 = vmatpush.bf16.msrb.mxu2 %v20982_v58  ;;  %6915 = vmatmul.bf16.vlgmr.msra.gmra.mxu3 %v2068_v63  ;;  %v21001_v58 = vld [vmem:[#allocation5 + $0x450] sm:$0xff]  ;;  %v260_v63 = vld [vmem:[#allocation2 + $0x28] sm:$0xff] }
  0xac   :  { %6959 = vmatpush.bf16.msrb.mxu3 %v20990_v59  ;;  %v21009_v59 = vld [vmem:[#allocation5 + $0x490] sm:$0xff]  ;;  %1862 = vst [vmem:[#allocation1 + $0x20] ss:$4 sm:$0xff] %v260_v63 }
  0xad   :  { %6921 = vmatpush.bf16.msrb.mxu0 %v20965_v0  ;;  %v21008_v0 = vld [vmem:[#allocation5 + $0x488] sm:$0xff] }
  0xae   :  { %6934 = vmatpush.bf16.msrb.mxu1 %v20973_v1  ;;  %v21016_v1 = vld [vmem:[#allocation5 + $0x4c8] sm:$0xff] }
  0xaf   :  { %6947 = vmatpush.bf16.msrb.mxu2 %v20981_v2  ;;  %v20991_v2 = vld [vmem:[#allocation5 + $0x400] sm:$0xff] }
  0xb0   :  { %6960 = vmatpush.bf16.msrb.mxu3 %v20989_v3  ;;  %v20999_v3 = vld [vmem:[#allocation5 + $0x440] sm:$0xff] }
  0xb1   :  { %6922 = vmatpush.bf16.msrb.mxu0 %v20964_v4  ;;  %v21007_v4 = vld [vmem:[#allocation5 + $0x480] sm:$0xff] }
  0xb2   :  { %6935 = vmatpush.bf16.msrb.mxu1 %v20972_v5  ;;  %v21015_v5 = vld [vmem:[#allocation5 + $0x4c0] sm:$0xff] }
  0xb3   :  { %6948 = vmatpush.bf16.msrb.mxu2 %v20980_v6  ;;  %v21030_v6 = vld [vmem:[#allocation5 + $0x538] sm:$0xff]  ;;  %v1869_v63 = vld.sshfl [vmem:[#allocation1 + $0x30] sm:$0xff pattern:$0x73625140] }
  0xb4   :  { %6961 = vmatpush.bf16.msrb.mxu3 %v20988_v7  ;;  %v21038_v7 = vld [vmem:[#allocation5 + $0x578] sm:$0xff] }
  0xb5   :  { %6923 = vmatpush.bf16.msrb.mxu0 %v20963_v8  ;;  %v1863_v8 = vld.sshfl [vmem:[#allocation1] sm:$0xff pattern:$0x73625140] }
  0xb6   :  { %6936 = vmatpush.bf16.msrb.mxu1 %v20971_v9  ;;  %v1865_v9 = vld.sshfl [vmem:[#allocation1 + $0x10] sm:$0xff pattern:$0x73625140] }
  0xb7   :  { %6949 = vmatpush.bf16.msrb.mxu2 %v20979_v10  ;;  %v1864_v10 = vld.sshfl [vmem:[#allocation1 + $0x8] sm:$0xff pattern:$0x73625140] }
  0xb8   :  { %6962 = vmatpush.bf16.msrb.mxu3 %v20987_v11  ;;  %v1866_v11 = vld.sshfl [vmem:[#allocation1 + $0x18] sm:$0xff pattern:$0x73625140] }
  0xb9   :  { %6924 = vmatpush.bf16.msrb.mxu0 %v20962_v12  ;;  %v21046_v12 = vld [vmem:[#allocation5 + $0x5b8] sm:$0xff] }
  0xba   :  { %6937 = vmatpush.bf16.msrb.mxu1 %v20970_v13  ;;  %v21054_v13 = vld [vmem:[#allocation5 + $0x5f8] sm:$0xff] }
  0xbb   :  { %6950 = vmatpush.bf16.msrb.mxu2 %v20978_v14  ;;  %v2073_v14 = vpack.c.bf16 %v1863_v8, %v1863_v8  ;;  %v21061_v8 = vld [vmem:[#allocation5 + $0x630] sm:$0xff] }
  0xbc   :  { %6963 = vmatpush.bf16.msrb.mxu3 %v20986_v15  ;;  %v2075_v15 = vpack.c.bf16 %v1865_v9, %v1865_v9  ;;  %v21069_v9 = vld [vmem:[#allocation5 + $0x670] sm:$0xff] }
  0xbd   :  { %6925 = vmatpush.bf16.msrb.mxu0 %v20961_v16  ;;  %v2074_v16 = vpack.c.bf16 %v1864_v10, %v1864_v10  ;;  %v21077_v10 = vld [vmem:[#allocation5 + $0x6b0] sm:$0xff] }
  0xbe   :  { %6938 = vmatpush.bf16.msrb.mxu1 %v20969_v17  ;;  %v2076_v17 = vpack.c.bf16 %v1866_v11, %v1866_v11  ;;  %v21085_v11 = vld [vmem:[#allocation5 + $0x6f0] sm:$0xff] }
  0xbf   :  { %6951 = vmatpush.bf16.msrb.mxu2 %v20977_v18  ;;  %v21029_v18 = vld [vmem:[#allocation5 + $0x530] sm:$0xff] }
  0xc0   :  { %6964 = vmatpush.bf16.msrb.mxu3 %v20985_v19  ;;  %v21037_v19 = vld [vmem:[#allocation5 + $0x570] sm:$0xff] }
  0xc1   :  { %6926 = vmatpush.bf16.msrb.mxu0 %v20960_v20  ;;  %v21045_v20 = vld [vmem:[#allocation5 + $0x5b0] sm:$0xff] }
  0xc2   :  { %6939 = vmatpush.bf16.msrb.mxu1 %v20968_v21  ;;  %v21053_v21 = vld [vmem:[#allocation5 + $0x5f0] sm:$0xff] }
  0xc3   :  { %6952 = vmatpush.bf16.msrb.mxu2 %v20976_v23  ;;  %v21036_v23 = vld [vmem:[#allocation5 + $0x568] sm:$0xff] }
  0xc4   :  { %6965 = vmatpush.bf16.msrb.mxu3 %v20984_v24  ;;  %v22420_v24 = vld [vmem:[#allocation7] ss:$0 sm:$0xff] }
  0xc5   :  { %6927 = vmatpush.bf16.msrb.mxu0 %v20959_v25  ;;  %v21044_v25 = vld [vmem:[#allocation5 + $0x5a8] sm:$0xff] }
  0xc6   :  { %6940 = vmatpush.bf16.msrb.mxu1 %v20967_v26  ;;  %v21052_v26 = vld [vmem:[#allocation5 + $0x5e8] sm:$0xff] }
  0xc7   :  { %6953 = vmatpush.bf16.msrb.mxu2 %v20975_v27 }
  0xc8   :  { %6966 = vmatpush.bf16.msrb.mxu3 %v20983_v28  ;;  %6928 = vmatmul.bf16.vlgmr.msrb.gmra.mxu0 %v2069_v37  ;;  %v21027_v28 = vld [vmem:[#allocation5 + $0x520] sm:$0xff]  ;;  %v21042_v37 = vld [vmem:[#allocation5 + $0x598] sm:$0xff] }
  0xc9   :  { %6972 = vmatpush.bf16.msra.mxu0 %v20998_v29  ;;  %6941 = vmatmul.bf16.vlgmr.msrb.gmra.mxu1 %v2070_v39  ;;  %v21035_v29 = vld [vmem:[#allocation5 + $0x560] sm:$0xff] }
  0xca   :  { %6985 = vmatpush.bf16.msra.mxu1 %v21006_v30  ;;  %6954 = vmatmul.bf16.vlgmr.msrb.gmra.mxu2 %v2071_v38  ;;  %v21050_v38 = vld [vmem:[#allocation5 + $0x5d8] sm:$0xff] }
  0xcb   :  { %6998 = vmatpush.bf16.msra.mxu2 %v21014_v35  ;;  %6967 = vmatmul.bf16.vlgmr.msrb.gmra.mxu3 %v2072_v40  ;;  %v21026_v35 = vld [vmem:[#allocation5 + $0x518] sm:$0xff] }
  0xcc   :  { %7011 = vmatpush.bf16.msra.mxu3 %v21022_v36  ;;  %v21034_v36 = vld [vmem:[#allocation5 + $0x558] sm:$0xff] }
  0xcd   :  { %6973 = vmatpush.bf16.msra.mxu0 %v20997_v41 }
  0xce   :  { %6986 = vmatpush.bf16.msra.mxu1 %v21005_v42 }
  0xcf   :  { %6999 = vmatpush.bf16.msra.mxu2 %v21013_v43  ;;  %v21025_v43 = vld [vmem:[#allocation5 + $0x510] sm:$0xff] }
  0xd0   :  { %7012 = vmatpush.bf16.msra.mxu3 %v21021_v44  ;;  %v21033_v44 = vld [vmem:[#allocation5 + $0x550] sm:$0xff] }
  0xd1   :  { %6974 = vmatpush.bf16.msra.mxu0 %v20996_v45 }
  0xd2   :  { %6987 = vmatpush.bf16.msra.mxu1 %v21004_v46 }
  0xd3   :  { %7000 = vmatpush.bf16.msra.mxu2 %v21012_v47  ;;  %v21041_v47 = vld [vmem:[#allocation5 + $0x590] sm:$0xff] }
  0xd4   :  { %7013 = vmatpush.bf16.msra.mxu3 %v21020_v48  ;;  %v21049_v48 = vld [vmem:[#allocation5 + $0x5d0] sm:$0xff] }
  0xd5   :  { %6975 = vmatpush.bf16.msra.mxu0 %v20995_v49  ;;  %v21024_v49 = vld [vmem:[#allocation5 + $0x508] sm:$0xff] }
  0xd6   :  { %6988 = vmatpush.bf16.msra.mxu1 %v21003_v50  ;;  %v21032_v50 = vld [vmem:[#allocation5 + $0x548] sm:$0xff] }
  0xd7   :  { %7001 = vmatpush.bf16.msra.mxu2 %v21011_v51  ;;  %v261_v51 = vld [vmem:[#allocation2 + $0x30] sm:$0xff] }
  0xd8   :  { %7014 = vmatpush.bf16.msra.mxu3 %v21019_v52  ;;  %v21040_v52 = vld [vmem:[#allocation5 + $0x588] sm:$0xff]  ;;  %1871 = vst [vmem:[#allocation1] ss:$4 sm:$0xff] %v261_v51 }
  0xd9   :  { %6976 = vmatpush.bf16.msra.mxu0 %v20994_v53  ;;  %v21048_v53 = vld [vmem:[#allocation5 + $0x5c8] sm:$0xff] }
  0xda   :  { %6989 = vmatpush.bf16.msra.mxu1 %v21002_v54 }
  0xdb   :  { %7002 = vmatpush.bf16.msra.mxu2 %v21010_v55 }
  0xdc   :  { %7015 = vmatpush.bf16.msra.mxu3 %v21018_v56  ;;  %v21023_v56 = vld [vmem:[#allocation5 + $0x500] sm:$0xff] }
  0xdd   :  { %6977 = vmatpush.bf16.msra.mxu0 %v20993_v57  ;;  %v21031_v57 = vld [vmem:[#allocation5 + $0x540] sm:$0xff] }
  0xde   :  { %6990 = vmatpush.bf16.msra.mxu1 %v21001_v58  ;;  %v21039_v58 = vld [vmem:[#allocation5 + $0x580] sm:$0xff] }
  0xdf   :  { %7003 = vmatpush.bf16.msra.mxu2 %v21009_v59  ;;  %v21047_v59 = vld [vmem:[#allocation5 + $0x5c0] sm:$0xff]  ;;  %v1873_v51 = vld.sshfl [vmem:[#allocation1] sm:$0xff pattern:$0x73625140] }
  0xe0   :  { %7016 = vmatpush.bf16.msra.mxu3 %v21017_v60  ;;  %v21062_v60 = vld [vmem:[#allocation5 + $0x638] sm:$0xff] }
  0xe1   :  { %6978 = vmatpush.bf16.msra.mxu0 %v20992_v61  ;;  %v21070_v61 = vld [vmem:[#allocation5 + $0x678] sm:$0xff] }
  0xe2   :  { %6991 = vmatpush.bf16.msra.mxu1 %v21000_v62  ;;  %v1867_v62 = vld.sshfl [vmem:[#allocation1 + $0x20] sm:$0xff pattern:$0x73625140] }
  0xe3   :  { %7004 = vmatpush.bf16.msra.mxu2 %v21008_v0  ;;  %v1868_v0 = vld.sshfl [vmem:[#allocation1 + $0x28] sm:$0xff pattern:$0x73625140] }
  0xe4   :  { %7017 = vmatpush.bf16.msra.mxu3 %v21016_v1  ;;  %v1870_v1 = vld.sshfl [vmem:[#allocation1 + $0x38] sm:$0xff pattern:$0x73625140] }
  0xe5   :  { %6979 = vmatpush.bf16.msra.mxu0 %v20991_v2  ;;  %v6773_v27 = vpop.f32.mrf.mxu0  ;;  %v21078_v2 = vld [vmem:[#allocation5 + $0x6b8] sm:$0xff] }
  0xe6   :  { %6992 = vmatpush.bf16.msra.mxu1 %v20999_v3  ;;  %v6774_v30 = vadd.f32 %v22420_v24, %v6773_v27  ;;  %v6786_v31 = vpop.f32.mrf.mxu1  ;;  %v21086_v3 = vld [vmem:[#allocation5 + $0x6f8] sm:$0xff] }
  0xe7   :  { %7005 = vmatpush.bf16.msra.mxu2 %v21007_v4  ;;  %v2077_v4 = vpack.c.bf16 %v1867_v62, %v1867_v62  ;;  %v21058_v24 = vld [vmem:[#allocation5 + $0x618] sm:$0xff]  ;;  %v21101_v62 = vld [vmem:[#allocation5 + $0x770] sm:$0xff] }
  0xe8   :  { %7018 = vmatpush.bf16.msra.mxu3 %v21015_v5  ;;  %6980 = vmatmul.bf16.vlgmr.msra.gmra.mxu0 %v2073_v14  ;;  %v6787_v34 = vadd.f32 %v6786_v31, %v6774_v30  ;;  %v2079_v5 = vpack.c.bf16 %v1869_v63, %v1869_v63  ;;  %v21076_v14 = vld [vmem:[#allocation5 + $0x6a8] sm:$0xff]  ;;  %v21082_v27 = vld [vmem:[#allocation5 + $0x6d8] sm:$0xff]  ;;  %v21109_v63 = vld [vmem:[#allocation5 + $0x7b0] sm:$0xff] }
  0xe9   :  { %7024 = vmatpush.bf16.msrb.mxu0 %v21030_v6  ;;  %6993 = vmatmul.bf16.vlgmr.msra.gmra.mxu1 %v2074_v16  ;;  %v2078_v6 = vpack.c.bf16 %v1868_v0, %v1868_v0  ;;  %v21117_v0 = vld [vmem:[#allocation5 + $0x7f0] sm:$0xff] }
  0xea   :  { %7037 = vmatpush.bf16.msrb.mxu1 %v21038_v7  ;;  %7006 = vmatmul.bf16.vlgmr.msra.gmra.mxu2 %v2075_v15  ;;  %v2080_v7 = vpack.c.bf16 %v1870_v1, %v1870_v1  ;;  %v21084_v15 = vld [vmem:[#allocation5 + $0x6e8] sm:$0xff] }
  0xeb   :  { %7050 = vmatpush.bf16.msrb.mxu2 %v21046_v12  ;;  %7019 = vmatmul.bf16.vlgmr.msra.gmra.mxu3 %v2076_v17  ;;  %v21060_v12 = vld [vmem:[#allocation5 + $0x628] sm:$0xff]  ;;  %v21059_v17 = vld [vmem:[#allocation5 + $0x620] sm:$0xff] }
  0xec   :  { %7063 = vmatpush.bf16.msrb.mxu3 %v21054_v13  ;;  %v21068_v13 = vld [vmem:[#allocation5 + $0x668] sm:$0xff] }
  0xed   :  { %7025 = vmatpush.bf16.msrb.mxu0 %v21029_v18  ;;  %v6799_v39 = vpop.f32.mrf.mxu2  ;;  %v6775_v42 = vpop.f32.mrf.mxu0  ;;  %v21067_v18 = vld [vmem:[#allocation5 + $0x660] sm:$0xff]  ;;  %v21092_v1 = vld [vmem:[#allocation5 + $0x728] sm:$0xff] }
  0xee   :  { %7038 = vmatpush.bf16.msrb.mxu1 %v21037_v19  ;;  %v6800_v40 = vadd.f32 %v6799_v39, %v6787_v34  ;;  %v6812_v41 = vpop.f32.mrf.mxu3  ;;  %v6788_v46 = vpop.f32.mrf.mxu1  ;;  %v21064_v39 = vld [vmem:[#allocation5 + $0x648] sm:$0xff] }
  0xef   :  { %7051 = vmatpush.bf16.msrb.mxu2 %v21045_v20  ;;  %v21080_v42 = vld [vmem:[#allocation5 + $0x6c8] sm:$0xff]  ;;  %v21063_v46 = vld [vmem:[#allocation5 + $0x640] sm:$0xff] }
  0xf0   :  { %7064 = vmatpush.bf16.msrb.mxu3 %v21053_v21  ;;  %v23150_v45 = vadd.f32 %v6812_v41, %v6800_v40  ;;  %v21075_v21 = vld [vmem:[#allocation5 + $0x6a0] sm:$0xff]  ;;  %v262_v40 = vld [vmem:[#allocation2 + $0x38] sm:$0xff]  ;;  %v21072_v41 = vld [vmem:[#allocation5 + $0x688] sm:$0xff] }
  0xf1   :  { %7026 = vmatpush.bf16.msrb.mxu0 %v21028_v22  ;;  %v21083_v22 = vld [vmem:[#allocation5 + $0x6e0] sm:$0xff]  ;;  %1872 = vst [vmem:[#allocation1 + $0x20] ss:$4 sm:$0xff] %v262_v40 }
  0xf2   :  { %7039 = vmatpush.bf16.msrb.mxu1 %v21036_v23 }
  0xf3   :  { %7052 = vmatpush.bf16.msrb.mxu2 %v21044_v25  ;;  %v21066_v25 = vld [vmem:[#allocation5 + $0x658] sm:$0xff] }
  0xf4   :  { %7065 = vmatpush.bf16.msrb.mxu3 %v21052_v26  ;;  %v21074_v26 = vld [vmem:[#allocation5 + $0x698] sm:$0xff] }
  0xf5   :  { %7027 = vmatpush.bf16.msrb.mxu0 %v21027_v28  ;;  %v6801_v54 = vpop.f32.mrf.mxu2 }
  0xf6   :  { %7040 = vmatpush.bf16.msrb.mxu1 %v21035_v29  ;;  %v6814_v55 = vpop.f32.mrf.mxu3  ;;  %v1876_v54 = vld.sshfl [vmem:[#allocation1 + $0x18] sm:$0xff pattern:$0x73625140] }
  0xf7   :  { %7053 = vmatpush.bf16.msrb.mxu2 %v21043_v32  ;;  %v21057_v32 = vld [vmem:[#allocation5 + $0x610] sm:$0xff]  ;;  %v21110_v55 = vld [vmem:[#allocation5 + $0x7b8] sm:$0xff] }
  0xf8   :  { %7066 = vmatpush.bf16.msrb.mxu3 %v21051_v33  ;;  %v21065_v33 = vld [vmem:[#allocation5 + $0x650] sm:$0xff]  ;;  %v1877_v40 = vld.sshfl [vmem:[#allocation1 + $0x20] sm:$0xff pattern:$0x73625140] }
  0xf9   :  { %7028 = vmatpush.bf16.msrb.mxu0 %v21026_v35 }
  0xfa   :  { %7041 = vmatpush.bf16.msrb.mxu1 %v21034_v36  ;;  %v21073_v36 = vld [vmem:[#allocation5 + $0x690] sm:$0xff] }
  0xfb   :  { %7054 = vmatpush.bf16.msrb.mxu2 %v21042_v37  ;;  %v21081_v37 = vld [vmem:[#allocation5 + $0x6d0] sm:$0xff] }
  0xfc   :  { %7067 = vmatpush.bf16.msrb.mxu3 %v21050_v38  ;;  %v21056_v38 = vld [vmem:[#allocation5 + $0x608] sm:$0xff] }
  0xfd   :  { %7029 = vmatpush.bf16.msrb.mxu0 %v21025_v43 }
  0xfe   :  { %7042 = vmatpush.bf16.msrb.mxu1 %v21033_v44 }
  0xff   :  { %7055 = vmatpush.bf16.msrb.mxu2 %v21041_v47  ;;  %v21071_v47 = vld [vmem:[#allocation5 + $0x680] sm:$0xff] }
 0x100   :  { %7068 = vmatpush.bf16.msrb.mxu3 %v21049_v48  ;;  %v21079_v48 = vld [vmem:[#allocation5 + $0x6c0] sm:$0xff] }
 0x101   :  { %7030 = vmatpush.bf16.msrb.mxu0 %v21024_v49  ;;  %v21094_v49 = vld [vmem:[#allocation5 + $0x738] sm:$0xff] }
 0x102   :  { %7043 = vmatpush.bf16.msrb.mxu1 %v21032_v50  ;;  %v21102_v50 = vld [vmem:[#allocation5 + $0x778] sm:$0xff] }
 0x103   :  { %7056 = vmatpush.bf16.msrb.mxu2 %v21040_v52  ;;  %v1875_v52 = vld.sshfl [vmem:[#allocation1 + $0x10] sm:$0xff pattern:$0x73625140] }
 0x104   :  { %7069 = vmatpush.bf16.msrb.mxu3 %v21048_v53  ;;  %v1874_v53 = vld.sshfl [vmem:[#allocation1 + $0x8] sm:$0xff pattern:$0x73625140] }
 0x105   :  { %7031 = vmatpush.bf16.msrb.mxu0 %v21023_v56  ;;  %v6825_v16 = vpop.f32.mrf.mxu0  ;;  %v21118_v56 = vld [vmem:[#allocation5 + $0x7f8] sm:$0xff] }
 0x106   :  { %7044 = vmatpush.bf16.msrb.mxu1 %v21031_v57  ;;  %v6826_v19 = vadd.f32 %v6825_v16, %v23150_v45  ;;  %v6838_v20 = vpop.f32.mrf.mxu1  ;;  %v21055_v45 = vld [vmem:[#allocation5 + $0x600] sm:$0xff]  ;;  %v2081_v57 = vpack.c.bf16 %v1873_v51, %v1873_v51  ;;  %v21114_v16 = vld [vmem:[#allocation5 + $0x7d8] sm:$0xff]  ;;  %v21133_v51 = vld [vmem:[#allocation5 + $0x870] sm:$0xff] }
 0x107   :  { %7057 = vmatpush.bf16.msrb.mxu2 %v21039_v58  ;;  %v2083_v58 = vpack.c.bf16 %v1875_v52, %v1875_v52  ;;  %v21141_v52 = vld [vmem:[#allocation5 + $0x8b0] sm:$0xff] }
 0x108   :  { %7070 = vmatpush.bf16.msrb.mxu3 %v21047_v59  ;;  %7032 = vmatmul.bf16.vlgmr.msrb.gmra.mxu0 %v2077_v4  ;;  %v6839_v23 = vadd.f32 %v6838_v20, %v6826_v19  ;;  %v2082_v59 = vpack.c.bf16 %v1874_v53, %v1874_v53  ;;  %v21116_v4 = vld [vmem:[#allocation5 + $0x7e8] sm:$0xff]  ;;  %v21149_v53 = vld [vmem:[#allocation5 + $0x8f0] sm:$0xff] }
 0x109   :  { %7076 = vmatpush.bf16.msra.mxu0 %v21062_v60  ;;  %7045 = vmatmul.bf16.vlgmr.msrb.gmra.mxu1 %v2078_v6  ;;  %v2084_v60 = vpack.c.bf16 %v1876_v54, %v1876_v54  ;;  %v21124_v54 = vld [vmem:[#allocation5 + $0x828] sm:$0xff] }
 0x10a   :  { %7089 = vmatpush.bf16.msra.mxu1 %v21070_v61  ;;  %7058 = vmatmul.bf16.vlgmr.msrb.gmra.mxu2 %v2079_v5  ;;  %v21093_v61 = vld [vmem:[#allocation5 + $0x730] sm:$0xff] }
 0x10b   :  { %7102 = vmatpush.bf16.msra.mxu2 %v21078_v2  ;;  %7071 = vmatmul.bf16.vlgmr.msrb.gmra.mxu3 %v2080_v7  ;;  %v21100_v2 = vld [vmem:[#allocation5 + $0x768] sm:$0xff]  ;;  %v21091_v7 = vld [vmem:[#allocation5 + $0x720] sm:$0xff] }
 0x10c   :  { %7115 = vmatpush.bf16.msra.mxu3 %v21086_v3  ;;  %v21108_v3 = vld [vmem:[#allocation5 + $0x7a8] sm:$0xff] }
 0x10d   :  { %7077 = vmatpush.bf16.msra.mxu0 %v21061_v8  ;;  %v6851_v28 = vpop.f32.mrf.mxu2  ;;  %v6827_v31 = vpop.f32.mrf.mxu0  ;;  %v21099_v8 = vld [vmem:[#allocation5 + $0x760] sm:$0xff] }
 0x10e   :  { %7090 = vmatpush.bf16.msra.mxu1 %v21069_v9  ;;  %v6852_v29 = vadd.f32 %v6851_v28, %v6839_v23  ;;  %v6864_v30 = vpop.f32.mrf.mxu3  ;;  %v6840_v35 = vpop.f32.mrf.mxu1  ;;  %v21097_v23 = vld [vmem:[#allocation5 + $0x750] sm:$0xff]  ;;  %v21096_v28 = vld [vmem:[#allocation5 + $0x748] sm:$0xff] }
 0x10f   :  { %7103 = vmatpush.bf16.msra.mxu2 %v21077_v10  ;;  %v21107_v10 = vld [vmem:[#allocation5 + $0x7a0] sm:$0xff]  ;;  %v21112_v31 = vld [vmem:[#allocation5 + $0x7c8] sm:$0xff] }
 0x110   :  { %7116 = vmatpush.bf16.msra.mxu3 %v21085_v11  ;;  %v23153_v34 = vadd.f32 %v6864_v30, %v6852_v29  ;;  %v21115_v11 = vld [vmem:[#allocation5 + $0x7e0] sm:$0xff]  ;;  %v21104_v30 = vld [vmem:[#allocation5 + $0x788] sm:$0xff] }
 0x111   :  { %7078 = vmatpush.bf16.msra.mxu0 %v21060_v12  ;;  %v263_v29 = vld [vmem:[#allocation2 + $0x40] sm:$0xff] }
 0x112   :  { %7091 = vmatpush.bf16.msra.mxu1 %v21068_v13  ;;  %v21090_v13 = vld [vmem:[#allocation5 + $0x718] sm:$0xff]  ;;  %1881 = vst [vmem:[#allocation1] ss:$4 sm:$0xff] %v263_v29  ;;  %v21095_v35 = vld [vmem:[#allocation5 + $0x740] sm:$0xff] }
 0x113   :  { %7104 = vmatpush.bf16.msra.mxu2 %v21076_v14  ;;  %v21098_v14 = vld [vmem:[#allocation5 + $0x758] sm:$0xff] }
 0x114   :  { %7117 = vmatpush.bf16.msra.mxu3 %v21084_v15  ;;  %v21106_v15 = vld [vmem:[#allocation5 + $0x798] sm:$0xff] }
 0x115   :  { %7079 = vmatpush.bf16.msra.mxu0 %v21059_v17  ;;  %v6853_v43 = vpop.f32.mrf.mxu2 }
 0x116   :  { %7092 = vmatpush.bf16.msra.mxu1 %v21067_v18  ;;  %v6866_v44 = vpop.f32.mrf.mxu3  ;;  %v1880_v43 = vld.sshfl [vmem:[#allocation1 + $0x38] sm:$0xff pattern:$0x73625140] }
 0x117   :  { %7105 = vmatpush.bf16.msra.mxu2 %v21075_v21  ;;  %v21142_v44 = vld [vmem:[#allocation5 + $0x8b8] sm:$0xff] }
 0x118   :  { %7118 = vmatpush.bf16.msra.mxu3 %v21083_v22  ;;  %v21089_v22 = vld [vmem:[#allocation5 + $0x710] sm:$0xff] }
 0x119   :  { %7080 = vmatpush.bf16.msra.mxu0 %v21058_v24  ;;  %v1883_v29 = vld.sshfl [vmem:[#allocation1] sm:$0xff pattern:$0x73625140] }
 0x11a   :  { %7093 = vmatpush.bf16.msra.mxu1 %v21066_v25  ;;  %v21105_v25 = vld [vmem:[#allocation5 + $0x790] sm:$0xff] }
 0x11b   :  { %7106 = vmatpush.bf16.msra.mxu2 %v21074_v26  ;;  %v21113_v26 = vld [vmem:[#allocation5 + $0x7d0] sm:$0xff] }
 0x11c   :  { %7119 = vmatpush.bf16.msra.mxu3 %v21082_v27  ;;  %v21088_v27 = vld [vmem:[#allocation5 + $0x708] sm:$0xff] }
 0x11d   :  { %7081 = vmatpush.bf16.msra.mxu0 %v21057_v32 }
 0x11e   :  { %7094 = vmatpush.bf16.msra.mxu1 %v21065_v33 }
 0x11f   :  { %7107 = vmatpush.bf16.msra.mxu2 %v21073_v36  ;;  %v21103_v36 = vld [vmem:[#allocation5 + $0x780] sm:$0xff] }
 0x120   :  { %7120 = vmatpush.bf16.msra.mxu3 %v21081_v37  ;;  %v21111_v37 = vld [vmem:[#allocation5 + $0x7c0] sm:$0xff] }
 0x121   :  { %7082 = vmatpush.bf16.msra.mxu0 %v21056_v38  ;;  %v21126_v38 = vld [vmem:[#allocation5 + $0x838] sm:$0xff] }
 0x122   :  { %7095 = vmatpush.bf16.msra.mxu1 %v21064_v39  ;;  %v21134_v39 = vld [vmem:[#allocation5 + $0x878] sm:$0xff] }
 0x123   :  { %7108 = vmatpush.bf16.msra.mxu2 %v21072_v41  ;;  %v1879_v41 = vld.sshfl [vmem:[#allocation1 + $0x30] sm:$0xff pattern:$0x73625140] }
 0x124   :  { %7121 = vmatpush.bf16.msra.mxu3 %v21080_v42  ;;  %v1878_v42 = vld.sshfl [vmem:[#allocation1 + $0x28] sm:$0xff pattern:$0x73625140] }
 0x125   :  { %7083 = vmatpush.bf16.msra.mxu0 %v21055_v45  ;;  %v6877_v5 = vpop.f32.mrf.mxu0  ;;  %v21150_v45 = vld [vmem:[#allocation5 + $0x8f8] sm:$0xff] }
 0x126   :  { %7096 = vmatpush.bf16.msra.mxu1 %v21063_v46  ;;  %v6878_v6 = vadd.f32 %v6877_v5, %v23153_v34  ;;  %v6890_v9 = vpop.f32.mrf.mxu1  ;;  %v21087_v34 = vld [vmem:[#allocation5 + $0x700] sm:$0xff]  ;;  %v2085_v46 = vpack.c.bf16 %v1877_v40, %v1877_v40  ;;  %v21146_v5 = vld [vmem:[#allocation5 + $0x8d8] sm:$0xff]  ;;  %v21165_v40 = vld [vmem:[#allocation5 + $0x970] sm:$0xff] }
 0x127   :  { %7109 = vmatpush.bf16.msra.mxu2 %v21071_v47  ;;  %v2087_v47 = vpack.c.bf16 %v1879_v41, %v1879_v41  ;;  %v21173_v41 = vld [vmem:[#allocation5 + $0x9b0] sm:$0xff] }
 0x128   :  { %7122 = vmatpush.bf16.msra.mxu3 %v21079_v48  ;;  %7084 = vmatmul.bf16.vlgmr.msra.gmra.mxu0 %v2081_v57  ;;  %v6891_v12 = vadd.f32 %v6890_v9, %v6878_v6  ;;  %v2086_v48 = vpack.c.bf16 %v1878_v42, %v1878_v42  ;;  %v21148_v57 = vld [vmem:[#allocation5 + $0x8e8] sm:$0xff]  ;;  %v21181_v42 = vld [vmem:[#allocation5 + $0x9f0] sm:$0xff] }
 0x129   :  { %7128 = vmatpush.bf16.msrb.mxu0 %v21094_v49  ;;  %7097 = vmatmul.bf16.vlgmr.msra.gmra.mxu1 %v2082_v59  ;;  %v2088_v49 = vpack.c.bf16 %v1880_v43, %v1880_v43  ;;  %v21156_v43 = vld [vmem:[#allocation5 + $0x928] sm:$0xff] }
 0x12a   :  { %7141 = vmatpush.bf16.msrb.mxu1 %v21102_v50  ;;  %7110 = vmatmul.bf16.vlgmr.msra.gmra.mxu2 %v2083_v58  ;;  %v21125_v50 = vld [vmem:[#allocation5 + $0x830] sm:$0xff] }
 0x12b   :  { %7154 = vmatpush.bf16.msrb.mxu2 %v21110_v55  ;;  %7123 = vmatmul.bf16.vlgmr.msra.gmra.mxu3 %v2084_v60  ;;  %v21132_v55 = vld [vmem:[#allocation5 + $0x868] sm:$0xff]  ;;  %v21123_v60 = vld [vmem:[#allocation5 + $0x820] sm:$0xff] }
 0x12c   :  { %7167 = vmatpush.bf16.msrb.mxu3 %v21118_v56  ;;  %v21140_v56 = vld [vmem:[#allocation5 + $0x8a8] sm:$0xff] }
 0x12d   :  { %7129 = vmatpush.bf16.msrb.mxu0 %v21093_v61  ;;  %v6903_v17 = vpop.f32.mrf.mxu2  ;;  %v6879_v20 = vpop.f32.mrf.mxu0  ;;  %v21131_v61 = vld [vmem:[#allocation5 + $0x860] sm:$0xff] }
 0x12e   :  { %7142 = vmatpush.bf16.msrb.mxu1 %v21101_v62  ;;  %v6904_v18 = vadd.f32 %v6903_v17, %v6891_v12  ;;  %v6916_v19 = vpop.f32.mrf.mxu3  ;;  %v6892_v24 = vpop.f32.mrf.mxu1  ;;  %v21129_v12 = vld [vmem:[#allocation5 + $0x850] sm:$0xff]  ;;  %v21128_v17 = vld [vmem:[#allocation5 + $0x848] sm:$0xff] }
 0x12f   :  { %7155 = vmatpush.bf16.msrb.mxu2 %v21109_v63  ;;  %v21139_v63 = vld [vmem:[#allocation5 + $0x8a0] sm:$0xff]  ;;  %v21144_v20 = vld [vmem:[#allocation5 + $0x8c8] sm:$0xff] }
 0x130   :  { %7168 = vmatpush.bf16.msrb.mxu3 %v21117_v0  ;;  %v23156_v21 = vadd.f32 %v6916_v19, %v6904_v18  ;;  %v21147_v0 = vld [vmem:[#allocation5 + $0x8e0] sm:$0xff]  ;;  %v264_v18 = vld [vmem:[#allocation2 + $0x48] sm:$0xff] }
 0x131   :  { %7130 = vmatpush.bf16.msrb.mxu0 %v21092_v1  ;;  %v21136_v19 = vld [vmem:[#allocation5 + $0x888] sm:$0xff]  ;;  %1882 = vst [vmem:[#allocation1 + $0x20] ss:$4 sm:$0xff] %v264_v18  ;;  %v21127_v24 = vld [vmem:[#allocation5 + $0x840] sm:$0xff] }
 0x132   :  { %7143 = vmatpush.bf16.msrb.mxu1 %v21100_v2  ;;  %v21122_v2 = vld [vmem:[#allocation5 + $0x818] sm:$0xff] }
 0x133   :  { %7156 = vmatpush.bf16.msrb.mxu2 %v21108_v3  ;;  %v21130_v3 = vld [vmem:[#allocation5 + $0x858] sm:$0xff] }
 0x134   :  { %7169 = vmatpush.bf16.msrb.mxu3 %v21116_v4  ;;  %v21138_v4 = vld [vmem:[#allocation5 + $0x898] sm:$0xff] }
 0x135   :  { %7131 = vmatpush.bf16.msrb.mxu0 %v21091_v7  ;;  %v6905_v32 = vpop.f32.mrf.mxu2 }
 0x136   :  { %7144 = vmatpush.bf16.msrb.mxu1 %v21099_v8  ;;  %v6918_v33 = vpop.f32.mrf.mxu3  ;;  %v1886_v32 = vld.sshfl [vmem:[#allocation1 + $0x18] sm:$0xff pattern:$0x73625140] }
 0x137   :  { %7157 = vmatpush.bf16.msrb.mxu2 %v21107_v10  ;;  %v21174_v33 = vld [vmem:[#allocation5 + $0x9b8] sm:$0xff] }
 0x138   :  { %7170 = vmatpush.bf16.msrb.mxu3 %v21115_v11  ;;  %v21121_v11 = vld [vmem:[#allocation5 + $0x810] sm:$0xff]  ;;  %v1887_v18 = vld.sshfl [vmem:[#allocation1 + $0x20] sm:$0xff pattern:$0x73625140] }
 0x139   :  { %7132 = vmatpush.bf16.msrb.mxu0 %v21090_v13 }
 0x13a   :  { %7145 = vmatpush.bf16.msrb.mxu1 %v21098_v14  ;;  %v21137_v14 = vld [vmem:[#allocation5 + $0x890] sm:$0xff] }
 0x13b   :  { %7158 = vmatpush.bf16.msrb.mxu2 %v21106_v15  ;;  %v21145_v15 = vld [vmem:[#allocation5 + $0x8d0] sm:$0xff] }
 0x13c   :  { %7171 = vmatpush.bf16.msrb.mxu3 %v21114_v16  ;;  %v21120_v16 = vld [vmem:[#allocation5 + $0x808] sm:$0xff] }
 0x13d   :  { %7133 = vmatpush.bf16.msrb.mxu0 %v21089_v22 }
 0x13e   :  { %7146 = vmatpush.bf16.msrb.mxu1 %v21097_v23  ;;  %v21119_v23 = vld [vmem:[#allocation5 + $0x800] sm:$0xff] }
 0x13f   :  { %7159 = vmatpush.bf16.msrb.mxu2 %v21105_v25  ;;  %v21135_v25 = vld [vmem:[#allocation5 + $0x880] sm:$0xff] }
 0x140   :  { %7172 = vmatpush.bf16.msrb.mxu3 %v21113_v26  ;;  %v21143_v26 = vld [vmem:[#allocation5 + $0x8c0] sm:$0xff] }
 0x141   :  { %7134 = vmatpush.bf16.msrb.mxu0 %v21088_v27  ;;  %v21158_v27 = vld [vmem:[#allocation5 + $0x938] sm:$0xff] }
 0x142   :  { %7147 = vmatpush.bf16.msrb.mxu1 %v21096_v28  ;;  %v21166_v28 = vld [vmem:[#allocation5 + $0x978] sm:$0xff] }
 0x143   :  { %7160 = vmatpush.bf16.msrb.mxu2 %v21104_v30  ;;  %v1885_v30 = vld.sshfl [vmem:[#allocation1 + $0x10] sm:$0xff pattern:$0x73625140] }
 0x144   :  { %7173 = vmatpush.bf16.msrb.mxu3 %v21112_v31  ;;  %v1884_v31 = vld.sshfl [vmem:[#allocation1 + $0x8] sm:$0xff pattern:$0x73625140] }
 0x145   :  { %7135 = vmatpush.bf16.msrb.mxu0 %v21087_v34  ;;  %v6929_v58 = vpop.f32.mrf.mxu0  ;;  %v21182_v34 = vld [vmem:[#allocation5 + $0x9f8] sm:$0xff] }
 0x146   :  { %7148 = vmatpush.bf16.msrb.mxu1 %v21095_v35  ;;  %v6930_v59 = vadd.f32 %v6929_v58, %v23156_v21  ;;  %v6942_v62 = vpop.f32.mrf.mxu1  ;;  %v2089_v35 = vpack.c.bf16 %v1883_v29, %v1883_v29  ;;  %v21178_v58 = vld [vmem:[#allocation5 + $0x9d8] sm:$0xff]  ;;  %v21197_v29 = vld [vmem:[#allocation5 + $0xa70] sm:$0xff] }
 0x147   :  { %7161 = vmatpush.bf16.msrb.mxu2 %v21103_v36  ;;  %v2091_v36 = vpack.c.bf16 %v1885_v30, %v1885_v30  ;;  %v21205_v30 = vld [vmem:[#allocation5 + $0xab0] sm:$0xff] }
 0x148   :  { %7174 = vmatpush.bf16.msrb.mxu3 %v21111_v37  ;;  %7136 = vmatmul.bf16.vlgmr.msrb.gmra.mxu0 %v2085_v46  ;;  %v6943_v1 = vadd.f32 %v6942_v62, %v6930_v59  ;;  %v2090_v37 = vpack.c.bf16 %v1884_v31, %v1884_v31  ;;  %v21180_v46 = vld [vmem:[#allocation5 + $0x9e8] sm:$0xff]  ;;  %v21213_v31 = vld [vmem:[#allocation5 + $0xaf0] sm:$0xff] }
 0x149   :  { %7180 = vmatpush.bf16.msra.mxu0 %v21126_v38  ;;  %7149 = vmatmul.bf16.vlgmr.msrb.gmra.mxu1 %v2086_v48  ;;  %v2092_v38 = vpack.c.bf16 %v1886_v32, %v1886_v32  ;;  %v21188_v32 = vld [vmem:[#allocation5 + $0xa28] sm:$0xff] }
 0x14a   :  { %7193 = vmatpush.bf16.msra.mxu1 %v21134_v39  ;;  %7162 = vmatmul.bf16.vlgmr.msrb.gmra.mxu2 %v2087_v47  ;;  %v21157_v39 = vld [vmem:[#allocation5 + $0x930] sm:$0xff] }
 0x14b   :  { %7206 = vmatpush.bf16.msra.mxu2 %v21142_v44  ;;  %7175 = vmatmul.bf16.vlgmr.msrb.gmra.mxu3 %v2088_v49  ;;  %v21164_v44 = vld [vmem:[#allocation5 + $0x968] sm:$0xff]  ;;  %v21155_v49 = vld [vmem:[#allocation5 + $0x920] sm:$0xff] }
 0x14c   :  { %7219 = vmatpush.bf16.msra.mxu3 %v21150_v45  ;;  %v21172_v45 = vld [vmem:[#allocation5 + $0x9a8] sm:$0xff] }
 0x14d   :  { %7181 = vmatpush.bf16.msra.mxu0 %v21125_v50  ;;  %v6955_v6 = vpop.f32.mrf.mxu2  ;;  %v6931_v9 = vpop.f32.mrf.mxu0  ;;  %v21163_v50 = vld [vmem:[#allocation5 + $0x960] sm:$0xff] }
 0x14e   :  { %7194 = vmatpush.bf16.msra.mxu1 %v21133_v51  ;;  %v6956_v7 = vadd.f32 %v6955_v6, %v6943_v1  ;;  %v6968_v8 = vpop.f32.mrf.mxu3  ;;  %v6944_v13 = vpop.f32.mrf.mxu1  ;;  %v21161_v1 = vld [vmem:[#allocation5 + $0x950] sm:$0xff]  ;;  %v21160_v6 = vld [vmem:[#allocation5 + $0x948] sm:$0xff] }
 0x14f   :  { %7207 = vmatpush.bf16.msra.mxu2 %v21141_v52  ;;  %v21171_v52 = vld [vmem:[#allocation5 + $0x9a0] sm:$0xff]  ;;  %v21176_v9 = vld [vmem:[#allocation5 + $0x9c8] sm:$0xff] }
 0x150   :  { %7220 = vmatpush.bf16.msra.mxu3 %v21149_v53  ;;  %v23159_v10 = vadd.f32 %v6968_v8, %v6956_v7  ;;  %v21179_v53 = vld [vmem:[#allocation5 + $0x9e0] sm:$0xff]  ;;  %v265_v7 = vld [vmem:[#allocation2 + $0x50] sm:$0xff]  ;;  %v21168_v8 = vld [vmem:[#allocation5 + $0x988] sm:$0xff] }
 0x151   :  { %7182 = vmatpush.bf16.msra.mxu0 %v21124_v54  ;;  %1891 = vst [vmem:[#allocation1] ss:$4 sm:$0xff] %v265_v7  ;;  %v21159_v13 = vld [vmem:[#allocation5 + $0x940] sm:$0xff] }
 0x152   :  { %7195 = vmatpush.bf16.msra.mxu1 %v21132_v55  ;;  %v21154_v55 = vld [vmem:[#allocation5 + $0x918] sm:$0xff] }
 0x153   :  { %7208 = vmatpush.bf16.msra.mxu2 %v21140_v56  ;;  %v21162_v56 = vld [vmem:[#allocation5 + $0x958] sm:$0xff] }
 0x154   :  { %7221 = vmatpush.bf16.msra.mxu3 %v21148_v57  ;;  %v21170_v57 = vld [vmem:[#allocation5 + $0x998] sm:$0xff] }
 0x155   :  { %7183 = vmatpush.bf16.msra.mxu0 %v21123_v60  ;;  %v6957_v21 = vpop.f32.mrf.mxu2 }
 0x156   :  { %7196 = vmatpush.bf16.msra.mxu1 %v21131_v61  ;;  %v6970_v22 = vpop.f32.mrf.mxu3  ;;  %v1890_v21 = vld.sshfl [vmem:[#allocation1 + $0x38] sm:$0xff pattern:$0x73625140] }
 0x157   :  { %7209 = vmatpush.bf16.msra.mxu2 %v21139_v63  ;;  %v21206_v22 = vld [vmem:[#allocation5 + $0xab8] sm:$0xff] }
 0x158   :  { %7222 = vmatpush.bf16.msra.mxu3 %v21147_v0  ;;  %v21153_v0 = vld [vmem:[#allocation5 + $0x910] sm:$0xff]  ;;  %v1893_v7 = vld.sshfl [vmem:[#allocation1] sm:$0xff pattern:$0x73625140] }
 0x159   :  { %7184 = vmatpush.bf16.msra.mxu0 %v21122_v2 }
 0x15a   :  { %7197 = vmatpush.bf16.msra.mxu1 %v21130_v3  ;;  %v21169_v3 = vld [vmem:[#allocation5 + $0x990] sm:$0xff] }
 0x15b   :  { %7210 = vmatpush.bf16.msra.mxu2 %v21138_v4  ;;  %v21177_v4 = vld [vmem:[#allocation5 + $0x9d0] sm:$0xff] }
 0x15c   :  { %7223 = vmatpush.bf16.msra.mxu3 %v21146_v5  ;;  %v21152_v5 = vld [vmem:[#allocation5 + $0x908] sm:$0xff] }
 0x15d   :  { %7185 = vmatpush.bf16.msra.mxu0 %v21121_v11 }
 0x15e   :  { %7198 = vmatpush.bf16.msra.mxu1 %v21129_v12  ;;  %v21151_v12 = vld [vmem:[#allocation5 + $0x900] sm:$0xff] }
 0x15f   :  { %7211 = vmatpush.bf16.msra.mxu2 %v21137_v14  ;;  %v21167_v14 = vld [vmem:[#allocation5 + $0x980] sm:$0xff] }
 0x160   :  { %7224 = vmatpush.bf16.msra.mxu3 %v21145_v15  ;;  %v21175_v15 = vld [vmem:[#allocation5 + $0x9c0] sm:$0xff] }
 0x161   :  { %7186 = vmatpush.bf16.msra.mxu0 %v21120_v16  ;;  %v21190_v16 = vld [vmem:[#allocation5 + $0xa38] sm:$0xff] }
 0x162   :  { %7199 = vmatpush.bf16.msra.mxu1 %v21128_v17  ;;  %v21198_v17 = vld [vmem:[#allocation5 + $0xa78] sm:$0xff] }
 0x163   :  { %7212 = vmatpush.bf16.msra.mxu2 %v21136_v19  ;;  %v1889_v19 = vld.sshfl [vmem:[#allocation1 + $0x30] sm:$0xff pattern:$0x73625140] }
 0x164   :  { %7225 = vmatpush.bf16.msra.mxu3 %v21144_v20  ;;  %v1888_v20 = vld.sshfl [vmem:[#allocation1 + $0x28] sm:$0xff pattern:$0x73625140] }
 0x165   :  { %7187 = vmatpush.bf16.msra.mxu0 %v21119_v23  ;;  %v6981_v47 = vpop.f32.mrf.mxu0  ;;  %v21214_v23 = vld [vmem:[#allocation5 + $0xaf8] sm:$0xff] }
 0x166   :  { %7200 = vmatpush.bf16.msra.mxu1 %v21127_v24  ;;  %v6982_v48 = vadd.f32 %v6981_v47, %v23159_v10  ;;  %v6994_v51 = vpop.f32.mrf.mxu1  ;;  %v2093_v24 = vpack.c.bf16 %v1887_v18, %v1887_v18  ;;  %v21210_v47 = vld [vmem:[#allocation5 + $0xad8] sm:$0xff]  ;;  %v21229_v18 = vld [vmem:[#allocation5 + $0xb70] sm:$0xff] }
 0x167   :  { %7213 = vmatpush.bf16.msra.mxu2 %v21135_v25  ;;  %v2095_v25 = vpack.c.bf16 %v1889_v19, %v1889_v19  ;;  %v21237_v19 = vld [vmem:[#allocation5 + $0xbb0] sm:$0xff] }
 0x168   :  { %7226 = vmatpush.bf16.msra.mxu3 %v21143_v26  ;;  %7188 = vmatmul.bf16.vlgmr.msra.gmra.mxu0 %v2089_v35  ;;  %v6995_v54 = vadd.f32 %v6994_v51, %v6982_v48  ;;  %v2094_v26 = vpack.c.bf16 %v1888_v20, %v1888_v20  ;;  %v21212_v35 = vld [vmem:[#allocation5 + $0xae8] sm:$0xff]  ;;  %v21245_v20 = vld [vmem:[#allocation5 + $0xbf0] sm:$0xff] }
 0x169   :  { %7232 = vmatpush.bf16.msrb.mxu0 %v21158_v27  ;;  %7201 = vmatmul.bf16.vlgmr.msra.gmra.mxu1 %v2090_v37  ;;  %v2096_v27 = vpack.c.bf16 %v1890_v21, %v1890_v21  ;;  %v21220_v21 = vld [vmem:[#allocation5 + $0xb28] sm:$0xff] }
 0x16a   :  { %7245 = vmatpush.bf16.msrb.mxu1 %v21166_v28  ;;  %7214 = vmatmul.bf16.vlgmr.msra.gmra.mxu2 %v2091_v36  ;;  %v21189_v28 = vld [vmem:[#allocation5 + $0xa30] sm:$0xff] }
 0x16b   :  { %7258 = vmatpush.bf16.msrb.mxu2 %v21174_v33  ;;  %7227 = vmatmul.bf16.vlgmr.msra.gmra.mxu3 %v2092_v38  ;;  %v21196_v33 = vld [vmem:[#allocation5 + $0xa68] sm:$0xff]  ;;  %v21187_v38 = vld [vmem:[#allocation5 + $0xa20] sm:$0xff] }
 0x16c   :  { %7271 = vmatpush.bf16.msrb.mxu3 %v21182_v34  ;;  %v21204_v34 = vld [vmem:[#allocation5 + $0xaa8] sm:$0xff] }
 0x16d   :  { %7233 = vmatpush.bf16.msrb.mxu0 %v21157_v39  ;;  %v7007_v59 = vpop.f32.mrf.mxu2  ;;  %v6983_v62 = vpop.f32.mrf.mxu0  ;;  %v21195_v39 = vld [vmem:[#allocation5 + $0xa60] sm:$0xff] }
 0x16e   :  { %7246 = vmatpush.bf16.msrb.mxu1 %v21165_v40  ;;  %v7008_v60 = vadd.f32 %v7007_v59, %v6995_v54  ;;  %v7020_v61 = vpop.f32.mrf.mxu3  ;;  %v6996_v2 = vpop.f32.mrf.mxu1  ;;  %v21193_v54 = vld [vmem:[#allocation5 + $0xa50] sm:$0xff]  ;;  %v21192_v59 = vld [vmem:[#allocation5 + $0xa48] sm:$0xff] }
 0x16f   :  { %7259 = vmatpush.bf16.msrb.mxu2 %v21173_v41  ;;  %v21203_v41 = vld [vmem:[#allocation5 + $0xaa0] sm:$0xff]  ;;  %v21208_v62 = vld [vmem:[#allocation5 + $0xac8] sm:$0xff] }
 0x170   :  { %7272 = vmatpush.bf16.msrb.mxu3 %v21181_v42  ;;  %v23162_v63 = vadd.f32 %v7020_v61, %v7008_v60  ;;  %v21211_v42 = vld [vmem:[#allocation5 + $0xae0] sm:$0xff]  ;;  %v266_v60 = vld [vmem:[#allocation2 + $0x58] sm:$0xff]  ;;  %v21200_v61 = vld [vmem:[#allocation5 + $0xa88] sm:$0xff] }
 0x171   :  { %7234 = vmatpush.bf16.msrb.mxu0 %v21156_v43  ;;  %1892 = vst [vmem:[#allocation1 + $0x20] ss:$4 sm:$0xff] %v266_v60  ;;  %v21191_v2 = vld [vmem:[#allocation5 + $0xa40] sm:$0xff] }
 0x172   :  { %7247 = vmatpush.bf16.msrb.mxu1 %v21164_v44  ;;  %v21186_v44 = vld [vmem:[#allocation5 + $0xa18] sm:$0xff] }
 0x173   :  { %7260 = vmatpush.bf16.msrb.mxu2 %v21172_v45  ;;  %v21194_v45 = vld [vmem:[#allocation5 + $0xa58] sm:$0xff] }
 0x174   :  { %7273 = vmatpush.bf16.msrb.mxu3 %v21180_v46  ;;  %v21202_v46 = vld [vmem:[#allocation5 + $0xa98] sm:$0xff] }
 0x175   :  { %7235 = vmatpush.bf16.msrb.mxu0 %v21155_v49  ;;  %v7009_v10 = vpop.f32.mrf.mxu2 }
 0x176   :  { %7248 = vmatpush.bf16.msrb.mxu1 %v21163_v50  ;;  %v7022_v11 = vpop.f32.mrf.mxu3  ;;  %v1896_v10 = vld.sshfl [vmem:[#allocation1 + $0x18] sm:$0xff pattern:$0x73625140] }
 0x177   :  { %7261 = vmatpush.bf16.msrb.mxu2 %v21171_v52  ;;  %v21238_v11 = vld [vmem:[#allocation5 + $0xbb8] sm:$0xff] }
 0x178   :  { %7274 = vmatpush.bf16.msrb.mxu3 %v21179_v53  ;;  %v21185_v53 = vld [vmem:[#allocation5 + $0xa10] sm:$0xff]  ;;  %v1897_v60 = vld.sshfl [vmem:[#allocation1 + $0x20] sm:$0xff pattern:$0x73625140] }
 0x179   :  { %7236 = vmatpush.bf16.msrb.mxu0 %v21154_v55 }
 0x17a   :  { %7249 = vmatpush.bf16.msrb.mxu1 %v21162_v56  ;;  %v21201_v56 = vld [vmem:[#allocation5 + $0xa90] sm:$0xff] }
 0x17b   :  { %7262 = vmatpush.bf16.msrb.mxu2 %v21170_v57  ;;  %v21209_v57 = vld [vmem:[#allocation5 + $0xad0] sm:$0xff] }
 0x17c   :  { %7275 = vmatpush.bf16.msrb.mxu3 %v21178_v58  ;;  %v21184_v58 = vld [vmem:[#allocation5 + $0xa08] sm:$0xff] }
 0x17d   :  { %7237 = vmatpush.bf16.msrb.mxu0 %v21153_v0 }
 0x17e   :  { %7250 = vmatpush.bf16.msrb.mxu1 %v21161_v1  ;;  %v21183_v1 = vld [vmem:[#allocation5 + $0xa00] sm:$0xff] }
 0x17f   :  { %7263 = vmatpush.bf16.msrb.mxu2 %v21169_v3  ;;  %v21199_v3 = vld [vmem:[#allocation5 + $0xa80] sm:$0xff] }
 0x180   :  { %7276 = vmatpush.bf16.msrb.mxu3 %v21177_v4  ;;  %v21207_v4 = vld [vmem:[#allocation5 + $0xac0] sm:$0xff] }
 0x181   :  { %7238 = vmatpush.bf16.msrb.mxu0 %v21152_v5  ;;  %v21222_v5 = vld [vmem:[#allocation5 + $0xb38] sm:$0xff] }
 0x182   :  { %7251 = vmatpush.bf16.msrb.mxu1 %v21160_v6  ;;  %v21230_v6 = vld [vmem:[#allocation5 + $0xb78] sm:$0xff] }
 0x183   :  { %7264 = vmatpush.bf16.msrb.mxu2 %v21168_v8  ;;  %v1895_v8 = vld.sshfl [vmem:[#allocation1 + $0x10] sm:$0xff pattern:$0x73625140] }
 0x184   :  { %7277 = vmatpush.bf16.msrb.mxu3 %v21176_v9  ;;  %v1894_v9 = vld.sshfl [vmem:[#allocation1 + $0x8] sm:$0xff pattern:$0x73625140] }
 0x185   :  { %7239 = vmatpush.bf16.msrb.mxu0 %v21151_v12  ;;  %v7033_v36 = vpop.f32.mrf.mxu0  ;;  %v21246_v12 = vld [vmem:[#allocation5 + $0xbf8] sm:$0xff] }
 0x186   :  { %7252 = vmatpush.bf16.msrb.mxu1 %v21159_v13  ;;  %v7034_v37 = vadd.f32 %v7033_v36, %v23162_v63  ;;  %v7046_v40 = vpop.f32.mrf.mxu1  ;;  %v2097_v13 = vpack.c.bf16 %v1893_v7, %v1893_v7  ;;  %v21242_v36 = vld [vmem:[#allocation5 + $0xbd8] sm:$0xff]  ;;  %v21261_v7 = vld [vmem:[#allocation5 + $0xc70] sm:$0xff] }
 0x187   :  { %7265 = vmatpush.bf16.msrb.mxu2 %v21167_v14  ;;  %v2099_v14 = vpack.c.bf16 %v1895_v8, %v1895_v8  ;;  %v21269_v8 = vld [vmem:[#allocation5 + $0xcb0] sm:$0xff] }
 0x188   :  { %7278 = vmatpush.bf16.msrb.mxu3 %v21175_v15  ;;  %7240 = vmatmul.bf16.vlgmr.msrb.gmra.mxu0 %v2093_v24  ;;  %v7047_v43 = vadd.f32 %v7046_v40, %v7034_v37  ;;  %v2098_v15 = vpack.c.bf16 %v1894_v9, %v1894_v9  ;;  %v21244_v24 = vld [vmem:[#allocation5 + $0xbe8] sm:$0xff]  ;;  %v21277_v9 = vld [vmem:[#allocation5 + $0xcf0] sm:$0xff] }
 0x189   :  { %7284 = vmatpush.bf16.msra.mxu0 %v21190_v16  ;;  %7253 = vmatmul.bf16.vlgmr.msrb.gmra.mxu1 %v2094_v26  ;;  %v2100_v16 = vpack.c.bf16 %v1896_v10, %v1896_v10  ;;  %v21252_v10 = vld [vmem:[#allocation5 + $0xc28] sm:$0xff] }
 0x18a   :  { %7297 = vmatpush.bf16.msra.mxu1 %v21198_v17  ;;  %7266 = vmatmul.bf16.vlgmr.msrb.gmra.mxu2 %v2095_v25  ;;  %v21221_v17 = vld [vmem:[#allocation5 + $0xb30] sm:$0xff] }
 0x18b   :  { %7310 = vmatpush.bf16.msra.mxu2 %v21206_v22  ;;  %7279 = vmatmul.bf16.vlgmr.msrb.gmra.mxu3 %v2096_v27  ;;  %v21228_v22 = vld [vmem:[#allocation5 + $0xb68] sm:$0xff]  ;;  %v21219_v27 = vld [vmem:[#allocation5 + $0xb20] sm:$0xff] }
 0x18c   :  { %7323 = vmatpush.bf16.msra.mxu3 %v21214_v23  ;;  %v21236_v23 = vld [vmem:[#allocation5 + $0xba8] sm:$0xff] }
 0x18d   :  { %7285 = vmatpush.bf16.msra.mxu0 %v21189_v28  ;;  %v7059_v48 = vpop.f32.mrf.mxu2  ;;  %v7035_v51 = vpop.f32.mrf.mxu0  ;;  %v21227_v28 = vld [vmem:[#allocation5 + $0xb60] sm:$0xff] }
 0x18e   :  { %7298 = vmatpush.bf16.msra.mxu1 %v21197_v29  ;;  %v7060_v49 = vadd.f32 %v7059_v48, %v7047_v43  ;;  %v7072_v50 = vpop.f32.mrf.mxu3  ;;  %v7048_v55 = vpop.f32.mrf.mxu1  ;;  %v21225_v43 = vld [vmem:[#allocation5 + $0xb50] sm:$0xff]  ;;  %v21224_v48 = vld [vmem:[#allocation5 + $0xb48] sm:$0xff] }
 0x18f   :  { %7311 = vmatpush.bf16.msra.mxu2 %v21205_v30  ;;  %v21235_v30 = vld [vmem:[#allocation5 + $0xba0] sm:$0xff]  ;;  %v21240_v51 = vld [vmem:[#allocation5 + $0xbc8] sm:$0xff] }
 0x190   :  { %7324 = vmatpush.bf16.msra.mxu3 %v21213_v31  ;;  %v23165_v52 = vadd.f32 %v7072_v50, %v7060_v49  ;;  %v21243_v31 = vld [vmem:[#allocation5 + $0xbe0] sm:$0xff]  ;;  %v21232_v50 = vld [vmem:[#allocation5 + $0xb88] sm:$0xff] }
 0x191   :  { %7286 = vmatpush.bf16.msra.mxu0 %v21188_v32  ;;  %v267_v49 = vld [vmem:[#allocation2 + $0x60] sm:$0xff] }
 0x192   :  { %7299 = vmatpush.bf16.msra.mxu1 %v21196_v33  ;;  %v21218_v33 = vld [vmem:[#allocation5 + $0xb18] sm:$0xff]  ;;  %1901 = vst [vmem:[#allocation1] ss:$4 sm:$0xff] %v267_v49  ;;  %v21223_v55 = vld [vmem:[#allocation5 + $0xb40] sm:$0xff] }
 0x193   :  { %7312 = vmatpush.bf16.msra.mxu2 %v21204_v34  ;;  %v21226_v34 = vld [vmem:[#allocation5 + $0xb58] sm:$0xff] }
 0x194   :  { %7325 = vmatpush.bf16.msra.mxu3 %v21212_v35  ;;  %v21234_v35 = vld [vmem:[#allocation5 + $0xb98] sm:$0xff] }
 0x195   :  { %7287 = vmatpush.bf16.msra.mxu0 %v21187_v38  ;;  %v7061_v63 = vpop.f32.mrf.mxu2 }
 0x196   :  { %7300 = vmatpush.bf16.msra.mxu1 %v21195_v39  ;;  %v7074_v0 = vpop.f32.mrf.mxu3  ;;  %v1900_v63 = vld.sshfl [vmem:[#allocation1 + $0x38] sm:$0xff pattern:$0x73625140] }
 0x197   :  { %7313 = vmatpush.bf16.msra.mxu2 %v21203_v41  ;;  %v21270_v0 = vld [vmem:[#allocation5 + $0xcb8] sm:$0xff] }
 0x198   :  { %7326 = vmatpush.bf16.msra.mxu3 %v21211_v42  ;;  %v21217_v42 = vld [vmem:[#allocation5 + $0xb10] sm:$0xff] }
 0x199   :  { %7288 = vmatpush.bf16.msra.mxu0 %v21186_v44  ;;  %v1903_v49 = vld.sshfl [vmem:[#allocation1] sm:$0xff pattern:$0x73625140] }
 0x19a   :  { %7301 = vmatpush.bf16.msra.mxu1 %v21194_v45  ;;  %v21233_v45 = vld [vmem:[#allocation5 + $0xb90] sm:$0xff] }
 0x19b   :  { %7314 = vmatpush.bf16.msra.mxu2 %v21202_v46  ;;  %v21241_v46 = vld [vmem:[#allocation5 + $0xbd0] sm:$0xff] }
 0x19c   :  { %7327 = vmatpush.bf16.msra.mxu3 %v21210_v47  ;;  %v21216_v47 = vld [vmem:[#allocation5 + $0xb08] sm:$0xff] }
 0x19d   :  { %7289 = vmatpush.bf16.msra.mxu0 %v21185_v53 }
 0x19e   :  { %7302 = vmatpush.bf16.msra.mxu1 %v21193_v54  ;;  %v21215_v54 = vld [vmem:[#allocation5 + $0xb00] sm:$0xff] }
 0x19f   :  { %7315 = vmatpush.bf16.msra.mxu2 %v21201_v56  ;;  %v21231_v56 = vld [vmem:[#allocation5 + $0xb80] sm:$0xff] }
 0x1a0   :  { %7328 = vmatpush.bf16.msra.mxu3 %v21209_v57  ;;  %v21239_v57 = vld [vmem:[#allocation5 + $0xbc0] sm:$0xff] }
 0x1a1   :  { %7290 = vmatpush.bf16.msra.mxu0 %v21184_v58  ;;  %v21254_v58 = vld [vmem:[#allocation5 + $0xc38] sm:$0xff] }
 0x1a2   :  { %7303 = vmatpush.bf16.msra.mxu1 %v21192_v59  ;;  %v21262_v59 = vld [vmem:[#allocation5 + $0xc78] sm:$0xff] }
 0x1a3   :  { %7316 = vmatpush.bf16.msra.mxu2 %v21200_v61  ;;  %v1899_v61 = vld.sshfl [vmem:[#allocation1 + $0x30] sm:$0xff pattern:$0x73625140] }
 0x1a4   :  { %7329 = vmatpush.bf16.msra.mxu3 %v21208_v62  ;;  %v1898_v62 = vld.sshfl [vmem:[#allocation1 + $0x28] sm:$0xff pattern:$0x73625140] }
 0x1a5   :  { %7291 = vmatpush.bf16.msra.mxu0 %v21183_v1  ;;  %v7085_v25 = vpop.f32.mrf.mxu0  ;;  %v21278_v1 = vld [vmem:[#allocation5 + $0xcf8] sm:$0xff] }
 0x1a6   :  { %7304 = vmatpush.bf16.msra.mxu1 %v21191_v2  ;;  %v7086_v26 = vadd.f32 %v7085_v25, %v23165_v52  ;;  %v7098_v29 = vpop.f32.mrf.mxu1  ;;  %v2101_v2 = vpack.c.bf16 %v1897_v60, %v1897_v60  ;;  %v21274_v25 = vld [vmem:[#allocation5 + $0xcd8] sm:$0xff]  ;;  %v21293_v60 = vld [vmem:[#allocation5 + $0xd70] sm:$0xff] }
 0x1a7   :  { %7317 = vmatpush.bf16.msra.mxu2 %v21199_v3  ;;  %v2103_v3 = vpack.c.bf16 %v1899_v61, %v1899_v61  ;;  %v21301_v61 = vld [vmem:[#allocation5 + $0xdb0] sm:$0xff] }
 0x1a8   :  { %7330 = vmatpush.bf16.msra.mxu3 %v21207_v4  ;;  %7292 = vmatmul.bf16.vlgmr.msra.gmra.mxu0 %v2097_v13  ;;  %v7099_v32 = vadd.f32 %v7098_v29, %v7086_v26  ;;  %v2102_v4 = vpack.c.bf16 %v1898_v62, %v1898_v62  ;;  %v21276_v13 = vld [vmem:[#allocation5 + $0xce8] sm:$0xff]  ;;  %v21309_v62 = vld [vmem:[#allocation5 + $0xdf0] sm:$0xff] }
 0x1a9   :  { %7336 = vmatpush.bf16.msrb.mxu0 %v21222_v5  ;;  %7305 = vmatmul.bf16.vlgmr.msra.gmra.mxu1 %v2098_v15  ;;  %v2104_v5 = vpack.c.bf16 %v1900_v63, %v1900_v63  ;;  %v21284_v63 = vld [vmem:[#allocation5 + $0xd28] sm:$0xff] }
 0x1aa   :  { %7349 = vmatpush.bf16.msrb.mxu1 %v21230_v6  ;;  %7318 = vmatmul.bf16.vlgmr.msra.gmra.mxu2 %v2099_v14  ;;  %v21253_v6 = vld [vmem:[#allocation5 + $0xc30] sm:$0xff] }
 0x1ab   :  { %7362 = vmatpush.bf16.msrb.mxu2 %v21238_v11  ;;  %7331 = vmatmul.bf16.vlgmr.msra.gmra.mxu3 %v2100_v16  ;;  %v21260_v11 = vld [vmem:[#allocation5 + $0xc68] sm:$0xff]  ;;  %v21251_v16 = vld [vmem:[#allocation5 + $0xc20] sm:$0xff] }
 0x1ac   :  { %7375 = vmatpush.bf16.msrb.mxu3 %v21246_v12  ;;  %v21268_v12 = vld [vmem:[#allocation5 + $0xca8] sm:$0xff] }
 0x1ad   :  { %7337 = vmatpush.bf16.msrb.mxu0 %v21221_v17  ;;  %v7111_v37 = vpop.f32.mrf.mxu2  ;;  %v7087_v40 = vpop.f32.mrf.mxu0  ;;  %v21259_v17 = vld [vmem:[#allocation5 + $0xc60] sm:$0xff] }
 0x1ae   :  { %7350 = vmatpush.bf16.msrb.mxu1 %v21229_v18  ;;  %v7112_v38 = vadd.f32 %v7111_v37, %v7099_v32  ;;  %v7124_v39 = vpop.f32.mrf.mxu3  ;;  %v7100_v44 = vpop.f32.mrf.mxu1  ;;  %v21257_v32 = vld [vmem:[#allocation5 + $0xc50] sm:$0xff]  ;;  %v21256_v37 = vld [vmem:[#allocation5 + $0xc48] sm:$0xff] }
 0x1af   :  { %7363 = vmatpush.bf16.msrb.mxu2 %v21237_v19  ;;  %v21267_v19 = vld [vmem:[#allocation5 + $0xca0] sm:$0xff]  ;;  %v21272_v40 = vld [vmem:[#allocation5 + $0xcc8] sm:$0xff] }
 0x1b0   :  { %7376 = vmatpush.bf16.msrb.mxu3 %v21245_v20  ;;  %v23168_v41 = vadd.f32 %v7124_v39, %v7112_v38  ;;  %v21275_v20 = vld [vmem:[#allocation5 + $0xce0] sm:$0xff]  ;;  %v268_v38 = vld [vmem:[#allocation2 + $0x68] sm:$0xff] }
 0x1b1   :  { %7338 = vmatpush.bf16.msrb.mxu0 %v21220_v21  ;;  %v21264_v39 = vld [vmem:[#allocation5 + $0xc88] sm:$0xff]  ;;  %1902 = vst [vmem:[#allocation1 + $0x20] ss:$4 sm:$0xff] %v268_v38  ;;  %v21255_v44 = vld [vmem:[#allocation5 + $0xc40] sm:$0xff] }
 0x1b2   :  { %7351 = vmatpush.bf16.msrb.mxu1 %v21228_v22  ;;  %v21250_v22 = vld [vmem:[#allocation5 + $0xc18] sm:$0xff] }
 0x1b3   :  { %7364 = vmatpush.bf16.msrb.mxu2 %v21236_v23  ;;  %v21258_v23 = vld [vmem:[#allocation5 + $0xc58] sm:$0xff] }
 0x1b4   :  { %7377 = vmatpush.bf16.msrb.mxu3 %v21244_v24  ;;  %v21266_v24 = vld [vmem:[#allocation5 + $0xc98] sm:$0xff] }
 0x1b5   :  { %7339 = vmatpush.bf16.msrb.mxu0 %v21219_v27  ;;  %v7113_v52 = vpop.f32.mrf.mxu2 }
 0x1b6   :  { %7352 = vmatpush.bf16.msrb.mxu1 %v21227_v28  ;;  %v7126_v53 = vpop.f32.mrf.mxu3  ;;  %v1906_v52 = vld.sshfl [vmem:[#allocation1 + $0x18] sm:$0xff pattern:$0x73625140] }
 0x1b7   :  { %7365 = vmatpush.bf16.msrb.mxu2 %v21235_v30  ;;  %v21302_v53 = vld [vmem:[#allocation5 + $0xdb8] sm:$0xff] }
 0x1b8   :  { %7378 = vmatpush.bf16.msrb.mxu3 %v21243_v31  ;;  %v21249_v31 = vld [vmem:[#allocation5 + $0xc10] sm:$0xff]  ;;  %v1907_v38 = vld.sshfl [vmem:[#allocation1 + $0x20] sm:$0xff pattern:$0x73625140] }
 0x1b9   :  { %7340 = vmatpush.bf16.msrb.mxu0 %v21218_v33 }
 0x1ba   :  { %7353 = vmatpush.bf16.msrb.mxu1 %v21226_v34  ;;  %v21265_v34 = vld [vmem:[#allocation5 + $0xc90] sm:$0xff] }
 0x1bb   :  { %7366 = vmatpush.bf16.msrb.mxu2 %v21234_v35  ;;  %v21273_v35 = vld [vmem:[#allocation5 + $0xcd0] sm:$0xff] }
 0x1bc   :  { %7379 = vmatpush.bf16.msrb.mxu3 %v21242_v36  ;;  %v21248_v36 = vld [vmem:[#allocation5 + $0xc08] sm:$0xff] }
 0x1bd   :  { %7341 = vmatpush.bf16.msrb.mxu0 %v21217_v42 }
 0x1be   :  { %7354 = vmatpush.bf16.msrb.mxu1 %v21225_v43  ;;  %v21247_v43 = vld [vmem:[#allocation5 + $0xc00] sm:$0xff] }
 0x1bf   :  { %7367 = vmatpush.bf16.msrb.mxu2 %v21233_v45  ;;  %v21263_v45 = vld [vmem:[#allocation5 + $0xc80] sm:$0xff] }
 0x1c0   :  { %7380 = vmatpush.bf16.msrb.mxu3 %v21241_v46  ;;  %v21271_v46 = vld [vmem:[#allocation5 + $0xcc0] sm:$0xff] }
 0x1c1   :  { %7342 = vmatpush.bf16.msrb.mxu0 %v21216_v47  ;;  %v21286_v47 = vld [vmem:[#allocation5 + $0xd38] sm:$0xff] }
 0x1c2   :  { %7355 = vmatpush.bf16.msrb.mxu1 %v21224_v48  ;;  %v21294_v48 = vld [vmem:[#allocation5 + $0xd78] sm:$0xff] }
 0x1c3   :  { %7368 = vmatpush.bf16.msrb.mxu2 %v21232_v50  ;;  %v1905_v50 = vld.sshfl [vmem:[#allocation1 + $0x10] sm:$0xff pattern:$0x73625140] }
 0x1c4   :  { %7381 = vmatpush.bf16.msrb.mxu3 %v21240_v51  ;;  %v1904_v51 = vld.sshfl [vmem:[#allocation1 + $0x8] sm:$0xff pattern:$0x73625140] }
 0x1c5   :  { %7343 = vmatpush.bf16.msrb.mxu0 %v21215_v54  ;;  %v7137_v14 = vpop.f32.mrf.mxu0  ;;  %v21310_v54 = vld [vmem:[#allocation5 + $0xdf8] sm:$0xff] }
 0x1c6   :  { %7356 = vmatpush.bf16.msrb.mxu1 %v21223_v55  ;;  %v7138_v15 = vadd.f32 %v7137_v14, %v23168_v41  ;;  %v7150_v18 = vpop.f32.mrf.mxu1  ;;  %v2105_v55 = vpack.c.bf16 %v1903_v49, %v1903_v49  ;;  %v21306_v14 = vld [vmem:[#allocation5 + $0xdd8] sm:$0xff]  ;;  %v21325_v49 = vld [vmem:[#allocation5 + $0xe70] sm:$0xff] }
 0x1c7   :  { %7369 = vmatpush.bf16.msrb.mxu2 %v21231_v56  ;;  %v2107_v56 = vpack.c.bf16 %v1905_v50, %v1905_v50  ;;  %v21333_v50 = vld [vmem:[#allocation5 + $0xeb0] sm:$0xff] }
 0x1c8   :  { %7382 = vmatpush.bf16.msrb.mxu3 %v21239_v57  ;;  %7344 = vmatmul.bf16.vlgmr.msrb.gmra.mxu0 %v2101_v2  ;;  %v7151_v21 = vadd.f32 %v7150_v18, %v7138_v15  ;;  %v2106_v57 = vpack.c.bf16 %v1904_v51, %v1904_v51  ;;  %v21308_v2 = vld [vmem:[#allocation5 + $0xde8] sm:$0xff]  ;;  %v21341_v51 = vld [vmem:[#allocation5 + $0xef0] sm:$0xff] }
 0x1c9   :  { %7388 = vmatpush.bf16.msra.mxu0 %v21254_v58  ;;  %7357 = vmatmul.bf16.vlgmr.msrb.gmra.mxu1 %v2102_v4  ;;  %v2108_v58 = vpack.c.bf16 %v1906_v52, %v1906_v52  ;;  %v21316_v52 = vld [vmem:[#allocation5 + $0xe28] sm:$0xff] }
 0x1ca   :  { %7401 = vmatpush.bf16.msra.mxu1 %v21262_v59  ;;  %7370 = vmatmul.bf16.vlgmr.msrb.gmra.mxu2 %v2103_v3  ;;  %v21285_v59 = vld [vmem:[#allocation5 + $0xd30] sm:$0xff] }
 0x1cb   :  { %7414 = vmatpush.bf16.msra.mxu2 %v21270_v0  ;;  %7383 = vmatmul.bf16.vlgmr.msrb.gmra.mxu3 %v2104_v5  ;;  %v21292_v0 = vld [vmem:[#allocation5 + $0xd68] sm:$0xff]  ;;  %v21283_v5 = vld [vmem:[#allocation5 + $0xd20] sm:$0xff] }
 0x1cc   :  { %7427 = vmatpush.bf16.msra.mxu3 %v21278_v1  ;;  %v21300_v1 = vld [vmem:[#allocation5 + $0xda8] sm:$0xff] }
 0x1cd   :  { %7389 = vmatpush.bf16.msra.mxu0 %v21253_v6  ;;  %v7163_v26 = vpop.f32.mrf.mxu2  ;;  %v7139_v29 = vpop.f32.mrf.mxu0  ;;  %v21291_v6 = vld [vmem:[#allocation5 + $0xd60] sm:$0xff] }
 0x1ce   :  { %7402 = vmatpush.bf16.msra.mxu1 %v21261_v7  ;;  %v7164_v27 = vadd.f32 %v7163_v26, %v7151_v21  ;;  %v7176_v28 = vpop.f32.mrf.mxu3  ;;  %v7152_v33 = vpop.f32.mrf.mxu1  ;;  %v21289_v21 = vld [vmem:[#allocation5 + $0xd50] sm:$0xff]  ;;  %v21288_v26 = vld [vmem:[#allocation5 + $0xd48] sm:$0xff] }
 0x1cf   :  { %7415 = vmatpush.bf16.msra.mxu2 %v21269_v8  ;;  %v21299_v8 = vld [vmem:[#allocation5 + $0xda0] sm:$0xff]  ;;  %v21304_v29 = vld [vmem:[#allocation5 + $0xdc8] sm:$0xff] }
 0x1d0   :  { %7428 = vmatpush.bf16.msra.mxu3 %v21277_v9  ;;  %v23171_v30 = vadd.f32 %v7176_v28, %v7164_v27  ;;  %v21307_v9 = vld [vmem:[#allocation5 + $0xde0] sm:$0xff]  ;;  %v269_v27 = vld [vmem:[#allocation2 + $0x70] sm:$0xff]  ;;  %v21296_v28 = vld [vmem:[#allocation5 + $0xd88] sm:$0xff] }
 0x1d1   :  { %7390 = vmatpush.bf16.msra.mxu0 %v21252_v10  ;;  %1911 = vst [vmem:[#allocation1] ss:$4 sm:$0xff] %v269_v27  ;;  %v21287_v33 = vld [vmem:[#allocation5 + $0xd40] sm:$0xff] }
 0x1d2   :  { %7403 = vmatpush.bf16.msra.mxu1 %v21260_v11  ;;  %v21282_v11 = vld [vmem:[#allocation5 + $0xd18] sm:$0xff] }
 0x1d3   :  { %7416 = vmatpush.bf16.msra.mxu2 %v21268_v12  ;;  %v21290_v12 = vld [vmem:[#allocation5 + $0xd58] sm:$0xff] }
 0x1d4   :  { %7429 = vmatpush.bf16.msra.mxu3 %v21276_v13  ;;  %v21298_v13 = vld [vmem:[#allocation5 + $0xd98] sm:$0xff] }
 0x1d5   :  { %7391 = vmatpush.bf16.msra.mxu0 %v21251_v16  ;;  %v7165_v41 = vpop.f32.mrf.mxu2 }
 0x1d6   :  { %7404 = vmatpush.bf16.msra.mxu1 %v21259_v17  ;;  %v7178_v42 = vpop.f32.mrf.mxu3  ;;  %v1910_v41 = vld.sshfl [vmem:[#allocation1 + $0x38] sm:$0xff pattern:$0x73625140] }
 0x1d7   :  { %7417 = vmatpush.bf16.msra.mxu2 %v21267_v19  ;;  %v21334_v42 = vld [vmem:[#allocation5 + $0xeb8] sm:$0xff] }
 0x1d8   :  { %7430 = vmatpush.bf16.msra.mxu3 %v21275_v20  ;;  %v21281_v20 = vld [vmem:[#allocation5 + $0xd10] sm:$0xff]  ;;  %v1913_v27 = vld.sshfl [vmem:[#allocation1] sm:$0xff pattern:$0x73625140] }
 0x1d9   :  { %7392 = vmatpush.bf16.msra.mxu0 %v21250_v22 }
 0x1da   :  { %7405 = vmatpush.bf16.msra.mxu1 %v21258_v23  ;;  %v21297_v23 = vld [vmem:[#allocation5 + $0xd90] sm:$0xff] }
 0x1db   :  { %7418 = vmatpush.bf16.msra.mxu2 %v21266_v24  ;;  %v21305_v24 = vld [vmem:[#allocation5 + $0xdd0] sm:$0xff] }
 0x1dc   :  { %7431 = vmatpush.bf16.msra.mxu3 %v21274_v25  ;;  %v21280_v25 = vld [vmem:[#allocation5 + $0xd08] sm:$0xff] }
 0x1dd   :  { %7393 = vmatpush.bf16.msra.mxu0 %v21249_v31 }
 0x1de   :  { %7406 = vmatpush.bf16.msra.mxu1 %v21257_v32  ;;  %v21279_v32 = vld [vmem:[#allocation5 + $0xd00] sm:$0xff] }
 0x1df   :  { %7419 = vmatpush.bf16.msra.mxu2 %v21265_v34  ;;  %v21295_v34 = vld [vmem:[#allocation5 + $0xd80] sm:$0xff] }
 0x1e0   :  { %7432 = vmatpush.bf16.msra.mxu3 %v21273_v35  ;;  %v21303_v35 = vld [vmem:[#allocation5 + $0xdc0] sm:$0xff] }
 0x1e1   :  { %7394 = vmatpush.bf16.msra.mxu0 %v21248_v36  ;;  %v21318_v36 = vld [vmem:[#allocation5 + $0xe38] sm:$0xff] }
 0x1e2   :  { %7407 = vmatpush.bf16.msra.mxu1 %v21256_v37  ;;  %v21326_v37 = vld [vmem:[#allocation5 + $0xe78] sm:$0xff] }
 0x1e3   :  { %7420 = vmatpush.bf16.msra.mxu2 %v21264_v39  ;;  %v1909_v39 = vld.sshfl [vmem:[#allocation1 + $0x30] sm:$0xff pattern:$0x73625140] }
 0x1e4   :  { %7433 = vmatpush.bf16.msra.mxu3 %v21272_v40  ;;  %v1908_v40 = vld.sshfl [vmem:[#allocation1 + $0x28] sm:$0xff pattern:$0x73625140] }
 0x1e5   :  { %7395 = vmatpush.bf16.msra.mxu0 %v21247_v43  ;;  %v7189_v3 = vpop.f32.mrf.mxu0  ;;  %v21342_v43 = vld [vmem:[#allocation5 + $0xef8] sm:$0xff] }
 0x1e6   :  { %7408 = vmatpush.bf16.msra.mxu1 %v21255_v44  ;;  %v7190_v4 = vadd.f32 %v7189_v3, %v23171_v30  ;;  %v7202_v7 = vpop.f32.mrf.mxu1  ;;  %v2109_v44 = vpack.c.bf16 %v1907_v38, %v1907_v38  ;;  %v21338_v3 = vld [vmem:[#allocation5 + $0xed8] sm:$0xff]  ;;  %v21357_v38 = vld [vmem:[#allocation5 + $0xf70] sm:$0xff] }
 0x1e7   :  { %7421 = vmatpush.bf16.msra.mxu2 %v21263_v45  ;;  %v2111_v45 = vpack.c.bf16 %v1909_v39, %v1909_v39  ;;  %v21365_v39 = vld [vmem:[#allocation5 + $0xfb0] sm:$0xff] }
 0x1e8   :  { %7434 = vmatpush.bf16.msra.mxu3 %v21271_v46  ;;  %7396 = vmatmul.bf16.vlgmr.msra.gmra.mxu0 %v2105_v55  ;;  %v7203_v10 = vadd.f32 %v7202_v7, %v7190_v4  ;;  %v2110_v46 = vpack.c.bf16 %v1908_v40, %v1908_v40  ;;  %v21340_v55 = vld [vmem:[#allocation5 + $0xee8] sm:$0xff]  ;;  %v21373_v40 = vld [vmem:[#allocation5 + $0xff0] sm:$0xff] }
 0x1e9   :  { %7440 = vmatpush.bf16.msrb.mxu0 %v21286_v47  ;;  %7409 = vmatmul.bf16.vlgmr.msra.gmra.mxu1 %v2106_v57  ;;  %v2112_v47 = vpack.c.bf16 %v1910_v41, %v1910_v41  ;;  %v21348_v41 = vld [vmem:[#allocation5 + $0xf28] sm:$0xff] }
 0x1ea   :  { %7453 = vmatpush.bf16.msrb.mxu1 %v21294_v48  ;;  %7422 = vmatmul.bf16.vlgmr.msra.gmra.mxu2 %v2107_v56  ;;  %v21317_v48 = vld [vmem:[#allocation5 + $0xe30] sm:$0xff] }
 0x1eb   :  { %7466 = vmatpush.bf16.msrb.mxu2 %v21302_v53  ;;  %7435 = vmatmul.bf16.vlgmr.msra.gmra.mxu3 %v2108_v58  ;;  %v21324_v53 = vld [vmem:[#allocation5 + $0xe68] sm:$0xff]  ;;  %v21315_v58 = vld [vmem:[#allocation5 + $0xe20] sm:$0xff] }
 0x1ec   :  { %7479 = vmatpush.bf16.msrb.mxu3 %v21310_v54  ;;  %v21332_v54 = vld [vmem:[#allocation5 + $0xea8] sm:$0xff] }
 0x1ed   :  { %7441 = vmatpush.bf16.msrb.mxu0 %v21285_v59  ;;  %v7215_v15 = vpop.f32.mrf.mxu2  ;;  %v7191_v18 = vpop.f32.mrf.mxu0  ;;  %v21323_v59 = vld [vmem:[#allocation5 + $0xe60] sm:$0xff] }
 0x1ee   :  { %7454 = vmatpush.bf16.msrb.mxu1 %v21293_v60  ;;  %v7216_v16 = vadd.f32 %v7215_v15, %v7203_v10  ;;  %v7228_v17 = vpop.f32.mrf.mxu3  ;;  %v7204_v22 = vpop.f32.mrf.mxu1  ;;  %v21321_v10 = vld [vmem:[#allocation5 + $0xe50] sm:$0xff]  ;;  %v21320_v15 = vld [vmem:[#allocation5 + $0xe48] sm:$0xff] }
 0x1ef   :  { %7467 = vmatpush.bf16.msrb.mxu2 %v21301_v61  ;;  %v21331_v61 = vld [vmem:[#allocation5 + $0xea0] sm:$0xff]  ;;  %v21336_v18 = vld [vmem:[#allocation5 + $0xec8] sm:$0xff] }
 0x1f0   :  { %7480 = vmatpush.bf16.msrb.mxu3 %v21309_v62  ;;  %v23174_v19 = vadd.f32 %v7228_v17, %v7216_v16  ;;  %v21339_v62 = vld [vmem:[#allocation5 + $0xee0] sm:$0xff]  ;;  %v270_v16 = vld [vmem:[#allocation2 + $0x78] sm:$0xff]  ;;  %v21328_v17 = vld [vmem:[#allocation5 + $0xe88] sm:$0xff] }
 0x1f1   :  { %7442 = vmatpush.bf16.msrb.mxu0 %v21284_v63  ;;  %1912 = vst [vmem:[#allocation1 + $0x20] ss:$4 sm:$0xff] %v270_v16  ;;  %v21319_v22 = vld [vmem:[#allocation5 + $0xe40] sm:$0xff] }
 0x1f2   :  { %7455 = vmatpush.bf16.msrb.mxu1 %v21292_v0  ;;  %v21314_v0 = vld [vmem:[#allocation5 + $0xe18] sm:$0xff] }
 0x1f3   :  { %7468 = vmatpush.bf16.msrb.mxu2 %v21300_v1  ;;  %v21322_v1 = vld [vmem:[#allocation5 + $0xe58] sm:$0xff] }
 0x1f4   :  { %7481 = vmatpush.bf16.msrb.mxu3 %v21308_v2  ;;  %v21330_v2 = vld [vmem:[#allocation5 + $0xe98] sm:$0xff] }
 0x1f5   :  { %7443 = vmatpush.bf16.msrb.mxu0 %v21283_v5  ;;  %v7217_v30 = vpop.f32.mrf.mxu2 }
 0x1f6   :  { %7456 = vmatpush.bf16.msrb.mxu1 %v21291_v6  ;;  %v7230_v31 = vpop.f32.mrf.mxu3  ;;  %v1916_v30 = vld.sshfl [vmem:[#allocation1 + $0x18] sm:$0xff pattern:$0x73625140] }
 0x1f7   :  { %7469 = vmatpush.bf16.msrb.mxu2 %v21299_v8  ;;  %v21366_v31 = vld [vmem:[#allocation5 + $0xfb8] sm:$0xff] }
 0x1f8   :  { %7482 = vmatpush.bf16.msrb.mxu3 %v21307_v9  ;;  %v21313_v9 = vld [vmem:[#allocation5 + $0xe10] sm:$0xff]  ;;  %v1917_v16 = vld.sshfl [vmem:[#allocation1 + $0x20] sm:$0xff pattern:$0x73625140] }
 0x1f9   :  { %7444 = vmatpush.bf16.msrb.mxu0 %v21282_v11 }
 0x1fa   :  { %7457 = vmatpush.bf16.msrb.mxu1 %v21290_v12  ;;  %v21329_v12 = vld [vmem:[#allocation5 + $0xe90] sm:$0xff] }
 0x1fb   :  { %7470 = vmatpush.bf16.msrb.mxu2 %v21298_v13  ;;  %v21337_v13 = vld [vmem:[#allocation5 + $0xed0] sm:$0xff] }
 0x1fc   :  { %7483 = vmatpush.bf16.msrb.mxu3 %v21306_v14  ;;  %v21312_v14 = vld [vmem:[#allocation5 + $0xe08] sm:$0xff] }
 0x1fd   :  { %7445 = vmatpush.bf16.msrb.mxu0 %v21281_v20 }
 0x1fe   :  { %7458 = vmatpush.bf16.msrb.mxu1 %v21289_v21  ;;  %v21311_v21 = vld [vmem:[#allocation5 + $0xe00] sm:$0xff] }
 0x1ff   :  { %7471 = vmatpush.bf16.msrb.mxu2 %v21297_v23  ;;  %v21327_v23 = vld [vmem:[#allocation5 + $0xe80] sm:$0xff] }
 0x200   :  { %7484 = vmatpush.bf16.msrb.mxu3 %v21305_v24  ;;  %v21335_v24 = vld [vmem:[#allocation5 + $0xec0] sm:$0xff] }
 0x201   :  { %7446 = vmatpush.bf16.msrb.mxu0 %v21280_v25  ;;  %v21350_v25 = vld [vmem:[#allocation5 + $0xf38] sm:$0xff] }
 0x202   :  { %7459 = vmatpush.bf16.msrb.mxu1 %v21288_v26  ;;  %v21358_v26 = vld [vmem:[#allocation5 + $0xf78] sm:$0xff] }
 0x203   :  { %7472 = vmatpush.bf16.msrb.mxu2 %v21296_v28  ;;  %v1915_v28 = vld.sshfl [vmem:[#allocation1 + $0x10] sm:$0xff pattern:$0x73625140] }
 0x204   :  { %7485 = vmatpush.bf16.msrb.mxu3 %v21304_v29  ;;  %v1914_v29 = vld.sshfl [vmem:[#allocation1 + $0x8] sm:$0xff pattern:$0x73625140] }
 0x205   :  { %7447 = vmatpush.bf16.msrb.mxu0 %v21279_v32  ;;  %v7241_v56 = vpop.f32.mrf.mxu0  ;;  %v21374_v32 = vld [vmem:[#allocation5 + $0xff8] sm:$0xff] }
 0x206   :  { %7460 = vmatpush.bf16.msrb.mxu1 %v21287_v33  ;;  %v7242_v57 = vadd.f32 %v7241_v56, %v23174_v19  ;;  %v7254_v60 = vpop.f32.mrf.mxu1  ;;  %v2113_v33 = vpack.c.bf16 %v1913_v27, %v1913_v27  ;;  %v21370_v56 = vld [vmem:[#allocation5 + $0xfd8] sm:$0xff]  ;;  %v21389_v27 = vld [vmem:[#allocation5 + $0x1070] sm:$0xff] }
 0x207   :  { %7473 = vmatpush.bf16.msrb.mxu2 %v21295_v34  ;;  %v2115_v34 = vpack.c.bf16 %v1915_v28, %v1915_v28  ;;  %v21397_v28 = vld [vmem:[#allocation5 + $0x10b0] sm:$0xff] }
 0x208   :  { %7486 = vmatpush.bf16.msrb.mxu3 %v21303_v35  ;;  %7448 = vmatmul.bf16.vlgmr.msrb.gmra.mxu0 %v2109_v44  ;;  %v7255_v63 = vadd.f32 %v7254_v60, %v7242_v57  ;;  %v2114_v35 = vpack.c.bf16 %v1914_v29, %v1914_v29  ;;  %v21372_v44 = vld [vmem:[#allocation5 + $0xfe8] sm:$0xff]  ;;  %v21405_v29 = vld [vmem:[#allocation5 + $0x10f0] sm:$0xff] }
 0x209   :  { %7492 = vmatpush.bf16.msra.mxu0 %v21318_v36  ;;  %7461 = vmatmul.bf16.vlgmr.msrb.gmra.mxu1 %v2110_v46  ;;  %v2116_v36 = vpack.c.bf16 %v1916_v30, %v1916_v30  ;;  %v21380_v30 = vld [vmem:[#allocation5 + $0x1028] sm:$0xff] }
 0x20a   :  { %7505 = vmatpush.bf16.msra.mxu1 %v21326_v37  ;;  %7474 = vmatmul.bf16.vlgmr.msrb.gmra.mxu2 %v2111_v45  ;;  %v21349_v37 = vld [vmem:[#allocation5 + $0xf30] sm:$0xff] }
 0x20b   :  { %7518 = vmatpush.bf16.msra.mxu2 %v21334_v42  ;;  %7487 = vmatmul.bf16.vlgmr.msrb.gmra.mxu3 %v2112_v47  ;;  %v21356_v42 = vld [vmem:[#allocation5 + $0xf68] sm:$0xff]  ;;  %v21347_v47 = vld [vmem:[#allocation5 + $0xf20] sm:$0xff] }
 0x20c   :  { %7531 = vmatpush.bf16.msra.mxu3 %v21342_v43  ;;  %v21364_v43 = vld [vmem:[#allocation5 + $0xfa8] sm:$0xff] }
 0x20d   :  { %7493 = vmatpush.bf16.msra.mxu0 %v21317_v48  ;;  %v7267_v4 = vpop.f32.mrf.mxu2  ;;  %v7243_v7 = vpop.f32.mrf.mxu0  ;;  %v21355_v48 = vld [vmem:[#allocation5 + $0xf60] sm:$0xff] }
 0x20e   :  { %7506 = vmatpush.bf16.msra.mxu1 %v21325_v49  ;;  %v7268_v5 = vadd.f32 %v7267_v4, %v7255_v63  ;;  %v7280_v6 = vpop.f32.mrf.mxu3  ;;  %v7256_v11 = vpop.f32.mrf.mxu1  ;;  %v21353_v63 = vld [vmem:[#allocation5 + $0xf50] sm:$0xff]  ;;  %v21352_v4 = vld [vmem:[#allocation5 + $0xf48] sm:$0xff] }
 0x20f   :  { %7519 = vmatpush.bf16.msra.mxu2 %v21333_v50  ;;  %v21363_v50 = vld [vmem:[#allocation5 + $0xfa0] sm:$0xff]  ;;  %v21368_v7 = vld [vmem:[#allocation5 + $0xfc8] sm:$0xff] }
 0x210   :  { %7532 = vmatpush.bf16.msra.mxu3 %v21341_v51  ;;  %v23177_v8 = vadd.f32 %v7280_v6, %v7268_v5  ;;  %v21371_v51 = vld [vmem:[#allocation5 + $0xfe0] sm:$0xff]  ;;  %v21360_v6 = vld [vmem:[#allocation5 + $0xf88] sm:$0xff] }
 0x211   :  { %7494 = vmatpush.bf16.msra.mxu0 %v21316_v52  ;;  %v271_v5 = vld [vmem:[#allocation2 + $0x80] sm:$0xff] }
 0x212   :  { %7507 = vmatpush.bf16.msra.mxu1 %v21324_v53  ;;  %v21346_v53 = vld [vmem:[#allocation5 + $0xf18] sm:$0xff]  ;;  %1921 = vst [vmem:[#allocation1] ss:$4 sm:$0xff] %v271_v5  ;;  %v21351_v11 = vld [vmem:[#allocation5 + $0xf40] sm:$0xff] }
 0x213   :  { %7520 = vmatpush.bf16.msra.mxu2 %v21332_v54  ;;  %v21354_v54 = vld [vmem:[#allocation5 + $0xf58] sm:$0xff] }
 0x214   :  { %7533 = vmatpush.bf16.msra.mxu3 %v21340_v55  ;;  %v21362_v55 = vld [vmem:[#allocation5 + $0xf98] sm:$0xff] }
 0x215   :  { %7495 = vmatpush.bf16.msra.mxu0 %v21315_v58  ;;  %v7269_v19 = vpop.f32.mrf.mxu2 }
 0x216   :  { %7508 = vmatpush.bf16.msra.mxu1 %v21323_v59  ;;  %v7282_v20 = vpop.f32.mrf.mxu3  ;;  %v1920_v19 = vld.sshfl [vmem:[#allocation1 + $0x38] sm:$0xff pattern:$0x73625140] }
 0x217   :  { %7521 = vmatpush.bf16.msra.mxu2 %v21331_v61  ;;  %v21398_v20 = vld [vmem:[#allocation5 + $0x10b8] sm:$0xff] }
 0x218   :  { %7534 = vmatpush.bf16.msra.mxu3 %v21339_v62  ;;  %v21345_v62 = vld [vmem:[#allocation5 + $0xf10] sm:$0xff] }
 0x219   :  { %7496 = vmatpush.bf16.msra.mxu0 %v21314_v0  ;;  %v1923_v5 = vld.sshfl [vmem:[#allocation1] sm:$0xff pattern:$0x73625140] }
 0x21a   :  { %7509 = vmatpush.bf16.msra.mxu1 %v21322_v1  ;;  %v21361_v1 = vld [vmem:[#allocation5 + $0xf90] sm:$0xff] }
 0x21b   :  { %7522 = vmatpush.bf16.msra.mxu2 %v21330_v2  ;;  %v21369_v2 = vld [vmem:[#allocation5 + $0xfd0] sm:$0xff] }
 0x21c   :  { %7535 = vmatpush.bf16.msra.mxu3 %v21338_v3  ;;  %v21344_v3 = vld [vmem:[#allocation5 + $0xf08] sm:$0xff] }
 0x21d   :  { %7497 = vmatpush.bf16.msra.mxu0 %v21313_v9 }
 0x21e   :  { %7510 = vmatpush.bf16.msra.mxu1 %v21321_v10  ;;  %v21343_v10 = vld [vmem:[#allocation5 + $0xf00] sm:$0xff] }
 0x21f   :  { %7523 = vmatpush.bf16.msra.mxu2 %v21329_v12  ;;  %v21359_v12 = vld [vmem:[#allocation5 + $0xf80] sm:$0xff] }
 0x220   :  { %7536 = vmatpush.bf16.msra.mxu3 %v21337_v13  ;;  %v21367_v13 = vld [vmem:[#allocation5 + $0xfc0] sm:$0xff] }
 0x221   :  { %7498 = vmatpush.bf16.msra.mxu0 %v21312_v14  ;;  %v21382_v14 = vld [vmem:[#allocation5 + $0x1038] sm:$0xff] }
 0x222   :  { %7511 = vmatpush.bf16.msra.mxu1 %v21320_v15  ;;  %v21390_v15 = vld [vmem:[#allocation5 + $0x1078] sm:$0xff] }
 0x223   :  { %7524 = vmatpush.bf16.msra.mxu2 %v21328_v17  ;;  %v1919_v17 = vld.sshfl [vmem:[#allocation1 + $0x30] sm:$0xff pattern:$0x73625140] }
 0x224   :  { %7537 = vmatpush.bf16.msra.mxu3 %v21336_v18  ;;  %v1918_v18 = vld.sshfl [vmem:[#allocation1 + $0x28] sm:$0xff pattern:$0x73625140] }
 0x225   :  { %7499 = vmatpush.bf16.msra.mxu0 %v21311_v21  ;;  %v7293_v45 = vpop.f32.mrf.mxu0  ;;  %v21406_v21 = vld [vmem:[#allocation5 + $0x10f8] sm:$0xff] }
 0x226   :  { %7512 = vmatpush.bf16.msra.mxu1 %v21319_v22  ;;  %v7294_v46 = vadd.f32 %v7293_v45, %v23177_v8  ;;  %v7306_v49 = vpop.f32.mrf.mxu1  ;;  %v2117_v22 = vpack.c.bf16 %v1917_v16, %v1917_v16  ;;  %v21402_v45 = vld [vmem:[#allocation5 + $0x10d8] sm:$0xff]  ;;  %v21421_v16 = vld [vmem:[#allocation5 + $0x1170] sm:$0xff] }
 0x227   :  { %7525 = vmatpush.bf16.msra.mxu2 %v21327_v23  ;;  %v2119_v23 = vpack.c.bf16 %v1919_v17, %v1919_v17  ;;  %v21429_v17 = vld [vmem:[#allocation5 + $0x11b0] sm:$0xff] }
 0x228   :  { %7538 = vmatpush.bf16.msra.mxu3 %v21335_v24  ;;  %7500 = vmatmul.bf16.vlgmr.msra.gmra.mxu0 %v2113_v33  ;;  %v7307_v52 = vadd.f32 %v7306_v49, %v7294_v46  ;;  %v2118_v24 = vpack.c.bf16 %v1918_v18, %v1918_v18  ;;  %v21404_v33 = vld [vmem:[#allocation5 + $0x10e8] sm:$0xff]  ;;  %v21437_v18 = vld [vmem:[#allocation5 + $0x11f0] sm:$0xff] }
 0x229   :  { %7544 = vmatpush.bf16.msrb.mxu0 %v21350_v25  ;;  %7513 = vmatmul.bf16.vlgmr.msra.gmra.mxu1 %v2114_v35  ;;  %v2120_v25 = vpack.c.bf16 %v1920_v19, %v1920_v19  ;;  %v21412_v19 = vld [vmem:[#allocation5 + $0x1128] sm:$0xff] }
 0x22a   :  { %7557 = vmatpush.bf16.msrb.mxu1 %v21358_v26  ;;  %7526 = vmatmul.bf16.vlgmr.msra.gmra.mxu2 %v2115_v34  ;;  %v21381_v26 = vld [vmem:[#allocation5 + $0x1030] sm:$0xff] }
 0x22b   :  { %7570 = vmatpush.bf16.msrb.mxu2 %v21366_v31  ;;  %7539 = vmatmul.bf16.vlgmr.msra.gmra.mxu3 %v2116_v36  ;;  %v21388_v31 = vld [vmem:[#allocation5 + $0x1068] sm:$0xff]  ;;  %v21379_v36 = vld [vmem:[#allocation5 + $0x1020] sm:$0xff] }
 0x22c   :  { %7583 = vmatpush.bf16.msrb.mxu3 %v21374_v32  ;;  %v21396_v32 = vld [vmem:[#allocation5 + $0x10a8] sm:$0xff] }
 0x22d   :  { %7545 = vmatpush.bf16.msrb.mxu0 %v21349_v37  ;;  %v7319_v57 = vpop.f32.mrf.mxu2  ;;  %v7295_v60 = vpop.f32.mrf.mxu0  ;;  %v21387_v37 = vld [vmem:[#allocation5 + $0x1060] sm:$0xff] }
 0x22e   :  { %7558 = vmatpush.bf16.msrb.mxu1 %v21357_v38  ;;  %v7320_v58 = vadd.f32 %v7319_v57, %v7307_v52  ;;  %v7332_v59 = vpop.f32.mrf.mxu3  ;;  %v7308_v0 = vpop.f32.mrf.mxu1  ;;  %v21385_v52 = vld [vmem:[#allocation5 + $0x1050] sm:$0xff]  ;;  %v21384_v57 = vld [vmem:[#allocation5 + $0x1048] sm:$0xff] }
 0x22f   :  { %7571 = vmatpush.bf16.msrb.mxu2 %v21365_v39  ;;  %v21395_v39 = vld [vmem:[#allocation5 + $0x10a0] sm:$0xff]  ;;  %v21400_v60 = vld [vmem:[#allocation5 + $0x10c8] sm:$0xff] }
 0x230   :  { %7584 = vmatpush.bf16.msrb.mxu3 %v21373_v40  ;;  %v23180_v61 = vadd.f32 %v7332_v59, %v7320_v58  ;;  %v21403_v40 = vld [vmem:[#allocation5 + $0x10e0] sm:$0xff]  ;;  %v272_v58 = vld [vmem:[#allocation2 + $0x88] sm:$0xff] }
 0x231   :  { %7546 = vmatpush.bf16.msrb.mxu0 %v21348_v41  ;;  %v21392_v59 = vld [vmem:[#allocation5 + $0x1088] sm:$0xff]  ;;  %1922 = vst [vmem:[#allocation1 + $0x20] ss:$4 sm:$0xff] %v272_v58  ;;  %v21383_v0 = vld [vmem:[#allocation5 + $0x1040] sm:$0xff] }
 0x232   :  { %7559 = vmatpush.bf16.msrb.mxu1 %v21356_v42  ;;  %v21378_v42 = vld [vmem:[#allocation5 + $0x1018] sm:$0xff] }
 0x233   :  { %7572 = vmatpush.bf16.msrb.mxu2 %v21364_v43  ;;  %v21386_v43 = vld [vmem:[#allocation5 + $0x1058] sm:$0xff] }
 0x234   :  { %7585 = vmatpush.bf16.msrb.mxu3 %v21372_v44  ;;  %v21394_v44 = vld [vmem:[#allocation5 + $0x1098] sm:$0xff] }
 0x235   :  { %7547 = vmatpush.bf16.msrb.mxu0 %v21347_v47  ;;  %v7321_v8 = vpop.f32.mrf.mxu2 }
 0x236   :  { %7560 = vmatpush.bf16.msrb.mxu1 %v21355_v48  ;;  %v7334_v9 = vpop.f32.mrf.mxu3  ;;  %v1926_v8 = vld.sshfl [vmem:[#allocation1 + $0x18] sm:$0xff pattern:$0x73625140] }
 0x237   :  { %7573 = vmatpush.bf16.msrb.mxu2 %v21363_v50  ;;  %v21430_v9 = vld [vmem:[#allocation5 + $0x11b8] sm:$0xff] }
 0x238   :  { %7586 = vmatpush.bf16.msrb.mxu3 %v21371_v51  ;;  %v21377_v51 = vld [vmem:[#allocation5 + $0x1010] sm:$0xff]  ;;  %v1928_v58 = vld.sshfl [vmem:[#allocation1 + $0x28] sm:$0xff pattern:$0x73625140] }
 0x239   :  { %7548 = vmatpush.bf16.msrb.mxu0 %v21346_v53 }
 0x23a   :  { %7561 = vmatpush.bf16.msrb.mxu1 %v21354_v54  ;;  %v21393_v54 = vld [vmem:[#allocation5 + $0x1090] sm:$0xff] }
 0x23b   :  { %7574 = vmatpush.bf16.msrb.mxu2 %v21362_v55  ;;  %v21401_v55 = vld [vmem:[#allocation5 + $0x10d0] sm:$0xff] }
 0x23c   :  { %7587 = vmatpush.bf16.msrb.mxu3 %v21370_v56  ;;  %v21376_v56 = vld [vmem:[#allocation5 + $0x1008] sm:$0xff] }
 0x23d   :  { %7549 = vmatpush.bf16.msrb.mxu0 %v21345_v62 }
 0x23e   :  { %7562 = vmatpush.bf16.msrb.mxu1 %v21353_v63  ;;  %v21375_v63 = vld [vmem:[#allocation5 + $0x1000] sm:$0xff] }
 0x23f   :  { %7575 = vmatpush.bf16.msrb.mxu2 %v21361_v1  ;;  %v21391_v1 = vld [vmem:[#allocation5 + $0x1080] sm:$0xff] }
 0x240   :  { %7588 = vmatpush.bf16.msrb.mxu3 %v21369_v2  ;;  %v21399_v2 = vld [vmem:[#allocation5 + $0x10c0] sm:$0xff] }
 0x241   :  { %7550 = vmatpush.bf16.msrb.mxu0 %v21344_v3  ;;  %v21414_v3 = vld [vmem:[#allocation5 + $0x1138] sm:$0xff] }
 0x242   :  { %7563 = vmatpush.bf16.msrb.mxu1 %v21352_v4  ;;  %v21422_v4 = vld [vmem:[#allocation5 + $0x1178] sm:$0xff] }
 0x243   :  { %7576 = vmatpush.bf16.msrb.mxu2 %v21360_v6  ;;  %v1925_v6 = vld.sshfl [vmem:[#allocation1 + $0x10] sm:$0xff pattern:$0x73625140] }
 0x244   :  { %7589 = vmatpush.bf16.msrb.mxu3 %v21368_v7  ;;  %v1924_v7 = vld.sshfl [vmem:[#allocation1 + $0x8] sm:$0xff pattern:$0x73625140] }
 0x245   :  { %7551 = vmatpush.bf16.msrb.mxu0 %v21343_v10  ;;  %v7345_v34 = vpop.f32.mrf.mxu0  ;;  %v21438_v10 = vld [vmem:[#allocation5 + $0x11f8] sm:$0xff] }
 0x246   :  { %7564 = vmatpush.bf16.msrb.mxu1 %v21351_v11  ;;  %v7346_v35 = vadd.f32 %v7345_v34, %v23180_v61  ;;  %v7358_v38 = vpop.f32.mrf.mxu1  ;;  %v2121_v11 = vpack.c.bf16 %v1923_v5, %v1923_v5  ;;  %v21469_v5 = vld [vmem:[#allocation5 + $0x12f0] sm:$0xff] }
 0x247   :  { %7577 = vmatpush.bf16.msrb.mxu2 %v21359_v12  ;;  %v2123_v12 = vpack.c.bf16 %v1925_v6, %v1925_v6 }
 0x248   :  { %7590 = vmatpush.bf16.msrb.mxu3 %v21367_v13  ;;  %7552 = vmatmul.bf16.vlgmr.msrb.gmra.mxu0 %v2117_v22  ;;  %v7359_v41 = vadd.f32 %v7358_v38, %v7346_v35  ;;  %v2122_v13 = vpack.c.bf16 %v1924_v7, %v1924_v7  ;;  %v21436_v22 = vld [vmem:[#allocation5 + $0x11e8] sm:$0xff] }
 0x249   :  { %7596 = vmatpush.bf16.msra.mxu0 %v21382_v14  ;;  %7565 = vmatmul.bf16.vlgmr.msrb.gmra.mxu1 %v2118_v24  ;;  %v2124_v14 = vpack.c.bf16 %v1926_v8, %v1926_v8  ;;  %v21411_v24 = vld [vmem:[#allocation5 + $0x1120] sm:$0xff]  ;;  %v21444_v7 = vld [vmem:[#allocation5 + $0x1228] sm:$0xff] }
 0x24a   :  { %7609 = vmatpush.bf16.msra.mxu1 %v21390_v15  ;;  %7578 = vmatmul.bf16.vlgmr.msrb.gmra.mxu2 %v2119_v23  ;;  %v21413_v15 = vld [vmem:[#allocation5 + $0x1130] sm:$0xff]  ;;  %v21452_v8 = vld [vmem:[#allocation5 + $0x1268] sm:$0xff] }
 0x24b   :  { %7622 = vmatpush.bf16.msra.mxu2 %v21398_v20  ;;  %7591 = vmatmul.bf16.vlgmr.msrb.gmra.mxu3 %v2120_v25  ;;  %v21420_v20 = vld [vmem:[#allocation5 + $0x1168] sm:$0xff]  ;;  %v21419_v25 = vld [vmem:[#allocation5 + $0x1160] sm:$0xff] }
 0x24c   :  { %7635 = vmatpush.bf16.msra.mxu3 %v21406_v21  ;;  %v21428_v21 = vld [vmem:[#allocation5 + $0x11a8] sm:$0xff] }
 0x24d   :  { %7597 = vmatpush.bf16.msra.mxu0 %v21381_v26  ;;  %v7371_v46 = vpop.f32.mrf.mxu2  ;;  %v7347_v49 = vpop.f32.mrf.mxu0 }
 0x24e   :  { %7610 = vmatpush.bf16.msra.mxu1 %v21389_v27  ;;  %v7372_v47 = vadd.f32 %v7371_v46, %v7359_v41  ;;  %v7384_v48 = vpop.f32.mrf.mxu3  ;;  %v7360_v53 = vpop.f32.mrf.mxu1  ;;  %v21427_v27 = vld [vmem:[#allocation5 + $0x11a0] sm:$0xff]  ;;  %v21408_v41 = vld [vmem:[#allocation5 + $0x1108] sm:$0xff] }
 0x24f   :  { %7623 = vmatpush.bf16.msra.mxu2 %v21397_v28  ;;  %v21435_v28 = vld [vmem:[#allocation5 + $0x11e0] sm:$0xff]  ;;  %v21446_v53 = vld [vmem:[#allocation5 + $0x1238] sm:$0xff] }
 0x250   :  { %7636 = vmatpush.bf16.msra.mxu3 %v21405_v29  ;;  %v23183_v50 = vadd.f32 %v7384_v48, %v7372_v47  ;;  %v21410_v29 = vld [vmem:[#allocation5 + $0x1118] sm:$0xff]  ;;  %v21407_v48 = vld [vmem:[#allocation5 + $0x1100] sm:$0xff] }
 0x251   :  { %7598 = vmatpush.bf16.msra.mxu0 %v21380_v30  ;;  %v21418_v30 = vld [vmem:[#allocation5 + $0x1158] sm:$0xff]  ;;  %v21415_v49 = vld [vmem:[#allocation5 + $0x1140] sm:$0xff] }
 0x252   :  { %7611 = vmatpush.bf16.msra.mxu1 %v21388_v31  ;;  %v21426_v31 = vld [vmem:[#allocation5 + $0x1198] sm:$0xff] }
 0x253   :  { %7624 = vmatpush.bf16.msra.mxu2 %v21396_v32  ;;  %v21434_v32 = vld [vmem:[#allocation5 + $0x11d8] sm:$0xff] }
 0x254   :  { %7637 = vmatpush.bf16.msra.mxu3 %v21404_v33 }
 0x255   :  { %7599 = vmatpush.bf16.msra.mxu0 %v21379_v36  ;;  %v7373_v61 = vpop.f32.mrf.mxu2  ;;  %v21409_v36 = vld [vmem:[#allocation5 + $0x1110] sm:$0xff] }
 0x256   :  { %7612 = vmatpush.bf16.msra.mxu1 %v21387_v37  ;;  %v7386_v62 = vpop.f32.mrf.mxu3  ;;  %v21417_v37 = vld [vmem:[#allocation5 + $0x1150] sm:$0xff]  ;;  %v21470_v61 = vld [vmem:[#allocation5 + $0x12f8] sm:$0xff] }
 0x257   :  { %7625 = vmatpush.bf16.msra.mxu2 %v21395_v39  ;;  %v21425_v39 = vld [vmem:[#allocation5 + $0x1190] sm:$0xff] }
 0x258   :  { %7638 = vmatpush.bf16.msra.mxu3 %v21403_v40  ;;  %v21433_v40 = vld [vmem:[#allocation5 + $0x11d0] sm:$0xff] }
 0x259   :  { %7600 = vmatpush.bf16.msra.mxu0 %v21378_v42  ;;  %v21416_v42 = vld [vmem:[#allocation5 + $0x1148] sm:$0xff] }
 0x25a   :  { %7613 = vmatpush.bf16.msra.mxu1 %v21386_v43  ;;  %v273_v43 = vld [vmem:[#allocation2 + $0x90] sm:$0xff] }
 0x25b   :  { %7626 = vmatpush.bf16.msra.mxu2 %v21394_v44  ;;  %v21424_v44 = vld [vmem:[#allocation5 + $0x1188] sm:$0xff]  ;;  %1931 = vst [vmem:[#allocation1] ss:$4 sm:$0xff] %v273_v43  ;;  %v21463_v43 = vld [vmem:[#allocation5 + $0x12c0] sm:$0xff] }
 0x25c   :  { %7639 = vmatpush.bf16.msra.mxu3 %v21402_v45  ;;  %v21432_v45 = vld [vmem:[#allocation5 + $0x11c8] sm:$0xff] }
 0x25d   :  { %7601 = vmatpush.bf16.msra.mxu0 %v21377_v51  ;;  %v21423_v51 = vld [vmem:[#allocation5 + $0x1180] sm:$0xff] }
 0x25e   :  { %7614 = vmatpush.bf16.msra.mxu1 %v21385_v52  ;;  %v21431_v52 = vld [vmem:[#allocation5 + $0x11c0] sm:$0xff] }
 0x25f   :  { %7627 = vmatpush.bf16.msra.mxu2 %v21393_v54  ;;  %v21454_v54 = vld [vmem:[#allocation5 + $0x1278] sm:$0xff] }
 0x260   :  { %7640 = vmatpush.bf16.msra.mxu3 %v21401_v55  ;;  %v1927_v55 = vld.sshfl [vmem:[#allocation1 + $0x20] sm:$0xff pattern:$0x73625140] }
 0x261   :  { %7602 = vmatpush.bf16.msra.mxu0 %v21376_v56  ;;  %v1929_v56 = vld.sshfl [vmem:[#allocation1 + $0x30] sm:$0xff pattern:$0x73625140]  ;;  %v2125_v62 = vpack.c.bf16 %v1927_v55, %v1927_v55 }
 0x262   :  { %7615 = vmatpush.bf16.msra.mxu1 %v21384_v57 }
 0x263   :  { %7628 = vmatpush.bf16.msra.mxu2 %v21392_v59  ;;  %v1930_v59 = vld.sshfl [vmem:[#allocation1 + $0x38] sm:$0xff pattern:$0x73625140] }
 0x264   :  { %7641 = vmatpush.bf16.msra.mxu3 %v21400_v60  ;;  %v21462_v60 = vld [vmem:[#allocation5 + $0x12b8] sm:$0xff] }
 0x265   :  { %7603 = vmatpush.bf16.msra.mxu0 %v21375_v63  ;;  %v7397_v23 = vpop.f32.mrf.mxu0  ;;  %v2127_v63 = vpack.c.bf16 %v1929_v56, %v1929_v56 }
 0x266   :  { %7616 = vmatpush.bf16.msra.mxu1 %v21383_v0  ;;  %v7410_v26 = vpop.f32.mrf.mxu1  ;;  %v7398_v57 = vadd.f32 %v7397_v23, %v23183_v50  ;;  %v2126_v0 = vpack.c.bf16 %v1928_v58, %v1928_v58  ;;  %v21461_v50 = vld [vmem:[#allocation5 + $0x12b0] sm:$0xff]  ;;  %v21466_v23 = vld [vmem:[#allocation5 + $0x12d8] sm:$0xff] }
 0x267   :  { %7629 = vmatpush.bf16.msra.mxu2 %v21391_v1  ;;  %v2128_v1 = vpack.c.bf16 %v1930_v59, %v1930_v59  ;;  %v21485_v58 = vld [vmem:[#allocation5 + $0x1370] sm:$0xff] }
 0x268   :  { %7642 = vmatpush.bf16.msra.mxu3 %v21399_v2  ;;  %7604 = vmatmul.bf16.vlgmr.msra.gmra.mxu0 %v2121_v11  ;;  %v7411_v2 = vadd.f32 %v7410_v26, %v7398_v57  ;;  %v21477_v57 = vld [vmem:[#allocation5 + $0x1330] sm:$0xff] }
 0x269   :  { %7648 = vmatpush.bf16.msrb.mxu0 %v21414_v3  ;;  %7617 = vmatmul.bf16.vlgmr.msra.gmra.mxu1 %v2122_v13  ;;  %v21445_v3 = vld [vmem:[#allocation5 + $0x1230] sm:$0xff] }
 0x26a   :  { %7661 = vmatpush.bf16.msrb.mxu1 %v21422_v4  ;;  %7630 = vmatmul.bf16.vlgmr.msra.gmra.mxu2 %v2123_v12  ;;  %v21453_v4 = vld [vmem:[#allocation5 + $0x1270] sm:$0xff] }
 0x26b   :  { %7674 = vmatpush.bf16.msrb.mxu2 %v21430_v9  ;;  %7643 = vmatmul.bf16.vlgmr.msra.gmra.mxu3 %v2124_v14  ;;  %v21460_v9 = vld [vmem:[#allocation5 + $0x12a8] sm:$0xff]  ;;  %v21443_v14 = vld [vmem:[#allocation5 + $0x1220] sm:$0xff]  ;;  %v21493_v59 = vld [vmem:[#allocation5 + $0x13b0] sm:$0xff] }
 0x26c   :  { %7687 = vmatpush.bf16.msrb.mxu3 %v21438_v10  ;;  %v21468_v10 = vld [vmem:[#allocation5 + $0x12e8] sm:$0xff] }
 0x26d   :  { %7649 = vmatpush.bf16.msrb.mxu0 %v21413_v15  ;;  %v7423_v33 = vpop.f32.mrf.mxu2  ;;  %v7399_v35 = vpop.f32.mrf.mxu0  ;;  %v21451_v15 = vld [vmem:[#allocation5 + $0x1260] sm:$0xff] }
 0x26e   :  { %7662 = vmatpush.bf16.msrb.mxu1 %v21421_v16  ;;  %v23185_v34 = vpop.f32.mrf.mxu3  ;;  %v7412_v38 = vpop.f32.mrf.mxu1  ;;  %v7424_v6 = vadd.f32 %v7423_v33, %v7411_v2  ;;  %v21440_v33 = vld [vmem:[#allocation5 + $0x1208] sm:$0xff]  ;;  %v274_v35 = vld [vmem:[#allocation2 + $0x98] sm:$0xff] }
 0x26f   :  { %7675 = vmatpush.bf16.msrb.mxu2 %v21429_v17  ;;  %v21459_v17 = vld [vmem:[#allocation5 + $0x12a0] sm:$0xff]  ;;  %1932 = vst [vmem:[#allocation1 + $0x20] ss:$4 sm:$0xff] %v274_v35 }
 0x270   :  { %7688 = vmatpush.bf16.msrb.mxu3 %v21437_v18  ;;  %v7437_v11 = vadd.f32 %v23185_v34, %v7424_v6  ;;  %v21467_v18 = vld [vmem:[#allocation5 + $0x12e0] sm:$0xff]  ;;  %v21448_v34 = vld [vmem:[#allocation5 + $0x1248] sm:$0xff] }
 0x271   :  { %7650 = vmatpush.bf16.msrb.mxu0 %v21412_v19  ;;  %v21491_v6 = vld [vmem:[#allocation5 + $0x13a0] sm:$0xff] }
 0x272   :  { %7663 = vmatpush.bf16.msrb.mxu1 %v21420_v20  ;;  %v21442_v20 = vld [vmem:[#allocation5 + $0x1218] sm:$0xff] }
 0x273   :  { %7676 = vmatpush.bf16.msrb.mxu2 %v21428_v21  ;;  %v21450_v21 = vld [vmem:[#allocation5 + $0x1258] sm:$0xff] }
 0x274   :  { %7689 = vmatpush.bf16.msrb.mxu3 %v21436_v22  ;;  %v21458_v22 = vld [vmem:[#allocation5 + $0x1298] sm:$0xff] }
 0x275   :  { %7651 = vmatpush.bf16.msrb.mxu0 %v21411_v24  ;;  %v7425_v46 = vpop.f32.mrf.mxu2 }
 0x276   :  { %7664 = vmatpush.bf16.msrb.mxu1 %v21419_v25  ;;  %v7438_v47 = vpop.f32.mrf.mxu3  ;;  %v1933_v46 = vld.sshfl [vmem:[#allocation1] sm:$0xff pattern:$0x73625140] }
 0x277   :  { %7677 = vmatpush.bf16.msrb.mxu2 %v21427_v27  ;;  %v1935_v47 = vld.sshfl [vmem:[#allocation1 + $0x10] sm:$0xff pattern:$0x73625140]  ;;  %v1937_v35 = vld.sshfl [vmem:[#allocation1 + $0x20] sm:$0xff pattern:$0x73625140] }
 0x278   :  { %7690 = vmatpush.bf16.msrb.mxu3 %v21435_v28  ;;  %v21441_v28 = vld [vmem:[#allocation5 + $0x1210] sm:$0xff] }
 0x279   :  { %7652 = vmatpush.bf16.msrb.mxu0 %v21410_v29  ;;  %v21449_v29 = vld [vmem:[#allocation5 + $0x1250] sm:$0xff] }
 0x27a   :  { %7665 = vmatpush.bf16.msrb.mxu1 %v21418_v30 }
 0x27b   :  { %7678 = vmatpush.bf16.msrb.mxu2 %v21426_v31  ;;  %v21457_v31 = vld [vmem:[#allocation5 + $0x1290] sm:$0xff] }
 0x27c   :  { %7691 = vmatpush.bf16.msrb.mxu3 %v21434_v32  ;;  %v21465_v32 = vld [vmem:[#allocation5 + $0x12d0] sm:$0xff] }
 0x27d   :  { %7653 = vmatpush.bf16.msrb.mxu0 %v21409_v36  ;;  %v21456_v36 = vld [vmem:[#allocation5 + $0x1288] sm:$0xff] }
 0x27e   :  { %7666 = vmatpush.bf16.msrb.mxu1 %v21417_v37  ;;  %v21464_v37 = vld [vmem:[#allocation5 + $0x12c8] sm:$0xff] }
 0x27f   :  { %7679 = vmatpush.bf16.msrb.mxu2 %v21425_v39 }
 0x280   :  { %7692 = vmatpush.bf16.msrb.mxu3 %v21433_v40  ;;  %v21439_v40 = vld [vmem:[#allocation5 + $0x1200] sm:$0xff] }
 0x281   :  { %7654 = vmatpush.bf16.msrb.mxu0 %v21408_v41  ;;  %v21447_v41 = vld [vmem:[#allocation5 + $0x1240] sm:$0xff] }
 0x282   :  { %7667 = vmatpush.bf16.msrb.mxu1 %v21416_v42  ;;  %v21455_v42 = vld [vmem:[#allocation5 + $0x1280] sm:$0xff] }
 0x283   :  { %7680 = vmatpush.bf16.msrb.mxu2 %v21424_v44  ;;  %v21478_v44 = vld [vmem:[#allocation5 + $0x1338] sm:$0xff] }
 0x284   :  { %7693 = vmatpush.bf16.msrb.mxu3 %v21432_v45  ;;  %v21486_v45 = vld [vmem:[#allocation5 + $0x1378] sm:$0xff] }
 0x285   :  { %7655 = vmatpush.bf16.msrb.mxu0 %v21407_v48  ;;  %v7449_v12 = vpop.f32.mrf.mxu0  ;;  %v1934_v48 = vld.sshfl [vmem:[#allocation1 + $0x8] sm:$0xff pattern:$0x73625140] }
 0x286   :  { %7668 = vmatpush.bf16.msrb.mxu1 %v21415_v49  ;;  %v7450_v13 = vadd.f32 %v7449_v12, %v7437_v11  ;;  %v7462_v16 = vpop.f32.mrf.mxu1  ;;  %v1936_v49 = vld.sshfl [vmem:[#allocation1 + $0x18] sm:$0xff pattern:$0x73625140]  ;;  %v2130_v55 = vpack.c.bf16 %v1934_v48, %v1934_v48  ;;  %v21490_v11 = vld [vmem:[#allocation5 + $0x1398] sm:$0xff] }
 0x287   :  { %7681 = vmatpush.bf16.msrb.mxu2 %v21423_v51  ;;  %v21494_v51 = vld [vmem:[#allocation5 + $0x13b8] sm:$0xff]  ;;  %v2132_v56 = vpack.c.bf16 %v1936_v49, %v1936_v49  ;;  %v21533_v48 = vld [vmem:[#allocation5 + $0x14f0] sm:$0xff]  ;;  %v21508_v49 = vld [vmem:[#allocation5 + $0x1428] sm:$0xff] }
 0x288   :  { %7694 = vmatpush.bf16.msrb.mxu3 %v21431_v52  ;;  %7656 = vmatmul.bf16.vlgmr.msrb.gmra.mxu0 %v2125_v62  ;;  %v7463_v19 = vadd.f32 %v7462_v16, %v7450_v13  ;;  %v21502_v52 = vld [vmem:[#allocation5 + $0x13f8] sm:$0xff]  ;;  %v21484_v62 = vld [vmem:[#allocation5 + $0x1368] sm:$0xff] }
 0x289   :  { %7700 = vmatpush.bf16.msra.mxu0 %v21446_v53  ;;  %7669 = vmatmul.bf16.vlgmr.msrb.gmra.mxu1 %v2126_v0  ;;  %v2129_v53 = vpack.c.bf16 %v1933_v46, %v1933_v46  ;;  %v21500_v0 = vld [vmem:[#allocation5 + $0x13e8] sm:$0xff]  ;;  %v21498_v12 = vld [vmem:[#allocation5 + $0x13d8] sm:$0xff]  ;;  %v21517_v46 = vld [vmem:[#allocation5 + $0x1470] sm:$0xff] }
 0x28a   :  { %7713 = vmatpush.bf16.msra.mxu1 %v21454_v54  ;;  %7682 = vmatmul.bf16.vlgmr.msrb.gmra.mxu2 %v2127_v63  ;;  %v2131_v54 = vpack.c.bf16 %v1935_v47, %v1935_v47  ;;  %v21492_v63 = vld [vmem:[#allocation5 + $0x13a8] sm:$0xff]  ;;  %v21525_v47 = vld [vmem:[#allocation5 + $0x14b0] sm:$0xff] }
 0x28b   :  { %7726 = vmatpush.bf16.msra.mxu2 %v21462_v60  ;;  %7695 = vmatmul.bf16.vlgmr.msrb.gmra.mxu3 %v2128_v1  ;;  %v21501_v60 = vld [vmem:[#allocation5 + $0x13f0] sm:$0xff] }
 0x28c   :  { %7739 = vmatpush.bf16.msra.mxu3 %v21470_v61  ;;  %v21476_v61 = vld [vmem:[#allocation5 + $0x1328] sm:$0xff] }
 0x28d   :  { %7701 = vmatpush.bf16.msra.mxu0 %v21445_v3  ;;  %v7475_v24 = vpop.f32.mrf.mxu2  ;;  %v7451_v27 = vpop.f32.mrf.mxu0 }
 0x28e   :  { %7714 = vmatpush.bf16.msra.mxu1 %v21453_v4  ;;  %v23189_v25 = vadd.f32 %v7475_v24, %v7463_v19  ;;  %v23191_v26 = vpop.f32.mrf.mxu3  ;;  %v7464_v30 = vpop.f32.mrf.mxu1  ;;  %v21475_v4 = vld [vmem:[#allocation5 + $0x1320] sm:$0xff] }
 0x28f   :  { %7727 = vmatpush.bf16.msra.mxu2 %v21461_v50  ;;  %v21483_v50 = vld [vmem:[#allocation5 + $0x1360] sm:$0xff] }
 0x290   :  { %7740 = vmatpush.bf16.msra.mxu3 %v21469_v5  ;;  %v7489_v1 = vadd.f32 %v23191_v26, %v23189_v25  ;;  %v275_v24 = vld [vmem:[#allocation2 + $0xa0] sm:$0xff]  ;;  %v21488_v25 = vld [vmem:[#allocation5 + $0x1388] sm:$0xff] }
 0x291   :  { %7702 = vmatpush.bf16.msra.mxu0 %v21444_v7  ;;  %v21499_v7 = vld [vmem:[#allocation5 + $0x13e0] sm:$0xff]  ;;  %v21496_v26 = vld [vmem:[#allocation5 + $0x13c8] sm:$0xff]  ;;  %1941 = vst [vmem:[#allocation1] ss:$4 sm:$0xff] %v275_v24 }
 0x292   :  { %7715 = vmatpush.bf16.msra.mxu1 %v21452_v8  ;;  %v21479_v30 = vld [vmem:[#allocation5 + $0x1340] sm:$0xff] }
 0x293   :  { %7728 = vmatpush.bf16.msra.mxu2 %v21460_v9  ;;  %v21474_v9 = vld [vmem:[#allocation5 + $0x1318] sm:$0xff] }
 0x294   :  { %7741 = vmatpush.bf16.msra.mxu3 %v21468_v10  ;;  %v21482_v10 = vld [vmem:[#allocation5 + $0x1358] sm:$0xff] }
 0x295   :  { %7703 = vmatpush.bf16.msra.mxu0 %v21443_v14  ;;  %v7477_v38 = vpop.f32.mrf.mxu2 }
 0x296   :  { %7716 = vmatpush.bf16.msra.mxu1 %v21451_v15  ;;  %v7490_v39 = vpop.f32.mrf.mxu3  ;;  %v1940_v38 = vld.sshfl [vmem:[#allocation1 + $0x38] sm:$0xff pattern:$0x73625140] }
 0x297   :  { %7729 = vmatpush.bf16.msra.mxu2 %v21459_v17  ;;  %v21473_v17 = vld [vmem:[#allocation5 + $0x1310] sm:$0xff]  ;;  %v21526_v39 = vld [vmem:[#allocation5 + $0x14b8] sm:$0xff] }
 0x298   :  { %7742 = vmatpush.bf16.msra.mxu3 %v21467_v18  ;;  %v21481_v18 = vld [vmem:[#allocation5 + $0x1350] sm:$0xff]  ;;  %v1943_v24 = vld.sshfl [vmem:[#allocation1] sm:$0xff pattern:$0x73625140] }
 0x299   :  { %7704 = vmatpush.bf16.msra.mxu0 %v21442_v20  ;;  %v21489_v20 = vld [vmem:[#allocation5 + $0x1390] sm:$0xff] }
 0x29a   :  { %7717 = vmatpush.bf16.msra.mxu1 %v21450_v21  ;;  %v21497_v21 = vld [vmem:[#allocation5 + $0x13d0] sm:$0xff] }
 0x29b   :  { %7730 = vmatpush.bf16.msra.mxu2 %v21458_v22  ;;  %v21472_v22 = vld [vmem:[#allocation5 + $0x1308] sm:$0xff] }
 0x29c   :  { %7743 = vmatpush.bf16.msra.mxu3 %v21466_v23  ;;  %v21480_v23 = vld [vmem:[#allocation5 + $0x1348] sm:$0xff] }
 0x29d   :  { %7705 = vmatpush.bf16.msra.mxu0 %v21441_v28 }
 0x29e   :  { %7718 = vmatpush.bf16.msra.mxu1 %v21449_v29  ;;  %v21471_v29 = vld [vmem:[#allocation5 + $0x1300] sm:$0xff] }
 0x29f   :  { %7731 = vmatpush.bf16.msra.mxu2 %v21457_v31  ;;  %v21487_v31 = vld [vmem:[#allocation5 + $0x1380] sm:$0xff] }
 0x2a0   :  { %7744 = vmatpush.bf16.msra.mxu3 %v21465_v32  ;;  %v21495_v32 = vld [vmem:[#allocation5 + $0x13c0] sm:$0xff] }
 0x2a1   :  { %7706 = vmatpush.bf16.msra.mxu0 %v21440_v33  ;;  %v21510_v33 = vld [vmem:[#allocation5 + $0x1438] sm:$0xff] }
 0x2a2   :  { %7719 = vmatpush.bf16.msra.mxu1 %v21448_v34  ;;  %v21518_v34 = vld [vmem:[#allocation5 + $0x1478] sm:$0xff] }
 0x2a3   :  { %7732 = vmatpush.bf16.msra.mxu2 %v21456_v36  ;;  %v1939_v36 = vld.sshfl [vmem:[#allocation1 + $0x30] sm:$0xff pattern:$0x73625140] }
 0x2a4   :  { %7745 = vmatpush.bf16.msra.mxu3 %v21464_v37  ;;  %v1938_v37 = vld.sshfl [vmem:[#allocation1 + $0x28] sm:$0xff pattern:$0x73625140] }
 0x2a5   :  { %7707 = vmatpush.bf16.msra.mxu0 %v21439_v40  ;;  %v7501_v2 = vpop.f32.mrf.mxu0  ;;  %v21534_v40 = vld [vmem:[#allocation5 + $0x14f8] sm:$0xff] }
 0x2a6   :  { %7720 = vmatpush.bf16.msra.mxu1 %v21447_v41  ;;  %v7502_v3 = vadd.f32 %v7501_v2, %v7489_v1  ;;  %v7514_v5 = vpop.f32.mrf.mxu1  ;;  %v2133_v41 = vpack.c.bf16 %v1937_v35, %v1937_v35  ;;  %v21522_v1 = vld [vmem:[#allocation5 + $0x1498] sm:$0xff]  ;;  %v21549_v35 = vld [vmem:[#allocation5 + $0x1570] sm:$0xff] }
 0x2a7   :  { %7733 = vmatpush.bf16.msra.mxu2 %v21455_v42  ;;  %v2135_v42 = vpack.c.bf16 %v1939_v36, %v1939_v36  ;;  %v21530_v2 = vld [vmem:[#allocation5 + $0x14d8] sm:$0xff]  ;;  %v21557_v36 = vld [vmem:[#allocation5 + $0x15b0] sm:$0xff] }
 0x2a8   :  { %7746 = vmatpush.bf16.msra.mxu3 %v21463_v43  ;;  %7708 = vmatmul.bf16.vlgmr.msra.gmra.mxu0 %v2129_v53  ;;  %v7515_v8 = vadd.f32 %v7514_v5, %v7502_v3  ;;  %v2134_v43 = vpack.c.bf16 %v1938_v37, %v1938_v37  ;;  %v21532_v53 = vld [vmem:[#allocation5 + $0x14e8] sm:$0xff]  ;;  %v21565_v37 = vld [vmem:[#allocation5 + $0x15f0] sm:$0xff] }
 0x2a9   :  { %7752 = vmatpush.bf16.msrb.mxu0 %v21478_v44  ;;  %7721 = vmatmul.bf16.vlgmr.msra.gmra.mxu1 %v2130_v55  ;;  %v2136_v44 = vpack.c.bf16 %v1940_v38, %v1940_v38  ;;  %v21540_v38 = vld [vmem:[#allocation5 + $0x1528] sm:$0xff] }
 0x2aa   :  { %7765 = vmatpush.bf16.msrb.mxu1 %v21486_v45  ;;  %7734 = vmatmul.bf16.vlgmr.msra.gmra.mxu2 %v2131_v54  ;;  %v21509_v45 = vld [vmem:[#allocation5 + $0x1430] sm:$0xff] }
 0x2ab   :  { %7778 = vmatpush.bf16.msrb.mxu2 %v21494_v51  ;;  %7747 = vmatmul.bf16.vlgmr.msra.gmra.mxu3 %v2132_v56  ;;  %v21516_v51 = vld [vmem:[#allocation5 + $0x1468] sm:$0xff] }
 0x2ac   :  { %7791 = vmatpush.bf16.msrb.mxu3 %v21502_v52  ;;  %v21524_v52 = vld [vmem:[#allocation5 + $0x14a8] sm:$0xff] }
 0x2ad   :  { %7753 = vmatpush.bf16.msrb.mxu0 %v21477_v57  ;;  %v7527_v13 = vpop.f32.mrf.mxu2  ;;  %v7503_v16 = vpop.f32.mrf.mxu0  ;;  %v21507_v57 = vld [vmem:[#allocation5 + $0x1420] sm:$0xff] }
 0x2ae   :  { %7766 = vmatpush.bf16.msrb.mxu1 %v21485_v58  ;;  %v23195_v14 = vadd.f32 %v7527_v13, %v7515_v8  ;;  %v23197_v15 = vpop.f32.mrf.mxu3  ;;  %v7516_v19 = vpop.f32.mrf.mxu1  ;;  %v21515_v58 = vld [vmem:[#allocation5 + $0x1460] sm:$0xff]  ;;  %v276_v13 = vld [vmem:[#allocation2 + $0xa8] sm:$0xff] }
 0x2af   :  { %7779 = vmatpush.bf16.msrb.mxu2 %v21493_v59  ;;  %1942 = vst [vmem:[#allocation1 + $0x20] ss:$4 sm:$0xff] %v276_v13  ;;  %v21511_v19 = vld [vmem:[#allocation5 + $0x1440] sm:$0xff] }
 0x2b0   :  { %7792 = vmatpush.bf16.msrb.mxu3 %v21501_v60  ;;  %v7541_v54 = vadd.f32 %v23197_v15, %v23195_v14  ;;  %v21523_v60 = vld [vmem:[#allocation5 + $0x14a0] sm:$0xff]  ;;  %v21520_v14 = vld [vmem:[#allocation5 + $0x1488] sm:$0xff] }
 0x2b1   :  { %7754 = vmatpush.bf16.msrb.mxu0 %v21476_v61  ;;  %v21531_v61 = vld [vmem:[#allocation5 + $0x14e0] sm:$0xff]  ;;  %v21528_v15 = vld [vmem:[#allocation5 + $0x14c8] sm:$0xff] }
 0x2b2   :  { %7767 = vmatpush.bf16.msrb.mxu1 %v21484_v62 }
 0x2b3   :  { %7780 = vmatpush.bf16.msrb.mxu2 %v21492_v63  ;;  %v21506_v63 = vld [vmem:[#allocation5 + $0x1418] sm:$0xff] }
 0x2b4   :  { %7793 = vmatpush.bf16.msrb.mxu3 %v21500_v0  ;;  %v21514_v0 = vld [vmem:[#allocation5 + $0x1458] sm:$0xff] }
 0x2b5   :  { %7755 = vmatpush.bf16.msrb.mxu0 %v21475_v4  ;;  %v7529_v27 = vpop.f32.mrf.mxu2 }
 0x2b6   :  { %7768 = vmatpush.bf16.msrb.mxu1 %v21483_v50  ;;  %v7542_v28 = vpop.f32.mrf.mxu3  ;;  %v1946_v27 = vld.sshfl [vmem:[#allocation1 + $0x18] sm:$0xff pattern:$0x73625140]  ;;  %v1947_v13 = vld.sshfl [vmem:[#allocation1 + $0x20] sm:$0xff pattern:$0x73625140] }
 0x2b7   :  { %7781 = vmatpush.bf16.msrb.mxu2 %v21491_v6  ;;  %v21505_v6 = vld [vmem:[#allocation5 + $0x1410] sm:$0xff]  ;;  %v21558_v28 = vld [vmem:[#allocation5 + $0x15b8] sm:$0xff] }
 0x2b8   :  { %7794 = vmatpush.bf16.msrb.mxu3 %v21499_v7  ;;  %v21513_v7 = vld [vmem:[#allocation5 + $0x1450] sm:$0xff] }
 0x2b9   :  { %7756 = vmatpush.bf16.msrb.mxu0 %v21474_v9  ;;  %v21521_v9 = vld [vmem:[#allocation5 + $0x1490] sm:$0xff] }
 0x2ba   :  { %7769 = vmatpush.bf16.msrb.mxu1 %v21482_v10  ;;  %v21529_v10 = vld [vmem:[#allocation5 + $0x14d0] sm:$0xff] }
 0x2bb   :  { %7782 = vmatpush.bf16.msrb.mxu2 %v21490_v11  ;;  %v21504_v11 = vld [vmem:[#allocation5 + $0x1408] sm:$0xff] }
 0x2bc   :  { %7795 = vmatpush.bf16.msrb.mxu3 %v21498_v12  ;;  %v21512_v12 = vld [vmem:[#allocation5 + $0x1448] sm:$0xff] }
 0x2bd   :  { %7757 = vmatpush.bf16.msrb.mxu0 %v21473_v17 }
 0x2be   :  { %7770 = vmatpush.bf16.msrb.mxu1 %v21481_v18  ;;  %v21503_v18 = vld [vmem:[#allocation5 + $0x1400] sm:$0xff] }
 0x2bf   :  { %7783 = vmatpush.bf16.msrb.mxu2 %v21489_v20  ;;  %v21519_v20 = vld [vmem:[#allocation5 + $0x1480] sm:$0xff] }
 0x2c0   :  { %7796 = vmatpush.bf16.msrb.mxu3 %v21497_v21  ;;  %v21527_v21 = vld [vmem:[#allocation5 + $0x14c0] sm:$0xff] }
 0x2c1   :  { %7758 = vmatpush.bf16.msrb.mxu0 %v21472_v22  ;;  %v21542_v22 = vld [vmem:[#allocation5 + $0x1538] sm:$0xff] }
 0x2c2   :  { %7771 = vmatpush.bf16.msrb.mxu1 %v21480_v23  ;;  %v21550_v23 = vld [vmem:[#allocation5 + $0x1578] sm:$0xff] }
 0x2c3   :  { %7784 = vmatpush.bf16.msrb.mxu2 %v21488_v25  ;;  %v1945_v25 = vld.sshfl [vmem:[#allocation1 + $0x10] sm:$0xff pattern:$0x73625140] }
 0x2c4   :  { %7797 = vmatpush.bf16.msrb.mxu3 %v21496_v26  ;;  %v1944_v26 = vld.sshfl [vmem:[#allocation1 + $0x8] sm:$0xff pattern:$0x73625140] }
 0x2c5   :  { %7759 = vmatpush.bf16.msrb.mxu0 %v21471_v29  ;;  %v7553_v55 = vpop.f32.mrf.mxu0  ;;  %v21566_v29 = vld [vmem:[#allocation5 + $0x15f8] sm:$0xff] }
 0x2c6   :  { %7772 = vmatpush.bf16.msrb.mxu1 %v21479_v30  ;;  %v7554_v56 = vadd.f32 %v7553_v55, %v7541_v54  ;;  %v7566_v59 = vpop.f32.mrf.mxu1  ;;  %v2137_v30 = vpack.c.bf16 %v1943_v24, %v1943_v24  ;;  %v21554_v54 = vld [vmem:[#allocation5 + $0x1598] sm:$0xff]  ;;  %v21581_v24 = vld [vmem:[#allocation5 + $0x1670] sm:$0xff] }
 0x2c7   :  { %7785 = vmatpush.bf16.msrb.mxu2 %v21487_v31  ;;  %v2139_v31 = vpack.c.bf16 %v1945_v25, %v1945_v25  ;;  %v21562_v55 = vld [vmem:[#allocation5 + $0x15d8] sm:$0xff]  ;;  %v21589_v25 = vld [vmem:[#allocation5 + $0x16b0] sm:$0xff] }
 0x2c8   :  { %7798 = vmatpush.bf16.msrb.mxu3 %v21495_v32  ;;  %7760 = vmatmul.bf16.vlgmr.msrb.gmra.mxu0 %v2133_v41  ;;  %v7567_v62 = vadd.f32 %v7566_v59, %v7554_v56  ;;  %v2138_v32 = vpack.c.bf16 %v1944_v26, %v1944_v26  ;;  %v21564_v41 = vld [vmem:[#allocation5 + $0x15e8] sm:$0xff]  ;;  %v21597_v26 = vld [vmem:[#allocation5 + $0x16f0] sm:$0xff] }
 0x2c9   :  { %7804 = vmatpush.bf16.msra.mxu0 %v21510_v33  ;;  %7773 = vmatmul.bf16.vlgmr.msrb.gmra.mxu1 %v2134_v43  ;;  %v2140_v33 = vpack.c.bf16 %v1946_v27, %v1946_v27  ;;  %v21572_v27 = vld [vmem:[#allocation5 + $0x1628] sm:$0xff] }
 0x2ca   :  { %7817 = vmatpush.bf16.msra.mxu1 %v21518_v34  ;;  %7786 = vmatmul.bf16.vlgmr.msrb.gmra.mxu2 %v2135_v42  ;;  %v21541_v34 = vld [vmem:[#allocation5 + $0x1530] sm:$0xff] }
 0x2cb   :  { %7830 = vmatpush.bf16.msra.mxu2 %v21526_v39  ;;  %7799 = vmatmul.bf16.vlgmr.msrb.gmra.mxu3 %v2136_v44  ;;  %v21548_v39 = vld [vmem:[#allocation5 + $0x1568] sm:$0xff] }
 0x2cc   :  { %7843 = vmatpush.bf16.msra.mxu3 %v21534_v40  ;;  %v21556_v40 = vld [vmem:[#allocation5 + $0x15a8] sm:$0xff] }
 0x2cd   :  { %7805 = vmatpush.bf16.msra.mxu0 %v21509_v45  ;;  %v7579_v3 = vpop.f32.mrf.mxu2  ;;  %v7555_v5 = vpop.f32.mrf.mxu0  ;;  %v21539_v45 = vld [vmem:[#allocation5 + $0x1520] sm:$0xff] }
 0x2ce   :  { %7818 = vmatpush.bf16.msra.mxu1 %v21517_v46  ;;  %v23201_v4 = vadd.f32 %v7579_v3, %v7567_v62  ;;  %v23203_v50 = vpop.f32.mrf.mxu3  ;;  %v7568_v8 = vpop.f32.mrf.mxu1  ;;  %v21547_v46 = vld [vmem:[#allocation5 + $0x1560] sm:$0xff]  ;;  %v277_v3 = vld [vmem:[#allocation2 + $0xb0] sm:$0xff] }
 0x2cf   :  { %7831 = vmatpush.bf16.msra.mxu2 %v21525_v47  ;;  %1951 = vst [vmem:[#allocation1] ss:$4 sm:$0xff] %v277_v3  ;;  %v21543_v8 = vld [vmem:[#allocation5 + $0x1540] sm:$0xff] }
 0x2d0   :  { %7844 = vmatpush.bf16.msra.mxu3 %v21533_v48  ;;  %v7593_v42 = vadd.f32 %v23203_v50, %v23201_v4  ;;  %v21555_v48 = vld [vmem:[#allocation5 + $0x15a0] sm:$0xff]  ;;  %v21552_v4 = vld [vmem:[#allocation5 + $0x1588] sm:$0xff] }
 0x2d1   :  { %7806 = vmatpush.bf16.msra.mxu0 %v21508_v49  ;;  %v21563_v49 = vld [vmem:[#allocation5 + $0x15e0] sm:$0xff]  ;;  %v21560_v50 = vld [vmem:[#allocation5 + $0x15c8] sm:$0xff] }
 0x2d2   :  { %7819 = vmatpush.bf16.msra.mxu1 %v21516_v51 }
 0x2d3   :  { %7832 = vmatpush.bf16.msra.mxu2 %v21524_v52  ;;  %v21538_v52 = vld [vmem:[#allocation5 + $0x1518] sm:$0xff] }
 0x2d4   :  { %7845 = vmatpush.bf16.msra.mxu3 %v21532_v53  ;;  %v21546_v53 = vld [vmem:[#allocation5 + $0x1558] sm:$0xff] }
 0x2d5   :  { %7807 = vmatpush.bf16.msra.mxu0 %v21507_v57  ;;  %v7581_v16 = vpop.f32.mrf.mxu2 }
 0x2d6   :  { %7820 = vmatpush.bf16.msra.mxu1 %v21515_v58  ;;  %v7594_v17 = vpop.f32.mrf.mxu3  ;;  %v1950_v16 = vld.sshfl [vmem:[#allocation1 + $0x38] sm:$0xff pattern:$0x73625140]  ;;  %v1953_v3 = vld.sshfl [vmem:[#allocation1] sm:$0xff pattern:$0x73625140] }
 0x2d7   :  { %7833 = vmatpush.bf16.msra.mxu2 %v21523_v60  ;;  %v21537_v60 = vld [vmem:[#allocation5 + $0x1510] sm:$0xff]  ;;  %v21590_v17 = vld [vmem:[#allocation5 + $0x16b8] sm:$0xff] }
 0x2d8   :  { %7846 = vmatpush.bf16.msra.mxu3 %v21531_v61  ;;  %v21545_v61 = vld [vmem:[#allocation5 + $0x1550] sm:$0xff] }
 0x2d9   :  { %7808 = vmatpush.bf16.msra.mxu0 %v21506_v63  ;;  %v21553_v63 = vld [vmem:[#allocation5 + $0x1590] sm:$0xff] }
 0x2da   :  { %7821 = vmatpush.bf16.msra.mxu1 %v21514_v0  ;;  %v21561_v0 = vld [vmem:[#allocation5 + $0x15d0] sm:$0xff] }
 0x2db   :  { %7834 = vmatpush.bf16.msra.mxu2 %v21522_v1  ;;  %v21536_v1 = vld [vmem:[#allocation5 + $0x1508] sm:$0xff] }
 0x2dc   :  { %7847 = vmatpush.bf16.msra.mxu3 %v21530_v2  ;;  %v21544_v2 = vld [vmem:[#allocation5 + $0x1548] sm:$0xff] }
 0x2dd   :  { %7809 = vmatpush.bf16.msra.mxu0 %v21505_v6 }
 0x2de   :  { %7822 = vmatpush.bf16.msra.mxu1 %v21513_v7  ;;  %v21535_v7 = vld [vmem:[#allocation5 + $0x1500] sm:$0xff] }
 0x2df   :  { %7835 = vmatpush.bf16.msra.mxu2 %v21521_v9  ;;  %v21551_v9 = vld [vmem:[#allocation5 + $0x1580] sm:$0xff] }
 0x2e0   :  { %7848 = vmatpush.bf16.msra.mxu3 %v21529_v10  ;;  %v21559_v10 = vld [vmem:[#allocation5 + $0x15c0] sm:$0xff] }
 0x2e1   :  { %7810 = vmatpush.bf16.msra.mxu0 %v21504_v11  ;;  %v21574_v11 = vld [vmem:[#allocation5 + $0x1638] sm:$0xff] }
 0x2e2   :  { %7823 = vmatpush.bf16.msra.mxu1 %v21512_v12  ;;  %v21582_v12 = vld [vmem:[#allocation5 + $0x1678] sm:$0xff] }
 0x2e3   :  { %7836 = vmatpush.bf16.msra.mxu2 %v21520_v14  ;;  %v1949_v14 = vld.sshfl [vmem:[#allocation1 + $0x30] sm:$0xff pattern:$0x73625140] }
 0x2e4   :  { %7849 = vmatpush.bf16.msra.mxu3 %v21528_v15  ;;  %v1948_v15 = vld.sshfl [vmem:[#allocation1 + $0x28] sm:$0xff pattern:$0x73625140] }
 0x2e5   :  { %7811 = vmatpush.bf16.msra.mxu0 %v21503_v18  ;;  %v7605_v43 = vpop.f32.mrf.mxu0  ;;  %v21598_v18 = vld [vmem:[#allocation5 + $0x16f8] sm:$0xff] }
 0x2e6   :  { %7824 = vmatpush.bf16.msra.mxu1 %v21511_v19  ;;  %v7606_v44 = vadd.f32 %v7605_v43, %v7593_v42  ;;  %v7618_v47 = vpop.f32.mrf.mxu1  ;;  %v2141_v19 = vpack.c.bf16 %v1947_v13, %v1947_v13  ;;  %v21586_v42 = vld [vmem:[#allocation5 + $0x1698] sm:$0xff]  ;;  %v21613_v13 = vld [vmem:[#allocation5 + $0x1770] sm:$0xff] }
 0x2e7   :  { %7837 = vmatpush.bf16.msra.mxu2 %v21519_v20  ;;  %v2143_v20 = vpack.c.bf16 %v1949_v14, %v1949_v14  ;;  %v21594_v43 = vld [vmem:[#allocation5 + $0x16d8] sm:$0xff]  ;;  %v21621_v14 = vld [vmem:[#allocation5 + $0x17b0] sm:$0xff] }
 0x2e8   :  { %7850 = vmatpush.bf16.msra.mxu3 %v21527_v21  ;;  %7812 = vmatmul.bf16.vlgmr.msra.gmra.mxu0 %v2137_v30  ;;  %v7619_v51 = vadd.f32 %v7618_v47, %v7606_v44  ;;  %v2142_v21 = vpack.c.bf16 %v1948_v15, %v1948_v15  ;;  %v21596_v30 = vld [vmem:[#allocation5 + $0x16e8] sm:$0xff]  ;;  %v21629_v15 = vld [vmem:[#allocation5 + $0x17f0] sm:$0xff] }
 0x2e9   :  { %7856 = vmatpush.bf16.msrb.mxu0 %v21542_v22  ;;  %7825 = vmatmul.bf16.vlgmr.msra.gmra.mxu1 %v2138_v32  ;;  %v2144_v22 = vpack.c.bf16 %v1950_v16, %v1950_v16  ;;  %v21604_v16 = vld [vmem:[#allocation5 + $0x1728] sm:$0xff] }
 0x2ea   :  { %7869 = vmatpush.bf16.msrb.mxu1 %v21550_v23  ;;  %7838 = vmatmul.bf16.vlgmr.msra.gmra.mxu2 %v2139_v31  ;;  %v21573_v23 = vld [vmem:[#allocation5 + $0x1630] sm:$0xff] }
 0x2eb   :  { %7882 = vmatpush.bf16.msrb.mxu2 %v21558_v28  ;;  %7851 = vmatmul.bf16.vlgmr.msra.gmra.mxu3 %v2140_v33  ;;  %v21580_v28 = vld [vmem:[#allocation5 + $0x1668] sm:$0xff] }
 0x2ec   :  { %7895 = vmatpush.bf16.msrb.mxu3 %v21566_v29  ;;  %v21588_v29 = vld [vmem:[#allocation5 + $0x16a8] sm:$0xff] }
 0x2ed   :  { %7857 = vmatpush.bf16.msrb.mxu0 %v21541_v34  ;;  %v7631_v56 = vpop.f32.mrf.mxu2  ;;  %v7607_v59 = vpop.f32.mrf.mxu0  ;;  %v21571_v34 = vld [vmem:[#allocation5 + $0x1620] sm:$0xff] }
 0x2ee   :  { %7870 = vmatpush.bf16.msrb.mxu1 %v21549_v35  ;;  %v23207_v57 = vadd.f32 %v7631_v56, %v7619_v51  ;;  %v23209_v58 = vpop.f32.mrf.mxu3  ;;  %v7620_v62 = vpop.f32.mrf.mxu1  ;;  %v21579_v35 = vld [vmem:[#allocation5 + $0x1660] sm:$0xff]  ;;  %v21576_v56 = vld [vmem:[#allocation5 + $0x1648] sm:$0xff] }
 0x2ef   :  { %7883 = vmatpush.bf16.msrb.mxu2 %v21557_v36  ;;  %v21575_v62 = vld [vmem:[#allocation5 + $0x1640] sm:$0xff] }
 0x2f0   :  { %7896 = vmatpush.bf16.msrb.mxu3 %v21565_v37  ;;  %v7645_v31 = vadd.f32 %v23209_v58, %v23207_v57  ;;  %v21587_v37 = vld [vmem:[#allocation5 + $0x16a0] sm:$0xff]  ;;  %v21584_v57 = vld [vmem:[#allocation5 + $0x1688] sm:$0xff] }
 0x2f1   :  { %7858 = vmatpush.bf16.msrb.mxu0 %v21540_v38  ;;  %v21595_v38 = vld [vmem:[#allocation5 + $0x16e0] sm:$0xff]  ;;  %v21592_v58 = vld [vmem:[#allocation5 + $0x16c8] sm:$0xff] }
 0x2f2   :  { %7871 = vmatpush.bf16.msrb.mxu1 %v21548_v39 }
 0x2f3   :  { %7884 = vmatpush.bf16.msrb.mxu2 %v21556_v40  ;;  %v21570_v40 = vld [vmem:[#allocation5 + $0x1618] sm:$0xff] }
 0x2f4   :  { %7897 = vmatpush.bf16.msrb.mxu3 %v21564_v41  ;;  %v21578_v41 = vld [vmem:[#allocation5 + $0x1658] sm:$0xff] }
 0x2f5   :  { %7859 = vmatpush.bf16.msrb.mxu0 %v21539_v45  ;;  %v7633_v5 = vpop.f32.mrf.mxu2 }
 0x2f6   :  { %7872 = vmatpush.bf16.msrb.mxu1 %v21547_v46  ;;  %v7646_v6 = vpop.f32.mrf.mxu3  ;;  %v1956_v5 = vld.sshfl [vmem:[#allocation1 + $0x18] sm:$0xff pattern:$0x73625140] }
 0x2f7   :  { %7885 = vmatpush.bf16.msrb.mxu2 %v21555_v48  ;;  %v21569_v48 = vld [vmem:[#allocation5 + $0x1610] sm:$0xff]  ;;  %v21622_v6 = vld [vmem:[#allocation5 + $0x17b8] sm:$0xff] }
 0x2f8   :  { %7898 = vmatpush.bf16.msrb.mxu3 %v21563_v49  ;;  %v21577_v49 = vld [vmem:[#allocation5 + $0x1650] sm:$0xff] }
 0x2f9   :  { %7860 = vmatpush.bf16.msrb.mxu0 %v21538_v52  ;;  %v21585_v52 = vld [vmem:[#allocation5 + $0x1690] sm:$0xff] }
 0x2fa   :  { %7873 = vmatpush.bf16.msrb.mxu1 %v21546_v53  ;;  %v21593_v53 = vld [vmem:[#allocation5 + $0x16d0] sm:$0xff] }
 0x2fb   :  { %7886 = vmatpush.bf16.msrb.mxu2 %v21554_v54  ;;  %v278_v54 = vld [vmem:[#allocation2 + $0xb8] sm:$0xff] }
 0x2fc   :  { %7899 = vmatpush.bf16.msrb.mxu3 %v21562_v55  ;;  %v21568_v55 = vld [vmem:[#allocation5 + $0x1608] sm:$0xff]  ;;  %1952 = vst [vmem:[#allocation1 + $0x20] ss:$4 sm:$0xff] %v278_v54 }
 0x2fd   :  { %7861 = vmatpush.bf16.msrb.mxu0 %v21537_v60 }
 0x2fe   :  { %7874 = vmatpush.bf16.msrb.mxu1 %v21545_v61  ;;  %v21567_v61 = vld [vmem:[#allocation5 + $0x1600] sm:$0xff] }
 0x2ff   :  { %7887 = vmatpush.bf16.msrb.mxu2 %v21553_v63  ;;  %v21583_v63 = vld [vmem:[#allocation5 + $0x1680] sm:$0xff] }
 0x300   :  { %7900 = vmatpush.bf16.msrb.mxu3 %v21561_v0  ;;  %v21591_v0 = vld [vmem:[#allocation5 + $0x16c0] sm:$0xff] }
 0x301   :  { %7862 = vmatpush.bf16.msrb.mxu0 %v21536_v1  ;;  %v21606_v1 = vld [vmem:[#allocation5 + $0x1738] sm:$0xff] }
 0x302   :  { %7875 = vmatpush.bf16.msrb.mxu1 %v21544_v2  ;;  %v21614_v2 = vld [vmem:[#allocation5 + $0x1778] sm:$0xff] }
 0x303   :  { %7888 = vmatpush.bf16.msrb.mxu2 %v21552_v4  ;;  %v1955_v4 = vld.sshfl [vmem:[#allocation1 + $0x10] sm:$0xff pattern:$0x73625140]  ;;  %v1958_v54 = vld.sshfl [vmem:[#allocation1 + $0x28] sm:$0xff pattern:$0x73625140] }
 0x304   :  { %7901 = vmatpush.bf16.msrb.mxu3 %v21560_v50  ;;  %v1954_v50 = vld.sshfl [vmem:[#allocation1 + $0x8] sm:$0xff pattern:$0x73625140] }
 0x305   :  { %7863 = vmatpush.bf16.msrb.mxu0 %v21535_v7  ;;  %v7657_v32 = vpop.f32.mrf.mxu0  ;;  %v21630_v7 = vld [vmem:[#allocation5 + $0x17f8] sm:$0xff] }
 0x306   :  { %7876 = vmatpush.bf16.msrb.mxu1 %v21543_v8  ;;  %v7658_v33 = vadd.f32 %v7657_v32, %v7645_v31  ;;  %v7670_v36 = vpop.f32.mrf.mxu1  ;;  %v2145_v8 = vpack.c.bf16 %v1953_v3, %v1953_v3  ;;  %v21618_v31 = vld [vmem:[#allocation5 + $0x1798] sm:$0xff] }
 0x307   :  { %7889 = vmatpush.bf16.msrb.mxu2 %v21551_v9  ;;  %v2147_v9 = vpack.c.bf16 %v1955_v4, %v1955_v4  ;;  %v21626_v32 = vld [vmem:[#allocation5 + $0x17d8] sm:$0xff] }
 0x308   :  { %7902 = vmatpush.bf16.msrb.mxu3 %v21559_v10  ;;  %7864 = vmatmul.bf16.vlgmr.msrb.gmra.mxu0 %v2141_v19  ;;  %v7671_v39 = vadd.f32 %v7670_v36, %v7658_v33  ;;  %v2146_v10 = vpack.c.bf16 %v1954_v50, %v1954_v50  ;;  %v21628_v19 = vld [vmem:[#allocation5 + $0x17e8] sm:$0xff] }
 0x309   :  { %7908 = vmatpush.bf16.msra.mxu0 %v21574_v11  ;;  %7877 = vmatmul.bf16.vlgmr.msrb.gmra.mxu1 %v2142_v21  ;;  %v2148_v11 = vpack.c.bf16 %v1956_v5, %v1956_v5 }
 0x30a   :  { %7921 = vmatpush.bf16.msra.mxu1 %v21582_v12  ;;  %7890 = vmatmul.bf16.vlgmr.msrb.gmra.mxu2 %v2143_v20  ;;  %v21605_v12 = vld [vmem:[#allocation5 + $0x1730] sm:$0xff] }
 0x30b   :  { %7934 = vmatpush.bf16.msra.mxu2 %v21590_v17  ;;  %7903 = vmatmul.bf16.vlgmr.msrb.gmra.mxu3 %v2144_v22  ;;  %v21612_v17 = vld [vmem:[#allocation5 + $0x1768] sm:$0xff] }
 0x30c   :  { %7947 = vmatpush.bf16.msra.mxu3 %v21598_v18  ;;  %v21620_v18 = vld [vmem:[#allocation5 + $0x17a8] sm:$0xff] }
 0x30d   :  { %7909 = vmatpush.bf16.msra.mxu0 %v21573_v23  ;;  %v7683_v44 = vpop.f32.mrf.mxu2  ;;  %v7659_v47 = vpop.f32.mrf.mxu0  ;;  %v21603_v23 = vld [vmem:[#allocation5 + $0x1720] sm:$0xff] }
 0x30e   :  { %7922 = vmatpush.bf16.msra.mxu1 %v21581_v24  ;;  %v23213_v45 = vadd.f32 %v7683_v44, %v7671_v39  ;;  %v23215_v46 = vpop.f32.mrf.mxu3  ;;  %v7672_v51 = vpop.f32.mrf.mxu1  ;;  %v21611_v24 = vld [vmem:[#allocation5 + $0x1760] sm:$0xff]  ;;  %v21616_v44 = vld [vmem:[#allocation5 + $0x1788] sm:$0xff] }
 0x30f   :  { %7935 = vmatpush.bf16.msra.mxu2 %v21589_v25  ;;  %v21599_v47 = vld [vmem:[#allocation5 + $0x1700] sm:$0xff] }
 0x310   :  { %7948 = vmatpush.bf16.msra.mxu3 %v21597_v26  ;;  %v7697_v20 = vadd.f32 %v23215_v46, %v23213_v45  ;;  %v21619_v26 = vld [vmem:[#allocation5 + $0x17a0] sm:$0xff]  ;;  %v21624_v45 = vld [vmem:[#allocation5 + $0x17c8] sm:$0xff] }
 0x311   :  { %7910 = vmatpush.bf16.msra.mxu0 %v21572_v27  ;;  %v21627_v27 = vld [vmem:[#allocation5 + $0x17e0] sm:$0xff] }
 0x312   :  { %7923 = vmatpush.bf16.msra.mxu1 %v21580_v28  ;;  %v21615_v51 = vld [vmem:[#allocation5 + $0x1780] sm:$0xff] }
 0x313   :  { %7936 = vmatpush.bf16.msra.mxu2 %v21588_v29  ;;  %v21602_v29 = vld [vmem:[#allocation5 + $0x1718] sm:$0xff] }
 0x314   :  { %7949 = vmatpush.bf16.msra.mxu3 %v21596_v30  ;;  %v21610_v30 = vld [vmem:[#allocation5 + $0x1758] sm:$0xff] }
 0x315   :  { %7911 = vmatpush.bf16.msra.mxu0 %v21571_v34  ;;  %v7685_v59 = vpop.f32.mrf.mxu2 }
 0x316   :  { %7924 = vmatpush.bf16.msra.mxu1 %v21579_v35  ;;  %v7698_v60 = vpop.f32.mrf.mxu3 }
 0x317   :  { %7937 = vmatpush.bf16.msra.mxu2 %v21587_v37  ;;  %v21601_v37 = vld [vmem:[#allocation5 + $0x1710] sm:$0xff] }
 0x318   :  { %7950 = vmatpush.bf16.msra.mxu3 %v21595_v38  ;;  %v21609_v38 = vld [vmem:[#allocation5 + $0x1750] sm:$0xff] }
 0x319   :  { %7912 = vmatpush.bf16.msra.mxu0 %v21570_v40  ;;  %v21617_v40 = vld [vmem:[#allocation5 + $0x1790] sm:$0xff] }
 0x31a   :  { %7925 = vmatpush.bf16.msra.mxu1 %v21578_v41  ;;  %v21625_v41 = vld [vmem:[#allocation5 + $0x17d0] sm:$0xff] }
 0x31b   :  { %7938 = vmatpush.bf16.msra.mxu2 %v21586_v42  ;;  %v21600_v42 = vld [vmem:[#allocation5 + $0x1708] sm:$0xff] }
 0x31c   :  { %7951 = vmatpush.bf16.msra.mxu3 %v21594_v43  ;;  %v21608_v43 = vld [vmem:[#allocation5 + $0x1748] sm:$0xff] }
 0x31d   :  { %7913 = vmatpush.bf16.msra.mxu0 %v21569_v48 }
 0x31e   :  { %7926 = vmatpush.bf16.msra.mxu1 %v21577_v49  ;;  %v21607_v49 = vld [vmem:[#allocation5 + $0x1740] sm:$0xff] }
 0x31f   :  { %7939 = vmatpush.bf16.msra.mxu2 %v21585_v52  ;;  %v21623_v52 = vld [vmem:[#allocation5 + $0x17c0] sm:$0xff] }
 0x320   :  { %7952 = vmatpush.bf16.msra.mxu3 %v21593_v53  ;;  %v1957_v53 = vld.sshfl [vmem:[#allocation1 + $0x20] sm:$0xff pattern:$0x73625140] }
 0x321   :  { %7914 = vmatpush.bf16.msra.mxu0 %v21568_v55  ;;  %v1959_v55 = vld.sshfl [vmem:[#allocation1 + $0x30] sm:$0xff pattern:$0x73625140] }
 0x322   :  { %7927 = vmatpush.bf16.msra.mxu1 %v21576_v56  ;;  %v1960_v56 = vld.sshfl [vmem:[#allocation1 + $0x38] sm:$0xff pattern:$0x73625140]  ;;  %v2151_v59 = vpack.c.bf16 %v1959_v55, %v1959_v55  ;;  %v8060_v55 = vld [vmem:[%s23581_s5 + $0x30] sm:$0xff] }
 0x323   :  { %7940 = vmatpush.bf16.msra.mxu2 %v21584_v57  ;;  %v2149_v57 = vpack.c.bf16 %v1957_v53, %v1957_v53  ;;  %v2152_v60 = vpack.c.bf16 %v1960_v56, %v1960_v56 }
 0x324   :  { %7953 = vmatpush.bf16.msra.mxu3 %v21592_v58  ;;  %v2150_v58 = vpack.c.bf16 %v1958_v54, %v1958_v54  ;;  %v8061_v54 = vld [vmem:[%s23581_s5 + $0x38] sm:$0xff] }
 0x325   :  { %7915 = vmatpush.bf16.msra.mxu0 %v21567_v61  ;;  %v7709_v21 = vpop.f32.mrf.mxu0 }
 0x326   :  { %7928 = vmatpush.bf16.msra.mxu1 %v21575_v62  ;;  %v7710_v22 = vadd.f32 %v7709_v21, %v7697_v20  ;;  %v7722_v25 = vpop.f32.mrf.mxu1 }
 0x327   :  { %7941 = vmatpush.bf16.msra.mxu2 %v21583_v63 }
 0x328   :  { %7954 = vmatpush.bf16.msra.mxu3 %v21591_v0  ;;  %7916 = vmatmul.bf16.vlgmr.msra.gmra.mxu0 %v2145_v8  ;;  %v7723_v28 = vadd.f32 %v7722_v25, %v7710_v22  ;;  %v8027_v25 = vld [vmem:[%s23579_s3 + $0x70] sm:$0xff] }
 0x329   :  { %7960 = vmatpush.bf16.msrb.mxu0 %v21606_v1  ;;  %7929 = vmatmul.bf16.vlgmr.msra.gmra.mxu1 %v2146_v10 }
 0x32a   :  { %7973 = vmatpush.bf16.msrb.mxu1 %v21614_v2  ;;  %7942 = vmatmul.bf16.vlgmr.msra.gmra.mxu2 %v2147_v9 }
 0x32b   :  { %7986 = vmatpush.bf16.msrb.mxu2 %v21622_v6  ;;  %7955 = vmatmul.bf16.vlgmr.msra.gmra.mxu3 %v2148_v11 }
 0x32c   :  { %7999 = vmatpush.bf16.msrb.mxu3 %v21630_v7 }
 0x32d   :  { %7961 = vmatpush.bf16.msrb.mxu0 %v21605_v12  ;;  %v7735_v33 = vpop.f32.mrf.mxu2  ;;  %v7711_v36 = vpop.f32.mrf.mxu0 }
 0x32e   :  { %7974 = vmatpush.bf16.msrb.mxu1 %v21613_v13  ;;  %v7736_v34 = vadd.f32 %v7735_v33, %v7723_v28  ;;  %v7748_v35 = vpop.f32.mrf.mxu3  ;;  %v7724_v39 = vpop.f32.mrf.mxu1  ;;  %v8026_v28 = vld [vmem:[%s23579_s3 + $0x68] sm:$0xff]  ;;  %v8023_v33 = vld [vmem:[%s23579_s3 + $0x50] sm:$0xff]  ;;  %v8020_v36 = vld [vmem:[%s23579_s3 + $0x38] sm:$0xff] }
 0x32f   :  { %7987 = vmatpush.bf16.msrb.mxu2 %v21621_v14 }
 0x330   :  { %8000 = vmatpush.bf16.msrb.mxu3 %v21629_v15  ;;  %v7749_v61 = vadd.f32 %v7748_v35, %v7736_v34  ;;  %v8022_v34 = vld [vmem:[%s23579_s3 + $0x48] sm:$0xff]  ;;  %v8021_v35 = vld [vmem:[%s23579_s3 + $0x40] sm:$0xff] }
 0x331   :  { %7962 = vmatpush.bf16.msrb.mxu0 %v21604_v16 }
 0x332   :  { %7975 = vmatpush.bf16.msrb.mxu1 %v21612_v17 }
 0x333   :  { %7988 = vmatpush.bf16.msrb.mxu2 %v21620_v18 }
 0x334   :  { %8001 = vmatpush.bf16.msrb.mxu3 %v21628_v19 }
 0x335   :  { %7963 = vmatpush.bf16.msrb.mxu0 %v21603_v23  ;;  %v7737_v46 = vpop.f32.mrf.mxu2 }
 0x336   :  { %7976 = vmatpush.bf16.msrb.mxu1 %v21611_v24  ;;  %v7750_v48 = vpop.f32.mrf.mxu3  ;;  %v8028_v24 = vld [vmem:[%s23579_s3 + $0x78] sm:$0xff] }
 0x337   :  { %7989 = vmatpush.bf16.msrb.mxu2 %v21619_v26  ;;  %v8014_v48 = vld [vmem:[%s23579_s3 + $0x8] sm:$0xff] }
 0x338   :  { %8002 = vmatpush.bf16.msrb.mxu3 %v21627_v27 }
 0x339   :  { %7964 = vmatpush.bf16.msrb.mxu0 %v21602_v29  ;;  %v8025_v29 = vld [vmem:[%s23579_s3 + $0x60] sm:$0xff] }
 0x33a   :  { %7977 = vmatpush.bf16.msrb.mxu1 %v21610_v30  ;;  %v8024_v30 = vld [vmem:[%s23579_s3 + $0x58] sm:$0xff] }
 0x33b   :  { %7990 = vmatpush.bf16.msrb.mxu2 %v21618_v31 }
 0x33c   :  { %8003 = vmatpush.bf16.msrb.mxu3 %v21626_v32 }
 0x33d   :  { %7965 = vmatpush.bf16.msrb.mxu0 %v21601_v37  ;;  %v8019_v37 = vld [vmem:[%s23579_s3 + $0x30] sm:$0xff] }
 0x33e   :  { %7978 = vmatpush.bf16.msrb.mxu1 %v21609_v38  ;;  %v8018_v38 = vld [vmem:[%s23579_s3 + $0x28] sm:$0xff] }
 0x33f   :  { %7991 = vmatpush.bf16.msrb.mxu2 %v21617_v40  ;;  %v8017_v40 = vld [vmem:[%s23579_s3 + $0x20] sm:$0xff] }
 0x340   :  { %8004 = vmatpush.bf16.msrb.mxu3 %v21625_v41 }
 0x341   :  { %7966 = vmatpush.bf16.msrb.mxu0 %v21600_v42  ;;  %v8016_v42 = vld [vmem:[%s23579_s3 + $0x18] sm:$0xff] }
 0x342   :  { %7979 = vmatpush.bf16.msrb.mxu1 %v21608_v43 }
 0x343   :  { %7992 = vmatpush.bf16.msrb.mxu2 %v21616_v44  ;;  %v8015_v44 = vld [vmem:[%s23579_s3 + $0x10] sm:$0xff] }
 0x344   :  { %8005 = vmatpush.bf16.msrb.mxu3 %v21624_v45 }
 0x345   :  { %7967 = vmatpush.bf16.msrb.mxu0 %v21599_v47  ;;  %v7761_v62 = vpop.f32.mrf.mxu0 }
 0x346   :  { %7980 = vmatpush.bf16.msrb.mxu1 %v21607_v49  ;;  %v7762_v63 = vadd.f32 %v7761_v62, %v7749_v61  ;;  %v7774_v0 = vpop.f32.mrf.mxu1  ;;  %v8057_v62 = vld [vmem:[%s23581_s5 + $0x18] sm:$0xff] }
 0x347   :  { %7993 = vmatpush.bf16.msrb.mxu2 %v21615_v51 }
 0x348   :  { %8006 = vmatpush.bf16.msrb.mxu3 %v21623_v52  ;;  %7968 = vmatmul.bf16.vlgmr.msrb.gmra.mxu0 %v2149_v57  ;;  %v7775_v1 = vadd.f32 %v7774_v0, %v7762_v63  ;;  %v8013_v52 = vld [vmem:[%s23579_s3] sm:$0xff] }
 0x349   :  { %7981 = vmatmul.bf16.vlgmr.msrb.gmra.mxu1 %v2150_v58  ;;  %8033 = vmatpush.msra.mxu0 %v8028_v24  ;;  %v8059_v58 = vld [vmem:[%s23581_s5 + $0x28] sm:$0xff] }
 0x34a   :  { %7994 = vmatmul.bf16.vlgmr.msrb.gmra.mxu2 %v2151_v59  ;;  %8078 = vmatpush.msra.mxu1 %v8061_v54  ;;  %v22422_v24 = vld [vmem:[#allocation10] ss:$0 sm:$0xff] }
 0x34b   :  { %8007 = vmatmul.bf16.vlgmr.msrb.gmra.mxu3 %v2152_v60  ;;  %8034 = vmatpush.msra.mxu0 %v8027_v25  ;;  %v8058_v60 = vld [vmem:[%s23581_s5 + $0x20] sm:$0xff] }
 0x34c   :  { %8079 = vmatpush.msra.mxu1 %v8060_v55 }
 0x34d   :  { %v7787_v2 = vpop.f32.mrf.mxu2  ;;  %v7763_v50 = vpop.f32.mrf.mxu0  ;;  %8035 = vmatpush.msra.mxu0 %v8026_v28  ;;  %v8125_v28 = vld [vmem:[#allocation13] sm:$0x7] }
 0x34e   :  { %v7788_v3 = vadd.f32 %v7787_v2, %v7775_v1  ;;  %v7800_v4 = vpop.f32.mrf.mxu3  ;;  %v7776_v5 = vpop.f32.mrf.mxu1  ;;  %8080 = vmatpush.msra.mxu1 %v8059_v58  ;;  %17786 = vmatpush.msk.msra.mxu3 %vm8134_vm3, %v8125_v28  ;;  %v20097_v58 = vld [vmem:[#allocation22 + $0x1200] sm:$0xf] }
 0x34f   :  { %8036 = vmatpush.msra.mxu0 %v8025_v29  ;;  %v22423_v29 = vld [vmem:[#allocation11] ss:$0 sm:$0xff] }
 0x350   :  { %v7801_v8 = vadd.f32 %v7800_v4, %v7788_v3  ;;  %8081 = vmatpush.msra.mxu1 %v8058_v60  ;;  %v22255_v60 = vld [vmem:[#allocation22 + $0x137c] sm:$0xf0] }
 0x351   :  { %8037 = vmatpush.msra.mxu0 %v8024_v30 }
 0x352   :  { %8082 = vmatpush.msra.mxu1 %v8057_v62  ;;  %v20099_v62 = vld [vmem:[#allocation22 + $0x1380] sm:$0xf0] }
 0x353   :  { %8038 = vmatpush.msra.mxu0 %v8023_v33  ;;  %v8159_v33 = vld [vmem:[#allocation16] sm:$0xff] }
 0x355   :  { %v7789_v6 = vpop.f32.mrf.mxu2  ;;  %8039 = vmatpush.msra.mxu0 %v8022_v34  ;;  %v8199_v34 = vld [vmem:[#allocation19 + $0x38] sm:$0xff] }
 0x356   :  { %v7802_v7 = vpop.f32.mrf.mxu3 }
 0x357   :  { %8040 = vmatpush.msra.mxu0 %v8021_v35  ;;  %v8198_v35 = vld [vmem:[#allocation19 + $0x30] sm:$0xff] }
 0x359   :  { %8041 = vmatpush.msra.mxu0 %v8020_v36  ;;  %v8197_v36 = vld [vmem:[#allocation19 + $0x28] sm:$0xff] }
 0x35b   :  { %8042 = vmatpush.msra.mxu0 %v8019_v37  ;;  %v8196_v37 = vld [vmem:[#allocation19 + $0x20] sm:$0xff] }
 0x35d   :  { %8043 = vmatpush.msra.mxu0 %v8018_v38  ;;  %v8195_v38 = vld [vmem:[#allocation19 + $0x18] sm:$0xff] }
 0x35f   :  { %8044 = vmatpush.msra.mxu0 %v8017_v40 }
 0x361   :  { %8045 = vmatpush.msra.mxu0 %v8016_v42 }
 0x363   :  { %8046 = vmatpush.msra.mxu0 %v8015_v44  ;;  %v8193_v44 = vld [vmem:[#allocation19 + $0x8] sm:$0xff] }
 0x365   :  { %v7813_v9 = vpop.f32.mrf.mxu0  ;;  %8047 = vmatpush.msra.mxu0 %v8014_v48  ;;  %v22303_v48 = vld [vmem:[#allocation22 + $0x1504] sm:$0xf] }
 0x366   :  { %v7814_v10 = vadd.f32 %v7813_v9, %v7801_v8  ;;  %v7826_v11 = vpop.f32.mrf.mxu1 }
 0x367   :  { %8048 = vmatpush.msra.mxu0 %v8013_v52  ;;  %v20489_v52 = vld [vmem:[#allocation22 + $0x1508] sm:$0xf] }
 0x368   :  { %v7827_v12 = vadd.f32 %v7826_v11, %v7814_v10 }
 0x36d   :  { %v7839_v13 = vpop.f32.mrf.mxu2  ;;  %v7815_v16 = vpop.f32.mrf.mxu0 }
 0x36e   :  { %v7840_v14 = vadd.f32 %v7839_v13, %v7827_v12  ;;  %v7852_v15 = vpop.f32.mrf.mxu3  ;;  %v7828_v17 = vpop.f32.mrf.mxu1  ;;  %v8055_v16 = vld [vmem:[%s23581_s5 + $0x8] sm:$0xff] }
 0x36f   :  { %v8054_v17 = vld [vmem:[%s23581_s5] sm:$0xff] }
 0x370   :  { %v7853_v43 = vadd.f32 %v7852_v15, %v7840_v14  ;;  %v8056_v15 = vld [vmem:[%s23581_s5 + $0x10] sm:$0xff]  ;;  %s23017_s5 = smov [#allocation25]  }
 0x371   :  { %8083 = vmatpush.msra.mxu1 %v8056_v15 }
 0x373   :  { %8084 = vmatpush.msra.mxu1 %v8055_v16 }
 0x375   :  { %v7841_v18 = vpop.f32.mrf.mxu2  ;;  %8085 = vmatpush.msra.mxu1 %v8054_v17  ;;  %v19329_v17 = vld [vmem:[#allocation22 + $0xc00] sm:$0xf] }
 0x376   :  { %v7854_v19 = vpop.f32.mrf.mxu3  ;;  %v22421_v18 = vld [vmem:[#allocation8] ss:$0 sm:$0xff] }
 0x385   :  { %v7865_v20 = vpop.f32.mrf.mxu0 }
 0x386   :  { %v7878_v21 = vpop.f32.mrf.mxu1  ;;  %v7866_v46 = vadd.f32 %v7865_v20, %v7853_v43  ;;  %v8194_v43 = vld [vmem:[#allocation19 + $0x10] sm:$0xff] }
 0x388   :  { %v7879_v53 = vadd.f32 %v7878_v21, %v7866_v46  ;;  %v20481_v46 = vld [vmem:[#allocation22 + $0x1500] sm:$0xf] }
 0x38d   :  { %v7891_v22 = vpop.f32.mrf.mxu2  ;;  %v7867_v26 = vpop.f32.mrf.mxu0 }
 0x38e   :  { %v7904_v23 = vpop.f32.mrf.mxu3  ;;  %v7880_v27 = vpop.f32.mrf.mxu1  ;;  %v7892_v56 = vadd.f32 %v7891_v22, %v7879_v53  ;;  %v8092_v22 = vld [vmem:[%s23583_s7 + $0x8] sm:$0xf]  ;;  %v22352_v53 = vld [vmem:[#allocation22 + $0x1684] sm:$0xf0] }
 0x38f   :  { %17784 = vmatpush.msk.msra.mxu2 %vm8101_vm1, %v8092_v22  ;;  %v20490_v55 = vor.u32 %v22352_v53, %v20489_v52  ;;  %v19337_v22 = vld [vmem:[#allocation22 + $0xc08] sm:$0xf] }
 0x390   :  { %v7905_v61 = vadd.f32 %v7904_v23, %v7892_v56  ;;  %v8091_v23 = vld [vmem:[%s23583_s7] sm:$0xff]  ;;  %v22304_v56 = vld [vmem:[#allocation22 + $0x150c] sm:$0xf]  ;;  %s14692_s7 = sshll.u32 %s23017_s5, 4  ;;  %s14693_s7 = int_to_ptr.vmem [resolvable:$true] %s14692_s7 }
 0x391   :  { %8120 = vmatpush.msra.mxu2 %v8091_v23  ;;  %13079 = vmatpush.bf16.msrb.mxu0 %v20490_v55  ;;  %v22064_v23 = vld [vmem:[#allocation22 + $0xd84] sm:$0xf0]  ;;  %v21775_v55 = vld [vmem:[#allocation22 + $0x47c] sm:$0xf0] }
 0x392   :  { %v19338_v28 = vor.u32 %v22064_v23, %v19337_v22  ;;  %v20507_v22 = vld [vmem:[#allocation22 + $0x1698] sm:$0xf0] }
 0x393   :  { %8215 = vmatpush.msrb.mxu2 %v8199_v34  ;;  %v18953_v34 = vld [vmem:[#allocation22 + $0x908] sm:$0xf] }
 0x395   :  { %v7893_v31 = vpop.f32.mrf.mxu2  ;;  %8216 = vmatpush.msrb.mxu2 %v8198_v35  ;;  %v21968_v35 = vld [vmem:[#allocation22 + $0xa84] sm:$0xf0] }
 0x396   :  { %v7906_v32 = vpop.f32.mrf.mxu3 }
 0x397   :  { %v8160_v32 = vld [vmem:[#allocation16 + $0x8] sm:$0xf]  ;;  %8217 = vmatpush.msrb.mxu2 %v8197_v36  ;;  %v21920_v36 = vld [vmem:[#allocation22 + $0x90c] sm:$0xf] }
 0x398   :  { %17788 = vmatpush.msk.msrb.mxu1 %vm8101_vm1, %v8160_v32 }
 0x399   :  { %8218 = vmatpush.msrb.mxu2 %v8196_v37  ;;  %v18955_v37 = vld [vmem:[#allocation22 + $0xa88] sm:$0xf0] }
 0x39a   :  { %8186 = vmatpush.msrb.mxu1 %v8159_v33  ;;  %v18947_v33 = vld [vmem:[#allocation22 + $0xa80] sm:$0xf0] }
 0x39b   :  { %8219 = vmatpush.msrb.mxu2 %v8195_v38 }
 0x39d   :  { %8220 = vmatpush.msrb.mxu2 %v8194_v43  ;;  %v21823_v43 = vld [vmem:[#allocation22 + $0x604] sm:$0xf] }
 0x39f   :  { %8221 = vmatpush.msrb.mxu2 %v8193_v44  ;;  %v18958_v44 = vor.u32 %v21920_v36, %v18955_v37  ;;  %v22210_v36 = vld [vmem:[#allocation22 + $0x121c] sm:$0xf] }
 0x3a0   :  { %v20123_v37 = vld [vmem:[#allocation22 + $0x1398] sm:$0xf0] }
 0x3a5   :  { %v7917_v39 = vpop.f32.mrf.mxu0 }
 0x3a6   :  { %v7930_v41 = vpop.f32.mrf.mxu1  ;;  %v7918_v63 = vadd.f32 %v7917_v39, %v7905_v61  ;;  %v22424_v39 = vld [vmem:[#allocation14] ss:$0 sm:$0xff]  ;;  %v22207_v61 = vld [vmem:[#allocation22 + $0x1204] sm:$0xf] }
 0x3a8   :  { %v7931_v0 = vadd.f32 %v7930_v41, %v7918_v63  ;;  %v20098_v63 = vor.u32 %v22255_v60, %v20097_v58  ;;  %v18179_v58 = vld [vmem:[#allocation22 + $0x480] sm:$0xf0]  ;;  %v21776_v60 = vld [vmem:[#allocation22 + $0x484] sm:$0xf0] }
 0x3ad   :  { %v7943_v45 = vpop.f32.mrf.mxu2  ;;  %v7919_v49 = vpop.f32.mrf.mxu0 }
 0x3ae   :  { %v7956_v47 = vpop.f32.mrf.mxu3  ;;  %v7932_v51 = vpop.f32.mrf.mxu1  ;;  %v7944_v1 = vadd.f32 %v7943_v45, %v7931_v0  ;;  %v8192_v45 = vld [vmem:[#allocation19] sm:$0xff]  ;;  %v20102_v0 = vor.u32 %v22207_v61, %v20099_v62  ;;  %v21728_v61 = vld [vmem:[#allocation22 + $0x30c] sm:$0xf] }
 0x3af   :  { %8222 = vmatpush.msrb.mxu2 %v8192_v45  ;;  %v20483_v51 = vld [vmem:[#allocation22 + $0x1680] sm:$0xf0]  ;;  %v18187_v62 = vld [vmem:[#allocation22 + $0x488] sm:$0xf0] }
 0x3b0   :  { %v7957_v2 = vadd.f32 %v7956_v47, %v7944_v1  ;;  %v22351_v47 = vld [vmem:[#allocation22 + $0x167c] sm:$0xf0]  ;;  %v20486_v54 = vor.u32 %v22303_v48, %v20483_v51  ;;  %v20105_v1 = vld [vmem:[#allocation22 + $0x1208] sm:$0xf]  ;;  %v18563_v45 = vld [vmem:[#allocation22 + $0x780] sm:$0xf0] }
 0x3b1   :  { %v20482_v49 = vor.u32 %v22351_v47, %v20481_v46  ;;  %v18569_v46 = vld [vmem:[#allocation22 + $0x608] sm:$0xf]  ;;  %v21824_v48 = vld [vmem:[#allocation22 + $0x60c] sm:$0xf]  ;;  %v18566_v52 = vor.u32 %v21823_v43, %v18563_v45  ;;  %v20126_v43 = vor.u32 %v22210_v36, %v20123_v37  ;;  %v19731_v45 = vld [vmem:[#allocation22 + $0x1090] sm:$0xf0] }
 0x3b2   :  { %v21872_v47 = vld [vmem:[#allocation22 + $0x784] sm:$0xf0]  ;;  %v18203_v36 = vld [vmem:[#allocation22 + $0x498] sm:$0xf0] }
 0x3b3   :  { %13053 = vmatpush.bf16.msrb.mxu3 %v20482_v49  ;;  %v18571_v49 = vld [vmem:[#allocation22 + $0x788] sm:$0xf0]  ;;  %v18570_v53 = vor.u32 %v21872_v47, %v18569_v46  ;;  %v19737_v46 = vld [vmem:[#allocation22 + $0xf18] sm:$0xf] }
 0x3b4   :  { %v22162_v47 = vld [vmem:[#allocation22 + $0x1094] sm:$0xf0] }
 0x3b5   :  { %v7945_v57 = vpop.f32.mrf.mxu2 }
 0x3b6   :  { %v7958_v59 = vpop.f32.mrf.mxu3  ;;  %v20491_v57 = vld [vmem:[#allocation22 + $0x1688] sm:$0xf0] }
 0x3b7   :  { %v20494_v59 = vor.u32 %v22304_v56, %v20491_v57  ;;  %13054 = vmatpush.bf16.msrb.mxu3 %v20098_v63  ;;  %v21727_v56 = vld [vmem:[#allocation22 + $0x304] sm:$0xf]  ;;  %v18574_v57 = vor.u32 %v21824_v48, %v18571_v49  ;;  %v22425_v63 = vld [vmem:[#allocation17] ss:$0 sm:$0xff] }
 0x3b8   :  { %v22114_v48 = vld [vmem:[#allocation22 + $0xf1c] sm:$0xf] }
 0x3b9   :  { %v19739_v49 = vld [vmem:[#allocation22 + $0x1098] sm:$0xf0] }
 0x3c5   :  { %v7969_v3 = vpop.f32.mrf.mxu0 }
 0x3c6   :  { %v7982_v4 = vpop.f32.mrf.mxu1  ;;  %v7970_v50 = vadd.f32 %v7969_v3, %v7957_v2  ;;  %v22256_v2 = vld [vmem:[#allocation22 + $0x1384] sm:$0xf0]  ;;  %v22208_v3 = vld [vmem:[#allocation22 + $0x120c] sm:$0xf] }
 0x3c8   :  { %v7983_v5 = vadd.f32 %v7982_v4, %v7970_v50  ;;  %v20106_v4 = vor.u32 %v22256_v2, %v20105_v1  ;;  %v20107_v50 = vld [vmem:[#allocation22 + $0x1388] sm:$0xf0]  ;;  %v17793_v1 = vld [vmem:[#allocation22] sm:$0xf]  ;;  %v18182_v2 = vor.u32 %v21727_v56, %v18179_v58  ;;  %v19742_v56 = vor.u32 %v22114_v48, %v19739_v49  ;;  %v19347_v58 = vld [vmem:[#allocation22 + $0xd90] sm:$0xf0] }
 0x3c9   :  { %v17819_v48 = vld [vmem:[#allocation22 + $0x198] sm:$0xf0] }
 0x3ca   :  { %13080 = vmatpush.bf16.msrb.mxu0 %v20106_v4  ;;  %v21679_v4 = vld [vmem:[#allocation22 + $0x17c] sm:$0xf0] }
 0x3cd   :  { %v7995_v6 = vpop.f32.mrf.mxu2  ;;  %v7971_v9 = vpop.f32.mrf.mxu0 }
 0x3ce   :  { %v8008_v7 = vpop.f32.mrf.mxu3  ;;  %v7996_v8 = vadd.f32 %v7995_v6, %v7983_v5  ;;  %v7984_v10 = vpop.f32.mrf.mxu1  ;;  %v19713_v5 = vld [vmem:[#allocation22 + $0xf00] sm:$0xf]  ;;  %v19715_v9 = vld [vmem:[#allocation22 + $0x1080] sm:$0xf0] }
 0x3cf   :  { %v22159_v6 = vld [vmem:[#allocation22 + $0x107c] sm:$0xf0]  ;;  %v19721_v10 = vld [vmem:[#allocation22 + $0xf08] sm:$0xf] }
 0x3d0   :  { %v8009_v11 = vadd.f32 %v8008_v7, %v7996_v8  ;;  %v20110_v7 = vor.u32 %v22208_v3, %v20107_v50  ;;  %v22111_v8 = vld [vmem:[#allocation22 + $0xf04] sm:$0xf] }
 0x3d1   :  { %v19718_v15 = vor.u32 %v22111_v8, %v19715_v9  ;;  %v21631_v50 = vld [vmem:[#allocation22 + $0x4] sm:$0xf]  ;;  %v21680_v8 = vld [vmem:[#allocation22 + $0x184] sm:$0xf0]  ;;  %v21632_v9 = vld [vmem:[#allocation22 + $0xc] sm:$0xf] }
 0x3d2   :  { %v8012_v12 = vmax.f32 %v8009_v11, 0.0  ;;  %v19714_v11 = vor.u32 %v22159_v6, %v19713_v5  ;;  %v17795_v5 = vld [vmem:[#allocation22 + $0x180] sm:$0xf0]  ;;  %v18190_v6 = vor.u32 %v21728_v61, %v18187_v62  ;;  %v22018_v61 = vld [vmem:[#allocation22 + $0xc1c] sm:$0xf] }
 0x3d3   :  { %v19355_v62 = vld [vmem:[#allocation22 + $0xd98] sm:$0xf0] }
 0x3d4   :  { %8049 = vmatmul.f32.vlgmr.msra.gmra.mxu0 %v8012_v12  ;;  %v22160_v12 = vld [vmem:[#allocation22 + $0x1084] sm:$0xf0]  ;;  %13055 = vmatpush.bf16.msrb.mxu3 %v19714_v11  ;;  %v20497_v11 = vld [vmem:[#allocation22 + $0x1510] sm:$0xf] }
 0x3d5   :  { %v7997_v13 = vpop.f32.mrf.mxu2  ;;  %v19722_v16 = vor.u32 %v22160_v12, %v19721_v10  ;;  %v17803_v10 = vld [vmem:[#allocation22 + $0x188] sm:$0xf0]  ;;  %v22353_v12 = vld [vmem:[#allocation22 + $0x168c] sm:$0xf0] }
 0x3d6   :  { %v8010_v14 = vpop.f32.mrf.mxu3  ;;  %v22112_v13 = vld [vmem:[#allocation22 + $0xf0c] sm:$0xf] }
 0x3d7   :  { %v19723_v14 = vld [vmem:[#allocation22 + $0x1088] sm:$0xf0]  ;;  %13081 = vmatpush.bf16.msrb.mxu0 %v19722_v16  ;;  %v20499_v16 = vld [vmem:[#allocation22 + $0x1690] sm:$0xf0] }
 0x3db   :  { %13082 = vmatpush.bf16.msrb.mxu0 %v19338_v28  ;;  %v20113_v28 = vld [vmem:[#allocation22 + $0x1210] sm:$0xf] }
 0x451   :  { %v8050_v19 = vpop.f32.mrf.mxu0 }
 0x452   :  { %v8051_v20 = vadd.f32 %v22421_v18, %v8050_v19  ;;  %v22063_v18 = vld [vmem:[#allocation22 + $0xd7c] sm:$0xf0]  ;;  %v22015_v19 = vld [vmem:[#allocation22 + $0xc04] sm:$0xf] }
 0x454   :  { %v8053_v21 = vmax.f32 %v8051_v20, 0.0  ;;  %v19726_v20 = vor.u32 %v22112_v13, %v19723_v14  ;;  %v17794_v14 = vor.u32 %v21679_v4, %v17793_v1  ;;  %v18961_v1 = vld [vmem:[#allocation22 + $0x910] sm:$0xf]  ;;  %v19358_v4 = vor.u32 %v22018_v61, %v19355_v62  ;;  %v22308_v61 = vld [vmem:[#allocation22 + $0x152c] sm:$0xf] }
 0x455   :  { %v20523_v62 = vld [vmem:[#allocation22 + $0x16a8] sm:$0xf0] }
 0x456   :  { %17783 = vmatmul.msk.f32.vlgmr.msra.gmra.mxu1 %vm8066_vm0, %v8053_v21  ;;  %v19331_v21 = vld [vmem:[#allocation22 + $0xd80] sm:$0xf0] }
 0x457   :  { %13066 = vmatpush.bf16.msra.mxu1 %v20486_v54  ;;  %v18177_v54 = vld [vmem:[#allocation22 + $0x300] sm:$0xf] }
 0x45b   :  { %13067 = vmatpush.bf16.msra.mxu1 %v20102_v0  ;;  %v18178_v0 = vor.u32 %v21775_v55, %v18177_v54  ;;  %v22065_v54 = vld [vmem:[#allocation22 + $0xd8c] sm:$0xf0]  ;;  %v19738_v55 = vor.u32 %v22162_v47, %v19737_v46  ;;  %v21634_v47 = vld [vmem:[#allocation22 + $0x1c] sm:$0xf] }
 0x45c   :  { %v17822_v49 = vor.u32 %v21634_v47, %v17819_v48 }
 0x45f   :  { %13068 = vmatpush.bf16.msra.mxu1 %v19718_v15  ;;  %v22305_v15 = vld [vmem:[#allocation22 + $0x1514] sm:$0xf] }
 0x4d3   :  { %v8087_v25 = vpop.f32.mrf.mxu1 }
 0x4d4   :  { %v8088_v26 = vadd.f32 %v22422_v24, %v8087_v25  ;;  %v22016_v24 = vld [vmem:[#allocation22 + $0xc0c] sm:$0xf] }
 0x4d5   :  { %v19339_v25 = vld [vmem:[#allocation22 + $0xd88] sm:$0xf0] }
 0x4d6   :  { %v8090_v27 = vmax.f32 %v8088_v26, 0.0  ;;  %v19330_v26 = vor.u32 %v22063_v18, %v19329_v17  ;;  %v19342_v32 = vor.u32 %v22016_v24, %v19339_v25  ;;  %v20505_v17 = vld [vmem:[#allocation22 + $0x1518] sm:$0xf]  ;;  %v17806_v24 = vor.u32 %v21632_v9, %v17803_v10  ;;  %v18971_v9 = vld [vmem:[#allocation22 + $0xa98] sm:$0xf0] }
 0x4d8   :  { %17785 = vmatmul.msk.f32.vlgmr.msra.gmra.mxu2 %vm8097_vm2, %v8090_v27  ;;  %v19334_v27 = vor.u32 %v22015_v19, %v19331_v21  ;;  %13056 = vmatpush.bf16.msrb.mxu3 %v19330_v26  ;;  %v17798_v19 = vor.u32 %v21631_v50, %v17795_v5  ;;  %v22306_v21 = vld [vmem:[#allocation22 + $0x151c] sm:$0xf]  ;;  %v20498_v26 = vor.u32 %v22353_v12, %v20497_v11  ;;  %v21921_v50 = vld [vmem:[#allocation22 + $0x914] sm:$0xf]  ;;  %v18577_v12 = vld [vmem:[#allocation22 + $0x610] sm:$0xf] }
 0x4d9   :  { %13092 = vmatpush.bf16.msra.mxu2 %v20494_v59  ;;  %v18185_v59 = vld [vmem:[#allocation22 + $0x308] sm:$0xf]  ;;  %v18963_v5 = vld [vmem:[#allocation22 + $0xa90] sm:$0xf0] }
 0x4da   :  { %13069 = vmatpush.bf16.msra.mxu1 %v19334_v27  ;;  %v18186_v3 = vor.u32 %v21776_v60, %v18185_v59  ;;  %v20502_v27 = vor.u32 %v22305_v15, %v20499_v16  ;;  %v19353_v59 = vld [vmem:[#allocation22 + $0xc18] sm:$0xf]  ;;  %v18966_v11 = vor.u32 %v21921_v50, %v18963_v5  ;;  %v21825_v16 = vld [vmem:[#allocation22 + $0x614] sm:$0xf]  ;;  %v20526_v50 = vor.u32 %v22308_v61, %v20523_v62  ;;  %v22211_v5 = vld [vmem:[#allocation22 + $0x1224] sm:$0xf] }
 0x4db   :  { %v22066_v60 = vld [vmem:[#allocation22 + $0xd94] sm:$0xf0]  ;;  %v18209_v62 = vld [vmem:[#allocation22 + $0x320] sm:$0xf] }
 0x4dd   :  { %13093 = vmatpush.bf16.msra.mxu2 %v20110_v7  ;;  %v17801_v7 = vld [vmem:[#allocation22 + $0x8] sm:$0xf] }
 0x4de   :  { %v17802_v23 = vor.u32 %v21680_v8, %v17801_v7  ;;  %v21970_v7 = vld [vmem:[#allocation22 + $0xa94] sm:$0xf0]  ;;  %v21922_v8 = vld [vmem:[#allocation22 + $0x91c] sm:$0xf] }
 0x4df   :  { %v18974_v15 = vor.u32 %v21922_v8, %v18971_v9  ;;  %v22260_v8 = vld [vmem:[#allocation22 + $0x13a4] sm:$0xf0]  ;;  %v22212_v9 = vld [vmem:[#allocation22 + $0x122c] sm:$0xf] }
 0x4e1   :  { %13094 = vmatpush.bf16.msra.mxu2 %v19726_v20  ;;  %v22354_v20 = vld [vmem:[#allocation22 + $0x1694] sm:$0xf0] }
 0x4e5   :  { %13095 = vmatpush.bf16.msra.mxu2 %v19342_v32  ;;  %v22209_v32 = vld [vmem:[#allocation22 + $0x1214] sm:$0xf] }
 0x4e9   :  { %13096 = vmatpush.bf16.msra.mxu2 %v18958_v44  ;;  %v22113_v44 = vld [vmem:[#allocation22 + $0xf14] sm:$0xf] }
 0x4ed   :  { %13097 = vmatpush.bf16.msra.mxu2 %v18574_v57  ;;  %v22017_v57 = vld [vmem:[#allocation22 + $0xc14] sm:$0xf] }
 0x4f1   :  { %13098 = vmatpush.bf16.msra.mxu2 %v18190_v6  ;;  %v18969_v6 = vld [vmem:[#allocation22 + $0x918] sm:$0xf] }
 0x4f5   :  { %13099 = vmatpush.bf16.msra.mxu2 %v17806_v24 }
 0x55b   :  { %v8122_v30 = vpop.f32.mrf.mxu2 }
 0x55c   :  { %v8123_v31 = vadd.f32 %v22423_v29, %v8122_v30  ;;  %v18945_v29 = vld [vmem:[#allocation22 + $0x900] sm:$0xf] }
 0x55d   :  { %v21967_v30 = vld [vmem:[#allocation22 + $0xa7c] sm:$0xf0] }
 0x55e   :  { %17787 = vmatmul.msk.f32.vlgmr.msra.gmra.mxu3 %vm8130_vm4, %v8123_v31  ;;  %v21919_v31 = vld [vmem:[#allocation22 + $0x904] sm:$0xf]  ;;  %v18946_v38 = vor.u32 %v21967_v30, %v18945_v29  ;;  %v22257_v29 = vld [vmem:[#allocation22 + $0x138c] sm:$0xf0]  ;;  %v20506_v30 = vor.u32 %v22354_v20, %v20505_v17  ;;  %v18579_v17 = vld [vmem:[#allocation22 + $0x790] sm:$0xf0] }
 0x55f   :  { %v21826_v20 = vld [vmem:[#allocation22 + $0x61c] sm:$0xf] }
 0x560   :  { %13057 = vmatpush.bf16.msrb.mxu3 %v18946_v38  ;;  %v20114_v38 = vor.u32 %v22257_v29, %v20113_v28  ;;  %v21729_v28 = vld [vmem:[#allocation22 + $0x314] sm:$0xf] }
 0x5e1   :  { %v8155_v40 = vpop.f32.mrf.mxu3 }
 0x5e2   :  { %v8156_v41 = vadd.f32 %v22424_v39, %v8155_v40  ;;  %v18950_v39 = vor.u32 %v21919_v31, %v18947_v33  ;;  %v18954_v40 = vor.u32 %v21968_v35, %v18953_v34  ;;  %v20510_v31 = vor.u32 %v22306_v21, %v20507_v22  ;;  %v20115_v33 = vld [vmem:[#allocation22 + $0x1390] sm:$0xf0]  ;;  %v20121_v34 = vld [vmem:[#allocation22 + $0x1218] sm:$0xf]  ;;  %v18587_v21 = vld [vmem:[#allocation22 + $0x798] sm:$0xf0] }
 0x5e3   :  { %v22258_v35 = vld [vmem:[#allocation22 + $0x1394] sm:$0xf0] }
 0x5e4   :  { %v8158_v42 = vmax.f32 %v8156_v41, 0.0  ;;  %v18561_v41 = vld [vmem:[#allocation22 + $0x600] sm:$0xf]  ;;  %13070 = vmatpush.bf16.msra.mxu1 %v18950_v39  ;;  %13083 = vmatpush.bf16.msrb.mxu0 %v18954_v40  ;;  %v20118_v39 = vor.u32 %v22209_v32, %v20115_v33  ;;  %v19729_v40 = vld [vmem:[#allocation22 + $0xf10] sm:$0xf] }
 0x5e5   :  { %v21778_v32 = vld [vmem:[#allocation22 + $0x494] sm:$0xf0] }
 0x5e6   :  { %17789 = vmatmul.msk.f32.vlgmr.msrb.gmra.mxu1 %vm8097_vm2, %v8158_v42  ;;  %v21871_v42 = vld [vmem:[#allocation22 + $0x77c] sm:$0xf0] }
 0x5e7   :  { %v18562_v51 = vor.u32 %v21871_v42, %v18561_v41  ;;  %v22161_v41 = vld [vmem:[#allocation22 + $0x108c] sm:$0xf0]  ;;  %v20122_v42 = vor.u32 %v22258_v35, %v20121_v34  ;;  %v21730_v35 = vld [vmem:[#allocation22 + $0x31c] sm:$0xf] }
 0x5e8   :  { %13071 = vmatpush.bf16.msra.mxu1 %v18566_v52  ;;  %13084 = vmatpush.bf16.msrb.mxu0 %v18570_v53  ;;  %v19734_v52 = vor.u32 %v22113_v44, %v19731_v45  ;;  %v19345_v53 = vld [vmem:[#allocation22 + $0xc10] sm:$0xf]  ;;  %v18206_v37 = vor.u32 %v21730_v35, %v18203_v36  ;;  %v21682_v44 = vld [vmem:[#allocation22 + $0x194] sm:$0xf0] }
 0x5e9   :  { %13058 = vmatpush.bf16.msrb.mxu3 %v18562_v51  ;;  %v19730_v51 = vor.u32 %v22161_v41, %v19729_v40  ;;  %v21633_v40 = vld [vmem:[#allocation22 + $0x14] sm:$0xf] }
 0x5ec   :  { %13072 = vmatpush.bf16.msra.mxu1 %v18182_v2  ;;  %13085 = vmatpush.bf16.msrb.mxu0 %v18186_v3  ;;  %v21969_v2 = vld [vmem:[#allocation22 + $0xa8c] sm:$0xf0]  ;;  %v19354_v3 = vor.u32 %v22066_v60, %v19353_v59  ;;  %v22356_v59 = vld [vmem:[#allocation22 + $0x16a4] sm:$0xf0] }
 0x5ed   :  { %13059 = vmatpush.bf16.msrb.mxu3 %v18178_v0  ;;  %v19350_v0 = vor.u32 %v22017_v57, %v19347_v58  ;;  %v18962_v10 = vor.u32 %v21969_v2, %v18961_v1  ;;  %v20515_v57 = vld [vmem:[#allocation22 + $0x16a0] sm:$0xf0]  ;;  %v20521_v58 = vld [vmem:[#allocation22 + $0x1528] sm:$0xf]  ;;  %v20129_v2 = vld [vmem:[#allocation22 + $0x1220] sm:$0xf] }
 0x5f0   :  { %13073 = vmatpush.bf16.msra.mxu1 %v17798_v19  ;;  %13086 = vmatpush.bf16.msrb.mxu0 %v17802_v23  ;;  %v21874_v19 = vld [vmem:[#allocation22 + $0x794] sm:$0xf0]  ;;  %v18582_v23 = vor.u32 %v21825_v16, %v18579_v17  ;;  %v22115_v17 = vld [vmem:[#allocation22 + $0xf24] sm:$0xf] }
 0x5f1   :  { %13060 = vmatpush.bf16.msrb.mxu3 %v17794_v14  ;;  %v18970_v14 = vor.u32 %v21970_v7, %v18969_v6  ;;  %v20131_v6 = vld [vmem:[#allocation22 + $0x13a0] sm:$0xf0]  ;;  %v20137_v7 = vld [vmem:[#allocation22 + $0x1228] sm:$0xf] }
 0x5f4   :  { %13118 = vmatpush.bf16.msrb.mxu1 %v20502_v27  ;;  %13131 = vmatpush.bf16.msra.mxu0 %v20506_v30  ;;  %v21777_v27 = vld [vmem:[#allocation22 + $0x48c] sm:$0xf0]  ;;  %v18195_v30 = vld [vmem:[#allocation22 + $0x490] sm:$0xf0] }
 0x5f5   :  { %13105 = vmatpush.bf16.msra.mxu3 %v20498_v26  ;;  %v18193_v26 = vld [vmem:[#allocation22 + $0x310] sm:$0xf]  ;;  %v18198_v33 = vor.u32 %v21729_v28, %v18195_v30  ;;  %v19363_v30 = vld [vmem:[#allocation22 + $0xda0] sm:$0xf0] }
 0x5f6   :  { %v18194_v29 = vor.u32 %v21777_v27, %v18193_v26  ;;  %v22067_v26 = vld [vmem:[#allocation22 + $0xd9c] sm:$0xf0] }
 0x5f8   :  { %13119 = vmatpush.bf16.msrb.mxu1 %v20118_v39  ;;  %13132 = vmatpush.bf16.msra.mxu0 %v20122_v42  ;;  %v21681_v39 = vld [vmem:[#allocation22 + $0x18c] sm:$0xf0]  ;;  %v17811_v42 = vld [vmem:[#allocation22 + $0x190] sm:$0xf0] }
 0x5f9   :  { %13106 = vmatpush.bf16.msra.mxu3 %v20114_v38  ;;  %v17809_v38 = vld [vmem:[#allocation22 + $0x10] sm:$0xf]  ;;  %v17814_v45 = vor.u32 %v21633_v40, %v17811_v42  ;;  %v18979_v42 = vld [vmem:[#allocation22 + $0xaa0] sm:$0xf0] }
 0x5fa   :  { %v17810_v41 = vor.u32 %v21681_v39, %v17809_v38  ;;  %v21971_v38 = vld [vmem:[#allocation22 + $0xa9c] sm:$0xf0] }
 0x5fc   :  { %13120 = vmatpush.bf16.msrb.mxu1 %v19734_v52  ;;  %13133 = vmatpush.bf16.msra.mxu0 %v19738_v55  ;;  %v22355_v55 = vld [vmem:[#allocation22 + $0x169c] sm:$0xf0] }
 0x5fd   :  { %13107 = vmatpush.bf16.msra.mxu3 %v19730_v51  ;;  %v22426_v51 = vld [vmem:[#allocation20] ss:$0 sm:$0xff] }
 0x600   :  { %13121 = vmatpush.bf16.msrb.mxu1 %v19350_v0  ;;  %13134 = vmatpush.bf16.msra.mxu0 %v19354_v3  ;;  %v22259_v3 = vld [vmem:[#allocation22 + $0x139c] sm:$0xf0] }
 0x604   :  { %13122 = vmatpush.bf16.msrb.mxu1 %v18966_v11  ;;  %13135 = vmatpush.bf16.msra.mxu0 %v18970_v14  ;;  %v20130_v11 = vor.u32 %v22259_v3, %v20129_v2  ;;  %v22163_v14 = vld [vmem:[#allocation22 + $0x109c] sm:$0xf0]  ;;  %v21731_v3 = vld [vmem:[#allocation22 + $0x324] sm:$0xf] }
 0x608   :  { %13123 = vmatpush.bf16.msrb.mxu1 %v18582_v23 }
 0x60c   :  { %13124 = vmatpush.bf16.msrb.mxu1 %v18198_v33  ;;  %v22020_v33 = vld [vmem:[#allocation22 + $0xc2c] sm:$0xf] }
 0x610   :  { %13125 = vmatpush.bf16.msrb.mxu1 %v17814_v45  ;;  %v21924_v45 = vld [vmem:[#allocation22 + $0x92c] sm:$0xf] }
 0x663   :  { %v8188_v13 = vpop.f32.mrf.mxu1 }
 0x664   :  { %v8189_v18 = vadd.f32 %v22425_v63, %v8188_v13  ;;  %v19346_v63 = vor.u32 %v22065_v54, %v19345_v53  ;;  %v21873_v13 = vld [vmem:[#allocation22 + $0x78c] sm:$0xf0]  ;;  %v20513_v54 = vld [vmem:[#allocation22 + $0x1520] sm:$0xf] }
 0x665   :  { %v18578_v22 = vor.u32 %v21873_v13, %v18577_v12  ;;  %v20514_v0 = vor.u32 %v22355_v55, %v20513_v54  ;;  %v20134_v12 = vor.u32 %v22211_v5, %v20131_v6  ;;  %v19745_v13 = vld [vmem:[#allocation22 + $0xf20] sm:$0xf]  ;;  %v21827_v54 = vld [vmem:[#allocation22 + $0x624] sm:$0xf]  ;;  %v21780_v5 = vld [vmem:[#allocation22 + $0x4a4] sm:$0xf0] }
 0x666   :  { %v8191_v25 = vmax.f32 %v8189_v18, 0.0  ;;  %13108 = vmatpush.bf16.msra.mxu3 %v19346_v63  ;;  %v18585_v18 = vld [vmem:[#allocation22 + $0x618] sm:$0xf]  ;;  %v19746_v23 = vor.u32 %v22163_v14, %v19745_v13  ;;  %v18595_v55 = vld [vmem:[#allocation22 + $0x7a0] sm:$0xf0] }
 0x667   :  { %v18586_v24 = vor.u32 %v21874_v19, %v18585_v18  ;;  %v19747_v18 = vld [vmem:[#allocation22 + $0x10a0] sm:$0xf0]  ;;  %v19753_v19 = vld [vmem:[#allocation22 + $0xf28] sm:$0xf]  ;;  %v18598_v61 = vor.u32 %v21827_v54, %v18595_v55  ;;  %v21732_v6 = vld [vmem:[#allocation22 + $0x32c] sm:$0xf] }
 0x668   :  { %17790 = vmatmul.msk.f32.vlgmr.msrb.gmra.mxu2 %vm8066_vm0, %v8191_v25  ;;  %v18590_v25 = vor.u32 %v21826_v20, %v18587_v21  ;;  %v22164_v20 = vld [vmem:[#allocation22 + $0x10a4] sm:$0xf0]  ;;  %v22116_v21 = vld [vmem:[#allocation22 + $0xf2c] sm:$0xf]  ;;  %v17827_v13 = vld [vmem:[#allocation22 + $0x1a0] sm:$0xf0] }
 0x669   :  { %13144 = vmatpush.bf16.msrb.mxu2 %v20510_v31  ;;  %13136 = vmatpush.bf16.msra.mxu0 %v18586_v24  ;;  %v18201_v31 = vld [vmem:[#allocation22 + $0x318] sm:$0xf]  ;;  %v19750_v24 = vor.u32 %v22115_v17, %v19747_v18  ;;  %v19754_v27 = vor.u32 %v22164_v20, %v19753_v19  ;;  %v21684_v17 = vld [vmem:[#allocation22 + $0x1a4] sm:$0xf0]  ;;  %v21636_v18 = vld [vmem:[#allocation22 + $0x2c] sm:$0xf] }
 0x66a   :  { %13109 = vmatpush.bf16.msra.mxu3 %v18962_v10  ;;  %v18202_v34 = vor.u32 %v21778_v32, %v18201_v31  ;;  %v20139_v10 = vld [vmem:[#allocation22 + $0x13a8] sm:$0xf0]  ;;  %v19369_v31 = vld [vmem:[#allocation22 + $0xc28] sm:$0xf]  ;;  %v20529_v20 = vld [vmem:[#allocation22 + $0x1530] sm:$0xf] }
 0x66b   :  { %v20142_v16 = vor.u32 %v22212_v9, %v20139_v10  ;;  %v22068_v32 = vld [vmem:[#allocation22 + $0xda4] sm:$0xf0]  ;;  %v17835_v19 = vld [vmem:[#allocation22 + $0x1a8] sm:$0xf0]  ;;  %v22166_v54 = vld [vmem:[#allocation22 + $0x10b4] sm:$0xf0] }
 0x66c   :  { %v19370_v39 = vor.u32 %v22068_v32, %v19369_v31  ;;  %v17838_v31 = vor.u32 %v21636_v18, %v17835_v19  ;;  %v22118_v55 = vld [vmem:[#allocation22 + $0xf3c] sm:$0xf]  ;;  %v18609_v19 = vld [vmem:[#allocation22 + $0x630] sm:$0xf] }
 0x66d   :  { %13145 = vmatpush.bf16.msrb.mxu2 %v20126_v43  ;;  %13137 = vmatpush.bf16.msra.mxu0 %v18202_v34  ;;  %v17817_v43 = vld [vmem:[#allocation22 + $0x18] sm:$0xf]  ;;  %v19371_v34 = vld [vmem:[#allocation22 + $0xda8] sm:$0xf0] }
 0x66e   :  { %13110 = vmatpush.bf16.msra.mxu3 %v18578_v22  ;;  %v17818_v46 = vor.u32 %v21682_v44, %v17817_v43  ;;  %v19755_v22 = vld [vmem:[#allocation22 + $0x10a8] sm:$0xf0]  ;;  %v19374_v40 = vor.u32 %v22020_v33, %v19371_v34  ;;  %v18985_v43 = vld [vmem:[#allocation22 + $0x928] sm:$0xf]  ;;  %v20145_v34 = vld [vmem:[#allocation22 + $0x1230] sm:$0xf] }
 0x66f   :  { %v19758_v28 = vor.u32 %v22116_v21, %v19755_v22  ;;  %v21972_v44 = vld [vmem:[#allocation22 + $0xaa4] sm:$0xf0]  ;;  %v22357_v21 = vld [vmem:[#allocation22 + $0x16ac] sm:$0xf0]  ;;  %v22309_v22 = vld [vmem:[#allocation22 + $0x1534] sm:$0xf] }
 0x670   :  { %v20530_v32 = vor.u32 %v22357_v21, %v20529_v20  ;;  %v21877_v20 = vld [vmem:[#allocation22 + $0x7ac] sm:$0xf0] }
 0x671   :  { %13146 = vmatpush.bf16.msrb.mxu2 %v19742_v56  ;;  %13138 = vmatpush.bf16.msra.mxu0 %v17818_v46  ;;  %v22307_v56 = vld [vmem:[#allocation22 + $0x1524] sm:$0xf]  ;;  %v18987_v46 = vld [vmem:[#allocation22 + $0xaa8] sm:$0xf0] }
 0x672   :  { %13111 = vmatpush.bf16.msra.mxu3 %v18194_v29  ;;  %v20518_v1 = vor.u32 %v22307_v56, %v20515_v57  ;;  %v22019_v29 = vld [vmem:[#allocation22 + $0xc24] sm:$0xf]  ;;  %v18601_v56 = vld [vmem:[#allocation22 + $0x628] sm:$0xf] }
 0x673   :  { %v19366_v36 = vor.u32 %v22019_v29, %v19363_v30  ;;  %v21876_v57 = vld [vmem:[#allocation22 + $0x7a4] sm:$0xf0]  ;;  %v20539_v29 = vld [vmem:[#allocation22 + $0x16b8] sm:$0xf0] }
 0x675   :  { %13147 = vmatpush.bf16.msrb.mxu2 %v19358_v4  ;;  %v20522_v4 = vor.u32 %v22356_v59, %v20521_v58  ;;  %v21828_v58 = vld [vmem:[#allocation22 + $0x62c] sm:$0xf] }
 0x676   :  { %13112 = vmatpush.bf16.msra.mxu3 %v17810_v41  ;;  %v21923_v41 = vld [vmem:[#allocation22 + $0x924] sm:$0xf]  ;;  %v18603_v59 = vld [vmem:[#allocation22 + $0x7a8] sm:$0xf0] }
 0x677   :  { %v18982_v48 = vor.u32 %v21923_v41, %v18979_v42  ;;  %v18606_v2 = vor.u32 %v21828_v58, %v18603_v59  ;;  %v22262_v41 = vld [vmem:[#allocation22 + $0x13b4] sm:$0xf0]  ;;  %v22214_v42 = vld [vmem:[#allocation22 + $0x123c] sm:$0xf]  ;;  %v19377_v59 = vld [vmem:[#allocation22 + $0xc30] sm:$0xf] }
 0x679   :  { %13148 = vmatpush.bf16.msrb.mxu2 %v18974_v15  ;;  %v20138_v15 = vor.u32 %v22260_v8, %v20137_v7  ;;  %v18219_v7 = vld [vmem:[#allocation22 + $0x4a8] sm:$0xf0]  ;;  %v17825_v8 = vld [vmem:[#allocation22 + $0x20] sm:$0xf] }
 0x67d   :  { %13149 = vmatpush.bf16.msrb.mxu2 %v18590_v25  ;;  %v19361_v25 = vld [vmem:[#allocation22 + $0xc20] sm:$0xf] }
 0x67e   :  { %v19362_v35 = vor.u32 %v22067_v26, %v19361_v25 }
 0x681   :  { %13150 = vmatpush.bf16.msrb.mxu2 %v18206_v37  ;;  %v18977_v37 = vld [vmem:[#allocation22 + $0x920] sm:$0xf] }
 0x682   :  { %v18978_v47 = vor.u32 %v21971_v38, %v18977_v37  ;;  %v22213_v38 = vld [vmem:[#allocation22 + $0x1234] sm:$0xf] }
 0x685   :  { %13151 = vmatpush.bf16.msrb.mxu2 %v17822_v49  ;;  %v18593_v49 = vld [vmem:[#allocation22 + $0x620] sm:$0xf] }
 0x6eb   :  { %v8224_v52 = vpop.f32.mrf.mxu2 }
 0x6ec   :  { %v8225_v53 = vadd.f32 %v22426_v51, %v8224_v52  ;;  %v21875_v51 = vld [vmem:[#allocation22 + $0x79c] sm:$0xf0]  ;;  %v18986_v52 = vor.u32 %v21972_v44, %v18985_v43  ;;  %v20155_v43 = vld [vmem:[#allocation22 + $0x13b8] sm:$0xf0] }
 0x6ee   :  { %v8227_v60 = vmax.f32 %v8225_v53, 0.0  ;;  %v18990_v53 = vor.u32 %v21924_v45, %v18987_v46  ;;  %v19761_v46 = vld [vmem:[#allocation22 + $0xf30] sm:$0xf] }
 0x6f0   :  { %v23303_v63 = vpack.c.bf16 %v8227_v60, %v8227_v60  ;;  %v18594_v60 = vor.u32 %v21875_v51, %v18593_v49  ;;  %v20158_v49 = vor.u32 %v22214_v42, %v20155_v43  ;;  %v22117_v51 = vld [vmem:[#allocation22 + $0xf34] sm:$0xf] }
 0x6f2   :  { %13061 = vmatmul.bf16.vlgmr.msrb.gmra.mxu3 %v23303_v63  ;;  %13074 = vmatmul.bf16.vlgmr.msra.gmra.mxu1 %v23303_v63 }
 0x6f3   :  { %13087 = vmatmul.bf16.vlgmr.msrb.gmra.mxu0 %v23303_v63  ;;  %13100 = vmatmul.bf16.vlgmr.msra.gmra.mxu2 %v23303_v63 }
 0x6f4   :  { %13157 = vmatpush.bf16.msrb.mxu3 %v20514_v0  ;;  %13170 = vmatpush.bf16.msra.mxu1 %v20518_v1  ;;  %v21779_v0 = vld [vmem:[#allocation22 + $0x49c] sm:$0xf0]  ;;  %v18602_v1 = vor.u32 %v21876_v57, %v18601_v56  ;;  %v19771_v56 = vld [vmem:[#allocation22 + $0x10b8] sm:$0xf0] }
 0x6f5   :  { %13183 = vmatpush.bf16.msrb.mxu0 %v20522_v4  ;;  %13196 = vmatpush.bf16.msra.mxu2 %v20526_v50  ;;  %v18211_v4 = vld [vmem:[#allocation22 + $0x4a0] sm:$0xf0]  ;;  %v18217_v50 = vld [vmem:[#allocation22 + $0x328] sm:$0xf]  ;;  %v18210_v9 = vor.u32 %v21779_v0, %v18209_v62  ;;  %v19774_v62 = vor.u32 %v22118_v55, %v19771_v56  ;;  %v22021_v0 = vld [vmem:[#allocation22 + $0xc34] sm:$0xf] }
 0x6f6   :  { %v18214_v10 = vor.u32 %v21731_v3, %v18211_v4  ;;  %v18218_v14 = vor.u32 %v21780_v5, %v18217_v50  ;;  %v22070_v3 = vld [vmem:[#allocation22 + $0xdb4] sm:$0xf0]  ;;  %v22022_v4 = vld [vmem:[#allocation22 + $0xc3c] sm:$0xf]  ;;  %v22359_v55 = vld [vmem:[#allocation22 + $0x16bc] sm:$0xf0] }
 0x6f7   :  { %v19387_v50 = vld [vmem:[#allocation22 + $0xdb8] sm:$0xf0]  ;;  %v22311_v56 = vld [vmem:[#allocation22 + $0x1544] sm:$0xf] }
 0x6f8   :  { %13158 = vmatpush.bf16.msrb.mxu3 %v20130_v11  ;;  %13171 = vmatpush.bf16.msra.mxu1 %v20134_v12  ;;  %v21683_v11 = vld [vmem:[#allocation22 + $0x19c] sm:$0xf0]  ;;  %v21635_v12 = vld [vmem:[#allocation22 + $0x24] sm:$0xf] }
 0x6f9   :  { %13184 = vmatpush.bf16.msrb.mxu0 %v20138_v15  ;;  %13197 = vmatpush.bf16.msra.mxu2 %v20142_v16  ;;  %v18222_v15 = vor.u32 %v21732_v6, %v18219_v7  ;;  %v17833_v16 = vld [vmem:[#allocation22 + $0x28] sm:$0xf]  ;;  %v17826_v25 = vor.u32 %v21683_v11, %v17825_v8  ;;  %v17830_v26 = vor.u32 %v21635_v12, %v17827_v13  ;;  %v18993_v7 = vld [vmem:[#allocation22 + $0x930] sm:$0xf]  ;;  %v21925_v11 = vld [vmem:[#allocation22 + $0x934] sm:$0xf] }
 0x6fa   :  { %v17834_v30 = vor.u32 %v21684_v17, %v17833_v16  ;;  %v21973_v8 = vld [vmem:[#allocation22 + $0xaac] sm:$0xf0]  ;;  %v18995_v12 = vld [vmem:[#allocation22 + $0xab0] sm:$0xf0]  ;;  %v19001_v13 = vld [vmem:[#allocation22 + $0x938] sm:$0xf] }
 0x6fb   :  { %v19003_v16 = vld [vmem:[#allocation22 + $0xab8] sm:$0xf0]  ;;  %v18994_v17 = vor.u32 %v21973_v8, %v18993_v7  ;;  %v18998_v18 = vor.u32 %v21925_v11, %v18995_v12  ;;  %v22215_v8 = vld [vmem:[#allocation22 + $0x1244] sm:$0xf]  ;;  %v22264_v11 = vld [vmem:[#allocation22 + $0x13c4] sm:$0xf0] }
 0x6fc   :  { %13159 = vmatpush.bf16.msrb.mxu3 %v19746_v23  ;;  %13172 = vmatpush.bf16.msra.mxu1 %v19750_v24  ;;  %v20531_v23 = vld [vmem:[#allocation22 + $0x16b0] sm:$0xf0]  ;;  %v20537_v24 = vld [vmem:[#allocation22 + $0x1538] sm:$0xf]  ;;  %v22216_v12 = vld [vmem:[#allocation22 + $0x124c] sm:$0xf] }
 0x6fd   :  { %13185 = vmatpush.bf16.msrb.mxu0 %v19754_v27  ;;  %13198 = vmatpush.bf16.msra.mxu2 %v19758_v28  ;;  %v22358_v27 = vld [vmem:[#allocation22 + $0x16b4] sm:$0xf0]  ;;  %v22310_v28 = vld [vmem:[#allocation22 + $0x153c] sm:$0xf]  ;;  %v20534_v33 = vor.u32 %v22309_v22, %v20531_v23  ;;  %v21829_v23 = vld [vmem:[#allocation22 + $0x634] sm:$0xf] }
 0x6fe   :  { %v20542_v37 = vor.u32 %v22310_v28, %v20539_v29  ;;  %v18619_v28 = vld [vmem:[#allocation22 + $0x7b8] sm:$0xf0]  ;;  %v18610_v29 = vor.u32 %v21877_v20, %v18609_v19  ;;  %v22119_v20 = vld [vmem:[#allocation22 + $0xf44] sm:$0xf] }
 0x700   :  { %13160 = vmatpush.bf16.msrb.mxu3 %v19362_v35  ;;  %13173 = vmatpush.bf16.msra.mxu1 %v19366_v36  ;;  %v22261_v35 = vld [vmem:[#allocation22 + $0x13ac] sm:$0xf0]  ;;  %v20538_v36 = vor.u32 %v22358_v27, %v20537_v24  ;;  %v18611_v24 = vld [vmem:[#allocation22 + $0x7b0] sm:$0xf0]  ;;  %v21830_v27 = vld [vmem:[#allocation22 + $0x63c] sm:$0xf] }
 0x701   :  { %13186 = vmatpush.bf16.msrb.mxu0 %v19370_v39  ;;  %13199 = vmatpush.bf16.msra.mxu2 %v19374_v40  ;;  %v20147_v39 = vld [vmem:[#allocation22 + $0x13b0] sm:$0xf0]  ;;  %v20153_v40 = vld [vmem:[#allocation22 + $0x1238] sm:$0xf]  ;;  %v20146_v44 = vor.u32 %v22261_v35, %v20145_v34  ;;  %v18622_v34 = vor.u32 %v21830_v27, %v18619_v28  ;;  %v19393_v28 = vld [vmem:[#allocation22 + $0xc40] sm:$0xf] }
 0x702   :  { %13113 = vmatmul.bf16.vlgmr.msra.gmra.mxu3 %v23303_v63  ;;  %13126 = vmatmul.bf16.vlgmr.msrb.gmra.mxu1 %v23303_v63  ;;  %v20150_v45 = vor.u32 %v22213_v38, %v20147_v39  ;;  %v21733_v35 = vld [vmem:[#allocation22 + $0x334] sm:$0xf]  ;;  %v21782_v38 = vld [vmem:[#allocation22 + $0x4b4] sm:$0xf0]  ;;  %v21734_v39 = vld [vmem:[#allocation22 + $0x33c] sm:$0xf] }
 0x703   :  { %13139 = vmatmul.bf16.vlgmr.msra.gmra.mxu0 %v23303_v63  ;;  %13152 = vmatmul.bf16.vlgmr.msrb.gmra.mxu2 %v23303_v63 }
 0x704   :  { %13161 = vmatpush.bf16.msrb.mxu3 %v18978_v47  ;;  %13174 = vmatpush.bf16.msra.mxu1 %v18982_v48  ;;  %v22165_v47 = vld [vmem:[#allocation22 + $0x10ac] sm:$0xf0]  ;;  %v20154_v48 = vor.u32 %v22262_v41, %v20153_v40  ;;  %v18235_v40 = vld [vmem:[#allocation22 + $0x4b8] sm:$0xf0] }
 0x705   :  { %13187 = vmatpush.bf16.msrb.mxu0 %v18986_v52  ;;  %13200 = vmatpush.bf16.msra.mxu2 %v18990_v53  ;;  %v19763_v52 = vld [vmem:[#allocation22 + $0x10b0] sm:$0xf0]  ;;  %v19769_v53 = vld [vmem:[#allocation22 + $0xf38] sm:$0xf]  ;;  %v19762_v57 = vor.u32 %v22165_v47, %v19761_v46  ;;  %v17841_v41 = vld [vmem:[#allocation22 + $0x30] sm:$0xf] }
 0x706   :  { %v19766_v58 = vor.u32 %v22117_v51, %v19763_v52  ;;  %v17843_v46 = vld [vmem:[#allocation22 + $0x1b0] sm:$0xf0]  ;;  %v21686_v51 = vld [vmem:[#allocation22 + $0x1b4] sm:$0xf0]  ;;  %v21638_v52 = vld [vmem:[#allocation22 + $0x3c] sm:$0xf] }
 0x708   :  { %13162 = vmatpush.bf16.msrb.mxu3 %v18594_v60  ;;  %13175 = vmatpush.bf16.msra.mxu1 %v18598_v61  ;;  %v22069_v60 = vld [vmem:[#allocation22 + $0xdac] sm:$0xf0]  ;;  %v19770_v61 = vor.u32 %v22166_v54, %v19769_v53  ;;  %v17851_v53 = vld [vmem:[#allocation22 + $0x1b8] sm:$0xf0]  ;;  %v20545_v54 = vld [vmem:[#allocation22 + $0x1540] sm:$0xf] }
 0x709   :  { %13188 = vmatpush.bf16.msrb.mxu0 %v18602_v1  ;;  %13201 = vmatpush.bf16.msra.mxu2 %v18606_v2  ;;  %v19379_v1 = vld [vmem:[#allocation22 + $0xdb0] sm:$0xf0]  ;;  %v19385_v2 = vld [vmem:[#allocation22 + $0xc38] sm:$0xf]  ;;  %v19378_v5 = vor.u32 %v22069_v60, %v19377_v59 }
 0x70a   :  { %v19382_v6 = vor.u32 %v22021_v0, %v19379_v1  ;;  %v20555_v0 = vld [vmem:[#allocation22 + $0x16c8] sm:$0xf0] }
 0x70c   :  { %13163 = vmatpush.bf16.msrb.mxu3 %v18210_v9  ;;  %13176 = vmatpush.bf16.msra.mxu1 %v18214_v10  ;;  %v19386_v9 = vor.u32 %v22070_v3, %v19385_v2  ;;  %v19390_v10 = vor.u32 %v22022_v4, %v19387_v50  ;;  %v17854_v2 = vor.u32 %v21638_v52, %v17851_v53  ;;  %v20161_v50 = vld [vmem:[#allocation22 + $0x1240] sm:$0xf] }
 0x70d   :  { %13189 = vmatpush.bf16.msrb.mxu0 %v18218_v14  ;;  %13202 = vmatpush.bf16.msra.mxu2 %v18222_v15  ;;  %v21974_v14 = vld [vmem:[#allocation22 + $0xab4] sm:$0xf0]  ;;  %v21926_v15 = vld [vmem:[#allocation22 + $0x93c] sm:$0xf]  ;;  %v20546_v3 = vor.u32 %v22359_v55, %v20545_v54  ;;  %v18625_v53 = vld [vmem:[#allocation22 + $0x640] sm:$0xf] }
 0x70e   :  { %v19002_v21 = vor.u32 %v21974_v14, %v19001_v13  ;;  %v19006_v22 = vor.u32 %v21926_v15, %v19003_v16  ;;  %v20171_v13 = vld [vmem:[#allocation22 + $0x13c8] sm:$0xf0]  ;;  %v19777_v16 = vld [vmem:[#allocation22 + $0xf40] sm:$0xf] }
 0x70f   :  { %v20174_v19 = vor.u32 %v22216_v12, %v20171_v13  ;;  %v21879_v54 = vld [vmem:[#allocation22 + $0x7bc] sm:$0xf0] }
 0x710   :  { %13164 = vmatpush.bf16.msrb.mxu3 %v17826_v25  ;;  %13177 = vmatpush.bf16.msra.mxu1 %v17830_v26  ;;  %v18617_v25 = vld [vmem:[#allocation22 + $0x638] sm:$0xf] }
 0x711   :  { %13190 = vmatpush.bf16.msrb.mxu0 %v17834_v30  ;;  %13203 = vmatpush.bf16.msra.mxu2 %v17838_v31  ;;  %v21878_v26 = vld [vmem:[#allocation22 + $0x7b4] sm:$0xf0]  ;;  %v18614_v30 = vor.u32 %v21829_v23, %v18611_v24  ;;  %v18225_v31 = vld [vmem:[#allocation22 + $0x330] sm:$0xf]  ;;  %v22168_v23 = vld [vmem:[#allocation22 + $0x10c4] sm:$0xf0] }
 0x712   :  { %v22120_v24 = vld [vmem:[#allocation22 + $0xf4c] sm:$0xf] }
 0x713   :  { %13165 = vmatmul.bf16.vlgmr.msrb.gmra.mxu3 %v23303_v63  ;;  %13178 = vmatmul.bf16.vlgmr.msra.gmra.mxu1 %v23303_v63 }
 0x714   :  { %13209 = vmatpush.bf16.msra.mxu3 %v20530_v32  ;;  %13222 = vmatpush.bf16.msrb.mxu1 %v20534_v33  ;;  %v21781_v32 = vld [vmem:[#allocation22 + $0x4ac] sm:$0xf0]  ;;  %v18618_v33 = vor.u32 %v21878_v26, %v18617_v25  ;;  %v19787_v25 = vld [vmem:[#allocation22 + $0x10c8] sm:$0xf0] }
 0x715   :  { %13235 = vmatpush.bf16.msra.mxu0 %v20538_v36  ;;  %13248 = vmatpush.bf16.msrb.mxu2 %v20542_v37  ;;  %v18227_v36 = vld [vmem:[#allocation22 + $0x4b0] sm:$0xf0]  ;;  %v18233_v37 = vld [vmem:[#allocation22 + $0x338] sm:$0xf]  ;;  %v18226_v42 = vor.u32 %v21781_v32, %v18225_v31  ;;  %v19790_v31 = vor.u32 %v22120_v24, %v19787_v25  ;;  %v22023_v32 = vld [vmem:[#allocation22 + $0xc44] sm:$0xf] }
 0x716   :  { %13191 = vmatmul.bf16.vlgmr.msrb.gmra.mxu0 %v23303_v63  ;;  %13204 = vmatmul.bf16.vlgmr.msra.gmra.mxu2 %v23303_v63  ;;  %v18230_v43 = vor.u32 %v21733_v35, %v18227_v36  ;;  %v18234_v47 = vor.u32 %v21782_v38, %v18233_v37  ;;  %v22072_v35 = vld [vmem:[#allocation22 + $0xdc4] sm:$0xf0]  ;;  %v22024_v36 = vld [vmem:[#allocation22 + $0xc4c] sm:$0xf]  ;;  %v22361_v24 = vld [vmem:[#allocation22 + $0x16cc] sm:$0xf0] }
 0x717   :  { %v19403_v37 = vld [vmem:[#allocation22 + $0xdc8] sm:$0xf0]  ;;  %v22313_v25 = vld [vmem:[#allocation22 + $0x1554] sm:$0xf] }
 0x718   :  { %13210 = vmatpush.bf16.msra.mxu3 %v20146_v44  ;;  %13223 = vmatpush.bf16.msrb.mxu1 %v20150_v45  ;;  %v21685_v44 = vld [vmem:[#allocation22 + $0x1ac] sm:$0xf0]  ;;  %v21637_v45 = vld [vmem:[#allocation22 + $0x34] sm:$0xf] }
 0x719   :  { %13236 = vmatpush.bf16.msra.mxu0 %v20154_v48  ;;  %13249 = vmatpush.bf16.msrb.mxu2 %v20158_v49  ;;  %v18238_v48 = vor.u32 %v21734_v39, %v18235_v40  ;;  %v17849_v49 = vld [vmem:[#allocation22 + $0x38] sm:$0xf]  ;;  %v17842_v59 = vor.u32 %v21685_v44, %v17841_v41  ;;  %v17846_v60 = vor.u32 %v21637_v45, %v17843_v46  ;;  %v19009_v40 = vld [vmem:[#allocation22 + $0x940] sm:$0xf]  ;;  %v21927_v44 = vld [vmem:[#allocation22 + $0x944] sm:$0xf] }
 0x71a   :  { %v17850_v1 = vor.u32 %v21686_v51, %v17849_v49  ;;  %v21975_v41 = vld [vmem:[#allocation22 + $0xabc] sm:$0xf0]  ;;  %v19011_v45 = vld [vmem:[#allocation22 + $0xac0] sm:$0xf0]  ;;  %v19017_v46 = vld [vmem:[#allocation22 + $0x948] sm:$0xf] }
 0x71b   :  { %v19019_v49 = vld [vmem:[#allocation22 + $0xac8] sm:$0xf0]  ;;  %v19010_v51 = vor.u32 %v21975_v41, %v19009_v40  ;;  %v19014_v52 = vor.u32 %v21927_v44, %v19011_v45  ;;  %v22217_v41 = vld [vmem:[#allocation22 + $0x1254] sm:$0xf]  ;;  %v22266_v44 = vld [vmem:[#allocation22 + $0x13d4] sm:$0xf0] }
 0x71c   :  { %13211 = vmatpush.bf16.msra.mxu3 %v19762_v57  ;;  %13224 = vmatpush.bf16.msrb.mxu1 %v19766_v58  ;;  %v20547_v57 = vld [vmem:[#allocation22 + $0x16c0] sm:$0xf0]  ;;  %v20553_v58 = vld [vmem:[#allocation22 + $0x1548] sm:$0xf]  ;;  %v22218_v45 = vld [vmem:[#allocation22 + $0x125c] sm:$0xf] }
 0x71d   :  { %13237 = vmatpush.bf16.msra.mxu0 %v19770_v61  ;;  %13250 = vmatpush.bf16.msrb.mxu2 %v19774_v62  ;;  %v22360_v61 = vld [vmem:[#allocation22 + $0x16c4] sm:$0xf0]  ;;  %v22312_v62 = vld [vmem:[#allocation22 + $0x154c] sm:$0xf]  ;;  %v20550_v4 = vor.u32 %v22311_v56, %v20547_v57  ;;  %v21831_v57 = vld [vmem:[#allocation22 + $0x644] sm:$0xf] }
 0x71e   :  { %v20558_v7 = vor.u32 %v22312_v62, %v20555_v0  ;;  %v18635_v62 = vld [vmem:[#allocation22 + $0x7c8] sm:$0xf0]  ;;  %v18626_v0 = vor.u32 %v21879_v54, %v18625_v53  ;;  %v22121_v54 = vld [vmem:[#allocation22 + $0xf54] sm:$0xf] }
 0x720   :  { %13212 = vmatpush.bf16.msra.mxu3 %v19378_v5  ;;  %13225 = vmatpush.bf16.msrb.mxu1 %v19382_v6  ;;  %v22263_v5 = vld [vmem:[#allocation22 + $0x13bc] sm:$0xf0]  ;;  %v20554_v6 = vor.u32 %v22360_v61, %v20553_v58  ;;  %v18627_v58 = vld [vmem:[#allocation22 + $0x7c0] sm:$0xf0]  ;;  %v21832_v61 = vld [vmem:[#allocation22 + $0x64c] sm:$0xf] }
 0x721   :  { %13238 = vmatpush.bf16.msra.mxu0 %v19386_v9  ;;  %13251 = vmatpush.bf16.msrb.mxu2 %v19390_v10  ;;  %v20163_v9 = vld [vmem:[#allocation22 + $0x13c0] sm:$0xf0]  ;;  %v20169_v10 = vld [vmem:[#allocation22 + $0x1248] sm:$0xf]  ;;  %v20162_v14 = vor.u32 %v22263_v5, %v20161_v50  ;;  %v18638_v50 = vor.u32 %v21832_v61, %v18635_v62  ;;  %v19409_v62 = vld [vmem:[#allocation22 + $0xc50] sm:$0xf] }
 0x722   :  { %v20166_v15 = vor.u32 %v22215_v8, %v20163_v9  ;;  %v21735_v5 = vld [vmem:[#allocation22 + $0x344] sm:$0xf]  ;;  %v21784_v8 = vld [vmem:[#allocation22 + $0x4c4] sm:$0xf0]  ;;  %v21736_v9 = vld [vmem:[#allocation22 + $0x34c] sm:$0xf] }
 0x724   :  { %13213 = vmatpush.bf16.msra.mxu3 %v18994_v17  ;;  %13226 = vmatpush.bf16.msrb.mxu1 %v18998_v18  ;;  %v22167_v17 = vld [vmem:[#allocation22 + $0x10bc] sm:$0xf0]  ;;  %v20170_v18 = vor.u32 %v22264_v11, %v20169_v10  ;;  %v18251_v10 = vld [vmem:[#allocation22 + $0x4c8] sm:$0xf0] }
 0x725   :  { %13239 = vmatpush.bf16.msra.mxu0 %v19002_v21  ;;  %13252 = vmatpush.bf16.msrb.mxu2 %v19006_v22  ;;  %v19779_v21 = vld [vmem:[#allocation22 + $0x10c0] sm:$0xf0]  ;;  %v19785_v22 = vld [vmem:[#allocation22 + $0xf48] sm:$0xf]  ;;  %v19778_v26 = vor.u32 %v22167_v17, %v19777_v16  ;;  %v17857_v11 = vld [vmem:[#allocation22 + $0x40] sm:$0xf] }
 0x726   :  { %v19782_v27 = vor.u32 %v22119_v20, %v19779_v21  ;;  %v17859_v16 = vld [vmem:[#allocation22 + $0x1c0] sm:$0xf0]  ;;  %v21688_v20 = vld [vmem:[#allocation22 + $0x1c4] sm:$0xf0]  ;;  %v21640_v21 = vld [vmem:[#allocation22 + $0x4c] sm:$0xf] }
 0x728   :  { %13214 = vmatpush.bf16.msra.mxu3 %v18610_v29  ;;  %13227 = vmatpush.bf16.msrb.mxu1 %v18614_v30  ;;  %v22071_v29 = vld [vmem:[#allocation22 + $0xdbc] sm:$0xf0]  ;;  %v19786_v30 = vor.u32 %v22168_v23, %v19785_v22  ;;  %v17867_v22 = vld [vmem:[#allocation22 + $0x1c8] sm:$0xf0]  ;;  %v20561_v23 = vld [vmem:[#allocation22 + $0x1550] sm:$0xf] }
 0x729   :  { %13240 = vmatpush.bf16.msra.mxu0 %v18618_v33  ;;  %13253 = vmatpush.bf16.msrb.mxu2 %v18622_v34  ;;  %v19395_v33 = vld [vmem:[#allocation22 + $0xdc0] sm:$0xf0]  ;;  %v19401_v34 = vld [vmem:[#allocation22 + $0xc48] sm:$0xf]  ;;  %v19394_v38 = vor.u32 %v22071_v29, %v19393_v28 }
 0x72a   :  { %v19398_v39 = vor.u32 %v22023_v32, %v19395_v33  ;;  %v20571_v32 = vld [vmem:[#allocation22 + $0x16d8] sm:$0xf0] }
 0x72c   :  { %13215 = vmatpush.bf16.msra.mxu3 %v18226_v42  ;;  %13228 = vmatpush.bf16.msrb.mxu1 %v18230_v43  ;;  %v19402_v42 = vor.u32 %v22072_v35, %v19401_v34  ;;  %v19406_v43 = vor.u32 %v22024_v36, %v19403_v37  ;;  %v17870_v34 = vor.u32 %v21640_v21, %v17867_v22  ;;  %v20177_v37 = vld [vmem:[#allocation22 + $0x1250] sm:$0xf] }
 0x72d   :  { %13241 = vmatpush.bf16.msra.mxu0 %v18234_v47  ;;  %13254 = vmatpush.bf16.msrb.mxu2 %v18238_v48  ;;  %v21976_v47 = vld [vmem:[#allocation22 + $0xac4] sm:$0xf0]  ;;  %v21928_v48 = vld [vmem:[#allocation22 + $0x94c] sm:$0xf]  ;;  %v20562_v35 = vor.u32 %v22361_v24, %v20561_v23  ;;  %v18641_v22 = vld [vmem:[#allocation22 + $0x650] sm:$0xf] }
 0x72e   :  { %v19018_v55 = vor.u32 %v21976_v47, %v19017_v46  ;;  %v19022_v56 = vor.u32 %v21928_v48, %v19019_v49  ;;  %v20187_v46 = vld [vmem:[#allocation22 + $0x13d8] sm:$0xf0]  ;;  %v19793_v49 = vld [vmem:[#allocation22 + $0xf50] sm:$0xf] }
 0x72f   :  { %v20190_v53 = vor.u32 %v22218_v45, %v20187_v46  ;;  %v21881_v23 = vld [vmem:[#allocation22 + $0x7cc] sm:$0xf0] }
 0x730   :  { %13216 = vmatpush.bf16.msra.mxu3 %v17842_v59  ;;  %13229 = vmatpush.bf16.msrb.mxu1 %v17846_v60  ;;  %v18633_v59 = vld [vmem:[#allocation22 + $0x648] sm:$0xf] }
 0x731   :  { %13242 = vmatpush.bf16.msra.mxu0 %v17850_v1  ;;  %13255 = vmatpush.bf16.msrb.mxu2 %v17854_v2  ;;  %v21880_v60 = vld [vmem:[#allocation22 + $0x7c4] sm:$0xf0]  ;;  %v18630_v1 = vor.u32 %v21831_v57, %v18627_v58  ;;  %v18241_v2 = vld [vmem:[#allocation22 + $0x340] sm:$0xf]  ;;  %v22170_v57 = vld [vmem:[#allocation22 + $0x10d4] sm:$0xf0] }
 0x732   :  { %v22122_v58 = vld [vmem:[#allocation22 + $0xf5c] sm:$0xf] }
 0x733   :  { %13217 = vmatmul.bf16.vlgmr.msra.gmra.mxu3 %v23303_v63  ;;  %13230 = vmatmul.bf16.vlgmr.msrb.gmra.mxu1 %v23303_v63 }
 0x734   :  { %13261 = vmatpush.bf16.msrb.mxu3 %v20546_v3  ;;  %13274 = vmatpush.bf16.msra.mxu1 %v20550_v4  ;;  %v21783_v3 = vld [vmem:[#allocation22 + $0x4bc] sm:$0xf0]  ;;  %v18634_v4 = vor.u32 %v21880_v60, %v18633_v59  ;;  %v19803_v59 = vld [vmem:[#allocation22 + $0x10d8] sm:$0xf0] }
 0x735   :  { %13287 = vmatpush.bf16.msrb.mxu0 %v20554_v6  ;;  %13300 = vmatpush.bf16.msra.mxu2 %v20558_v7  ;;  %v18243_v6 = vld [vmem:[#allocation22 + $0x4c0] sm:$0xf0]  ;;  %v18249_v7 = vld [vmem:[#allocation22 + $0x348] sm:$0xf]  ;;  %v18242_v12 = vor.u32 %v21783_v3, %v18241_v2  ;;  %v19806_v2 = vor.u32 %v22122_v58, %v19803_v59  ;;  %v22025_v3 = vld [vmem:[#allocation22 + $0xc54] sm:$0xf] }
 0x736   :  { %13243 = vmatmul.bf16.vlgmr.msra.gmra.mxu0 %v23303_v63  ;;  %13256 = vmatmul.bf16.vlgmr.msrb.gmra.mxu2 %v23303_v63  ;;  %v18246_v13 = vor.u32 %v21735_v5, %v18243_v6  ;;  %v18250_v17 = vor.u32 %v21784_v8, %v18249_v7  ;;  %v22074_v5 = vld [vmem:[#allocation22 + $0xdd4] sm:$0xf0]  ;;  %v22026_v6 = vld [vmem:[#allocation22 + $0xc5c] sm:$0xf]  ;;  %v22363_v58 = vld [vmem:[#allocation22 + $0x16dc] sm:$0xf0] }
 0x737   :  { %v19419_v7 = vld [vmem:[#allocation22 + $0xdd8] sm:$0xf0]  ;;  %v22315_v59 = vld [vmem:[#allocation22 + $0x1564] sm:$0xf] }
 0x738   :  { %13262 = vmatpush.bf16.msrb.mxu3 %v20162_v14  ;;  %13275 = vmatpush.bf16.msra.mxu1 %v20166_v15  ;;  %v21687_v14 = vld [vmem:[#allocation22 + $0x1bc] sm:$0xf0]  ;;  %v21639_v15 = vld [vmem:[#allocation22 + $0x44] sm:$0xf] }
 0x739   :  { %13288 = vmatpush.bf16.msrb.mxu0 %v20170_v18  ;;  %13301 = vmatpush.bf16.msra.mxu2 %v20174_v19  ;;  %v18254_v18 = vor.u32 %v21736_v9, %v18251_v10  ;;  %v17865_v19 = vld [vmem:[#allocation22 + $0x48] sm:$0xf]  ;;  %v17858_v28 = vor.u32 %v21687_v14, %v17857_v11  ;;  %v17862_v29 = vor.u32 %v21639_v15, %v17859_v16  ;;  %v19025_v10 = vld [vmem:[#allocation22 + $0x950] sm:$0xf]  ;;  %v21929_v14 = vld [vmem:[#allocation22 + $0x954] sm:$0xf] }
 0x73a   :  { %v17866_v33 = vor.u32 %v21688_v20, %v17865_v19  ;;  %v21977_v11 = vld [vmem:[#allocation22 + $0xacc] sm:$0xf0]  ;;  %v19027_v15 = vld [vmem:[#allocation22 + $0xad0] sm:$0xf0]  ;;  %v19033_v16 = vld [vmem:[#allocation22 + $0x958] sm:$0xf] }
 0x73b   :  { %v19035_v19 = vld [vmem:[#allocation22 + $0xad8] sm:$0xf0]  ;;  %v19026_v20 = vor.u32 %v21977_v11, %v19025_v10  ;;  %v19030_v21 = vor.u32 %v21929_v14, %v19027_v15  ;;  %v22219_v11 = vld [vmem:[#allocation22 + $0x1264] sm:$0xf]  ;;  %v22268_v14 = vld [vmem:[#allocation22 + $0x13e4] sm:$0xf0] }
 0x73c   :  { %13263 = vmatpush.bf16.msrb.mxu3 %v19778_v26  ;;  %13276 = vmatpush.bf16.msra.mxu1 %v19782_v27  ;;  %v20563_v26 = vld [vmem:[#allocation22 + $0x16d0] sm:$0xf0]  ;;  %v20569_v27 = vld [vmem:[#allocation22 + $0x1558] sm:$0xf]  ;;  %v22220_v15 = vld [vmem:[#allocation22 + $0x126c] sm:$0xf] }
 0x73d   :  { %13289 = vmatpush.bf16.msrb.mxu0 %v19786_v30  ;;  %13302 = vmatpush.bf16.msra.mxu2 %v19790_v31  ;;  %v22362_v30 = vld [vmem:[#allocation22 + $0x16d4] sm:$0xf0]  ;;  %v22314_v31 = vld [vmem:[#allocation22 + $0x155c] sm:$0xf]  ;;  %v20566_v36 = vor.u32 %v22313_v25, %v20563_v26  ;;  %v21833_v26 = vld [vmem:[#allocation22 + $0x654] sm:$0xf] }
 0x73e   :  { %v20574_v40 = vor.u32 %v22314_v31, %v20571_v32  ;;  %v18651_v31 = vld [vmem:[#allocation22 + $0x7d8] sm:$0xf0]  ;;  %v18642_v32 = vor.u32 %v21881_v23, %v18641_v22  ;;  %v22123_v22 = vld [vmem:[#allocation22 + $0xf64] sm:$0xf] }
 0x740   :  { %13264 = vmatpush.bf16.msrb.mxu3 %v19394_v38  ;;  %13277 = vmatpush.bf16.msra.mxu1 %v19398_v39  ;;  %v22265_v38 = vld [vmem:[#allocation22 + $0x13cc] sm:$0xf0]  ;;  %v20570_v39 = vor.u32 %v22362_v30, %v20569_v27  ;;  %v18643_v27 = vld [vmem:[#allocation22 + $0x7d0] sm:$0xf0]  ;;  %v21834_v30 = vld [vmem:[#allocation22 + $0x65c] sm:$0xf] }
 0x741   :  { %13290 = vmatpush.bf16.msrb.mxu0 %v19402_v42  ;;  %13303 = vmatpush.bf16.msra.mxu2 %v19406_v43  ;;  %v20179_v42 = vld [vmem:[#allocation22 + $0x13d0] sm:$0xf0]  ;;  %v20185_v43 = vld [vmem:[#allocation22 + $0x1258] sm:$0xf]  ;;  %v20178_v47 = vor.u32 %v22265_v38, %v20177_v37  ;;  %v18654_v37 = vor.u32 %v21834_v30, %v18651_v31 }
 0x742   :  { %v20182_v48 = vor.u32 %v22217_v41, %v20179_v42  ;;  %v21737_v38 = vld [vmem:[#allocation22 + $0x354] sm:$0xf]  ;;  %v21786_v41 = vld [vmem:[#allocation22 + $0x4d4] sm:$0xf0]  ;;  %v21738_v42 = vld [vmem:[#allocation22 + $0x35c] sm:$0xf] }
 0x744   :  { %13265 = vmatpush.bf16.msrb.mxu3 %v19010_v51  ;;  %13278 = vmatpush.bf16.msra.mxu1 %v19014_v52  ;;  %v22169_v51 = vld [vmem:[#allocation22 + $0x10cc] sm:$0xf0]  ;;  %v20186_v52 = vor.u32 %v22266_v44, %v20185_v43  ;;  %v18267_v43 = vld [vmem:[#allocation22 + $0x4d8] sm:$0xf0] }
 0x745   :  { %13291 = vmatpush.bf16.msrb.mxu0 %v19018_v55  ;;  %13304 = vmatpush.bf16.msra.mxu2 %v19022_v56  ;;  %v19795_v55 = vld [vmem:[#allocation22 + $0x10d0] sm:$0xf0]  ;;  %v19801_v56 = vld [vmem:[#allocation22 + $0xf58] sm:$0xf]  ;;  %v19794_v60 = vor.u32 %v22169_v51, %v19793_v49  ;;  %v17873_v44 = vld [vmem:[#allocation22 + $0x50] sm:$0xf] }
 0x746   :  { %v19798_v61 = vor.u32 %v22121_v54, %v19795_v55  ;;  %v17875_v49 = vld [vmem:[#allocation22 + $0x1d0] sm:$0xf0]  ;;  %v21690_v54 = vld [vmem:[#allocation22 + $0x1d4] sm:$0xf0]  ;;  %v21642_v55 = vld [vmem:[#allocation22 + $0x5c] sm:$0xf] }
 0x748   :  { %13266 = vmatpush.bf16.msrb.mxu3 %v18626_v0  ;;  %13279 = vmatpush.bf16.msra.mxu1 %v18630_v1  ;;  %v22073_v0 = vld [vmem:[#allocation22 + $0xdcc] sm:$0xf0]  ;;  %v19802_v1 = vor.u32 %v22170_v57, %v19801_v56  ;;  %v17883_v56 = vld [vmem:[#allocation22 + $0x1d8] sm:$0xf0]  ;;  %v20577_v57 = vld [vmem:[#allocation22 + $0x1560] sm:$0xf] }
 0x749   :  { %13292 = vmatpush.bf16.msrb.mxu0 %v18634_v4  ;;  %13305 = vmatpush.bf16.msra.mxu2 %v18638_v50  ;;  %v19411_v4 = vld [vmem:[#allocation22 + $0xdd0] sm:$0xf0]  ;;  %v19417_v50 = vld [vmem:[#allocation22 + $0xc58] sm:$0xf]  ;;  %v19410_v8 = vor.u32 %v22073_v0, %v19409_v62 }
 0x74a   :  { %v19414_v9 = vor.u32 %v22025_v3, %v19411_v4  ;;  %v20587_v3 = vld [vmem:[#allocation22 + $0x16e8] sm:$0xf0] }
 0x74c   :  { %13267 = vmatpush.bf16.msrb.mxu3 %v18242_v12  ;;  %13280 = vmatpush.bf16.msra.mxu1 %v18246_v13  ;;  %v19418_v12 = vor.u32 %v22074_v5, %v19417_v50  ;;  %v19422_v13 = vor.u32 %v22026_v6, %v19419_v7  ;;  %v17886_v50 = vor.u32 %v21642_v55, %v17883_v56  ;;  %v20193_v7 = vld [vmem:[#allocation22 + $0x1260] sm:$0xf] }
 0x74d   :  { %13293 = vmatpush.bf16.msrb.mxu0 %v18250_v17  ;;  %13306 = vmatpush.bf16.msra.mxu2 %v18254_v18  ;;  %v21978_v17 = vld [vmem:[#allocation22 + $0xad4] sm:$0xf0]  ;;  %v21930_v18 = vld [vmem:[#allocation22 + $0x95c] sm:$0xf]  ;;  %v20578_v5 = vor.u32 %v22363_v58, %v20577_v57  ;;  %v21931_v58 = vld [vmem:[#allocation22 + $0x964] sm:$0xf] }
 0x74e   :  { %v19034_v24 = vor.u32 %v21978_v17, %v19033_v16  ;;  %v19038_v25 = vor.u32 %v21930_v18, %v19035_v19  ;;  %v20203_v16 = vld [vmem:[#allocation22 + $0x13e8] sm:$0xf0]  ;;  %v23325_v17 = vld [vmem:[#allocation23] sm:$0xff] }
 0x74f   :  { %v9022_v30 = vperm.slane %v23325_v17, 1 }
 0x750   :  { %13268 = vmatpush.bf16.msrb.mxu3 %v17858_v28  ;;  %13281 = vmatpush.bf16.msra.mxu1 %v17862_v29  ;;  %v18649_v28 = vld [vmem:[#allocation22 + $0x658] sm:$0xf] }
 0x751   :  { %13294 = vmatpush.bf16.msrb.mxu0 %v17866_v33  ;;  %13307 = vmatpush.bf16.msra.mxu2 %v17870_v34  ;;  %v21882_v29 = vld [vmem:[#allocation22 + $0x7d4] sm:$0xf0]  ;;  %v18646_v33 = vor.u32 %v21833_v26, %v18643_v27  ;;  %v18257_v34 = vld [vmem:[#allocation22 + $0x350] sm:$0xf]  ;;  %v19817_v26 = vld [vmem:[#allocation22 + $0xf68] sm:$0xf] }
 0x752   :  { %v22172_v27 = vld [vmem:[#allocation22 + $0x10e4] sm:$0xf0] }
 0x753   :  { %13269 = vmatmul.bf16.vlgmr.msrb.gmra.mxu3 %v23303_v63  ;;  %13282 = vmatmul.bf16.vlgmr.msra.gmra.mxu1 %v23303_v63 }
 0x754   :  { %13313 = vmatpush.bf16.msra.mxu3 %v20562_v35  ;;  %13326 = vmatpush.bf16.msrb.mxu1 %v20566_v36  ;;  %v21785_v35 = vld [vmem:[#allocation22 + $0x4cc] sm:$0xf0]  ;;  %v18650_v36 = vor.u32 %v21882_v29, %v18649_v28  ;;  %v22124_v28 = vld [vmem:[#allocation22 + $0xf6c] sm:$0xf] }
 0x755   :  { %13339 = vmatpush.bf16.msra.mxu0 %v20570_v39  ;;  %13352 = vmatpush.bf16.msrb.mxu2 %v20574_v40  ;;  %v18259_v39 = vld [vmem:[#allocation22 + $0x4d0] sm:$0xf0]  ;;  %v18265_v40 = vld [vmem:[#allocation22 + $0x358] sm:$0xf]  ;;  %v18258_v45 = vor.u32 %v21785_v35, %v18257_v34  ;;  %v19819_v29 = vld [vmem:[#allocation22 + $0x10e8] sm:$0xf0] }
 0x756   :  { %13295 = vmatmul.bf16.vlgmr.msrb.gmra.mxu0 %v23303_v63  ;;  %13308 = vmatmul.bf16.vlgmr.msra.gmra.mxu2 %v23303_v63  ;;  %v18262_v46 = vor.u32 %v21737_v38, %v18259_v39  ;;  %v18266_v51 = vor.u32 %v21786_v41, %v18265_v40  ;;  %v22027_v38 = vld [vmem:[#allocation22 + $0xc64] sm:$0xf]  ;;  %v19818_v39 = vor.u32 %v22172_v27, %v19817_v26 }
 0x757   :  { %v19822_v40 = vor.u32 %v22124_v28, %v19819_v29  ;;  %v19427_v41 = vld [vmem:[#allocation22 + $0xde0] sm:$0xf0]  ;;  %v18281_v29 = vld [vmem:[#allocation22 + $0x368] sm:$0xf] }
 0x758   :  { %13314 = vmatpush.bf16.msra.mxu3 %v20178_v47  ;;  %13327 = vmatpush.bf16.msrb.mxu1 %v20182_v48  ;;  %v21689_v47 = vld [vmem:[#allocation22 + $0x1cc] sm:$0xf0]  ;;  %v21641_v48 = vld [vmem:[#allocation22 + $0x54] sm:$0xf]  ;;  %v18275_v28 = vld [vmem:[#allocation22 + $0x4e0] sm:$0xf0] }
 0x759   :  { %13340 = vmatpush.bf16.msra.mxu0 %v20186_v52  ;;  %13353 = vmatpush.bf16.msrb.mxu2 %v20190_v53  ;;  %v18270_v52 = vor.u32 %v21738_v42, %v18267_v43  ;;  %v17881_v53 = vld [vmem:[#allocation22 + $0x58] sm:$0xf]  ;;  %v17874_v62 = vor.u32 %v21689_v47, %v17873_v44  ;;  %v17878_v0 = vor.u32 %v21641_v48, %v17875_v49  ;;  %v19433_v42 = vld [vmem:[#allocation22 + $0xc68] sm:$0xf]  ;;  %v9021_v47 = vperm.slane %v23325_v17, 0 }
 0x75a   :  { %v17882_v4 = vor.u32 %v21690_v54, %v17881_v53  ;;  %v22076_v43 = vld [vmem:[#allocation22 + $0xde4] sm:$0xf0]  ;;  %v9024_v49 = vperm.slane %v23325_v17, 3  ;;  %v19041_v53 = vld [vmem:[#allocation22 + $0x960] sm:$0xf] }
 0x75b   :  { %v21979_v54 = vld [vmem:[#allocation22 + $0xadc] sm:$0xf0]  ;;  %v19434_v55 = vor.u32 %v22076_v43, %v19433_v42  ;;  %v21643_v42 = vld [vmem:[#allocation22 + $0x64] sm:$0xf] }
 0x75c   :  { %13315 = vmatpush.bf16.msra.mxu3 %v19794_v60  ;;  %13328 = vmatpush.bf16.msrb.mxu1 %v19798_v61  ;;  %v20579_v60 = vld [vmem:[#allocation22 + $0x16e0] sm:$0xf0]  ;;  %v20585_v61 = vld [vmem:[#allocation22 + $0x1568] sm:$0xf] }
 0x75d   :  { %13341 = vmatpush.bf16.msra.mxu0 %v19802_v1  ;;  %13354 = vmatpush.bf16.msrb.mxu2 %v19806_v2  ;;  %v22364_v1 = vld [vmem:[#allocation22 + $0x16e4] sm:$0xf0]  ;;  %v22316_v2 = vld [vmem:[#allocation22 + $0x156c] sm:$0xf]  ;;  %v20582_v6 = vor.u32 %v22315_v59, %v20579_v60  ;;  %v19043_v59 = vld [vmem:[#allocation22 + $0xae0] sm:$0xf0] }
 0x75e   :  { %v20590_v10 = vor.u32 %v22316_v2, %v20587_v3  ;;  %v19049_v60 = vld [vmem:[#allocation22 + $0x968] sm:$0xf]  ;;  %v19051_v2 = vld [vmem:[#allocation22 + $0xae8] sm:$0xf0]  ;;  %v17891_v43 = vld [vmem:[#allocation22 + $0x1e0] sm:$0xf0] }
 0x760   :  { %13316 = vmatpush.bf16.msra.mxu3 %v19410_v8  ;;  %13329 = vmatpush.bf16.msrb.mxu1 %v19414_v9  ;;  %v22267_v8 = vld [vmem:[#allocation22 + $0x13dc] sm:$0xf0]  ;;  %v20586_v9 = vor.u32 %v22364_v1, %v20585_v61  ;;  %v21932_v1 = vld [vmem:[#allocation22 + $0x96c] sm:$0xf] }
 0x761   :  { %13342 = vmatpush.bf16.msra.mxu0 %v19418_v12  ;;  %13355 = vmatpush.bf16.msrb.mxu2 %v19422_v13  ;;  %v20195_v12 = vld [vmem:[#allocation22 + $0x13e0] sm:$0xf0]  ;;  %v20201_v13 = vld [vmem:[#allocation22 + $0x1268] sm:$0xf]  ;;  %v20194_v18 = vor.u32 %v22267_v8, %v20193_v7  ;;  %v18657_v7 = vld [vmem:[#allocation22 + $0x660] sm:$0xf] }
 0x762   :  { %v20198_v19 = vor.u32 %v22219_v11, %v20195_v12  ;;  %v20202_v23 = vor.u32 %v22268_v14, %v20201_v13  ;;  %v21883_v8 = vld [vmem:[#allocation22 + $0x7dc] sm:$0xf0]  ;;  %v21835_v11 = vld [vmem:[#allocation22 + $0x664] sm:$0xf]  ;;  %v18665_v13 = vld [vmem:[#allocation22 + $0x668] sm:$0xf] }
 0x763   :  { %v18659_v12 = vld [vmem:[#allocation22 + $0x7e0] sm:$0xf0]  ;;  %v21884_v14 = vld [vmem:[#allocation22 + $0x7e4] sm:$0xf0] }
 0x764   :  { %13317 = vmatpush.bf16.msra.mxu3 %v19026_v20  ;;  %13330 = vmatpush.bf16.msrb.mxu1 %v19030_v21  ;;  %v19809_v20 = vld [vmem:[#allocation22 + $0xf60] sm:$0xf] }
 0x765   :  { %13343 = vmatpush.bf16.msra.mxu0 %v19034_v24  ;;  %13356 = vmatpush.bf16.msrb.mxu2 %v19038_v25  ;;  %v22171_v21 = vld [vmem:[#allocation22 + $0x10dc] sm:$0xf0]  ;;  %v20206_v24 = vor.u32 %v22220_v15, %v20203_v16  ;;  %v19811_v25 = vld [vmem:[#allocation22 + $0x10e0] sm:$0xf0]  ;;  %v21836_v15 = vld [vmem:[#allocation22 + $0x66c] sm:$0xf] }
 0x766   :  { %v19814_v34 = vor.u32 %v22123_v22, %v19811_v25  ;;  %v18667_v16 = vld [vmem:[#allocation22 + $0x7e8] sm:$0xf0]  ;;  %v21787_v22 = vld [vmem:[#allocation22 + $0x4dc] sm:$0xf0]  ;;  %v18666_v25 = vor.u32 %v21884_v14, %v18665_v13 }
 0x767   :  { %v18670_v26 = vor.u32 %v21836_v15, %v18667_v16  ;;  %v20209_v16 = vld [vmem:[#allocation22 + $0x1270] sm:$0xf] }
 0x768   :  { %13318 = vmatpush.bf16.msra.mxu3 %v18642_v32  ;;  %13331 = vmatpush.bf16.msrb.mxu1 %v18646_v33  ;;  %v9023_v32 = vperm.slane %v23325_v17, 2  ;;  %v19810_v33 = vor.u32 %v22171_v21, %v19809_v20  ;;  %v18662_v20 = vor.u32 %v21835_v11, %v18659_v12  ;;  %v18273_v21 = vld [vmem:[#allocation22 + $0x360] sm:$0xf] }
 0x769   :  { %13344 = vmatpush.bf16.msra.mxu0 %v18650_v36  ;;  %13357 = vmatpush.bf16.msrb.mxu2 %v18654_v37  ;;  %v19425_v36 = vld [vmem:[#allocation22 + $0xc60] sm:$0xf] }
 0x76a   :  { %v22075_v37 = vld [vmem:[#allocation22 + $0xddc] sm:$0xf0] }
 0x76c   :  { %13319 = vmatpush.bf16.msra.mxu3 %v18258_v45  ;;  %13332 = vmatpush.bf16.msrb.mxu1 %v18262_v46  ;;  %v22028_v45 = vld [vmem:[#allocation22 + $0xc6c] sm:$0xf] }
 0x76d   :  { %13345 = vmatpush.bf16.msra.mxu0 %v18266_v51  ;;  %13358 = vmatpush.bf16.msrb.mxu2 %v18270_v52  ;;  %v19435_v46 = vld [vmem:[#allocation22 + $0xde8] sm:$0xf0]  ;;  %v19426_v51 = vor.u32 %v22075_v37, %v19425_v36  ;;  %v19430_v52 = vor.u32 %v22027_v38, %v19427_v41  ;;  %v9027_v36 = vperm.slane %v23325_v17, 6  ;;  %v18274_v38 = vor.u32 %v21787_v22, %v18273_v21  ;;  %v21691_v41 = vld [vmem:[#allocation22 + $0x1dc] sm:$0xf0] }
 0x76e   :  { %v19438_v56 = vor.u32 %v22028_v45, %v19435_v46  ;;  %v22221_v22 = vld [vmem:[#allocation22 + $0x1274] sm:$0xf] }
 0x76f   :  { %v13075_v31 = vpop.f32.mrf.mxu1 }
 0x770   :  { %13320 = vmatpush.bf16.msra.mxu3 %v17874_v62  ;;  %13333 = vmatpush.bf16.msrb.mxu1 %v17878_v0  ;;  %v13088_v35 = vpop.f32.mrf.mxu0  ;;  %v13076_v44 = vadd.f32 %v13075_v31, %v9022_v30  ;;  %v21980_v0 = vld [vmem:[#allocation22 + $0xae4] sm:$0xf0] }
 0x771   :  { %13346 = vmatpush.bf16.msra.mxu0 %v17882_v4  ;;  %13359 = vmatpush.bf16.msrb.mxu2 %v17886_v50  ;;  %v13089_v48 = vadd.f32 %v13088_v35, %v9023_v32  ;;  %v19042_v50 = vor.u32 %v21979_v54, %v19041_v53  ;;  %v21788_v30 = vld [vmem:[#allocation22 + $0x4e4] sm:$0xf0]  ;;  %v9026_v35 = vperm.slane %v23325_v17, 5 }
 0x772   :  { %22427 = vtanh.f32 %v13076_v44  ;;  %v18282_v53 = vor.u32 %v21788_v30, %v18281_v29 }
 0x773   :  { %13321 = vmatmul.bf16.vlgmr.msra.gmra.mxu3 %v23303_v63  ;;  %13334 = vmatmul.bf16.vlgmr.msrb.gmra.mxu1 %v23303_v63  ;;  %22429 = vtanh.f32 %v13089_v48 }
 0x774   :  { %13365 = vmatpush.bf16.msrb.mxu3 %v20578_v5  ;;  %13378 = vmatpush.bf16.msra.mxu1 %v20582_v6  ;;  %v19046_v5 = vor.u32 %v21931_v58, %v19043_v59 }
 0x775   :  { %13391 = vmatpush.bf16.msrb.mxu0 %v20586_v9  ;;  %13404 = vmatpush.bf16.msra.mxu2 %v20590_v10  ;;  %v13062_v57 = vpop.f32.mrf.mxu3  ;;  %v19050_v9 = vor.u32 %v21980_v0, %v19049_v60  ;;  %v19054_v10 = vor.u32 %v21932_v1, %v19051_v2  ;;  %v9025_v0 = vperm.slane %v23325_v17, 4 }
 0x776   :  { %13347 = vmatmul.bf16.vlgmr.msra.gmra.mxu0 %v23303_v63  ;;  %13360 = vmatmul.bf16.vlgmr.msrb.gmra.mxu2 %v23303_v63  ;;  %v13063_v61 = vadd.f32 %v13062_v57, %v9021_v47  ;;  %v13101_v62 = vpop.f32.mrf.mxu2  ;;  %v22365_v57 = vld [vmem:[#allocation22 + $0x16ec] sm:$0xf0] }
 0x777   :  { %v13102_v3 = vadd.f32 %v13101_v62, %v9024_v49  ;;  %v13077_v4 = vpop.f32.mrf.mxu1  ;;  %v17897_v49 = vld [vmem:[#allocation22 + $0x68] sm:$0xf]  ;;  %v20595_v62 = vld [vmem:[#allocation22 + $0x16f0] sm:$0xf0] }
 0x778   :  { %13366 = vmatpush.bf16.msrb.mxu3 %v20194_v18  ;;  %13379 = vmatpush.bf16.msra.mxu1 %v20198_v19  ;;  %22431 = vtanh.f32 %v13063_v61  ;;  %v13090_v6 = vpop.f32.mrf.mxu0  ;;  %v22428_v18 = vpop.eup %22427  ;;  %v18658_v19 = vor.u32 %v21883_v8, %v18657_v7  ;;  %v22317_v61 = vld [vmem:[#allocation22 + $0x1574] sm:$0xf]  ;;  %v22366_v4 = vld [vmem:[#allocation22 + $0x16f4] sm:$0xf0]  ;;  %v22318_v7 = vld [vmem:[#allocation22 + $0x157c] sm:$0xf] }
 0x779   :  { %13392 = vmatpush.bf16.msrb.mxu0 %v20202_v23  ;;  %13405 = vmatpush.bf16.msra.mxu2 %v20206_v24  ;;  %22433 = vtanh.f32 %v13102_v3  ;;  %v21739_v23 = vld [vmem:[#allocation22 + $0x364] sm:$0xf]  ;;  %v22430_v24 = vpop.eup %22429  ;;  %v14493_v44 = vrot.slane %v22428_v18, 6  ;;  %v20601_v3 = vld [vmem:[#allocation22 + $0x1578] sm:$0xf]  ;;  %v17894_v6 = vor.u32 %v21643_v42, %v17891_v43  ;;  %v20598_v13 = vor.u32 %v22317_v61, %v20595_v62 }
 0x77a   :  { %v14494_v45 = vrot.slane %v22430_v24, 4  ;;  %v18278_v47 = vor.u32 %v21739_v23, %v18275_v28  ;;  %v20603_v8 = vld [vmem:[#allocation22 + $0x16f8] sm:$0xf0]  ;;  %v22269_v18 = vld [vmem:[#allocation22 + $0x13ec] sm:$0xf0] }
 0x77b   :  { %v20211_v23 = vld [vmem:[#allocation22 + $0x13f0] sm:$0xf0]  ;;  %v20217_v24 = vld [vmem:[#allocation22 + $0x1278] sm:$0xf]  ;;  %v20219_v28 = vld [vmem:[#allocation22 + $0x13f8] sm:$0xf0]  ;;  %v20210_v29 = vor.u32 %v22269_v18, %v20209_v16 }
 0x77c   :  { %13367 = vmatpush.bf16.msrb.mxu3 %v19810_v33  ;;  %13380 = vmatpush.bf16.msra.mxu1 %v19814_v34  ;;  %v21740_v33 = vld [vmem:[#allocation22 + $0x36c] sm:$0xf]  ;;  %v20214_v30 = vor.u32 %v22221_v22, %v20211_v23  ;;  %v21982_v16 = vld [vmem:[#allocation22 + $0xaf4] sm:$0xf0] }
 0x77d   :  { %13393 = vmatpush.bf16.msrb.mxu0 %v19818_v39  ;;  %13406 = vmatpush.bf16.msra.mxu2 %v19822_v40  ;;  %v13064_v27 = vpop.f32.mrf.mxu3  ;;  %v18283_v34 = vld [vmem:[#allocation22 + $0x4e8] sm:$0xf0]  ;;  %v17889_v40 = vld [vmem:[#allocation22 + $0x60] sm:$0xf] }
 0x77e   :  { %v22432_v31 = vpop.eup %22431  ;;  %v13103_v32 = vpop.f32.mrf.mxu2  ;;  %v18286_v54 = vor.u32 %v21740_v33, %v18283_v34  ;;  %v22222_v27 = vld [vmem:[#allocation22 + $0x127c] sm:$0xf] }
 0x77f   :  { %v22434_v37 = vpop.eup %22433  ;;  %v13127_v39 = vpop.f32.mrf.mxu1  ;;  %v14566_v58 = vsel %vm14565_vm5, %v22432_v31, %v14493_v44  ;;  %v19825_v31 = vld [vmem:[#allocation22 + $0xf70] sm:$0xf]  ;;  %v20222_v34 = vor.u32 %v22222_v27, %v20219_v28  ;;  %v23346_v44 = vld [vmem:[#allocation23 + $0x8] sm:$0xff] }
 0x780   :  { %13368 = vmatpush.bf16.msrb.mxu3 %v19426_v51  ;;  %13381 = vmatpush.bf16.msra.mxu1 %v19430_v52  ;;  %v14495_v46 = vrot.slane %v22434_v37, 2  ;;  %v13140_v48 = vpop.f32.mrf.mxu0  ;;  %v21692_v51 = vld [vmem:[#allocation22 + $0x1e4] sm:$0xf0]  ;;  %v21644_v52 = vld [vmem:[#allocation22 + $0x6c] sm:$0xf]  ;;  %v13128_v60 = vadd.f32 %v13127_v39, %v9026_v35  ;;  %v9032_v22 = vperm.slane %v23346_v44, 3 }
 0x781   :  { %13394 = vmatpush.bf16.msrb.mxu0 %v19434_v55  ;;  %13407 = vmatpush.bf16.msra.mxu2 %v19438_v56  ;;  %v17899_v55 = vld [vmem:[#allocation22 + $0x1e8] sm:$0xf0]  ;;  %v20593_v56 = vld [vmem:[#allocation22 + $0x1570] sm:$0xf]  ;;  %v13141_v2 = vadd.f32 %v13140_v48, %v9027_v36  ;;  %v22125_v35 = vld [vmem:[#allocation22 + $0xf74] sm:$0xf] }
 0x782   :  { %v14568_v59 = vsel %vm14567_vm6, %v14494_v45, %v14495_v46  ;;  %22435 = vtanh.f32 %v13128_v60  ;;  %v20594_v12 = vor.u32 %v22365_v57, %v20593_v56  ;;  %v22173_v32 = vld [vmem:[#allocation22 + $0x10ec] sm:$0xf0]  ;;  %v19827_v36 = vld [vmem:[#allocation22 + $0x10f0] sm:$0xf0]  ;;  %v19833_v37 = vld [vmem:[#allocation22 + $0xf78] sm:$0xf] }
 0x783   :  { %v14569_v1 = vsel %vm8101_vm1, %v14566_v58, %v14568_v59  ;;  %22437 = vtanh.f32 %v13141_v2  ;;  %v22174_v39 = vld [vmem:[#allocation22 + $0x10f4] sm:$0xf0]  ;;  %v19441_v45 = vld [vmem:[#allocation22 + $0xc70] sm:$0xf]  ;;  %v19830_v48 = vor.u32 %v22125_v35, %v19827_v36  ;;  %v22030_v59 = vld [vmem:[#allocation22 + $0xc7c] sm:$0xf] }
 0x784   :  { %13369 = vmatpush.bf16.msrb.mxu3 %v19042_v50  ;;  %13382 = vmatpush.bf16.msra.mxu1 %v19046_v5  ;;  %v9028_v50 = vperm.slane %v23325_v17, 7  ;;  %14663 = vst [vmem:[#allocation25] sm:$0xff] %v14569_v1  ;;  %v17890_v5 = vor.u32 %v21691_v41, %v17889_v40  ;;  %v20602_v17 = vor.u32 %v22366_v4, %v20601_v3  ;;  %v22126_v40 = vld [vmem:[#allocation22 + $0xf7c] sm:$0xf]  ;;  %v19449_v57 = vld [vmem:[#allocation22 + $0xc78] sm:$0xf] }
 0x785   :  { %13395 = vmatpush.bf16.msrb.mxu0 %v19050_v9  ;;  %13408 = vmatpush.bf16.msra.mxu2 %v19054_v10  ;;  %v17898_v9 = vor.u32 %v21692_v51, %v17897_v49  ;;  %v17902_v10 = vor.u32 %v21644_v52, %v17899_v55  ;;  %v13114_v11 = vpop.f32.mrf.mxu3  ;;  %v19835_v41 = vld [vmem:[#allocation22 + $0x10f8] sm:$0xf0]  ;;  %v22077_v51 = vld [vmem:[#allocation22 + $0xdec] sm:$0xf0]  ;;  %v22029_v52 = vld [vmem:[#allocation22 + $0xc74] sm:$0xf]  ;;  %v19834_v55 = vor.u32 %v22174_v39, %v19833_v37 }
 0x786   :  { %v13115_v14 = vadd.f32 %v13114_v11, %v9025_v0  ;;  %v13153_v15 = vpop.f32.mrf.mxu2  ;;  %v19838_v56 = vor.u32 %v22126_v40, %v19835_v41  ;;  %v22078_v58 = vld [vmem:[#allocation22 + $0xdf4] sm:$0xf0]  ;;  %v9030_v0 = vperm.slane %v23346_v44, 1  ;;  %v19451_v1 = vld [vmem:[#allocation22 + $0xdf8] sm:$0xf0]  ;;  %v9031_v3 = vperm.slane %v23346_v44, 2 }
 0x787   :  { %v13129_v21 = vpop.f32.mrf.mxu1  ;;  %v19442_v4 = vor.u32 %v22077_v51, %v19441_v45  ;;  %v21886_v35 = vld [vmem:[#allocation22 + $0x7f4] sm:$0xf0]  ;;  %v21838_v36 = vld [vmem:[#allocation22 + $0x67c] sm:$0xf]  ;;  %v21789_v45 = vld [vmem:[#allocation22 + $0x4ec] sm:$0xf0] }
 0x788   :  { %13370 = vmatpush.bf16.msrb.mxu3 %v18658_v19  ;;  %13383 = vmatpush.bf16.msra.mxu1 %v18662_v20  ;;  %v20606_v19 = vor.u32 %v22318_v7, %v20603_v8  ;;  %v13154_v20 = vadd.f32 %v13153_v15, %v9028_v50  ;;  %22439 = vtanh.f32 %v13115_v14  ;;  %v19057_v8 = vld [vmem:[#allocation22 + $0x970] sm:$0xf]  ;;  %v19059_v14 = vld [vmem:[#allocation22 + $0xaf0] sm:$0xf0]  ;;  %v19065_v15 = vld [vmem:[#allocation22 + $0x978] sm:$0xf] }
 0x789   :  { %13396 = vmatpush.bf16.msrb.mxu0 %v18666_v25  ;;  %13409 = vmatpush.bf16.msra.mxu2 %v18670_v26  ;;  %v13142_v25 = vpop.f32.mrf.mxu0  ;;  %v22270_v26 = vld [vmem:[#allocation22 + $0x13f4] sm:$0xf0]  ;;  %v19066_v27 = vor.u32 %v21982_v16, %v19065_v15  ;;  %v18683_v37 = vld [vmem:[#allocation22 + $0x7f8] sm:$0xf0]  ;;  %v22368_v15 = vld [vmem:[#allocation22 + $0x1704] sm:$0xf0] }
 0x78a   :  { %22441 = vtanh.f32 %v13154_v20  ;;  %v20218_v33 = vor.u32 %v22270_v26, %v20217_v24  ;;  %v9029_v20 = vperm.slane %v23346_v44, 0  ;;  %v18673_v25 = vld [vmem:[#allocation22 + $0x670] sm:$0xf]  ;;  %v18297_v51 = vld [vmem:[#allocation22 + $0x378] sm:$0xf] }
 0x78b   :  { %v21885_v26 = vld [vmem:[#allocation22 + $0x7ec] sm:$0xf0]  ;;  %v22320_v16 = vld [vmem:[#allocation22 + $0x158c] sm:$0xf] }
 0x78c   :  { %13371 = vmatpush.bf16.msrb.mxu3 %v18274_v38  ;;  %13384 = vmatpush.bf16.msra.mxu1 %v18278_v47  ;;  %v22436_v38 = vpop.eup %22435  ;;  %v19826_v47 = vor.u32 %v22173_v32, %v19825_v31  ;;  %v18675_v31 = vld [vmem:[#allocation22 + $0x7f0] sm:$0xf0]  ;;  %v18681_v32 = vld [vmem:[#allocation22 + $0x678] sm:$0xf]  ;;  %v18674_v41 = vor.u32 %v21885_v26, %v18673_v25 }
 0x78d   :  { %13397 = vmatpush.bf16.msrb.mxu0 %v18282_v53  ;;  %13410 = vmatpush.bf16.msra.mxu2 %v18286_v54  ;;  %v22438_v42 = vpop.eup %22437  ;;  %v13116_v43 = vpop.f32.mrf.mxu3  ;;  %v19443_v53 = vld [vmem:[#allocation22 + $0xdf0] sm:$0xf0]  ;;  %v14496_v60 = vrot.slane %v22436_v38, 6 }
 0x78e   :  { %v22440_v46 = vpop.eup %22439  ;;  %v13155_v49 = vpop.f32.mrf.mxu2  ;;  %v14497_v61 = vrot.slane %v22438_v42, 4  ;;  %v19446_v7 = vor.u32 %v22029_v52, %v19443_v53  ;;  %v18289_v43 = vld [vmem:[#allocation22 + $0x370] sm:$0xf]  ;;  %v21790_v52 = vld [vmem:[#allocation22 + $0x4f4] sm:$0xf0] }
 0x78f   :  { %v14570_v50 = vsel %vm14565_vm5, %v22440_v46, %v14496_v60  ;;  %v18682_v46 = vor.u32 %v21886_v35, %v18681_v32  ;;  %v18291_v49 = vld [vmem:[#allocation22 + $0x4f0] sm:$0xf0]  ;;  %v21742_v53 = vld [vmem:[#allocation22 + $0x37c] sm:$0xf]  ;;  %v20233_v35 = vld [vmem:[#allocation22 + $0x1288] sm:$0xf] }
 0x790   :  { %13372 = vmatpush.bf16.msrb.mxu3 %v17890_v5  ;;  %13385 = vmatpush.bf16.msra.mxu1 %v17894_v6  ;;  %v22442_v54 = vpop.eup %22441  ;;  %v13179_v2 = vpop.f32.mrf.mxu1 }
 0x791   :  { %13398 = vmatpush.bf16.msrb.mxu0 %v17898_v9  ;;  %13411 = vmatpush.bf16.msra.mxu2 %v17902_v10  ;;  %v14498_v62 = vrot.slane %v22442_v54, 2  ;;  %v21981_v9 = vld [vmem:[#allocation22 + $0xaec] sm:$0xf0]  ;;  %v21933_v10 = vld [vmem:[#allocation22 + $0x974] sm:$0xf]  ;;  %v13180_v18 = vadd.f32 %v13179_v2, %v9030_v0  ;;  %v18298_v2 = vor.u32 %v21790_v52, %v18297_v51 }
 0x792   :  { %v19058_v23 = vor.u32 %v21981_v9, %v19057_v8  ;;  %v19062_v24 = vor.u32 %v21933_v10, %v19059_v14  ;;  %v18299_v54 = vld [vmem:[#allocation22 + $0x4f8] sm:$0xf0]  ;;  %v21694_v0 = vld [vmem:[#allocation22 + $0x1f4] sm:$0xf0]  ;;  %v22367_v9 = vld [vmem:[#allocation22 + $0x16fc] sm:$0xf0] }
 0x793   :  { %13373 = vmatmul.bf16.vlgmr.msrb.gmra.mxu3 %v23303_v63  ;;  %13386 = vmatmul.bf16.vlgmr.msra.gmra.mxu1 %v23303_v63  ;;  %v14571_v5 = vsel %vm14567_vm6, %v14497_v61, %v14498_v62  ;;  %v13192_v6 = vpop.f32.mrf.mxu0  ;;  %22443 = vtanh.f32 %v13180_v18  ;;  %v17907_v61 = vld [vmem:[#allocation22 + $0x1f0] sm:$0xf0]  ;;  %v17913_v62 = vld [vmem:[#allocation22 + $0x78] sm:$0xf]  ;;  %v22319_v10 = vld [vmem:[#allocation22 + $0x1584] sm:$0xf] }
 0x794   :  { %13417 = vmatpush.bf16.msra.mxu3 %v20594_v12  ;;  %13430 = vmatpush.bf16.msrb.mxu1 %v20598_v13  ;;  %v14572_v11 = vsel %vm8101_vm1, %v14570_v50, %v14571_v5  ;;  %v19450_v12 = vor.u32 %v22078_v58, %v19449_v57  ;;  %v19454_v13 = vor.u32 %v22030_v59, %v19451_v1  ;;  %v21645_v57 = vld [vmem:[#allocation22 + $0x74] sm:$0xf]  ;;  %v21646_v50 = vld [vmem:[#allocation22 + $0x7c] sm:$0xf]  ;;  %v20617_v14 = vld [vmem:[#allocation22 + $0x1588] sm:$0xf] }
 0x795   :  { %13443 = vmatpush.bf16.msra.mxu0 %v20602_v17  ;;  %13456 = vmatpush.bf16.msrb.mxu2 %v20606_v19  ;;  %14664 = vst [vmem:[#allocation25 + $0x8] sm:$0xff] %v14572_v11  ;;  %v21934_v17 = vld [vmem:[#allocation22 + $0x97c] sm:$0xf]  ;;  %v13193_v21 = vadd.f32 %v13192_v6, %v9031_v3  ;;  %v18290_v59 = vor.u32 %v21789_v45, %v18289_v43  ;;  %v20609_v6 = vld [vmem:[#allocation22 + $0x1580] sm:$0xf] }
 0x796   :  { %13399 = vmatmul.bf16.vlgmr.msrb.gmra.mxu0 %v23303_v63  ;;  %13412 = vmatmul.bf16.vlgmr.msra.gmra.mxu2 %v23303_v63  ;;  %v19067_v19 = vld [vmem:[#allocation22 + $0xaf8] sm:$0xf0]  ;;  %v18302_v3 = vor.u32 %v21742_v53, %v18299_v54  ;;  %v20611_v11 = vld [vmem:[#allocation22 + $0x1700] sm:$0xf0]  ;;  %v20610_v26 = vor.u32 %v22367_v9, %v20609_v6  ;;  %v20618_v32 = vor.u32 %v22368_v15, %v20617_v14  ;;  %v22128_v51 = vld [vmem:[#allocation22 + $0xf8c] sm:$0xf] }
 0x797   :  { %v19070_v28 = vor.u32 %v21934_v17, %v19067_v19  ;;  %22445 = vtanh.f32 %v13193_v21  ;;  %v17915_v5 = vld [vmem:[#allocation22 + $0x1f8] sm:$0xf0]  ;;  %v20619_v21 = vld [vmem:[#allocation22 + $0x1708] sm:$0xf0]  ;;  %v21935_v9 = vld [vmem:[#allocation22 + $0x984] sm:$0xf] }
 0x798   :  { %13418 = vmatpush.bf16.msra.mxu3 %v20210_v29  ;;  %13431 = vmatpush.bf16.msrb.mxu1 %v20214_v30  ;;  %v13166_v29 = vpop.f32.mrf.mxu3  ;;  %v21837_v30 = vld [vmem:[#allocation22 + $0x674] sm:$0xf]  ;;  %v13181_v39 = vpop.f32.mrf.mxu1  ;;  %v19851_v52 = vld [vmem:[#allocation22 + $0x1108] sm:$0xf0]  ;;  %v21984_v14 = vld [vmem:[#allocation22 + $0xb04] sm:$0xf0] }
 0x799   :  { %13444 = vmatpush.bf16.msra.mxu0 %v20218_v33  ;;  %13457 = vmatpush.bf16.msrb.mxu2 %v20222_v34  ;;  %v13167_v33 = vadd.f32 %v13166_v29, %v9029_v20  ;;  %v13205_v34 = vpop.f32.mrf.mxu2  ;;  %v18678_v42 = vor.u32 %v21837_v30, %v18675_v31  ;;  %v22444_v58 = vpop.eup %22443  ;;  %v17910_v20 = vor.u32 %v21645_v57, %v17907_v61  ;;  %v22271_v29 = vld [vmem:[#allocation22 + $0x13fc] sm:$0xf0]  ;;  %v22223_v30 = vld [vmem:[#allocation22 + $0x1284] sm:$0xf] }
 0x79a   :  { %v13206_v38 = vadd.f32 %v13205_v34, %v9032_v22  ;;  %v14499_v18 = vrot.slane %v22444_v58, 6  ;;  %v17914_v22 = vor.u32 %v21694_v0, %v17913_v62  ;;  %v20227_v34 = vld [vmem:[#allocation22 + $0x1400] sm:$0xf0]  ;;  %v22079_v57 = vld [vmem:[#allocation22 + $0xdfc] sm:$0xf0] }
 0x79b   :  { %22447 = vtanh.f32 %v13167_v33  ;;  %v13194_v40 = vpop.f32.mrf.mxu0  ;;  %v20622_v33 = vor.u32 %v22320_v16, %v20619_v21  ;;  %v19459_v61 = vld [vmem:[#allocation22 + $0xe00] sm:$0xf0]  ;;  %v19465_v62 = vld [vmem:[#allocation22 + $0xc88] sm:$0xf]  ;;  %v21936_v16 = vld [vmem:[#allocation22 + $0x98c] sm:$0xf] }
 0x79c   :  { %13419 = vmatpush.bf16.msra.mxu3 %v19826_v47  ;;  %13432 = vmatpush.bf16.msrb.mxu1 %v19830_v48  ;;  %22449 = vtanh.f32 %v13206_v38  ;;  %v18686_v47 = vor.u32 %v21838_v36, %v18683_v37  ;;  %v21741_v48 = vld [vmem:[#allocation22 + $0x374] sm:$0xf]  ;;  %v22272_v36 = vld [vmem:[#allocation22 + $0x1404] sm:$0xf0]  ;;  %v22224_v37 = vld [vmem:[#allocation22 + $0x128c] sm:$0xf]  ;;  %v20230_v40 = vor.u32 %v22223_v30, %v20227_v34 }
 0x79d   :  { %13445 = vmatpush.bf16.msra.mxu0 %v19834_v55  ;;  %13458 = vmatpush.bf16.msrb.mxu2 %v19838_v56  ;;  %v17905_v55 = vld [vmem:[#allocation22 + $0x70] sm:$0xf]  ;;  %v18294_v60 = vor.u32 %v21741_v48, %v18291_v49  ;;  %v22446_v1 = vpop.eup %22445  ;;  %v20235_v38 = vld [vmem:[#allocation22 + $0x1408] sm:$0xf0]  ;;  %v20234_v43 = vor.u32 %v22272_v36, %v20233_v35  ;;  %v19849_v48 = vld [vmem:[#allocation22 + $0xf88] sm:$0xf] }
 0x79e   :  { %v21693_v56 = vld [vmem:[#allocation22 + $0x1ec] sm:$0xf0]  ;;  %v14500_v17 = vrot.slane %v22446_v1, 4  ;;  %v20238_v45 = vor.u32 %v22224_v37, %v20235_v38  ;;  %v22176_v49 = vld [vmem:[#allocation22 + $0x1104] sm:$0xf0] }
 0x79f   :  { %v19850_v58 = vor.u32 %v22176_v49, %v19849_v48  ;;  %v22080_v0 = vld [vmem:[#allocation22 + $0xe04] sm:$0xf0]  ;;  %v22032_v1 = vld [vmem:[#allocation22 + $0xc8c] sm:$0xf] }
 0x7a0   :  { %13420 = vmatpush.bf16.msra.mxu3 %v19442_v4  ;;  %13433 = vmatpush.bf16.msrb.mxu1 %v19446_v7  ;;  %v13168_v4 = vpop.f32.mrf.mxu3  ;;  %v18697_v30 = vld [vmem:[#allocation22 + $0x688] sm:$0xf]  ;;  %v21840_v34 = vld [vmem:[#allocation22 + $0x68c] sm:$0xf] }
 0x7a1   :  { %13446 = vmatpush.bf16.msra.mxu0 %v19450_v12  ;;  %13459 = vmatpush.bf16.msrb.mxu2 %v19454_v13  ;;  %v22448_v7 = vpop.eup %22447  ;;  %v13207_v8 = vpop.f32.mrf.mxu2  ;;  %v17906_v13 = vor.u32 %v21693_v56, %v17905_v55  ;;  %v9034_v55 = vperm.slane %v23346_v44, 5  ;;  %v19457_v56 = vld [vmem:[#allocation22 + $0xc80] sm:$0xf]  ;;  %v9035_v4 = vperm.slane %v23346_v44, 6  ;;  %v21792_v48 = vld [vmem:[#allocation22 + $0x504] sm:$0xf0] }
 0x7a2   :  { %v22450_v12 = vpop.eup %22449  ;;  %v21983_v8 = vld [vmem:[#allocation22 + $0xafc] sm:$0xf0]  ;;  %v21744_v49 = vld [vmem:[#allocation22 + $0x38c] sm:$0xf] }
 0x7a3   :  { %v14501_v19 = vrot.slane %v22450_v12, 2  ;;  %v19075_v12 = vld [vmem:[#allocation22 + $0xb00] sm:$0xf0] }
 0x7a4   :  { %13421 = vmatpush.bf16.msra.mxu3 %v19058_v23  ;;  %13434 = vmatpush.bf16.msrb.mxu1 %v19062_v24  ;;  %v17918_v23 = vor.u32 %v21646_v50, %v17915_v5  ;;  %v14573_v24 = vsel %vm14565_vm5, %v22448_v7, %v14499_v18  ;;  %v19458_v5 = vor.u32 %v22079_v57, %v19457_v56  ;;  %v19073_v7 = vld [vmem:[#allocation22 + $0x980] sm:$0xf]  ;;  %v19083_v18 = vld [vmem:[#allocation22 + $0xb08] sm:$0xf0] }
 0x7a5   :  { %13447 = vmatpush.bf16.msra.mxu0 %v19066_v27  ;;  %13460 = vmatpush.bf16.msrb.mxu2 %v19070_v28  ;;  %v14574_v25 = vsel %vm14567_vm6, %v14500_v17, %v14501_v19  ;;  %v20614_v27 = vor.u32 %v22319_v10, %v20611_v11  ;;  %v20225_v28 = vld [vmem:[#allocation22 + $0x1280] sm:$0xf]  ;;  %v19466_v10 = vor.u32 %v22080_v0, %v19465_v62  ;;  %v9033_v17 = vperm.slane %v23346_v44, 4 }
 0x7a6   :  { %v14575_v31 = vsel %vm8101_vm1, %v14573_v24, %v14574_v25  ;;  %v20226_v39 = vor.u32 %v22271_v29, %v20225_v28  ;;  %v19074_v21 = vor.u32 %v21983_v8, %v19073_v7  ;;  %v21887_v24 = vld [vmem:[#allocation22 + $0x7fc] sm:$0xf0]  ;;  %v21839_v28 = vld [vmem:[#allocation22 + $0x684] sm:$0xf]  ;;  %v22321_v7 = vld [vmem:[#allocation22 + $0x1594] sm:$0xf] }
 0x7a7   :  { %14665 = vst [vmem:[#allocation25 + $0x10] sm:$0xff] %v14575_v31  ;;  %v18691_v29 = vld [vmem:[#allocation22 + $0x800] sm:$0xf0]  ;;  %v20627_v8 = vld [vmem:[#allocation22 + $0x1710] sm:$0xf0] }
 0x7a8   :  { %13422 = vmatpush.bf16.msra.mxu3 %v18674_v41  ;;  %13435 = vmatpush.bf16.msrb.mxu1 %v18678_v42  ;;  %v19841_v41 = vld [vmem:[#allocation22 + $0xf80] sm:$0xf] }
 0x7a9   :  { %13448 = vmatpush.bf16.msra.mxu0 %v18682_v46  ;;  %13461 = vmatpush.bf16.msrb.mxu2 %v18686_v47  ;;  %v22175_v42 = vld [vmem:[#allocation22 + $0x10fc] sm:$0xf0]  ;;  %v22127_v46 = vld [vmem:[#allocation22 + $0xf84] sm:$0xf] }
 0x7aa   :  { %v19843_v47 = vld [vmem:[#allocation22 + $0x1100] sm:$0xf0]  ;;  %v19842_v53 = vor.u32 %v22175_v42, %v19841_v41  ;;  %v21791_v41 = vld [vmem:[#allocation22 + $0x4fc] sm:$0xf0] }
 0x7ab   :  { %v19846_v54 = vor.u32 %v22127_v46, %v19843_v47  ;;  %v18307_v46 = vld [vmem:[#allocation22 + $0x500] sm:$0xf0]  ;;  %v18313_v47 = vld [vmem:[#allocation22 + $0x388] sm:$0xf] }
 0x7ac   :  { %13423 = vmatpush.bf16.msra.mxu3 %v18290_v59  ;;  %13436 = vmatpush.bf16.msrb.mxu1 %v18294_v60  ;;  %v19854_v59 = vor.u32 %v22128_v51, %v19851_v52  ;;  %v22031_v60 = vld [vmem:[#allocation22 + $0xc84] sm:$0xf]  ;;  %v18315_v51 = vld [vmem:[#allocation22 + $0x508] sm:$0xf0]  ;;  %v17921_v52 = vld [vmem:[#allocation22 + $0x80] sm:$0xf]  ;;  %v18314_v62 = vor.u32 %v21792_v48, %v18313_v47 }
 0x7ad   :  { %13449 = vmatpush.bf16.msra.mxu0 %v18298_v2  ;;  %13462 = vmatpush.bf16.msrb.mxu2 %v18302_v3  ;;  %v19467_v2 = vld [vmem:[#allocation22 + $0xe08] sm:$0xf0]  ;;  %v19462_v6 = vor.u32 %v22031_v60, %v19459_v61  ;;  %v21696_v60 = vld [vmem:[#allocation22 + $0x204] sm:$0xf0]  ;;  %v18318_v0 = vor.u32 %v21744_v49, %v18315_v51  ;;  %v22130_v47 = vld [vmem:[#allocation22 + $0xf9c] sm:$0xf] }
 0x7ae   :  { %v19470_v11 = vor.u32 %v22032_v1, %v19467_v2  ;;  %v21648_v2 = vld [vmem:[#allocation22 + $0x8c] sm:$0xf]  ;;  %v19867_v48 = vld [vmem:[#allocation22 + $0x1118] sm:$0xf0] }
 0x7b0   :  { %13424 = vmatpush.bf16.msra.mxu3 %v17906_v13  ;;  %13437 = vmatpush.bf16.msrb.mxu1 %v17910_v20  ;;  %v13231_v3 = vpop.f32.mrf.mxu1  ;;  %v19081_v13 = vld [vmem:[#allocation22 + $0x988] sm:$0xf]  ;;  %v9036_v20 = vperm.slane %v23346_v44, 7  ;;  %v18699_v44 = vld [vmem:[#allocation22 + $0x808] sm:$0xf0] }
 0x7b1   :  { %13450 = vmatpush.bf16.msra.mxu0 %v17914_v22  ;;  %13463 = vmatpush.bf16.msrb.mxu2 %v17918_v23  ;;  %v13232_v15 = vadd.f32 %v13231_v3, %v9034_v55  ;;  %v19078_v22 = vor.u32 %v21935_v9, %v19075_v12  ;;  %v18689_v23 = vld [vmem:[#allocation22 + $0x680] sm:$0xf]  ;;  %v19082_v25 = vor.u32 %v21984_v14, %v19081_v13  ;;  %v17931_v3 = vld [vmem:[#allocation22 + $0x208] sm:$0xf0]  ;;  %v22370_v12 = vld [vmem:[#allocation22 + $0x1714] sm:$0xf0] }
 0x7b2   :  { %v18690_v38 = vor.u32 %v21887_v24, %v18689_v23  ;;  %v22322_v13 = vld [vmem:[#allocation22 + $0x159c] sm:$0xf]  ;;  %v20630_v24 = vor.u32 %v22321_v7, %v20627_v8 }
 0x7b3   :  { %13425 = vmatmul.bf16.vlgmr.msra.gmra.mxu3 %v23303_v63  ;;  %13438 = vmatmul.bf16.vlgmr.msrb.gmra.mxu1 %v23303_v63  ;;  %v13244_v50 = vpop.f32.mrf.mxu0  ;;  %22451 = vtanh.f32 %v13232_v15 }
 0x7b4   :  { %13469 = vmatpush.bf16.msrb.mxu3 %v20610_v26  ;;  %13482 = vmatpush.bf16.msra.mxu1 %v20614_v27  ;;  %v13245_v19 = vadd.f32 %v13244_v50, %v9035_v4  ;;  %v19086_v26 = vor.u32 %v21936_v16, %v19083_v18  ;;  %v20625_v4 = vld [vmem:[#allocation22 + $0x1590] sm:$0xf] }
 0x7b5   :  { %13495 = vmatpush.bf16.msrb.mxu0 %v20618_v32  ;;  %13508 = vmatpush.bf16.msra.mxu2 %v20622_v33  ;;  %v21888_v33 = vld [vmem:[#allocation22 + $0x804] sm:$0xf0] }
 0x7b6   :  { %13451 = vmatmul.bf16.vlgmr.msra.gmra.mxu0 %v23303_v63  ;;  %13464 = vmatmul.bf16.vlgmr.msrb.gmra.mxu2 %v23303_v63  ;;  %v13218_v27 = vpop.f32.mrf.mxu3  ;;  %22453 = vtanh.f32 %v13245_v19  ;;  %v18698_v42 = vor.u32 %v21888_v33, %v18697_v30  ;;  %v22274_v33 = vld [vmem:[#allocation22 + $0x1414] sm:$0xf0] }
 0x7b7   :  { %v13219_v31 = vadd.f32 %v13218_v27, %v9033_v17  ;;  %v20635_v17 = vld [vmem:[#allocation22 + $0x1718] sm:$0xf0]  ;;  %v22225_v27 = vld [vmem:[#allocation22 + $0x1294] sm:$0xf] }
 0x7b8   :  { %13470 = vmatpush.bf16.msrb.mxu3 %v20226_v39  ;;  %13483 = vmatpush.bf16.msra.mxu1 %v20230_v40  ;;  %v13233_v36 = vpop.f32.mrf.mxu1  ;;  %v18694_v39 = vor.u32 %v21839_v28, %v18691_v29  ;;  %v18305_v40 = vld [vmem:[#allocation22 + $0x380] sm:$0xf]  ;;  %v20638_v30 = vor.u32 %v22322_v13, %v20635_v17  ;;  %v21938_v13 = vld [vmem:[#allocation22 + $0x99c] sm:$0xf] }
 0x7b9   :  { %13496 = vmatpush.bf16.msrb.mxu0 %v20234_v43  ;;  %13509 = vmatpush.bf16.msra.mxu2 %v20238_v45  ;;  %v13257_v32 = vpop.f32.mrf.mxu2  ;;  %22455 = vtanh.f32 %v13219_v31  ;;  %v18702_v43 = vor.u32 %v21840_v34, %v18699_v44  ;;  %v21743_v45 = vld [vmem:[#allocation22 + $0x384] sm:$0xf]  ;;  %v22452_v55 = vpop.eup %22451  ;;  %v18306_v56 = vor.u32 %v21791_v41, %v18305_v40  ;;  %v20243_v31 = vld [vmem:[#allocation22 + $0x1410] sm:$0xf0]  ;;  %v22226_v34 = vld [vmem:[#allocation22 + $0x129c] sm:$0xf] }
 0x7ba   :  { %v13258_v35 = vadd.f32 %v13257_v32, %v9036_v20  ;;  %v18310_v57 = vor.u32 %v21743_v45, %v18307_v46  ;;  %v14502_v14 = vrot.slane %v22452_v55, 6  ;;  %v17934_v20 = vor.u32 %v21648_v2, %v17931_v3  ;;  %v20249_v32 = vld [vmem:[#allocation22 + $0x1298] sm:$0xf]  ;;  %v20251_v44 = vld [vmem:[#allocation22 + $0x1418] sm:$0xf0]  ;;  %v23369_v45 = vld [vmem:[#allocation23 + $0x10] sm:$0xff] }
 0x7bb   :  { %v13246_v37 = vpop.f32.mrf.mxu0  ;;  %v20246_v36 = vor.u32 %v22225_v27, %v20243_v31  ;;  %v20250_v40 = vor.u32 %v22274_v33, %v20249_v32  ;;  %v20254_v41 = vor.u32 %v22226_v34, %v20251_v44  ;;  %v22178_v46 = vld [vmem:[#allocation22 + $0x1114] sm:$0xf0]  ;;  %v21842_v31 = vld [vmem:[#allocation22 + $0x69c] sm:$0xf] }
 0x7bc   :  { %13471 = vmatpush.bf16.msrb.mxu3 %v19842_v53  ;;  %13484 = vmatpush.bf16.msra.mxu1 %v19846_v54  ;;  %22457 = vtanh.f32 %v13258_v35  ;;  %v21695_v53 = vld [vmem:[#allocation22 + $0x1fc] sm:$0xf0]  ;;  %v21647_v54 = vld [vmem:[#allocation22 + $0x84] sm:$0xf]  ;;  %v22454_v61 = vpop.eup %22453  ;;  %v19857_v37 = vld [vmem:[#allocation22 + $0xf90] sm:$0xf] }
 0x7bd   :  { %13497 = vmatpush.bf16.msrb.mxu0 %v19850_v58  ;;  %13510 = vmatpush.bf16.msra.mxu2 %v19854_v59  ;;  %v17923_v58 = vld [vmem:[#allocation22 + $0x200] sm:$0xf0]  ;;  %v17929_v59 = vld [vmem:[#allocation22 + $0x88] sm:$0xf]  ;;  %v14503_v15 = vrot.slane %v22454_v61, 4 }
 0x7be   :  { %v13220_v1 = vpop.f32.mrf.mxu3  ;;  %v17926_v18 = vor.u32 %v21647_v54, %v17923_v58  ;;  %v17930_v19 = vor.u32 %v21696_v60, %v17929_v59  ;;  %v22081_v54 = vld [vmem:[#allocation22 + $0xe0c] sm:$0xf0]  ;;  %v19475_v58 = vld [vmem:[#allocation22 + $0xe10] sm:$0xf0]  ;;  %v19481_v59 = vld [vmem:[#allocation22 + $0xc98] sm:$0xf] }
 0x7bf   :  { %v22456_v50 = vpop.eup %22455  ;;  %v22082_v60 = vld [vmem:[#allocation22 + $0xe14] sm:$0xf0]  ;;  %v22034_v61 = vld [vmem:[#allocation22 + $0xc9c] sm:$0xf]  ;;  %v9039_v1 = vperm.slane %v23369_v45, 2 }
 0x7c0   :  { %13472 = vmatpush.bf16.msrb.mxu3 %v19458_v5  ;;  %13485 = vmatpush.bf16.msra.mxu1 %v19462_v6  ;;  %v22369_v6 = vld [vmem:[#allocation22 + $0x170c] sm:$0xf0]  ;;  %v19482_v7 = vor.u32 %v22082_v60, %v19481_v59  ;;  %v18713_v27 = vld [vmem:[#allocation22 + $0x698] sm:$0xf]  ;;  %v18715_v32 = vld [vmem:[#allocation22 + $0x818] sm:$0xf0] }
 0x7c1   :  { %13498 = vmatpush.bf16.msrb.mxu0 %v19466_v10  ;;  %13511 = vmatpush.bf16.msra.mxu2 %v19470_v11  ;;  %v13259_v5 = vpop.f32.mrf.mxu2  ;;  %v17922_v10 = vor.u32 %v21695_v53, %v17921_v52  ;;  %v20633_v11 = vld [vmem:[#allocation22 + $0x1598] sm:$0xf]  ;;  %v20626_v23 = vor.u32 %v22369_v6, %v20625_v4  ;;  %v9038_v52 = vperm.slane %v23369_v45, 1  ;;  %v19473_v53 = vld [vmem:[#allocation22 + $0xc90] sm:$0xf] }
 0x7c2   :  { %v22458_v9 = vpop.eup %22457  ;;  %v20634_v29 = vor.u32 %v22370_v12, %v20633_v11  ;;  %v19474_v3 = vor.u32 %v22081_v54, %v19473_v53  ;;  %v21985_v5 = vld [vmem:[#allocation22 + $0xb0c] sm:$0xf0]  ;;  %v21937_v6 = vld [vmem:[#allocation22 + $0x994] sm:$0xf]  ;;  %v21986_v11 = vld [vmem:[#allocation22 + $0xb14] sm:$0xf0] }
 0x7c3   :  { %v14504_v16 = vrot.slane %v22458_v9, 2  ;;  %v19091_v9 = vld [vmem:[#allocation22 + $0xb10] sm:$0xf0] }
 0x7c4   :  { %13473 = vmatpush.bf16.msrb.mxu3 %v19074_v21  ;;  %13486 = vmatpush.bf16.msra.mxu1 %v19078_v22  ;;  %v14576_v21 = vsel %vm14565_vm5, %v22456_v50, %v14502_v14  ;;  %v19089_v50 = vld [vmem:[#allocation22 + $0x990] sm:$0xf]  ;;  %v19099_v14 = vld [vmem:[#allocation22 + $0xb18] sm:$0xf0] }
 0x7c5   :  { %13499 = vmatpush.bf16.msrb.mxu0 %v19082_v25  ;;  %13512 = vmatpush.bf16.msra.mxu2 %v19086_v26  ;;  %v14577_v22 = vsel %vm14567_vm6, %v14503_v15, %v14504_v16  ;;  %v20241_v25 = vld [vmem:[#allocation22 + $0x1290] sm:$0xf]  ;;  %v9037_v15 = vperm.slane %v23369_v45, 0  ;;  %v19090_v17 = vor.u32 %v21985_v5, %v19089_v50  ;;  %v22371_v50 = vld [vmem:[#allocation22 + $0x171c] sm:$0xf0] }
 0x7c6   :  { %v22273_v26 = vld [vmem:[#allocation22 + $0x140c] sm:$0xf0]  ;;  %v14578_v28 = vsel %vm8101_vm1, %v14576_v21, %v14577_v22  ;;  %v22323_v5 = vld [vmem:[#allocation22 + $0x15a4] sm:$0xf] }
 0x7c7   :  { %14666 = vst [vmem:[#allocation25 + $0x18] sm:$0xff] %v14578_v28  ;;  %v20242_v35 = vor.u32 %v22273_v26, %v20241_v25  ;;  %v21889_v21 = vld [vmem:[#allocation22 + $0x80c] sm:$0xf0]  ;;  %v21841_v25 = vld [vmem:[#allocation22 + $0x694] sm:$0xf] }
 0x7c8   :  { %13474 = vmatpush.bf16.msrb.mxu3 %v18690_v38  ;;  %13487 = vmatpush.bf16.msra.mxu1 %v18694_v39  ;;  %v22177_v38 = vld [vmem:[#allocation22 + $0x110c] sm:$0xf0]  ;;  %v22129_v39 = vld [vmem:[#allocation22 + $0xf94] sm:$0xf] }
 0x7c9   :  { %13500 = vmatpush.bf16.msrb.mxu0 %v18698_v42  ;;  %13513 = vmatpush.bf16.msra.mxu2 %v18702_v43  ;;  %v19859_v42 = vld [vmem:[#allocation22 + $0x1110] sm:$0xf0]  ;;  %v19865_v43 = vld [vmem:[#allocation22 + $0xf98] sm:$0xf]  ;;  %v19858_v49 = vor.u32 %v22177_v38, %v19857_v37  ;;  %v18321_v37 = vld [vmem:[#allocation22 + $0x390] sm:$0xf] }
 0x7ca   :  { %v19862_v51 = vor.u32 %v22129_v39, %v19859_v42  ;;  %v19866_v55 = vor.u32 %v22178_v46, %v19865_v43  ;;  %v18707_v26 = vld [vmem:[#allocation22 + $0x810] sm:$0xf0]  ;;  %v21793_v38 = vld [vmem:[#allocation22 + $0x50c] sm:$0xf0]  ;;  %v18329_v43 = vld [vmem:[#allocation22 + $0x398] sm:$0xf] }
 0x7cb   :  { %v18323_v42 = vld [vmem:[#allocation22 + $0x510] sm:$0xf0]  ;;  %v21794_v46 = vld [vmem:[#allocation22 + $0x514] sm:$0xf0]  ;;  %v18322_v54 = vor.u32 %v21793_v38, %v18321_v37 }
 0x7cc   :  { %13475 = vmatpush.bf16.msrb.mxu3 %v18306_v56  ;;  %13488 = vmatpush.bf16.msra.mxu1 %v18310_v57  ;;  %v19870_v56 = vor.u32 %v22130_v47, %v19867_v48  ;;  %v22033_v57 = vld [vmem:[#allocation22 + $0xc94] sm:$0xf]  ;;  %v21746_v47 = vld [vmem:[#allocation22 + $0x39c] sm:$0xf]  ;;  %v18330_v60 = vor.u32 %v21794_v46, %v18329_v43  ;;  %v22132_v43 = vld [vmem:[#allocation22 + $0xfac] sm:$0xf] }
 0x7cd   :  { %13501 = vmatpush.bf16.msrb.mxu0 %v18314_v62  ;;  %13514 = vmatpush.bf16.msra.mxu2 %v18318_v0  ;;  %v19483_v62 = vld [vmem:[#allocation22 + $0xe18] sm:$0xf0]  ;;  %v19478_v4 = vor.u32 %v22033_v57, %v19475_v58  ;;  %v17945_v57 = vld [vmem:[#allocation22 + $0x98] sm:$0xf]  ;;  %v19883_v46 = vld [vmem:[#allocation22 + $0x1128] sm:$0xf0] }
 0x7ce   :  { %v19486_v8 = vor.u32 %v22034_v61, %v19483_v62  ;;  %v18331_v48 = vld [vmem:[#allocation22 + $0x518] sm:$0xf0]  ;;  %v21698_v58 = vld [vmem:[#allocation22 + $0x214] sm:$0xf0] }
 0x7cf   :  { %v18334_v61 = vor.u32 %v21746_v47, %v18331_v48 }
 0x7d0   :  { %13476 = vmatpush.bf16.msrb.mxu3 %v17922_v10  ;;  %13489 = vmatpush.bf16.msra.mxu1 %v17926_v18  ;;  %v13283_v0 = vpop.f32.mrf.mxu1  ;;  %v19097_v10 = vld [vmem:[#allocation22 + $0x998] sm:$0xf]  ;;  %v9040_v18 = vperm.slane %v23369_v45, 3 }
 0x7d1   :  { %13502 = vmatpush.bf16.msrb.mxu0 %v17930_v19  ;;  %13515 = vmatpush.bf16.msra.mxu2 %v17934_v20  ;;  %v13284_v12 = vadd.f32 %v13283_v0, %v9038_v52  ;;  %v19094_v19 = vor.u32 %v21937_v6, %v19091_v9  ;;  %v18705_v20 = vld [vmem:[#allocation22 + $0x690] sm:$0xf]  ;;  %v19098_v22 = vor.u32 %v21986_v11, %v19097_v10  ;;  %v21649_v52 = vld [vmem:[#allocation22 + $0x94] sm:$0xf]  ;;  %v21650_v0 = vld [vmem:[#allocation22 + $0x9c] sm:$0xf] }
 0x7d2   :  { %v20643_v6 = vld [vmem:[#allocation22 + $0x1720] sm:$0xf0]  ;;  %v20649_v9 = vld [vmem:[#allocation22 + $0x15a8] sm:$0xf]  ;;  %v22324_v11 = vld [vmem:[#allocation22 + $0x15ac] sm:$0xf] }
 0x7d3   :  { %13477 = vmatmul.bf16.vlgmr.msrb.gmra.mxu3 %v23303_v63  ;;  %13490 = vmatmul.bf16.vlgmr.msra.gmra.mxu1 %v23303_v63  ;;  %v13296_v2 = vpop.f32.mrf.mxu0  ;;  %22459 = vtanh.f32 %v13284_v12  ;;  %v22372_v10 = vld [vmem:[#allocation22 + $0x1724] sm:$0xf0] }
 0x7d4   :  { %13521 = vmatpush.bf16.msra.mxu3 %v20626_v23  ;;  %13534 = vmatpush.bf16.msrb.mxu1 %v20630_v24  ;;  %v13297_v16 = vadd.f32 %v13296_v2, %v9039_v1  ;;  %v19102_v23 = vor.u32 %v21938_v13, %v19099_v14  ;;  %v17947_v1 = vld [vmem:[#allocation22 + $0x218] sm:$0xf0]  ;;  %v20641_v2 = vld [vmem:[#allocation22 + $0x15a0] sm:$0xf] }
 0x7d5   :  { %13547 = vmatpush.bf16.msra.mxu0 %v20634_v29  ;;  %13560 = vmatpush.bf16.msrb.mxu2 %v20638_v30  ;;  %v21890_v30 = vld [vmem:[#allocation22 + $0x814] sm:$0xf0] }
 0x7d6   :  { %13503 = vmatmul.bf16.vlgmr.msrb.gmra.mxu0 %v23303_v63  ;;  %13516 = vmatmul.bf16.vlgmr.msra.gmra.mxu2 %v23303_v63  ;;  %v13270_v24 = vpop.f32.mrf.mxu3  ;;  %22461 = vtanh.f32 %v13297_v16  ;;  %v18714_v39 = vor.u32 %v21890_v30, %v18713_v27  ;;  %v20651_v16 = vld [vmem:[#allocation22 + $0x1728] sm:$0xf0]  ;;  %v20650_v27 = vor.u32 %v22372_v10, %v20649_v9  ;;  %v20265_v30 = vld [vmem:[#allocation22 + $0x12a8] sm:$0xf] }
 0x7d7   :  { %v13271_v28 = vadd.f32 %v13270_v24, %v9037_v15  ;;  %v22275_v24 = vld [vmem:[#allocation22 + $0x141c] sm:$0xf0]  ;;  %v21988_v9 = vld [vmem:[#allocation22 + $0xb24] sm:$0xf0] }
 0x7d8   :  { %13522 = vmatpush.bf16.msra.mxu3 %v20242_v35  ;;  %13535 = vmatpush.bf16.msrb.mxu1 %v20246_v36  ;;  %v13285_v34 = vpop.f32.mrf.mxu1  ;;  %v18706_v35 = vor.u32 %v21889_v21, %v18705_v20  ;;  %v18710_v36 = vor.u32 %v21841_v25, %v18707_v26  ;;  %v20642_v21 = vor.u32 %v22371_v50, %v20641_v2  ;;  %v22227_v25 = vld [vmem:[#allocation22 + $0x12a4] sm:$0xf] }
 0x7d9   :  { %13548 = vmatpush.bf16.msra.mxu0 %v20250_v40  ;;  %13561 = vmatpush.bf16.msrb.mxu2 %v20254_v41  ;;  %v13309_v29 = vpop.f32.mrf.mxu2  ;;  %22463 = vtanh.f32 %v13271_v28  ;;  %v18718_v40 = vor.u32 %v21842_v31, %v18715_v32  ;;  %v21745_v41 = vld [vmem:[#allocation22 + $0x394] sm:$0xf]  ;;  %v22460_v53 = vpop.eup %22459  ;;  %v20654_v28 = vor.u32 %v22324_v11, %v20651_v16  ;;  %v22276_v31 = vld [vmem:[#allocation22 + $0x1424] sm:$0xf0]  ;;  %v22228_v32 = vld [vmem:[#allocation22 + $0x12ac] sm:$0xf] }
 0x7da   :  { %v13310_v33 = vadd.f32 %v13309_v29, %v9040_v18  ;;  %v14505_v12 = vrot.slane %v22460_v53, 6  ;;  %v17946_v18 = vor.u32 %v21698_v58, %v17945_v57  ;;  %v20259_v29 = vld [vmem:[#allocation22 + $0x1420] sm:$0xf0]  ;;  %v20266_v37 = vor.u32 %v22276_v31, %v20265_v30  ;;  %v19497_v57 = vld [vmem:[#allocation22 + $0xca8] sm:$0xf] }
 0x7db   :  { %v13298_v44 = vpop.f32.mrf.mxu0  ;;  %v22084_v58 = vld [vmem:[#allocation22 + $0xe24] sm:$0xf0]  ;;  %v21939_v50 = vld [vmem:[#allocation22 + $0x9a4] sm:$0xf]  ;;  %v21940_v11 = vld [vmem:[#allocation22 + $0x9ac] sm:$0xf] }
 0x7dc   :  { %13523 = vmatpush.bf16.msra.mxu3 %v19858_v49  ;;  %13536 = vmatpush.bf16.msrb.mxu1 %v19862_v51  ;;  %22465 = vtanh.f32 %v13310_v33  ;;  %v17937_v49 = vld [vmem:[#allocation22 + $0x90] sm:$0xf]  ;;  %v22462_v59 = vpop.eup %22461  ;;  %v20267_v33 = vld [vmem:[#allocation22 + $0x1428] sm:$0xf0]  ;;  %v20262_v44 = vor.u32 %v22227_v25, %v20259_v29  ;;  %v18729_v25 = vld [vmem:[#allocation22 + $0x6a8] sm:$0xf] }
 0x7dd   :  { %13549 = vmatpush.bf16.msra.mxu0 %v19866_v55  ;;  %13562 = vmatpush.bf16.msrb.mxu2 %v19870_v56  ;;  %v21697_v51 = vld [vmem:[#allocation22 + $0x20c] sm:$0xf0]  ;;  %v18326_v55 = vor.u32 %v21745_v41, %v18323_v42  ;;  %v17939_v56 = vld [vmem:[#allocation22 + $0x210] sm:$0xf0]  ;;  %v14506_v13 = vrot.slane %v22462_v59, 4  ;;  %v20270_v38 = vor.u32 %v22228_v32, %v20267_v33 }
 0x7de   :  { %v13272_v62 = vpop.f32.mrf.mxu3  ;;  %v17942_v15 = vor.u32 %v21649_v52, %v17939_v56  ;;  %v19881_v41 = vld [vmem:[#allocation22 + $0xfa8] sm:$0xf]  ;;  %v22083_v52 = vld [vmem:[#allocation22 + $0xe1c] sm:$0xf0]  ;;  %v19491_v56 = vld [vmem:[#allocation22 + $0xe20] sm:$0xf0] }
 0x7df   :  { %v22180_v42 = vld [vmem:[#allocation22 + $0x1124] sm:$0xf0]  ;;  %v22036_v59 = vld [vmem:[#allocation22 + $0xcac] sm:$0xf]  ;;  %v9043_v62 = vperm.slane %v23369_v45, 6 }
 0x7e0   :  { %13524 = vmatpush.bf16.msra.mxu3 %v19474_v3  ;;  %13537 = vmatpush.bf16.msrb.mxu1 %v19478_v4  ;;  %v22464_v3 = vpop.eup %22463  ;;  %v19882_v53 = vor.u32 %v22180_v42, %v19881_v41  ;;  %v21844_v29 = vld [vmem:[#allocation22 + $0x6ac] sm:$0xf]  ;;  %v21796_v41 = vld [vmem:[#allocation22 + $0x524] sm:$0xf0] }
 0x7e1   :  { %13550 = vmatpush.bf16.msra.mxu0 %v19482_v7  ;;  %13563 = vmatpush.bf16.msrb.mxu2 %v19486_v8  ;;  %v13311_v4 = vpop.f32.mrf.mxu2  ;;  %v17938_v8 = vor.u32 %v21697_v51, %v17937_v49  ;;  %v9042_v49 = vperm.slane %v23369_v45, 5  ;;  %v19489_v51 = vld [vmem:[#allocation22 + $0xca0] sm:$0xf]  ;;  %v21748_v42 = vld [vmem:[#allocation22 + $0x3ac] sm:$0xf] }
 0x7e2   :  { %v22466_v7 = vpop.eup %22465  ;;  %v21987_v4 = vld [vmem:[#allocation22 + $0xb1c] sm:$0xf0] }
 0x7e3   :  { %v14507_v14 = vrot.slane %v22466_v7, 2  ;;  %v19107_v7 = vld [vmem:[#allocation22 + $0xb20] sm:$0xf0] }
 0x7e4   :  { %13525 = vmatpush.bf16.msra.mxu3 %v19090_v17  ;;  %13538 = vmatpush.bf16.msrb.mxu1 %v19094_v19  ;;  %v17950_v17 = vor.u32 %v21650_v0, %v17947_v1  ;;  %v14579_v19 = vsel %vm14565_vm5, %v22464_v3, %v14505_v12  ;;  %v19490_v1 = vor.u32 %v22083_v52, %v19489_v51  ;;  %v19105_v3 = vld [vmem:[#allocation22 + $0x9a0] sm:$0xf]  ;;  %v19115_v12 = vld [vmem:[#allocation22 + $0xb28] sm:$0xf0] }
 0x7e5   :  { %13551 = vmatpush.bf16.msra.mxu0 %v19098_v22  ;;  %13564 = vmatpush.bf16.msrb.mxu2 %v19102_v23  ;;  %v14580_v20 = vsel %vm14567_vm6, %v14506_v13, %v14507_v14  ;;  %v20646_v22 = vor.u32 %v22323_v5, %v20643_v6  ;;  %v20257_v23 = vld [vmem:[#allocation22 + $0x12a0] sm:$0xf]  ;;  %v19498_v5 = vor.u32 %v22084_v58, %v19497_v57  ;;  %v9041_v13 = vperm.slane %v23369_v45, 4 }
 0x7e6   :  { %v14581_v26 = vsel %vm8101_vm1, %v14579_v19, %v14580_v20  ;;  %v20258_v34 = vor.u32 %v22275_v24, %v20257_v23  ;;  %v19106_v16 = vor.u32 %v21987_v4, %v19105_v3  ;;  %v21891_v19 = vld [vmem:[#allocation22 + $0x81c] sm:$0xf0]  ;;  %v21843_v23 = vld [vmem:[#allocation22 + $0x6a4] sm:$0xf]  ;;  %v22325_v3 = vld [vmem:[#allocation22 + $0x15b4] sm:$0xf] }
 0x7e7   :  { %14667 = vst [vmem:[#allocation25 + $0x20] sm:$0xff] %v14581_v26  ;;  %v18723_v24 = vld [vmem:[#allocation22 + $0x820] sm:$0xf0]  ;;  %v20659_v4 = vld [vmem:[#allocation22 + $0x1730] sm:$0xf0] }
 0x7e8   :  { %13526 = vmatpush.bf16.msra.mxu3 %v18706_v35  ;;  %13539 = vmatpush.bf16.msrb.mxu1 %v18710_v36  ;;  %v19873_v35 = vld [vmem:[#allocation22 + $0xfa0] sm:$0xf] }
 0x7e9   :  { %13552 = vmatpush.bf16.msra.mxu0 %v18714_v39  ;;  %13565 = vmatpush.bf16.msrb.mxu2 %v18718_v40  ;;  %v22179_v36 = vld [vmem:[#allocation22 + $0x111c] sm:$0xf0]  ;;  %v22131_v39 = vld [vmem:[#allocation22 + $0xfa4] sm:$0xf] }
 0x7ea   :  { %v19875_v40 = vld [vmem:[#allocation22 + $0x1120] sm:$0xf0]  ;;  %v19874_v47 = vor.u32 %v22179_v36, %v19873_v35  ;;  %v21795_v35 = vld [vmem:[#allocation22 + $0x51c] sm:$0xf0] }
 0x7eb   :  { %v19878_v48 = vor.u32 %v22131_v39, %v19875_v40  ;;  %v18339_v39 = vld [vmem:[#allocation22 + $0x520] sm:$0xf0]  ;;  %v18345_v40 = vld [vmem:[#allocation22 + $0x3a8] sm:$0xf] }
 0x7ec   :  { %13527 = vmatpush.bf16.msra.mxu3 %v18322_v54  ;;  %13540 = vmatpush.bf16.msrb.mxu1 %v18326_v55  ;;  %v19886_v54 = vor.u32 %v22132_v43, %v19883_v46  ;;  %v22035_v55 = vld [vmem:[#allocation22 + $0xca4] sm:$0xf]  ;;  %v18347_v43 = vld [vmem:[#allocation22 + $0x528] sm:$0xf0]  ;;  %v17953_v46 = vld [vmem:[#allocation22 + $0xa0] sm:$0xf]  ;;  %v18346_v57 = vor.u32 %v21796_v41, %v18345_v40 }
 0x7ed   :  { %13553 = vmatpush.bf16.msra.mxu0 %v18330_v60  ;;  %13566 = vmatpush.bf16.msrb.mxu2 %v18334_v61  ;;  %v19499_v60 = vld [vmem:[#allocation22 + $0xe28] sm:$0xf0]  ;;  %v19494_v2 = vor.u32 %v22035_v55, %v19491_v56  ;;  %v21700_v55 = vld [vmem:[#allocation22 + $0x224] sm:$0xf0]  ;;  %v18350_v58 = vor.u32 %v21748_v42, %v18347_v43  ;;  %v22134_v40 = vld [vmem:[#allocation22 + $0xfbc] sm:$0xf] }
 0x7ee   :  { %v19502_v6 = vor.u32 %v22036_v59, %v19499_v60  ;;  %v21652_v60 = vld [vmem:[#allocation22 + $0xac] sm:$0xf]  ;;  %v19899_v41 = vld [vmem:[#allocation22 + $0x1138] sm:$0xf0] }
 0x7f0   :  { %13528 = vmatpush.bf16.msra.mxu3 %v17938_v8  ;;  %13541 = vmatpush.bf16.msrb.mxu1 %v17942_v15  ;;  %v13335_v61 = vpop.f32.mrf.mxu1  ;;  %v19113_v8 = vld [vmem:[#allocation22 + $0x9a8] sm:$0xf]  ;;  %v9044_v15 = vperm.slane %v23369_v45, 7  ;;  %v18731_v45 = vld [vmem:[#allocation22 + $0x828] sm:$0xf0] }
 0x7f1   :  { %13554 = vmatpush.bf16.msra.mxu0 %v17946_v18  ;;  %13567 = vmatpush.bf16.msrb.mxu2 %v17950_v17  ;;  %v13336_v10 = vadd.f32 %v13335_v61, %v9042_v49  ;;  %v19110_v18 = vor.u32 %v21939_v50, %v19107_v7  ;;  %v18721_v17 = vld [vmem:[#allocation22 + $0x6a0] sm:$0xf]  ;;  %v19114_v20 = vor.u32 %v21988_v9, %v19113_v8  ;;  %v17963_v61 = vld [vmem:[#allocation22 + $0x228] sm:$0xf0]  ;;  %v22374_v7 = vld [vmem:[#allocation22 + $0x1734] sm:$0xf0] }
 0x7f2   :  { %v18722_v33 = vor.u32 %v21891_v19, %v18721_v17  ;;  %v22326_v8 = vld [vmem:[#allocation22 + $0x15bc] sm:$0xf]  ;;  %v20662_v19 = vor.u32 %v22325_v3, %v20659_v4 }
 0x7f3   :  { %13529 = vmatmul.bf16.vlgmr.msra.gmra.mxu3 %v23303_v63  ;;  %13542 = vmatmul.bf16.vlgmr.msrb.gmra.mxu1 %v23303_v63  ;;  %v13348_v0 = vpop.f32.mrf.mxu0  ;;  %22467 = vtanh.f32 %v13336_v10 }
 0x7f4   :  { %13573 = vmatpush.bf16.msrb.mxu3 %v20642_v21  ;;  %13586 = vmatpush.bf16.msra.mxu1 %v20646_v22  ;;  %v13349_v14 = vadd.f32 %v13348_v0, %v9043_v62  ;;  %v19118_v21 = vor.u32 %v21940_v11, %v19115_v12  ;;  %v20657_v62 = vld [vmem:[#allocation22 + $0x15b0] sm:$0xf] }
 0x7f5   :  { %13599 = vmatpush.bf16.msrb.mxu0 %v20650_v27  ;;  %13612 = vmatpush.bf16.msra.mxu2 %v20654_v28  ;;  %v21892_v28 = vld [vmem:[#allocation22 + $0x824] sm:$0xf0] }
 0x7f6   :  { %13555 = vmatmul.bf16.vlgmr.msra.gmra.mxu0 %v23303_v63  ;;  %13568 = vmatmul.bf16.vlgmr.msrb.gmra.mxu2 %v23303_v63  ;;  %v13322_v22 = vpop.f32.mrf.mxu3  ;;  %22469 = vtanh.f32 %v13349_v14  ;;  %v18730_v36 = vor.u32 %v21892_v28, %v18729_v25  ;;  %v22278_v28 = vld [vmem:[#allocation22 + $0x1434] sm:$0xf0] }
 0x7f7   :  { %v13323_v26 = vadd.f32 %v13322_v22, %v9041_v13  ;;  %v20667_v13 = vld [vmem:[#allocation22 + $0x1738] sm:$0xf0]  ;;  %v22229_v22 = vld [vmem:[#allocation22 + $0x12b4] sm:$0xf] }
 0x7f8   :  { %13574 = vmatpush.bf16.msrb.mxu3 %v20258_v34  ;;  %13587 = vmatpush.bf16.msra.mxu1 %v20262_v44  ;;  %v13337_v31 = vpop.f32.mrf.mxu1  ;;  %v18726_v34 = vor.u32 %v21843_v23, %v18723_v24  ;;  %v18337_v44 = vld [vmem:[#allocation22 + $0x3a0] sm:$0xf]  ;;  %v20670_v25 = vor.u32 %v22326_v8, %v20667_v13  ;;  %v21942_v8 = vld [vmem:[#allocation22 + $0x9bc] sm:$0xf] }
 0x7f9   :  { %13600 = vmatpush.bf16.msrb.mxu0 %v20266_v37  ;;  %13613 = vmatpush.bf16.msra.mxu2 %v20270_v38  ;;  %v13361_v27 = vpop.f32.mrf.mxu2  ;;  %22471 = vtanh.f32 %v13323_v26  ;;  %v18734_v37 = vor.u32 %v21844_v29, %v18731_v45  ;;  %v21747_v38 = vld [vmem:[#allocation22 + $0x3a4] sm:$0xf]  ;;  %v22468_v49 = vpop.eup %22467  ;;  %v18338_v51 = vor.u32 %v21795_v35, %v18337_v44  ;;  %v20275_v26 = vld [vmem:[#allocation22 + $0x1430] sm:$0xf0]  ;;  %v22230_v29 = vld [vmem:[#allocation22 + $0x12bc] sm:$0xf] }
 0x7fa   :  { %v13362_v30 = vadd.f32 %v13361_v27, %v9044_v15  ;;  %v18342_v52 = vor.u32 %v21747_v38, %v18339_v39  ;;  %v14508_v9 = vrot.slane %v22468_v49, 6  ;;  %v17966_v15 = vor.u32 %v21652_v60, %v17963_v61  ;;  %v20281_v27 = vld [vmem:[#allocation22 + $0x12b8] sm:$0xf]  ;;  %v20283_v45 = vld [vmem:[#allocation22 + $0x1438] sm:$0xf0] }
 0x7fb   :  { %v13350_v32 = vpop.f32.mrf.mxu0  ;;  %v20278_v31 = vor.u32 %v22229_v22, %v20275_v26  ;;  %v20282_v44 = vor.u32 %v22278_v28, %v20281_v27  ;;  %v20286_v35 = vor.u32 %v22230_v29, %v20283_v45  ;;  %v23393_v38 = vld [vmem:[#allocation23 + $0x18] sm:$0xff] }
 0x7fc   :  { %13575 = vmatpush.bf16.msrb.mxu3 %v19874_v47  ;;  %13588 = vmatpush.bf16.msra.mxu1 %v19878_v48  ;;  %22473 = vtanh.f32 %v13362_v30  ;;  %v21699_v47 = vld [vmem:[#allocation22 + $0x21c] sm:$0xf0]  ;;  %v21651_v48 = vld [vmem:[#allocation22 + $0xa4] sm:$0xf]  ;;  %v22470_v56 = vpop.eup %22469  ;;  %v19889_v32 = vld [vmem:[#allocation22 + $0xfb0] sm:$0xf] }
 0x7fd   :  { %13601 = vmatpush.bf16.msrb.mxu0 %v19882_v53  ;;  %13614 = vmatpush.bf16.msra.mxu2 %v19886_v54  ;;  %v17955_v53 = vld [vmem:[#allocation22 + $0x220] sm:$0xf0]  ;;  %v17961_v54 = vld [vmem:[#allocation22 + $0xa8] sm:$0xf]  ;;  %v14509_v10 = vrot.slane %v22470_v56, 4 }
 0x7fe   :  { %v13324_v59 = vpop.f32.mrf.mxu3  ;;  %v17958_v12 = vor.u32 %v21651_v48, %v17955_v53  ;;  %v17962_v14 = vor.u32 %v21700_v55, %v17961_v54  ;;  %v22182_v39 = vld [vmem:[#allocation22 + $0x1134] sm:$0xf0]  ;;  %v22085_v48 = vld [vmem:[#allocation22 + $0xe2c] sm:$0xf0]  ;;  %v19507_v53 = vld [vmem:[#allocation22 + $0xe30] sm:$0xf0] }
 0x7ff   :  { %v22472_v0 = vpop.eup %22471  ;;  %v19513_v54 = vld [vmem:[#allocation22 + $0xcb8] sm:$0xf]  ;;  %v22038_v56 = vld [vmem:[#allocation22 + $0xcbc] sm:$0xf]  ;;  %v9047_v59 = vperm.slane %v23393_v38, 2 }
 0x800   :  { %13576 = vmatpush.bf16.msrb.mxu3 %v19490_v1  ;;  %13589 = vmatpush.bf16.msra.mxu1 %v19494_v2  ;;  %v22373_v2 = vld [vmem:[#allocation22 + $0x172c] sm:$0xf0]  ;;  %v22086_v55 = vld [vmem:[#allocation22 + $0xe34] sm:$0xf0]  ;;  %v21846_v26 = vld [vmem:[#allocation22 + $0x6bc] sm:$0xf] }
 0x801   :  { %13602 = vmatpush.bf16.msrb.mxu0 %v19498_v5  ;;  %13615 = vmatpush.bf16.msra.mxu2 %v19502_v6  ;;  %v13363_v1 = vpop.f32.mrf.mxu2  ;;  %v17954_v5 = vor.u32 %v21699_v47, %v17953_v46  ;;  %v20665_v6 = vld [vmem:[#allocation22 + $0x15b8] sm:$0xf]  ;;  %v20658_v17 = vor.u32 %v22373_v2, %v20657_v62  ;;  %v9046_v46 = vperm.slane %v23393_v38, 1  ;;  %v19505_v47 = vld [vmem:[#allocation22 + $0xcb0] sm:$0xf]  ;;  %v19514_v3 = vor.u32 %v22086_v55, %v19513_v54 }
 0x802   :  { %v22474_v50 = vpop.eup %22473  ;;  %v20666_v24 = vor.u32 %v22374_v7, %v20665_v6  ;;  %v19506_v61 = vor.u32 %v22085_v48, %v19505_v47  ;;  %v21989_v1 = vld [vmem:[#allocation22 + $0xb2c] sm:$0xf0]  ;;  %v21941_v2 = vld [vmem:[#allocation22 + $0x9b4] sm:$0xf]  ;;  %v21990_v6 = vld [vmem:[#allocation22 + $0xb34] sm:$0xf0] }
 0x803   :  { %v14510_v11 = vrot.slane %v22474_v50, 2  ;;  %v19123_v50 = vld [vmem:[#allocation22 + $0xb30] sm:$0xf0]  ;;  %v18745_v22 = vld [vmem:[#allocation22 + $0x6b8] sm:$0xf] }
 0x804   :  { %13577 = vmatpush.bf16.msrb.mxu3 %v19106_v16  ;;  %13590 = vmatpush.bf16.msra.mxu1 %v19110_v18  ;;  %v14582_v16 = vsel %vm14565_vm5, %v22472_v0, %v14508_v9  ;;  %v19121_v0 = vld [vmem:[#allocation22 + $0x9b0] sm:$0xf]  ;;  %v19131_v9 = vld [vmem:[#allocation22 + $0xb38] sm:$0xf0] }
 0x805   :  { %13603 = vmatpush.bf16.msrb.mxu0 %v19114_v20  ;;  %13616 = vmatpush.bf16.msra.mxu2 %v19118_v21  ;;  %v14583_v18 = vsel %vm14567_vm6, %v14509_v10, %v14510_v11  ;;  %v20273_v20 = vld [vmem:[#allocation22 + $0x12b0] sm:$0xf]  ;;  %v9045_v10 = vperm.slane %v23393_v38, 0  ;;  %v19122_v13 = vor.u32 %v21989_v1, %v19121_v0  ;;  %v18747_v27 = vld [vmem:[#allocation22 + $0x838] sm:$0xf0] }
 0x806   :  { %v22277_v21 = vld [vmem:[#allocation22 + $0x142c] sm:$0xf0]  ;;  %v14584_v23 = vsel %vm8101_vm1, %v14582_v16, %v14583_v18  ;;  %v22375_v0 = vld [vmem:[#allocation22 + $0x173c] sm:$0xf0]  ;;  %v22327_v1 = vld [vmem:[#allocation22 + $0x15c4] sm:$0xf] }
 0x807   :  { %14668 = vst [vmem:[#allocation25 + $0x28] sm:$0xff] %v14584_v23  ;;  %v20274_v30 = vor.u32 %v22277_v21, %v20273_v20  ;;  %v21893_v16 = vld [vmem:[#allocation22 + $0x82c] sm:$0xf0]  ;;  %v21845_v20 = vld [vmem:[#allocation22 + $0x6b4] sm:$0xf] }
 0x808   :  { %13578 = vmatpush.bf16.msrb.mxu3 %v18722_v33  ;;  %13591 = vmatpush.bf16.msra.mxu1 %v18726_v34  ;;  %v22181_v33 = vld [vmem:[#allocation22 + $0x112c] sm:$0xf0]  ;;  %v22133_v34 = vld [vmem:[#allocation22 + $0xfb4] sm:$0xf] }
 0x809   :  { %13604 = vmatpush.bf16.msrb.mxu0 %v18730_v36  ;;  %13617 = vmatpush.bf16.msra.mxu2 %v18734_v37  ;;  %v19891_v36 = vld [vmem:[#allocation22 + $0x1130] sm:$0xf0]  ;;  %v19897_v37 = vld [vmem:[#allocation22 + $0xfb8] sm:$0xf]  ;;  %v19890_v42 = vor.u32 %v22181_v33, %v19889_v32  ;;  %v18353_v32 = vld [vmem:[#allocation22 + $0x3b0] sm:$0xf] }
 0x80a   :  { %v19894_v43 = vor.u32 %v22133_v34, %v19891_v36  ;;  %v19898_v49 = vor.u32 %v22182_v39, %v19897_v37  ;;  %v18739_v21 = vld [vmem:[#allocation22 + $0x830] sm:$0xf0]  ;;  %v21797_v33 = vld [vmem:[#allocation22 + $0x52c] sm:$0xf0]  ;;  %v18361_v37 = vld [vmem:[#allocation22 + $0x3b8] sm:$0xf] }
 0x80b   :  { %v18355_v36 = vld [vmem:[#allocation22 + $0x530] sm:$0xf0]  ;;  %v21798_v39 = vld [vmem:[#allocation22 + $0x534] sm:$0xf0]  ;;  %v18354_v48 = vor.u32 %v21797_v33, %v18353_v32 }
 0x80c   :  { %13579 = vmatpush.bf16.msrb.mxu3 %v18338_v51  ;;  %13592 = vmatpush.bf16.msra.mxu1 %v18342_v52  ;;  %v19902_v51 = vor.u32 %v22134_v40, %v19899_v41  ;;  %v22037_v52 = vld [vmem:[#allocation22 + $0xcb4] sm:$0xf]  ;;  %v21750_v40 = vld [vmem:[#allocation22 + $0x3bc] sm:$0xf]  ;;  %v18362_v55 = vor.u32 %v21798_v39, %v18361_v37  ;;  %v22136_v37 = vld [vmem:[#allocation22 + $0xfcc] sm:$0xf] }
 0x80d   :  { %13605 = vmatpush.bf16.msrb.mxu0 %v18346_v57  ;;  %13618 = vmatpush.bf16.msra.mxu2 %v18350_v58  ;;  %v19515_v57 = vld [vmem:[#allocation22 + $0xe38] sm:$0xf0]  ;;  %v19510_v62 = vor.u32 %v22037_v52, %v19507_v53  ;;  %v17977_v52 = vld [vmem:[#allocation22 + $0xb8] sm:$0xf]  ;;  %v19915_v39 = vld [vmem:[#allocation22 + $0x1148] sm:$0xf0] }
 0x80e   :  { %v19518_v4 = vor.u32 %v22038_v56, %v19515_v57  ;;  %v18363_v41 = vld [vmem:[#allocation22 + $0x538] sm:$0xf0]  ;;  %v21702_v53 = vld [vmem:[#allocation22 + $0x234] sm:$0xf0] }
 0x80f   :  { %v18366_v56 = vor.u32 %v21750_v40, %v18363_v41 }
 0x810   :  { %13580 = vmatpush.bf16.msrb.mxu3 %v17954_v5  ;;  %13593 = vmatpush.bf16.msra.mxu1 %v17958_v12  ;;  %v13387_v58 = vpop.f32.mrf.mxu1  ;;  %v19129_v5 = vld [vmem:[#allocation22 + $0x9b8] sm:$0xf]  ;;  %v9048_v12 = vperm.slane %v23393_v38, 3 }
 0x811   :  { %13606 = vmatpush.bf16.msrb.mxu0 %v17962_v14  ;;  %13619 = vmatpush.bf16.msra.mxu2 %v17966_v15  ;;  %v13388_v7 = vadd.f32 %v13387_v58, %v9046_v46  ;;  %v19126_v14 = vor.u32 %v21941_v2, %v19123_v50  ;;  %v18737_v15 = vld [vmem:[#allocation22 + $0x6b0] sm:$0xf]  ;;  %v19130_v18 = vor.u32 %v21990_v6, %v19129_v5  ;;  %v21653_v46 = vld [vmem:[#allocation22 + $0xb4] sm:$0xf]  ;;  %v21654_v58 = vld [vmem:[#allocation22 + $0xbc] sm:$0xf] }
 0x812   :  { %v20675_v2 = vld [vmem:[#allocation22 + $0x1740] sm:$0xf0]  ;;  %v20681_v50 = vld [vmem:[#allocation22 + $0x15c8] sm:$0xf]  ;;  %v22328_v6 = vld [vmem:[#allocation22 + $0x15cc] sm:$0xf] }
 0x813   :  { %13581 = vmatmul.bf16.vlgmr.msrb.gmra.mxu3 %v23303_v63  ;;  %13594 = vmatmul.bf16.vlgmr.msra.gmra.mxu1 %v23303_v63  ;;  %v13400_v60 = vpop.f32.mrf.mxu0  ;;  %22475 = vtanh.f32 %v13388_v7  ;;  %v22376_v5 = vld [vmem:[#allocation22 + $0x1744] sm:$0xf0] }
 0x814   :  { %13625 = vmatpush.bf16.msra.mxu3 %v20658_v17  ;;  %13638 = vmatpush.bf16.msrb.mxu1 %v20662_v19  ;;  %v13401_v11 = vadd.f32 %v13400_v60, %v9047_v59  ;;  %v19134_v17 = vor.u32 %v21942_v8, %v19131_v9  ;;  %v17979_v59 = vld [vmem:[#allocation22 + $0x238] sm:$0xf0]  ;;  %v20673_v60 = vld [vmem:[#allocation22 + $0x15c0] sm:$0xf] }
 0x815   :  { %13651 = vmatpush.bf16.msra.mxu0 %v20666_v24  ;;  %13664 = vmatpush.bf16.msrb.mxu2 %v20670_v25  ;;  %v21894_v25 = vld [vmem:[#allocation22 + $0x834] sm:$0xf0] }
 0x816   :  { %13607 = vmatmul.bf16.vlgmr.msrb.gmra.mxu0 %v23303_v63  ;;  %13620 = vmatmul.bf16.vlgmr.msra.gmra.mxu2 %v23303_v63  ;;  %v13374_v19 = vpop.f32.mrf.mxu3  ;;  %22477 = vtanh.f32 %v13401_v11  ;;  %v18746_v34 = vor.u32 %v21894_v25, %v18745_v22  ;;  %v20683_v11 = vld [vmem:[#allocation22 + $0x1748] sm:$0xf0]  ;;  %v20682_v22 = vor.u32 %v22376_v5, %v20681_v50  ;;  %v20297_v25 = vld [vmem:[#allocation22 + $0x12c8] sm:$0xf] }
 0x817   :  { %v13375_v23 = vadd.f32 %v13374_v19, %v9045_v10  ;;  %v22279_v19 = vld [vmem:[#allocation22 + $0x143c] sm:$0xf0]  ;;  %v21992_v50 = vld [vmem:[#allocation22 + $0xb44] sm:$0xf0] }
 0x818   :  { %13626 = vmatpush.bf16.msra.mxu3 %v20274_v30  ;;  %13639 = vmatpush.bf16.msrb.mxu1 %v20278_v31  ;;  %v13389_v29 = vpop.f32.mrf.mxu1  ;;  %v18738_v30 = vor.u32 %v21893_v16, %v18737_v15  ;;  %v18742_v31 = vor.u32 %v21845_v20, %v18739_v21  ;;  %v20674_v16 = vor.u32 %v22375_v0, %v20673_v60  ;;  %v22231_v20 = vld [vmem:[#allocation22 + $0x12c4] sm:$0xf] }
 0x819   :  { %13652 = vmatpush.bf16.msra.mxu0 %v20282_v44  ;;  %13665 = vmatpush.bf16.msrb.mxu2 %v20286_v35  ;;  %v13413_v24 = vpop.f32.mrf.mxu2  ;;  %22479 = vtanh.f32 %v13375_v23  ;;  %v18750_v44 = vor.u32 %v21846_v26, %v18747_v27  ;;  %v21749_v35 = vld [vmem:[#allocation22 + $0x3b4] sm:$0xf]  ;;  %v22476_v47 = vpop.eup %22475  ;;  %v20686_v23 = vor.u32 %v22328_v6, %v20683_v11  ;;  %v22280_v26 = vld [vmem:[#allocation22 + $0x1444] sm:$0xf0]  ;;  %v22232_v27 = vld [vmem:[#allocation22 + $0x12cc] sm:$0xf] }
 0x81a   :  { %v13414_v28 = vadd.f32 %v13413_v24, %v9048_v12  ;;  %v14511_v7 = vrot.slane %v22476_v47, 6  ;;  %v17978_v12 = vor.u32 %v21702_v53, %v17977_v52  ;;  %v20291_v24 = vld [vmem:[#allocation22 + $0x1440] sm:$0xf0]  ;;  %v20298_v32 = vor.u32 %v22280_v26, %v20297_v25  ;;  %v19529_v52 = vld [vmem:[#allocation22 + $0xcc8] sm:$0xf] }
 0x81b   :  { %v13402_v45 = vpop.f32.mrf.mxu0  ;;  %v22088_v53 = vld [vmem:[#allocation22 + $0xe44] sm:$0xf0]  ;;  %v21943_v0 = vld [vmem:[#allocation22 + $0x9c4] sm:$0xf]  ;;  %v21944_v6 = vld [vmem:[#allocation22 + $0x9cc] sm:$0xf] }
 0x81c   :  { %13627 = vmatpush.bf16.msra.mxu3 %v19890_v42  ;;  %13640 = vmatpush.bf16.msrb.mxu1 %v19894_v43  ;;  %22481 = vtanh.f32 %v13414_v28  ;;  %v17969_v42 = vld [vmem:[#allocation22 + $0xb0] sm:$0xf]  ;;  %v22478_v54 = vpop.eup %22477  ;;  %v20299_v28 = vld [vmem:[#allocation22 + $0x1448] sm:$0xf0]  ;;  %v20294_v45 = vor.u32 %v22231_v20, %v20291_v24  ;;  %v18761_v20 = vld [vmem:[#allocation22 + $0x6c8] sm:$0xf] }
 0x81d   :  { %13653 = vmatpush.bf16.msra.mxu0 %v19898_v49  ;;  %13666 = vmatpush.bf16.msrb.mxu2 %v19902_v51  ;;  %v21701_v43 = vld [vmem:[#allocation22 + $0x22c] sm:$0xf0]  ;;  %v18358_v49 = vor.u32 %v21749_v35, %v18355_v36  ;;  %v17971_v51 = vld [vmem:[#allocation22 + $0x230] sm:$0xf0]  ;;  %v14512_v8 = vrot.slane %v22478_v54, 4  ;;  %v20302_v33 = vor.u32 %v22232_v27, %v20299_v28 }
 0x81e   :  { %v13376_v57 = vpop.f32.mrf.mxu3  ;;  %v17974_v10 = vor.u32 %v21653_v46, %v17971_v51  ;;  %v19913_v35 = vld [vmem:[#allocation22 + $0xfc8] sm:$0xf]  ;;  %v22087_v46 = vld [vmem:[#allocation22 + $0xe3c] sm:$0xf0]  ;;  %v19523_v51 = vld [vmem:[#allocation22 + $0xe40] sm:$0xf0] }
 0x81f   :  { %v22184_v36 = vld [vmem:[#allocation22 + $0x1144] sm:$0xf0]  ;;  %v22040_v54 = vld [vmem:[#allocation22 + $0xccc] sm:$0xf]  ;;  %v9051_v57 = vperm.slane %v23393_v38, 6 }
 0x820   :  { %13628 = vmatpush.bf16.msra.mxu3 %v19506_v61  ;;  %13641 = vmatpush.bf16.msrb.mxu1 %v19510_v62  ;;  %v22480_v61 = vpop.eup %22479  ;;  %v19914_v47 = vor.u32 %v22184_v36, %v19913_v35  ;;  %v21848_v24 = vld [vmem:[#allocation22 + $0x6cc] sm:$0xf]  ;;  %v21800_v35 = vld [vmem:[#allocation22 + $0x544] sm:$0xf0] }
 0x821   :  { %13654 = vmatpush.bf16.msra.mxu0 %v19514_v3  ;;  %13667 = vmatpush.bf16.msrb.mxu2 %v19518_v4  ;;  %v13415_v62 = vpop.f32.mrf.mxu2  ;;  %v17970_v4 = vor.u32 %v21701_v43, %v17969_v42  ;;  %v9050_v42 = vperm.slane %v23393_v38, 5  ;;  %v19521_v43 = vld [vmem:[#allocation22 + $0xcc0] sm:$0xf]  ;;  %v21752_v36 = vld [vmem:[#allocation22 + $0x3cc] sm:$0xf] }
 0x822   :  { %v22482_v3 = vpop.eup %22481  ;;  %v21991_v62 = vld [vmem:[#allocation22 + $0xb3c] sm:$0xf0] }
 0x823   :  { %v14513_v9 = vrot.slane %v22482_v3, 2  ;;  %v19139_v3 = vld [vmem:[#allocation22 + $0xb40] sm:$0xf0] }
 0x824   :  { %13629 = vmatpush.bf16.msra.mxu3 %v19122_v13  ;;  %13642 = vmatpush.bf16.msrb.mxu1 %v19126_v14  ;;  %v17982_v13 = vor.u32 %v21654_v58, %v17979_v59  ;;  %v14585_v14 = vsel %vm14565_vm5, %v22480_v61, %v14511_v7  ;;  %v19522_v59 = vor.u32 %v22087_v46, %v19521_v43  ;;  %v19137_v61 = vld [vmem:[#allocation22 + $0x9c0] sm:$0xf]  ;;  %v19147_v7 = vld [vmem:[#allocation22 + $0xb48] sm:$0xf0] }
 0x825   :  { %13655 = vmatpush.bf16.msra.mxu0 %v19130_v18  ;;  %13668 = vmatpush.bf16.msrb.mxu2 %v19134_v17  ;;  %v14586_v15 = vsel %vm14567_vm6, %v14512_v8, %v14513_v9  ;;  %v20678_v18 = vor.u32 %v22327_v1, %v20675_v2  ;;  %v20289_v17 = vld [vmem:[#allocation22 + $0x12c0] sm:$0xf]  ;;  %v19530_v1 = vor.u32 %v22088_v53, %v19529_v52  ;;  %v9049_v8 = vperm.slane %v23393_v38, 4 }
 0x826   :  { %v14587_v21 = vsel %vm8101_vm1, %v14585_v14, %v14586_v15  ;;  %v20290_v29 = vor.u32 %v22279_v19, %v20289_v17  ;;  %v19138_v11 = vor.u32 %v21991_v62, %v19137_v61  ;;  %v21895_v14 = vld [vmem:[#allocation22 + $0x83c] sm:$0xf0]  ;;  %v21847_v17 = vld [vmem:[#allocation22 + $0x6c4] sm:$0xf]  ;;  %v22329_v61 = vld [vmem:[#allocation22 + $0x15d4] sm:$0xf] }
 0x827   :  { %14669 = vst [vmem:[#allocation25 + $0x30] sm:$0xff] %v14587_v21  ;;  %v18755_v19 = vld [vmem:[#allocation22 + $0x840] sm:$0xf0]  ;;  %v20691_v62 = vld [vmem:[#allocation22 + $0x1750] sm:$0xf0] }
 0x828   :  { %13630 = vmatpush.bf16.msra.mxu3 %v18738_v30  ;;  %13643 = vmatpush.bf16.msrb.mxu1 %v18742_v31  ;;  %v19905_v30 = vld [vmem:[#allocation22 + $0xfc0] sm:$0xf] }
 0x829   :  { %13656 = vmatpush.bf16.msra.mxu0 %v18746_v34  ;;  %13669 = vmatpush.bf16.msrb.mxu2 %v18750_v44  ;;  %v22183_v31 = vld [vmem:[#allocation22 + $0x113c] sm:$0xf0]  ;;  %v22135_v34 = vld [vmem:[#allocation22 + $0xfc4] sm:$0xf] }
 0x82a   :  { %v19907_v44 = vld [vmem:[#allocation22 + $0x1140] sm:$0xf0]  ;;  %v19906_v40 = vor.u32 %v22183_v31, %v19905_v30  ;;  %v21799_v30 = vld [vmem:[#allocation22 + $0x53c] sm:$0xf0] }
 0x82b   :  { %v19910_v41 = vor.u32 %v22135_v34, %v19907_v44  ;;  %v18371_v34 = vld [vmem:[#allocation22 + $0x540] sm:$0xf0]  ;;  %v18377_v44 = vld [vmem:[#allocation22 + $0x3c8] sm:$0xf] }
 0x82c   :  { %13631 = vmatpush.bf16.msra.mxu3 %v18354_v48  ;;  %13644 = vmatpush.bf16.msrb.mxu1 %v18358_v49  ;;  %v19918_v48 = vor.u32 %v22136_v37, %v19915_v39  ;;  %v22039_v49 = vld [vmem:[#allocation22 + $0xcc4] sm:$0xf]  ;;  %v18379_v37 = vld [vmem:[#allocation22 + $0x548] sm:$0xf0]  ;;  %v17985_v39 = vld [vmem:[#allocation22 + $0xc0] sm:$0xf]  ;;  %v18378_v52 = vor.u32 %v21800_v35, %v18377_v44 }
 0x82d   :  { %13657 = vmatpush.bf16.msra.mxu0 %v18362_v55  ;;  %13670 = vmatpush.bf16.msrb.mxu2 %v18366_v56  ;;  %v19531_v55 = vld [vmem:[#allocation22 + $0xe48] sm:$0xf0]  ;;  %v19526_v60 = vor.u32 %v22039_v49, %v19523_v51  ;;  %v21704_v49 = vld [vmem:[#allocation22 + $0x244] sm:$0xf0]  ;;  %v18382_v53 = vor.u32 %v21752_v36, %v18379_v37  ;;  %v22138_v44 = vld [vmem:[#allocation22 + $0xfdc] sm:$0xf] }
 0x82e   :  { %v19534_v2 = vor.u32 %v22040_v54, %v19531_v55  ;;  %v21656_v55 = vld [vmem:[#allocation22 + $0xcc] sm:$0xf]  ;;  %v19931_v35 = vld [vmem:[#allocation22 + $0x1158] sm:$0xf0] }
 0x830   :  { %13632 = vmatpush.bf16.msra.mxu3 %v17970_v4  ;;  %13645 = vmatpush.bf16.msrb.mxu1 %v17974_v10  ;;  %v13439_v56 = vpop.f32.mrf.mxu1  ;;  %v19145_v4 = vld [vmem:[#allocation22 + $0x9c8] sm:$0xf]  ;;  %v9052_v10 = vperm.slane %v23393_v38, 7  ;;  %v18763_v38 = vld [vmem:[#allocation22 + $0x848] sm:$0xf0] }
 0x831   :  { %13658 = vmatpush.bf16.msra.mxu0 %v17978_v12  ;;  %13671 = vmatpush.bf16.msrb.mxu2 %v17982_v13  ;;  %v13440_v5 = vadd.f32 %v13439_v56, %v9050_v42  ;;  %v19142_v12 = vor.u32 %v21943_v0, %v19139_v3  ;;  %v18753_v13 = vld [vmem:[#allocation22 + $0x6c0] sm:$0xf]  ;;  %v19146_v15 = vor.u32 %v21992_v50, %v19145_v4  ;;  %v17995_v56 = vld [vmem:[#allocation22 + $0x248] sm:$0xf0]  ;;  %v22378_v3 = vld [vmem:[#allocation22 + $0x1754] sm:$0xf0] }
 0x832   :  { %v18754_v28 = vor.u32 %v21895_v14, %v18753_v13  ;;  %v22330_v4 = vld [vmem:[#allocation22 + $0x15dc] sm:$0xf]  ;;  %v20694_v14 = vor.u32 %v22329_v61, %v20691_v62 }
 0x833   :  { %13633 = vmatmul.bf16.vlgmr.msra.gmra.mxu3 %v23303_v63  ;;  %13646 = vmatmul.bf16.vlgmr.msrb.gmra.mxu1 %v23303_v63  ;;  %v13452_v58 = vpop.f32.mrf.mxu0  ;;  %22483 = vtanh.f32 %v13440_v5 }
 0x834   :  { %13677 = vmatpush.bf16.msrb.mxu3 %v20674_v16  ;;  %13690 = vmatpush.bf16.msra.mxu1 %v20678_v18  ;;  %v13453_v9 = vadd.f32 %v13452_v58, %v9051_v57  ;;  %v19150_v16 = vor.u32 %v21944_v6, %v19147_v7  ;;  %v20689_v57 = vld [vmem:[#allocation22 + $0x15d0] sm:$0xf] }
 0x835   :  { %13703 = vmatpush.bf16.msrb.mxu0 %v20682_v22  ;;  %13716 = vmatpush.bf16.msra.mxu2 %v20686_v23  ;;  %v21896_v23 = vld [vmem:[#allocation22 + $0x844] sm:$0xf0] }
 0x836   :  { %13659 = vmatmul.bf16.vlgmr.msra.gmra.mxu0 %v23303_v63  ;;  %13672 = vmatmul.bf16.vlgmr.msrb.gmra.mxu2 %v23303_v63  ;;  %v13426_v18 = vpop.f32.mrf.mxu3  ;;  %22485 = vtanh.f32 %v13453_v9  ;;  %v18762_v31 = vor.u32 %v21896_v23, %v18761_v20  ;;  %v22282_v23 = vld [vmem:[#allocation22 + $0x1454] sm:$0xf0] }
 0x837   :  { %v13427_v21 = vadd.f32 %v13426_v18, %v9049_v8  ;;  %v20699_v8 = vld [vmem:[#allocation22 + $0x1758] sm:$0xf0]  ;;  %v22233_v18 = vld [vmem:[#allocation22 + $0x12d4] sm:$0xf] }
 0x838   :  { %13678 = vmatpush.bf16.msrb.mxu3 %v20290_v29  ;;  %13691 = vmatpush.bf16.msra.mxu1 %v20294_v45  ;;  %v13441_v26 = vpop.f32.mrf.mxu1  ;;  %v18758_v29 = vor.u32 %v21847_v17, %v18755_v19  ;;  %v18369_v45 = vld [vmem:[#allocation22 + $0x3c0] sm:$0xf]  ;;  %v20702_v20 = vor.u32 %v22330_v4, %v20699_v8  ;;  %v21946_v4 = vld [vmem:[#allocation22 + $0x9dc] sm:$0xf] }
 0x839   :  { %13704 = vmatpush.bf16.msrb.mxu0 %v20298_v32  ;;  %13717 = vmatpush.bf16.msra.mxu2 %v20302_v33  ;;  %v13465_v22 = vpop.f32.mrf.mxu2  ;;  %22487 = vtanh.f32 %v13427_v21  ;;  %v18766_v32 = vor.u32 %v21848_v24, %v18763_v38  ;;  %v21751_v33 = vld [vmem:[#allocation22 + $0x3c4] sm:$0xf]  ;;  %v22484_v42 = vpop.eup %22483  ;;  %v18370_v43 = vor.u32 %v21799_v30, %v18369_v45  ;;  %v20307_v21 = vld [vmem:[#allocation22 + $0x1450] sm:$0xf0]  ;;  %v22234_v24 = vld [vmem:[#allocation22 + $0x12dc] sm:$0xf] }
 0x83a   :  { %v13466_v25 = vadd.f32 %v13465_v22, %v9052_v10  ;;  %v18374_v46 = vor.u32 %v21751_v33, %v18371_v34  ;;  %v14514_v50 = vrot.slane %v22484_v42, 6  ;;  %v17998_v10 = vor.u32 %v21656_v55, %v17995_v56  ;;  %v20313_v22 = vld [vmem:[#allocation22 + $0x12d8] sm:$0xf]  ;;  %v20315_v38 = vld [vmem:[#allocation22 + $0x1458] sm:$0xf0]  ;;  %v23417_v33 = vld [vmem:[#allocation23 + $0x20] sm:$0xff] }
 0x83b   :  { %v13454_v27 = vpop.f32.mrf.mxu0  ;;  %v20310_v26 = vor.u32 %v22233_v18, %v20307_v21  ;;  %v20314_v45 = vor.u32 %v22282_v23, %v20313_v22  ;;  %v20318_v30 = vor.u32 %v22234_v24, %v20315_v38  ;;  %v22186_v34 = vld [vmem:[#allocation22 + $0x1154] sm:$0xf0]  ;;  %v21850_v21 = vld [vmem:[#allocation22 + $0x6dc] sm:$0xf] }
 0x83c   :  { %13679 = vmatpush.bf16.msrb.mxu3 %v19906_v40  ;;  %13692 = vmatpush.bf16.msra.mxu1 %v19910_v41  ;;  %22489 = vtanh.f32 %v13466_v25  ;;  %v21703_v40 = vld [vmem:[#allocation22 + $0x23c] sm:$0xf0]  ;;  %v21655_v41 = vld [vmem:[#allocation22 + $0xc4] sm:$0xf]  ;;  %v22486_v51 = vpop.eup %22485  ;;  %v19921_v27 = vld [vmem:[#allocation22 + $0xfd0] sm:$0xf] }
 0x83d   :  { %13705 = vmatpush.bf16.msrb.mxu0 %v19914_v47  ;;  %13718 = vmatpush.bf16.msra.mxu2 %v19918_v48  ;;  %v17987_v47 = vld [vmem:[#allocation22 + $0x240] sm:$0xf0]  ;;  %v17993_v48 = vld [vmem:[#allocation22 + $0xc8] sm:$0xf]  ;;  %v14515_v5 = vrot.slane %v22486_v51, 4 }
 0x83e   :  { %v13428_v54 = vpop.f32.mrf.mxu3  ;;  %v17990_v7 = vor.u32 %v21655_v41, %v17987_v47  ;;  %v17994_v9 = vor.u32 %v21704_v49, %v17993_v48  ;;  %v22089_v41 = vld [vmem:[#allocation22 + $0xe4c] sm:$0xf0]  ;;  %v19539_v47 = vld [vmem:[#allocation22 + $0xe50] sm:$0xf0]  ;;  %v19545_v48 = vld [vmem:[#allocation22 + $0xcd8] sm:$0xf] }
 0x83f   :  { %v22488_v58 = vpop.eup %22487  ;;  %v22090_v49 = vld [vmem:[#allocation22 + $0xe54] sm:$0xf0]  ;;  %v22042_v51 = vld [vmem:[#allocation22 + $0xcdc] sm:$0xf]  ;;  %v9055_v54 = vperm.slane %v23417_v33, 2 }
 0x840   :  { %13680 = vmatpush.bf16.msrb.mxu3 %v19522_v59  ;;  %13693 = vmatpush.bf16.msra.mxu1 %v19526_v60  ;;  %v22377_v60 = vld [vmem:[#allocation22 + $0x174c] sm:$0xf0]  ;;  %v19546_v61 = vor.u32 %v22090_v49, %v19545_v48  ;;  %v18777_v18 = vld [vmem:[#allocation22 + $0x6d8] sm:$0xf]  ;;  %v18779_v22 = vld [vmem:[#allocation22 + $0x858] sm:$0xf0] }
 0x841   :  { %13706 = vmatpush.bf16.msrb.mxu0 %v19530_v1  ;;  %13719 = vmatpush.bf16.msra.mxu2 %v19534_v2  ;;  %v13467_v59 = vpop.f32.mrf.mxu2  ;;  %v17986_v1 = vor.u32 %v21703_v40, %v17985_v39  ;;  %v20697_v2 = vld [vmem:[#allocation22 + $0x15d8] sm:$0xf]  ;;  %v20690_v13 = vor.u32 %v22377_v60, %v20689_v57  ;;  %v9054_v39 = vperm.slane %v23417_v33, 1  ;;  %v19537_v40 = vld [vmem:[#allocation22 + $0xcd0] sm:$0xf] }
 0x842   :  { %v22490_v0 = vpop.eup %22489  ;;  %v20698_v19 = vor.u32 %v22378_v3, %v20697_v2  ;;  %v19538_v56 = vor.u32 %v22089_v41, %v19537_v40  ;;  %v21993_v59 = vld [vmem:[#allocation22 + $0xb4c] sm:$0xf0]  ;;  %v21945_v60 = vld [vmem:[#allocation22 + $0x9d4] sm:$0xf]  ;;  %v21994_v2 = vld [vmem:[#allocation22 + $0xb54] sm:$0xf0] }
 0x843   :  { %v14516_v6 = vrot.slane %v22490_v0, 2  ;;  %v19155_v0 = vld [vmem:[#allocation22 + $0xb50] sm:$0xf0] }
 0x844   :  { %13681 = vmatpush.bf16.msrb.mxu3 %v19138_v11  ;;  %13694 = vmatpush.bf16.msra.mxu1 %v19142_v12  ;;  %v14588_v11 = vsel %vm14565_vm5, %v22488_v58, %v14514_v50  ;;  %v19153_v58 = vld [vmem:[#allocation22 + $0x9d0] sm:$0xf]  ;;  %v19163_v50 = vld [vmem:[#allocation22 + $0xb58] sm:$0xf0] }
 0x845   :  { %13707 = vmatpush.bf16.msrb.mxu0 %v19146_v15  ;;  %13720 = vmatpush.bf16.msra.mxu2 %v19150_v16  ;;  %v14589_v12 = vsel %vm14567_vm6, %v14515_v5, %v14516_v6  ;;  %v20305_v15 = vld [vmem:[#allocation22 + $0x12d0] sm:$0xf]  ;;  %v9053_v5 = vperm.slane %v23417_v33, 0  ;;  %v19154_v8 = vor.u32 %v21993_v59, %v19153_v58  ;;  %v22379_v58 = vld [vmem:[#allocation22 + $0x175c] sm:$0xf0] }
 0x846   :  { %v22281_v16 = vld [vmem:[#allocation22 + $0x144c] sm:$0xf0]  ;;  %v14590_v17 = vsel %vm8101_vm1, %v14588_v11, %v14589_v12  ;;  %v22331_v59 = vld [vmem:[#allocation22 + $0x15e4] sm:$0xf] }
 0x847   :  { %14670 = vst [vmem:[#allocation25 + $0x38] sm:$0xff] %v14590_v17  ;;  %v20306_v25 = vor.u32 %v22281_v16, %v20305_v15  ;;  %v21897_v11 = vld [vmem:[#allocation22 + $0x84c] sm:$0xf0]  ;;  %v21849_v15 = vld [vmem:[#allocation22 + $0x6d4] sm:$0xf] }
 0x848   :  { %13682 = vmatpush.bf16.msrb.mxu3 %v18754_v28  ;;  %13695 = vmatpush.bf16.msra.mxu1 %v18758_v29  ;;  %v22185_v28 = vld [vmem:[#allocation22 + $0x114c] sm:$0xf0]  ;;  %v22137_v29 = vld [vmem:[#allocation22 + $0xfd4] sm:$0xf] }
 0x849   :  { %13708 = vmatpush.bf16.msrb.mxu0 %v18762_v31  ;;  %13721 = vmatpush.bf16.msra.mxu2 %v18766_v32  ;;  %v19923_v31 = vld [vmem:[#allocation22 + $0x1150] sm:$0xf0]  ;;  %v19929_v32 = vld [vmem:[#allocation22 + $0xfd8] sm:$0xf]  ;;  %v19922_v36 = vor.u32 %v22185_v28, %v19921_v27  ;;  %v18385_v27 = vld [vmem:[#allocation22 + $0x3d0] sm:$0xf] }
 0x84a   :  { %v19926_v37 = vor.u32 %v22137_v29, %v19923_v31  ;;  %v19930_v42 = vor.u32 %v22186_v34, %v19929_v32  ;;  %v18771_v16 = vld [vmem:[#allocation22 + $0x850] sm:$0xf0]  ;;  %v21801_v28 = vld [vmem:[#allocation22 + $0x54c] sm:$0xf0]  ;;  %v18393_v32 = vld [vmem:[#allocation22 + $0x3d8] sm:$0xf] }
 0x84b   :  { %v18387_v31 = vld [vmem:[#allocation22 + $0x550] sm:$0xf0]  ;;  %v21802_v34 = vld [vmem:[#allocation22 + $0x554] sm:$0xf0]  ;;  %v18386_v41 = vor.u32 %v21801_v28, %v18385_v27 }
 0x84c   :  { %13683 = vmatpush.bf16.msrb.mxu3 %v18370_v43  ;;  %13696 = vmatpush.bf16.msra.mxu1 %v18374_v46  ;;  %v19934_v43 = vor.u32 %v22138_v44, %v19931_v35  ;;  %v22041_v46 = vld [vmem:[#allocation22 + $0xcd4] sm:$0xf]  ;;  %v21754_v44 = vld [vmem:[#allocation22 + $0x3dc] sm:$0xf]  ;;  %v18394_v49 = vor.u32 %v21802_v34, %v18393_v32  ;;  %v22140_v32 = vld [vmem:[#allocation22 + $0xfec] sm:$0xf] }
 0x84d   :  { %13709 = vmatpush.bf16.msrb.mxu0 %v18378_v52  ;;  %13722 = vmatpush.bf16.msra.mxu2 %v18382_v53  ;;  %v19547_v52 = vld [vmem:[#allocation22 + $0xe58] sm:$0xf0]  ;;  %v19542_v57 = vor.u32 %v22041_v46, %v19539_v47  ;;  %v18009_v46 = vld [vmem:[#allocation22 + $0xd8] sm:$0xf]  ;;  %v19947_v34 = vld [vmem:[#allocation22 + $0x1168] sm:$0xf0] }
 0x84e   :  { %v19550_v62 = vor.u32 %v22042_v51, %v19547_v52  ;;  %v18395_v35 = vld [vmem:[#allocation22 + $0x558] sm:$0xf0]  ;;  %v21706_v47 = vld [vmem:[#allocation22 + $0x254] sm:$0xf0] }
 0x84f   :  { %v18398_v51 = vor.u32 %v21754_v44, %v18395_v35 }
 0x850   :  { %13684 = vmatpush.bf16.msrb.mxu3 %v17986_v1  ;;  %13697 = vmatpush.bf16.msra.mxu1 %v17990_v7  ;;  %v13491_v53 = vpop.f32.mrf.mxu1  ;;  %v19161_v1 = vld [vmem:[#allocation22 + $0x9d8] sm:$0xf]  ;;  %v9056_v7 = vperm.slane %v23417_v33, 3 }
 0x851   :  { %13710 = vmatpush.bf16.msrb.mxu0 %v17994_v9  ;;  %13723 = vmatpush.bf16.msra.mxu2 %v17998_v10  ;;  %v13492_v3 = vadd.f32 %v13491_v53, %v9054_v39  ;;  %v19158_v9 = vor.u32 %v21945_v60, %v19155_v0  ;;  %v18769_v10 = vld [vmem:[#allocation22 + $0x6d0] sm:$0xf]  ;;  %v19162_v12 = vor.u32 %v21994_v2, %v19161_v1  ;;  %v21657_v39 = vld [vmem:[#allocation22 + $0xd4] sm:$0xf]  ;;  %v21658_v53 = vld [vmem:[#allocation22 + $0xdc] sm:$0xf] }
 0x852   :  { %v20707_v60 = vld [vmem:[#allocation22 + $0x1760] sm:$0xf0]  ;;  %v20713_v0 = vld [vmem:[#allocation22 + $0x15e8] sm:$0xf]  ;;  %v22332_v2 = vld [vmem:[#allocation22 + $0x15ec] sm:$0xf] }
 0x853   :  { %13685 = vmatmul.bf16.vlgmr.msrb.gmra.mxu3 %v23303_v63  ;;  %13698 = vmatmul.bf16.vlgmr.msra.gmra.mxu1 %v23303_v63  ;;  %v13504_v55 = vpop.f32.mrf.mxu0  ;;  %22491 = vtanh.f32 %v13492_v3  ;;  %v22380_v1 = vld [vmem:[#allocation22 + $0x1764] sm:$0xf0] }
 0x854   :  { %13729 = vmatpush.bf16.msra.mxu3 %v20690_v13  ;;  %13742 = vmatpush.bf16.msrb.mxu1 %v20694_v14  ;;  %v13505_v6 = vadd.f32 %v13504_v55, %v9055_v54  ;;  %v19166_v13 = vor.u32 %v21946_v4, %v19163_v50  ;;  %v18011_v54 = vld [vmem:[#allocation22 + $0x258] sm:$0xf0]  ;;  %v20705_v55 = vld [vmem:[#allocation22 + $0x15e0] sm:$0xf] }
 0x855   :  { %13755 = vmatpush.bf16.msra.mxu0 %v20698_v19  ;;  %13768 = vmatpush.bf16.msrb.mxu2 %v20702_v20  ;;  %v21898_v20 = vld [vmem:[#allocation22 + $0x854] sm:$0xf0] }
 0x856   :  { %13711 = vmatmul.bf16.vlgmr.msrb.gmra.mxu0 %v23303_v63  ;;  %13724 = vmatmul.bf16.vlgmr.msra.gmra.mxu2 %v23303_v63  ;;  %v13478_v14 = vpop.f32.mrf.mxu3  ;;  %22493 = vtanh.f32 %v13505_v6  ;;  %v18778_v29 = vor.u32 %v21898_v20, %v18777_v18  ;;  %v20715_v6 = vld [vmem:[#allocation22 + $0x1768] sm:$0xf0]  ;;  %v20714_v18 = vor.u32 %v22380_v1, %v20713_v0  ;;  %v20329_v20 = vld [vmem:[#allocation22 + $0x12e8] sm:$0xf] }
 0x857   :  { %v13479_v17 = vadd.f32 %v13478_v14, %v9053_v5  ;;  %v22283_v14 = vld [vmem:[#allocation22 + $0x145c] sm:$0xf0]  ;;  %v21996_v0 = vld [vmem:[#allocation22 + $0xb64] sm:$0xf0] }
 0x858   :  { %13730 = vmatpush.bf16.msra.mxu3 %v20306_v25  ;;  %13743 = vmatpush.bf16.msrb.mxu1 %v20310_v26  ;;  %v13493_v24 = vpop.f32.mrf.mxu1  ;;  %v18770_v25 = vor.u32 %v21897_v11, %v18769_v10  ;;  %v18774_v26 = vor.u32 %v21849_v15, %v18771_v16  ;;  %v20706_v11 = vor.u32 %v22379_v58, %v20705_v55  ;;  %v22235_v15 = vld [vmem:[#allocation22 + $0x12e4] sm:$0xf] }
 0x859   :  { %13756 = vmatpush.bf16.msra.mxu0 %v20314_v45  ;;  %13769 = vmatpush.bf16.msrb.mxu2 %v20318_v30  ;;  %v13517_v19 = vpop.f32.mrf.mxu2  ;;  %22495 = vtanh.f32 %v13479_v17  ;;  %v18782_v45 = vor.u32 %v21850_v21, %v18779_v22  ;;  %v21753_v30 = vld [vmem:[#allocation22 + $0x3d4] sm:$0xf]  ;;  %v22492_v40 = vpop.eup %22491  ;;  %v20718_v17 = vor.u32 %v22332_v2, %v20715_v6  ;;  %v22284_v21 = vld [vmem:[#allocation22 + $0x1464] sm:$0xf0]  ;;  %v22236_v22 = vld [vmem:[#allocation22 + $0x12ec] sm:$0xf] }
 0x85a   :  { %v13518_v23 = vadd.f32 %v13517_v19, %v9056_v7  ;;  %v14517_v3 = vrot.slane %v22492_v40, 6  ;;  %v18010_v7 = vor.u32 %v21706_v47, %v18009_v46  ;;  %v20323_v19 = vld [vmem:[#allocation22 + $0x1460] sm:$0xf0]  ;;  %v20330_v27 = vor.u32 %v22284_v21, %v20329_v20  ;;  %v19561_v46 = vld [vmem:[#allocation22 + $0xce8] sm:$0xf] }
 0x85b   :  { %v13506_v38 = vpop.f32.mrf.mxu0  ;;  %v22092_v47 = vld [vmem:[#allocation22 + $0xe64] sm:$0xf0]  ;;  %v21947_v58 = vld [vmem:[#allocation22 + $0x9e4] sm:$0xf]  ;;  %v21948_v2 = vld [vmem:[#allocation22 + $0x9ec] sm:$0xf] }
 0x85c   :  { %13731 = vmatpush.bf16.msra.mxu3 %v19922_v36  ;;  %13744 = vmatpush.bf16.msrb.mxu1 %v19926_v37  ;;  %22497 = vtanh.f32 %v13518_v23  ;;  %v18001_v36 = vld [vmem:[#allocation22 + $0xd0] sm:$0xf]  ;;  %v22494_v48 = vpop.eup %22493  ;;  %v20331_v23 = vld [vmem:[#allocation22 + $0x1468] sm:$0xf0]  ;;  %v20326_v38 = vor.u32 %v22235_v15, %v20323_v19  ;;  %v18793_v15 = vld [vmem:[#allocation22 + $0x6e8] sm:$0xf] }
 0x85d   :  { %13757 = vmatpush.bf16.msra.mxu0 %v19930_v42  ;;  %13770 = vmatpush.bf16.msrb.mxu2 %v19934_v43  ;;  %v21705_v37 = vld [vmem:[#allocation22 + $0x24c] sm:$0xf0]  ;;  %v18390_v42 = vor.u32 %v21753_v30, %v18387_v31  ;;  %v18003_v43 = vld [vmem:[#allocation22 + $0x250] sm:$0xf0]  ;;  %v14518_v4 = vrot.slane %v22494_v48, 4  ;;  %v20334_v28 = vor.u32 %v22236_v22, %v20331_v23 }
 0x85e   :  { %v13480_v52 = vpop.f32.mrf.mxu3  ;;  %v18006_v5 = vor.u32 %v21657_v39, %v18003_v43  ;;  %v19945_v30 = vld [vmem:[#allocation22 + $0xfe8] sm:$0xf]  ;;  %v22091_v39 = vld [vmem:[#allocation22 + $0xe5c] sm:$0xf0]  ;;  %v19555_v43 = vld [vmem:[#allocation22 + $0xe60] sm:$0xf0] }
 0x85f   :  { %v22188_v31 = vld [vmem:[#allocation22 + $0x1164] sm:$0xf0]  ;;  %v22044_v48 = vld [vmem:[#allocation22 + $0xcec] sm:$0xf]  ;;  %v9059_v52 = vperm.slane %v23417_v33, 6 }
 0x860   :  { %13732 = vmatpush.bf16.msra.mxu3 %v19538_v56  ;;  %13745 = vmatpush.bf16.msrb.mxu1 %v19542_v57  ;;  %v22496_v56 = vpop.eup %22495  ;;  %v19946_v40 = vor.u32 %v22188_v31, %v19945_v30  ;;  %v21852_v19 = vld [vmem:[#allocation22 + $0x6ec] sm:$0xf]  ;;  %v21804_v30 = vld [vmem:[#allocation22 + $0x564] sm:$0xf0] }
 0x861   :  { %13758 = vmatpush.bf16.msra.mxu0 %v19546_v61  ;;  %13771 = vmatpush.bf16.msrb.mxu2 %v19550_v62  ;;  %v13519_v57 = vpop.f32.mrf.mxu2  ;;  %v18002_v62 = vor.u32 %v21705_v37, %v18001_v36  ;;  %v9058_v36 = vperm.slane %v23417_v33, 5  ;;  %v19553_v37 = vld [vmem:[#allocation22 + $0xce0] sm:$0xf]  ;;  %v21756_v31 = vld [vmem:[#allocation22 + $0x3ec] sm:$0xf] }
 0x862   :  { %v22498_v61 = vpop.eup %22497  ;;  %v21995_v57 = vld [vmem:[#allocation22 + $0xb5c] sm:$0xf0] }
 0x863   :  { %v14519_v50 = vrot.slane %v22498_v61, 2  ;;  %v19171_v61 = vld [vmem:[#allocation22 + $0xb60] sm:$0xf0] }
 0x864   :  { %13733 = vmatpush.bf16.msra.mxu3 %v19154_v8  ;;  %13746 = vmatpush.bf16.msrb.mxu1 %v19158_v9  ;;  %v18014_v8 = vor.u32 %v21658_v53, %v18011_v54  ;;  %v14591_v9 = vsel %vm14565_vm5, %v22496_v56, %v14517_v3  ;;  %v19554_v54 = vor.u32 %v22091_v39, %v19553_v37  ;;  %v19169_v56 = vld [vmem:[#allocation22 + $0x9e0] sm:$0xf]  ;;  %v19179_v3 = vld [vmem:[#allocation22 + $0xb68] sm:$0xf0] }
 0x865   :  { %13759 = vmatpush.bf16.msra.mxu0 %v19162_v12  ;;  %13772 = vmatpush.bf16.msrb.mxu2 %v19166_v13  ;;  %v14592_v10 = vsel %vm14567_vm6, %v14518_v4, %v14519_v50  ;;  %v20710_v12 = vor.u32 %v22331_v59, %v20707_v60  ;;  %v20321_v13 = vld [vmem:[#allocation22 + $0x12e0] sm:$0xf]  ;;  %v19562_v59 = vor.u32 %v22092_v47, %v19561_v46  ;;  %v9057_v4 = vperm.slane %v23417_v33, 4 }
 0x866   :  { %v14593_v16 = vsel %vm8101_vm1, %v14591_v9, %v14592_v10  ;;  %v20322_v24 = vor.u32 %v22283_v14, %v20321_v13  ;;  %v19170_v6 = vor.u32 %v21995_v57, %v19169_v56  ;;  %v21899_v9 = vld [vmem:[#allocation22 + $0x85c] sm:$0xf0]  ;;  %v21851_v13 = vld [vmem:[#allocation22 + $0x6e4] sm:$0xf]  ;;  %v22333_v56 = vld [vmem:[#allocation22 + $0x15f4] sm:$0xf] }
 0x867   :  { %14671 = vst [vmem:[#allocation25 + $0x40] sm:$0xff] %v14593_v16  ;;  %v18787_v14 = vld [vmem:[#allocation22 + $0x860] sm:$0xf0]  ;;  %v20723_v57 = vld [vmem:[#allocation22 + $0x1770] sm:$0xf0] }
 0x868   :  { %13734 = vmatpush.bf16.msra.mxu3 %v18770_v25  ;;  %13747 = vmatpush.bf16.msrb.mxu1 %v18774_v26  ;;  %v19937_v25 = vld [vmem:[#allocation22 + $0xfe0] sm:$0xf] }
 0x869   :  { %13760 = vmatpush.bf16.msra.mxu0 %v18778_v29  ;;  %13773 = vmatpush.bf16.msrb.mxu2 %v18782_v45  ;;  %v22187_v26 = vld [vmem:[#allocation22 + $0x115c] sm:$0xf0]  ;;  %v22139_v29 = vld [vmem:[#allocation22 + $0xfe4] sm:$0xf] }
 0x86a   :  { %v19939_v45 = vld [vmem:[#allocation22 + $0x1160] sm:$0xf0]  ;;  %v19938_v44 = vor.u32 %v22187_v26, %v19937_v25  ;;  %v21803_v25 = vld [vmem:[#allocation22 + $0x55c] sm:$0xf0] }
 0x86b   :  { %v19942_v35 = vor.u32 %v22139_v29, %v19939_v45  ;;  %v18403_v29 = vld [vmem:[#allocation22 + $0x560] sm:$0xf0]  ;;  %v18409_v45 = vld [vmem:[#allocation22 + $0x3e8] sm:$0xf] }
 0x86c   :  { %13735 = vmatpush.bf16.msra.mxu3 %v18386_v41  ;;  %13748 = vmatpush.bf16.msrb.mxu1 %v18390_v42  ;;  %v19950_v41 = vor.u32 %v22140_v32, %v19947_v34  ;;  %v22043_v42 = vld [vmem:[#allocation22 + $0xce4] sm:$0xf]  ;;  %v18411_v32 = vld [vmem:[#allocation22 + $0x568] sm:$0xf0]  ;;  %v18017_v34 = vld [vmem:[#allocation22 + $0xe0] sm:$0xf]  ;;  %v18410_v46 = vor.u32 %v21804_v30, %v18409_v45 }
 0x86d   :  { %13761 = vmatpush.bf16.msra.mxu0 %v18394_v49  ;;  %13774 = vmatpush.bf16.msrb.mxu2 %v18398_v51  ;;  %v19563_v49 = vld [vmem:[#allocation22 + $0xe68] sm:$0xf0]  ;;  %v19558_v55 = vor.u32 %v22043_v42, %v19555_v43  ;;  %v21708_v42 = vld [vmem:[#allocation22 + $0x264] sm:$0xf0]  ;;  %v18414_v47 = vor.u32 %v21756_v31, %v18411_v32  ;;  %v22142_v45 = vld [vmem:[#allocation22 + $0xffc] sm:$0xf] }
 0x86e   :  { %v19566_v60 = vor.u32 %v22044_v48, %v19563_v49  ;;  %v21660_v49 = vld [vmem:[#allocation22 + $0xec] sm:$0xf]  ;;  %v19963_v30 = vld [vmem:[#allocation22 + $0x1178] sm:$0xf0] }
 0x870   :  { %13736 = vmatpush.bf16.msra.mxu3 %v18002_v62  ;;  %13749 = vmatpush.bf16.msrb.mxu1 %v18006_v5  ;;  %v13543_v51 = vpop.f32.mrf.mxu1  ;;  %v19177_v62 = vld [vmem:[#allocation22 + $0x9e8] sm:$0xf]  ;;  %v9060_v5 = vperm.slane %v23417_v33, 7  ;;  %v18795_v33 = vld [vmem:[#allocation22 + $0x868] sm:$0xf0] }
 0x871   :  { %13762 = vmatpush.bf16.msra.mxu0 %v18010_v7  ;;  %13775 = vmatpush.bf16.msrb.mxu2 %v18014_v8  ;;  %v13544_v1 = vadd.f32 %v13543_v51, %v9058_v36  ;;  %v19174_v7 = vor.u32 %v21947_v58, %v19171_v61  ;;  %v18785_v8 = vld [vmem:[#allocation22 + $0x6e0] sm:$0xf]  ;;  %v19178_v10 = vor.u32 %v21996_v0, %v19177_v62  ;;  %v18027_v51 = vld [vmem:[#allocation22 + $0x268] sm:$0xf0]  ;;  %v22382_v61 = vld [vmem:[#allocation22 + $0x1774] sm:$0xf0] }
 0x872   :  { %v18786_v23 = vor.u32 %v21899_v9, %v18785_v8  ;;  %v22334_v62 = vld [vmem:[#allocation22 + $0x15fc] sm:$0xf]  ;;  %v20726_v9 = vor.u32 %v22333_v56, %v20723_v57 }
 0x873   :  { %13737 = vmatmul.bf16.vlgmr.msra.gmra.mxu3 %v23303_v63  ;;  %13750 = vmatmul.bf16.vlgmr.msrb.gmra.mxu1 %v23303_v63  ;;  %v13556_v53 = vpop.f32.mrf.mxu0  ;;  %22499 = vtanh.f32 %v13544_v1 }
 0x874   :  { %13781 = vmatpush.bf16.msrb.mxu3 %v20706_v11  ;;  %13794 = vmatpush.bf16.msra.mxu1 %v20710_v12  ;;  %v13557_v50 = vadd.f32 %v13556_v53, %v9059_v52  ;;  %v19182_v11 = vor.u32 %v21948_v2, %v19179_v3  ;;  %v20721_v52 = vld [vmem:[#allocation22 + $0x15f0] sm:$0xf] }
 0x875   :  { %13807 = vmatpush.bf16.msrb.mxu0 %v20714_v18  ;;  %13820 = vmatpush.bf16.msra.mxu2 %v20718_v17  ;;  %v21900_v17 = vld [vmem:[#allocation22 + $0x864] sm:$0xf0] }
 0x876   :  { %13763 = vmatmul.bf16.vlgmr.msra.gmra.mxu0 %v23303_v63  ;;  %13776 = vmatmul.bf16.vlgmr.msrb.gmra.mxu2 %v23303_v63  ;;  %v13530_v12 = vpop.f32.mrf.mxu3  ;;  %22501 = vtanh.f32 %v13557_v50  ;;  %v18794_v26 = vor.u32 %v21900_v17, %v18793_v15  ;;  %v22286_v17 = vld [vmem:[#allocation22 + $0x1474] sm:$0xf0] }
 0x877   :  { %v13531_v16 = vadd.f32 %v13530_v12, %v9057_v4  ;;  %v20731_v4 = vld [vmem:[#allocation22 + $0x1778] sm:$0xf0]  ;;  %v22237_v12 = vld [vmem:[#allocation22 + $0x12f4] sm:$0xf] }
 0x878   :  { %13782 = vmatpush.bf16.msrb.mxu3 %v20322_v24  ;;  %13795 = vmatpush.bf16.msra.mxu1 %v20326_v38  ;;  %v13545_v21 = vpop.f32.mrf.mxu1  ;;  %v18790_v24 = vor.u32 %v21851_v13, %v18787_v14  ;;  %v18401_v38 = vld [vmem:[#allocation22 + $0x3e0] sm:$0xf]  ;;  %v20734_v15 = vor.u32 %v22334_v62, %v20731_v4  ;;  %v21950_v62 = vld [vmem:[#allocation22 + $0x9fc] sm:$0xf] }
 0x879   :  { %13808 = vmatpush.bf16.msrb.mxu0 %v20330_v27  ;;  %13821 = vmatpush.bf16.msra.mxu2 %v20334_v28  ;;  %v13569_v18 = vpop.f32.mrf.mxu2  ;;  %22503 = vtanh.f32 %v13531_v16  ;;  %v18798_v27 = vor.u32 %v21852_v19, %v18795_v33  ;;  %v21755_v28 = vld [vmem:[#allocation22 + $0x3e4] sm:$0xf]  ;;  %v22500_v36 = vpop.eup %22499  ;;  %v18402_v37 = vor.u32 %v21803_v25, %v18401_v38  ;;  %v20339_v16 = vld [vmem:[#allocation22 + $0x1470] sm:$0xf0]  ;;  %v22238_v19 = vld [vmem:[#allocation22 + $0x12fc] sm:$0xf] }
 0x87a   :  { %v13570_v20 = vadd.f32 %v13569_v18, %v9060_v5  ;;  %v18406_v39 = vor.u32 %v21755_v28, %v18403_v29  ;;  %v14520_v0 = vrot.slane %v22500_v36, 6  ;;  %v18030_v5 = vor.u32 %v21660_v49, %v18027_v51  ;;  %v20345_v18 = vld [vmem:[#allocation22 + $0x12f8] sm:$0xf]  ;;  %v20347_v33 = vld [vmem:[#allocation22 + $0x1478] sm:$0xf0]  ;;  %v23441_v28 = vld [vmem:[#allocation23 + $0x28] sm:$0xff] }
 0x87b   :  { %v13558_v22 = vpop.f32.mrf.mxu0  ;;  %v20342_v21 = vor.u32 %v22237_v12, %v20339_v16  ;;  %v20346_v38 = vor.u32 %v22286_v17, %v20345_v18  ;;  %v20350_v25 = vor.u32 %v22238_v19, %v20347_v33  ;;  %v22190_v29 = vld [vmem:[#allocation22 + $0x1174] sm:$0xf0]  ;;  %v21854_v16 = vld [vmem:[#allocation22 + $0x6fc] sm:$0xf] }
 0x87c   :  { %13783 = vmatpush.bf16.msrb.mxu3 %v19938_v44  ;;  %13796 = vmatpush.bf16.msra.mxu1 %v19942_v35  ;;  %22505 = vtanh.f32 %v13570_v20  ;;  %v21707_v44 = vld [vmem:[#allocation22 + $0x25c] sm:$0xf0]  ;;  %v21659_v35 = vld [vmem:[#allocation22 + $0xe4] sm:$0xf]  ;;  %v22502_v43 = vpop.eup %22501  ;;  %v19953_v22 = vld [vmem:[#allocation22 + $0xff0] sm:$0xf] }
 0x87d   :  { %13809 = vmatpush.bf16.msrb.mxu0 %v19946_v40  ;;  %13822 = vmatpush.bf16.msra.mxu2 %v19950_v41  ;;  %v18019_v40 = vld [vmem:[#allocation22 + $0x260] sm:$0xf0]  ;;  %v18025_v41 = vld [vmem:[#allocation22 + $0xe8] sm:$0xf]  ;;  %v14521_v1 = vrot.slane %v22502_v43, 4 }
 0x87e   :  { %v13532_v48 = vpop.f32.mrf.mxu3  ;;  %v18022_v3 = vor.u32 %v21659_v35, %v18019_v40  ;;  %v18026_v50 = vor.u32 %v21708_v42, %v18025_v41  ;;  %v22093_v35 = vld [vmem:[#allocation22 + $0xe6c] sm:$0xf0]  ;;  %v19571_v40 = vld [vmem:[#allocation22 + $0xe70] sm:$0xf0]  ;;  %v19577_v41 = vld [vmem:[#allocation22 + $0xcf8] sm:$0xf] }
 0x87f   :  { %v22504_v53 = vpop.eup %22503  ;;  %v22094_v42 = vld [vmem:[#allocation22 + $0xe74] sm:$0xf0]  ;;  %v22046_v43 = vld [vmem:[#allocation22 + $0xcfc] sm:$0xf]  ;;  %v9063_v48 = vperm.slane %v23441_v28, 2 }
 0x880   :  { %13784 = vmatpush.bf16.msrb.mxu3 %v19554_v54  ;;  %13797 = vmatpush.bf16.msra.mxu1 %v19558_v55  ;;  %v22381_v55 = vld [vmem:[#allocation22 + $0x176c] sm:$0xf0]  ;;  %v19578_v56 = vor.u32 %v22094_v42, %v19577_v41  ;;  %v18809_v12 = vld [vmem:[#allocation22 + $0x6f8] sm:$0xf]  ;;  %v18811_v18 = vld [vmem:[#allocation22 + $0x878] sm:$0xf0] }
 0x881   :  { %13810 = vmatpush.bf16.msrb.mxu0 %v19562_v59  ;;  %13823 = vmatpush.bf16.msra.mxu2 %v19566_v60  ;;  %v13571_v54 = vpop.f32.mrf.mxu2  ;;  %v18018_v59 = vor.u32 %v21707_v44, %v18017_v34  ;;  %v20729_v60 = vld [vmem:[#allocation22 + $0x15f8] sm:$0xf]  ;;  %v20722_v8 = vor.u32 %v22381_v55, %v20721_v52  ;;  %v9062_v34 = vperm.slane %v23441_v28, 1  ;;  %v19569_v44 = vld [vmem:[#allocation22 + $0xcf0] sm:$0xf] }
 0x882   :  { %v22506_v58 = vpop.eup %22505  ;;  %v20730_v14 = vor.u32 %v22382_v61, %v20729_v60  ;;  %v19570_v51 = vor.u32 %v22093_v35, %v19569_v44  ;;  %v21997_v54 = vld [vmem:[#allocation22 + $0xb6c] sm:$0xf0]  ;;  %v21949_v55 = vld [vmem:[#allocation22 + $0x9f4] sm:$0xf]  ;;  %v21998_v60 = vld [vmem:[#allocation22 + $0xb74] sm:$0xf0] }
 0x883   :  { %v14522_v2 = vrot.slane %v22506_v58, 2  ;;  %v19187_v58 = vld [vmem:[#allocation22 + $0xb70] sm:$0xf0] }
 0x884   :  { %13785 = vmatpush.bf16.msrb.mxu3 %v19170_v6  ;;  %13798 = vmatpush.bf16.msra.mxu1 %v19174_v7  ;;  %v14594_v6 = vsel %vm14565_vm5, %v22504_v53, %v14520_v0  ;;  %v19185_v53 = vld [vmem:[#allocation22 + $0x9f0] sm:$0xf]  ;;  %v19195_v0 = vld [vmem:[#allocation22 + $0xb78] sm:$0xf0] }
 0x885   :  { %13811 = vmatpush.bf16.msrb.mxu0 %v19178_v10  ;;  %13824 = vmatpush.bf16.msra.mxu2 %v19182_v11  ;;  %v14595_v7 = vsel %vm14567_vm6, %v14521_v1, %v14522_v2  ;;  %v20337_v10 = vld [vmem:[#allocation22 + $0x12f0] sm:$0xf]  ;;  %v9061_v1 = vperm.slane %v23441_v28, 0  ;;  %v19186_v4 = vor.u32 %v21997_v54, %v19185_v53  ;;  %v22383_v53 = vld [vmem:[#allocation22 + $0x177c] sm:$0xf0] }
 0x886   :  { %v22285_v11 = vld [vmem:[#allocation22 + $0x146c] sm:$0xf0]  ;;  %v14596_v13 = vsel %vm8101_vm1, %v14594_v6, %v14595_v7  ;;  %v22335_v54 = vld [vmem:[#allocation22 + $0x1604] sm:$0xf] }
 0x887   :  { %14672 = vst [vmem:[#allocation25 + $0x48] sm:$0xff] %v14596_v13  ;;  %v20338_v20 = vor.u32 %v22285_v11, %v20337_v10  ;;  %v21901_v6 = vld [vmem:[#allocation22 + $0x86c] sm:$0xf0]  ;;  %v21853_v10 = vld [vmem:[#allocation22 + $0x6f4] sm:$0xf] }
 0x888   :  { %13786 = vmatpush.bf16.msrb.mxu3 %v18786_v23  ;;  %13799 = vmatpush.bf16.msra.mxu1 %v18790_v24  ;;  %v22189_v23 = vld [vmem:[#allocation22 + $0x116c] sm:$0xf0]  ;;  %v22141_v24 = vld [vmem:[#allocation22 + $0xff4] sm:$0xf] }
 0x889   :  { %13812 = vmatpush.bf16.msrb.mxu0 %v18794_v26  ;;  %13825 = vmatpush.bf16.msra.mxu2 %v18798_v27  ;;  %v19955_v26 = vld [vmem:[#allocation22 + $0x1170] sm:$0xf0]  ;;  %v19961_v27 = vld [vmem:[#allocation22 + $0xff8] sm:$0xf]  ;;  %v19954_v31 = vor.u32 %v22189_v23, %v19953_v22  ;;  %v18417_v22 = vld [vmem:[#allocation22 + $0x3f0] sm:$0xf] }
 0x88a   :  { %v19958_v32 = vor.u32 %v22141_v24, %v19955_v26  ;;  %v19962_v36 = vor.u32 %v22190_v29, %v19961_v27  ;;  %v18803_v11 = vld [vmem:[#allocation22 + $0x870] sm:$0xf0]  ;;  %v21805_v23 = vld [vmem:[#allocation22 + $0x56c] sm:$0xf0]  ;;  %v18425_v27 = vld [vmem:[#allocation22 + $0x3f8] sm:$0xf] }
 0x88b   :  { %v18419_v26 = vld [vmem:[#allocation22 + $0x570] sm:$0xf0]  ;;  %v21806_v29 = vld [vmem:[#allocation22 + $0x574] sm:$0xf0]  ;;  %v18418_v35 = vor.u32 %v21805_v23, %v18417_v22 }
 0x88c   :  { %13787 = vmatpush.bf16.msrb.mxu3 %v18402_v37  ;;  %13800 = vmatpush.bf16.msra.mxu1 %v18406_v39  ;;  %v19966_v37 = vor.u32 %v22142_v45, %v19963_v30  ;;  %v22045_v39 = vld [vmem:[#allocation22 + $0xcf4] sm:$0xf]  ;;  %v21758_v45 = vld [vmem:[#allocation22 + $0x3fc] sm:$0xf]  ;;  %v18426_v42 = vor.u32 %v21806_v29, %v18425_v27  ;;  %v22144_v27 = vld [vmem:[#allocation22 + $0x100c] sm:$0xf] }
 0x88d   :  { %13813 = vmatpush.bf16.msrb.mxu0 %v18410_v46  ;;  %13826 = vmatpush.bf16.msra.mxu2 %v18414_v47  ;;  %v19579_v46 = vld [vmem:[#allocation22 + $0xe78] sm:$0xf0]  ;;  %v19574_v52 = vor.u32 %v22045_v39, %v19571_v40  ;;  %v18041_v39 = vld [vmem:[#allocation22 + $0xf8] sm:$0xf]  ;;  %v19979_v29 = vld [vmem:[#allocation22 + $0x1188] sm:$0xf0] }
 0x88e   :  { %v19582_v57 = vor.u32 %v22046_v43, %v19579_v46  ;;  %v18427_v30 = vld [vmem:[#allocation22 + $0x578] sm:$0xf0]  ;;  %v21710_v40 = vld [vmem:[#allocation22 + $0x274] sm:$0xf0] }
 0x88f   :  { %v18430_v43 = vor.u32 %v21758_v45, %v18427_v30 }
 0x890   :  { %13788 = vmatpush.bf16.msrb.mxu3 %v18018_v59  ;;  %13801 = vmatpush.bf16.msra.mxu1 %v18022_v3  ;;  %v13595_v47 = vpop.f32.mrf.mxu1  ;;  %v19193_v59 = vld [vmem:[#allocation22 + $0x9f8] sm:$0xf]  ;;  %v9064_v3 = vperm.slane %v23441_v28, 3 }
 0x891   :  { %13814 = vmatpush.bf16.msrb.mxu0 %v18026_v50  ;;  %13827 = vmatpush.bf16.msra.mxu2 %v18030_v5  ;;  %v13596_v61 = vadd.f32 %v13595_v47, %v9062_v34  ;;  %v19190_v50 = vor.u32 %v21949_v55, %v19187_v58  ;;  %v18801_v5 = vld [vmem:[#allocation22 + $0x6f0] sm:$0xf]  ;;  %v19194_v7 = vor.u32 %v21998_v60, %v19193_v59  ;;  %v21661_v34 = vld [vmem:[#allocation22 + $0xf4] sm:$0xf]  ;;  %v21662_v47 = vld [vmem:[#allocation22 + $0xfc] sm:$0xf] }
 0x892   :  { %v20739_v55 = vld [vmem:[#allocation22 + $0x1780] sm:$0xf0]  ;;  %v20745_v58 = vld [vmem:[#allocation22 + $0x1608] sm:$0xf]  ;;  %v22336_v60 = vld [vmem:[#allocation22 + $0x160c] sm:$0xf] }
 0x893   :  { %13789 = vmatmul.bf16.vlgmr.msrb.gmra.mxu3 %v23303_v63  ;;  %13802 = vmatmul.bf16.vlgmr.msra.gmra.mxu1 %v23303_v63  ;;  %v13608_v49 = vpop.f32.mrf.mxu0  ;;  %22507 = vtanh.f32 %v13596_v61  ;;  %v22384_v59 = vld [vmem:[#allocation22 + $0x1784] sm:$0xf0] }
 0x894   :  { %13833 = vmatpush.bf16.msra.mxu3 %v20722_v8  ;;  %13846 = vmatpush.bf16.msrb.mxu1 %v20726_v9  ;;  %v13609_v2 = vadd.f32 %v13608_v49, %v9063_v48  ;;  %v19198_v8 = vor.u32 %v21950_v62, %v19195_v0  ;;  %v18043_v48 = vld [vmem:[#allocation22 + $0x278] sm:$0xf0]  ;;  %v20737_v49 = vld [vmem:[#allocation22 + $0x1600] sm:$0xf] }
 0x895   :  { %13859 = vmatpush.bf16.msra.mxu0 %v20730_v14  ;;  %13872 = vmatpush.bf16.msrb.mxu2 %v20734_v15  ;;  %v21902_v15 = vld [vmem:[#allocation22 + $0x874] sm:$0xf0] }
 0x896   :  { %13815 = vmatmul.bf16.vlgmr.msrb.gmra.mxu0 %v23303_v63  ;;  %13828 = vmatmul.bf16.vlgmr.msra.gmra.mxu2 %v23303_v63  ;;  %v13582_v9 = vpop.f32.mrf.mxu3  ;;  %22509 = vtanh.f32 %v13609_v2  ;;  %v18810_v24 = vor.u32 %v21902_v15, %v18809_v12  ;;  %v20747_v2 = vld [vmem:[#allocation22 + $0x1788] sm:$0xf0]  ;;  %v20746_v12 = vor.u32 %v22384_v59, %v20745_v58  ;;  %v20361_v15 = vld [vmem:[#allocation22 + $0x1308] sm:$0xf] }
 0x897   :  { %v13583_v13 = vadd.f32 %v13582_v9, %v9061_v1  ;;  %v22287_v9 = vld [vmem:[#allocation22 + $0x147c] sm:$0xf0]  ;;  %v22000_v58 = vld [vmem:[#allocation22 + $0xb84] sm:$0xf0] }
 0x898   :  { %13834 = vmatpush.bf16.msra.mxu3 %v20338_v20  ;;  %13847 = vmatpush.bf16.msrb.mxu1 %v20342_v21  ;;  %v13597_v19 = vpop.f32.mrf.mxu1  ;;  %v18802_v20 = vor.u32 %v21901_v6, %v18801_v5  ;;  %v18806_v21 = vor.u32 %v21853_v10, %v18803_v11  ;;  %v20738_v6 = vor.u32 %v22383_v53, %v20737_v49  ;;  %v22239_v10 = vld [vmem:[#allocation22 + $0x1304] sm:$0xf] }
 0x899   :  { %13860 = vmatpush.bf16.msra.mxu0 %v20346_v38  ;;  %13873 = vmatpush.bf16.msrb.mxu2 %v20350_v25  ;;  %v13621_v14 = vpop.f32.mrf.mxu2  ;;  %22511 = vtanh.f32 %v13583_v13  ;;  %v18814_v38 = vor.u32 %v21854_v16, %v18811_v18  ;;  %v21757_v25 = vld [vmem:[#allocation22 + $0x3f4] sm:$0xf]  ;;  %v22508_v44 = vpop.eup %22507  ;;  %v20750_v13 = vor.u32 %v22336_v60, %v20747_v2  ;;  %v22288_v16 = vld [vmem:[#allocation22 + $0x1484] sm:$0xf0]  ;;  %v22240_v18 = vld [vmem:[#allocation22 + $0x130c] sm:$0xf] }
 0x89a   :  { %v13622_v17 = vadd.f32 %v13621_v14, %v9064_v3  ;;  %v14523_v61 = vrot.slane %v22508_v44, 6  ;;  %v18042_v3 = vor.u32 %v21710_v40, %v18041_v39  ;;  %v20355_v14 = vld [vmem:[#allocation22 + $0x1480] sm:$0xf0]  ;;  %v20362_v22 = vor.u32 %v22288_v16, %v20361_v15  ;;  %v19593_v39 = vld [vmem:[#allocation22 + $0xd08] sm:$0xf] }
 0x89b   :  { %v13610_v33 = vpop.f32.mrf.mxu0  ;;  %v22096_v40 = vld [vmem:[#allocation22 + $0xe84] sm:$0xf0]  ;;  %v21951_v53 = vld [vmem:[#allocation22 + $0xa04] sm:$0xf]  ;;  %v21952_v60 = vld [vmem:[#allocation22 + $0xa0c] sm:$0xf] }
 0x89c   :  { %13835 = vmatpush.bf16.msra.mxu3 %v19954_v31  ;;  %13848 = vmatpush.bf16.msrb.mxu1 %v19958_v32  ;;  %22513 = vtanh.f32 %v13622_v17  ;;  %v18033_v31 = vld [vmem:[#allocation22 + $0xf0] sm:$0xf]  ;;  %v22510_v41 = vpop.eup %22509  ;;  %v20363_v17 = vld [vmem:[#allocation22 + $0x1488] sm:$0xf0]  ;;  %v20358_v33 = vor.u32 %v22239_v10, %v20355_v14  ;;  %v18825_v10 = vld [vmem:[#allocation22 + $0x708] sm:$0xf] }
 0x89d   :  { %13861 = vmatpush.bf16.msra.mxu0 %v19962_v36  ;;  %13874 = vmatpush.bf16.msrb.mxu2 %v19966_v37  ;;  %v21709_v32 = vld [vmem:[#allocation22 + $0x26c] sm:$0xf0]  ;;  %v18422_v36 = vor.u32 %v21757_v25, %v18419_v26  ;;  %v18035_v37 = vld [vmem:[#allocation22 + $0x270] sm:$0xf0]  ;;  %v14524_v62 = vrot.slane %v22510_v41, 4  ;;  %v20366_v23 = vor.u32 %v22240_v18, %v20363_v17 }
 0x89e   :  { %v13584_v46 = vpop.f32.mrf.mxu3  ;;  %v18038_v1 = vor.u32 %v21661_v34, %v18035_v37  ;;  %v19977_v25 = vld [vmem:[#allocation22 + $0x1008] sm:$0xf]  ;;  %v22095_v34 = vld [vmem:[#allocation22 + $0xe7c] sm:$0xf0]  ;;  %v19587_v37 = vld [vmem:[#allocation22 + $0xe80] sm:$0xf0] }
 0x89f   :  { %v22192_v26 = vld [vmem:[#allocation22 + $0x1184] sm:$0xf0]  ;;  %v22048_v41 = vld [vmem:[#allocation22 + $0xd0c] sm:$0xf]  ;;  %v9067_v46 = vperm.slane %v23441_v28, 6 }
 0x8a0   :  { %13836 = vmatpush.bf16.msra.mxu3 %v19570_v51  ;;  %13849 = vmatpush.bf16.msrb.mxu1 %v19574_v52  ;;  %v22512_v51 = vpop.eup %22511  ;;  %v19978_v44 = vor.u32 %v22192_v26, %v19977_v25  ;;  %v21856_v14 = vld [vmem:[#allocation22 + $0x70c] sm:$0xf]  ;;  %v21808_v25 = vld [vmem:[#allocation22 + $0x584] sm:$0xf0] }
 0x8a1   :  { %13862 = vmatpush.bf16.msra.mxu0 %v19578_v56  ;;  %13875 = vmatpush.bf16.msrb.mxu2 %v19582_v57  ;;  %v13623_v52 = vpop.f32.mrf.mxu2  ;;  %v18034_v57 = vor.u32 %v21709_v32, %v18033_v31  ;;  %v9066_v31 = vperm.slane %v23441_v28, 5  ;;  %v19585_v32 = vld [vmem:[#allocation22 + $0xd00] sm:$0xf]  ;;  %v21760_v26 = vld [vmem:[#allocation22 + $0x40c] sm:$0xf] }
 0x8a2   :  { %v22514_v56 = vpop.eup %22513  ;;  %v21999_v52 = vld [vmem:[#allocation22 + $0xb7c] sm:$0xf0] }
 0x8a3   :  { %v14525_v0 = vrot.slane %v22514_v56, 2  ;;  %v19203_v56 = vld [vmem:[#allocation22 + $0xb80] sm:$0xf0] }
 0x8a4   :  { %13837 = vmatpush.bf16.msra.mxu3 %v19186_v4  ;;  %13850 = vmatpush.bf16.msrb.mxu1 %v19190_v50  ;;  %v18046_v4 = vor.u32 %v21662_v47, %v18043_v48  ;;  %v14597_v50 = vsel %vm14565_vm5, %v22512_v51, %v14523_v61  ;;  %v19586_v48 = vor.u32 %v22095_v34, %v19585_v32  ;;  %v19201_v51 = vld [vmem:[#allocation22 + $0xa00] sm:$0xf]  ;;  %v19211_v61 = vld [vmem:[#allocation22 + $0xb88] sm:$0xf0] }
 0x8a5   :  { %13863 = vmatpush.bf16.msra.mxu0 %v19194_v7  ;;  %13876 = vmatpush.bf16.msrb.mxu2 %v19198_v8  ;;  %v14598_v5 = vsel %vm14567_vm6, %v14524_v62, %v14525_v0  ;;  %v20742_v7 = vor.u32 %v22335_v54, %v20739_v55  ;;  %v20353_v8 = vld [vmem:[#allocation22 + $0x1300] sm:$0xf]  ;;  %v19594_v54 = vor.u32 %v22096_v40, %v19593_v39  ;;  %v9065_v62 = vperm.slane %v23441_v28, 4 }
 0x8a6   :  { %v14599_v11 = vsel %vm8101_vm1, %v14597_v50, %v14598_v5  ;;  %v20354_v19 = vor.u32 %v22287_v9, %v20353_v8  ;;  %v19202_v2 = vor.u32 %v21999_v52, %v19201_v51  ;;  %v21903_v50 = vld [vmem:[#allocation22 + $0x87c] sm:$0xf0]  ;;  %v21855_v8 = vld [vmem:[#allocation22 + $0x704] sm:$0xf]  ;;  %v22337_v51 = vld [vmem:[#allocation22 + $0x1614] sm:$0xf] }
 0x8a7   :  { %14673 = vst [vmem:[#allocation25 + $0x50] sm:$0xff] %v14599_v11  ;;  %v18819_v9 = vld [vmem:[#allocation22 + $0x880] sm:$0xf0]  ;;  %v20755_v52 = vld [vmem:[#allocation22 + $0x1790] sm:$0xf0] }
 0x8a8   :  { %13838 = vmatpush.bf16.msra.mxu3 %v18802_v20  ;;  %13851 = vmatpush.bf16.msrb.mxu1 %v18806_v21  ;;  %v19969_v20 = vld [vmem:[#allocation22 + $0x1000] sm:$0xf] }
 0x8a9   :  { %13864 = vmatpush.bf16.msra.mxu0 %v18810_v24  ;;  %13877 = vmatpush.bf16.msrb.mxu2 %v18814_v38  ;;  %v22191_v21 = vld [vmem:[#allocation22 + $0x117c] sm:$0xf0]  ;;  %v22143_v24 = vld [vmem:[#allocation22 + $0x1004] sm:$0xf] }
 0x8aa   :  { %v19971_v38 = vld [vmem:[#allocation22 + $0x1180] sm:$0xf0]  ;;  %v19970_v45 = vor.u32 %v22191_v21, %v19969_v20  ;;  %v21807_v20 = vld [vmem:[#allocation22 + $0x57c] sm:$0xf0] }
 0x8ab   :  { %v19974_v30 = vor.u32 %v22143_v24, %v19971_v38  ;;  %v18435_v24 = vld [vmem:[#allocation22 + $0x580] sm:$0xf0]  ;;  %v18441_v38 = vld [vmem:[#allocation22 + $0x408] sm:$0xf] }
 0x8ac   :  { %13839 = vmatpush.bf16.msra.mxu3 %v18418_v35  ;;  %13852 = vmatpush.bf16.msrb.mxu1 %v18422_v36  ;;  %v19982_v35 = vor.u32 %v22144_v27, %v19979_v29  ;;  %v22047_v36 = vld [vmem:[#allocation22 + $0xd04] sm:$0xf]  ;;  %v18443_v27 = vld [vmem:[#allocation22 + $0x588] sm:$0xf0]  ;;  %v18049_v29 = vld [vmem:[#allocation22 + $0x100] sm:$0xf]  ;;  %v18442_v39 = vor.u32 %v21808_v25, %v18441_v38 }
 0x8ad   :  { %13865 = vmatpush.bf16.msra.mxu0 %v18426_v42  ;;  %13878 = vmatpush.bf16.msrb.mxu2 %v18430_v43  ;;  %v19595_v42 = vld [vmem:[#allocation22 + $0xe88] sm:$0xf0]  ;;  %v19590_v49 = vor.u32 %v22047_v36, %v19587_v37  ;;  %v21712_v36 = vld [vmem:[#allocation22 + $0x284] sm:$0xf0]  ;;  %v18446_v40 = vor.u32 %v21760_v26, %v18443_v27  ;;  %v22146_v38 = vld [vmem:[#allocation22 + $0x101c] sm:$0xf] }
 0x8ae   :  { %v19598_v55 = vor.u32 %v22048_v41, %v19595_v42  ;;  %v21664_v42 = vld [vmem:[#allocation22 + $0x10c] sm:$0xf]  ;;  %v19995_v25 = vld [vmem:[#allocation22 + $0x1198] sm:$0xf0] }
 0x8b0   :  { %13840 = vmatpush.bf16.msra.mxu3 %v18034_v57  ;;  %13853 = vmatpush.bf16.msrb.mxu1 %v18038_v1  ;;  %v13647_v43 = vpop.f32.mrf.mxu1  ;;  %v19209_v57 = vld [vmem:[#allocation22 + $0xa08] sm:$0xf]  ;;  %v9068_v1 = vperm.slane %v23441_v28, 7  ;;  %v18827_v28 = vld [vmem:[#allocation22 + $0x888] sm:$0xf0] }
 0x8b1   :  { %13866 = vmatpush.bf16.msra.mxu0 %v18042_v3  ;;  %13879 = vmatpush.bf16.msrb.mxu2 %v18046_v4  ;;  %v13648_v59 = vadd.f32 %v13647_v43, %v9066_v31  ;;  %v19206_v3 = vor.u32 %v21951_v53, %v19203_v56  ;;  %v18817_v4 = vld [vmem:[#allocation22 + $0x700] sm:$0xf]  ;;  %v19210_v5 = vor.u32 %v22000_v58, %v19209_v57  ;;  %v18059_v43 = vld [vmem:[#allocation22 + $0x288] sm:$0xf0]  ;;  %v22386_v56 = vld [vmem:[#allocation22 + $0x1794] sm:$0xf0] }
 0x8b2   :  { %v18818_v17 = vor.u32 %v21903_v50, %v18817_v4  ;;  %v22338_v57 = vld [vmem:[#allocation22 + $0x161c] sm:$0xf]  ;;  %v20758_v50 = vor.u32 %v22337_v51, %v20755_v52 }
 0x8b3   :  { %13841 = vmatmul.bf16.vlgmr.msra.gmra.mxu3 %v23303_v63  ;;  %13854 = vmatmul.bf16.vlgmr.msrb.gmra.mxu1 %v23303_v63  ;;  %v13660_v47 = vpop.f32.mrf.mxu0  ;;  %22515 = vtanh.f32 %v13648_v59 }
 0x8b4   :  { %13885 = vmatpush.bf16.msrb.mxu3 %v20738_v6  ;;  %13898 = vmatpush.bf16.msra.mxu1 %v20742_v7  ;;  %v13661_v0 = vadd.f32 %v13660_v47, %v9067_v46  ;;  %v19214_v6 = vor.u32 %v21952_v60, %v19211_v61  ;;  %v20753_v46 = vld [vmem:[#allocation22 + $0x1610] sm:$0xf] }
 0x8b5   :  { %13911 = vmatpush.bf16.msrb.mxu0 %v20746_v12  ;;  %13924 = vmatpush.bf16.msra.mxu2 %v20750_v13  ;;  %v21904_v13 = vld [vmem:[#allocation22 + $0x884] sm:$0xf0] }
 0x8b6   :  { %13867 = vmatmul.bf16.vlgmr.msra.gmra.mxu0 %v23303_v63  ;;  %13880 = vmatmul.bf16.vlgmr.msrb.gmra.mxu2 %v23303_v63  ;;  %v13634_v7 = vpop.f32.mrf.mxu3  ;;  %22517 = vtanh.f32 %v13661_v0  ;;  %v18826_v21 = vor.u32 %v21904_v13, %v18825_v10  ;;  %v22290_v13 = vld [vmem:[#allocation22 + $0x1494] sm:$0xf0] }
 0x8b7   :  { %v13635_v11 = vadd.f32 %v13634_v7, %v9065_v62  ;;  %v20763_v62 = vld [vmem:[#allocation22 + $0x1798] sm:$0xf0]  ;;  %v22241_v7 = vld [vmem:[#allocation22 + $0x1314] sm:$0xf] }
 0x8b8   :  { %13886 = vmatpush.bf16.msrb.mxu3 %v20354_v19  ;;  %13899 = vmatpush.bf16.msra.mxu1 %v20358_v33  ;;  %v13649_v16 = vpop.f32.mrf.mxu1  ;;  %v18822_v19 = vor.u32 %v21855_v8, %v18819_v9  ;;  %v18433_v33 = vld [vmem:[#allocation22 + $0x400] sm:$0xf]  ;;  %v20766_v10 = vor.u32 %v22338_v57, %v20763_v62  ;;  %v21954_v57 = vld [vmem:[#allocation22 + $0xa1c] sm:$0xf] }
 0x8b9   :  { %13912 = vmatpush.bf16.msrb.mxu0 %v20362_v22  ;;  %13925 = vmatpush.bf16.msra.mxu2 %v20366_v23  ;;  %v13673_v12 = vpop.f32.mrf.mxu2  ;;  %22519 = vtanh.f32 %v13635_v11  ;;  %v18830_v22 = vor.u32 %v21856_v14, %v18827_v28  ;;  %v21759_v23 = vld [vmem:[#allocation22 + $0x404] sm:$0xf]  ;;  %v22516_v31 = vpop.eup %22515  ;;  %v18434_v32 = vor.u32 %v21807_v20, %v18433_v33  ;;  %v20371_v11 = vld [vmem:[#allocation22 + $0x1490] sm:$0xf0]  ;;  %v22242_v14 = vld [vmem:[#allocation22 + $0x131c] sm:$0xf] }
 0x8ba   :  { %v13674_v15 = vadd.f32 %v13673_v12, %v9068_v1  ;;  %v18438_v34 = vor.u32 %v21759_v23, %v18435_v24  ;;  %v14526_v58 = vrot.slane %v22516_v31, 6  ;;  %v18062_v1 = vor.u32 %v21664_v42, %v18059_v43  ;;  %v20377_v12 = vld [vmem:[#allocation22 + $0x1318] sm:$0xf]  ;;  %v20379_v28 = vld [vmem:[#allocation22 + $0x1498] sm:$0xf0]  ;;  %v23465_v23 = vld [vmem:[#allocation23 + $0x30] sm:$0xff] }
 0x8bb   :  { %v13662_v18 = vpop.f32.mrf.mxu0  ;;  %v20374_v16 = vor.u32 %v22241_v7, %v20371_v11  ;;  %v20378_v33 = vor.u32 %v22290_v13, %v20377_v12  ;;  %v20382_v20 = vor.u32 %v22242_v14, %v20379_v28  ;;  %v22194_v24 = vld [vmem:[#allocation22 + $0x1194] sm:$0xf0]  ;;  %v21858_v11 = vld [vmem:[#allocation22 + $0x71c] sm:$0xf] }
 0x8bc   :  { %13887 = vmatpush.bf16.msrb.mxu3 %v19970_v45  ;;  %13900 = vmatpush.bf16.msra.mxu1 %v19974_v30  ;;  %22521 = vtanh.f32 %v13674_v15  ;;  %v21711_v45 = vld [vmem:[#allocation22 + $0x27c] sm:$0xf0]  ;;  %v21663_v30 = vld [vmem:[#allocation22 + $0x104] sm:$0xf]  ;;  %v22518_v37 = vpop.eup %22517  ;;  %v19985_v18 = vld [vmem:[#allocation22 + $0x1010] sm:$0xf] }
 0x8bd   :  { %13913 = vmatpush.bf16.msrb.mxu0 %v19978_v44  ;;  %13926 = vmatpush.bf16.msra.mxu2 %v19982_v35  ;;  %v18051_v44 = vld [vmem:[#allocation22 + $0x280] sm:$0xf0]  ;;  %v18057_v35 = vld [vmem:[#allocation22 + $0x108] sm:$0xf]  ;;  %v14527_v59 = vrot.slane %v22518_v37, 4 }
 0x8be   :  { %v13636_v41 = vpop.f32.mrf.mxu3  ;;  %v18054_v61 = vor.u32 %v21663_v30, %v18051_v44  ;;  %v18058_v0 = vor.u32 %v21712_v36, %v18057_v35  ;;  %v22097_v30 = vld [vmem:[#allocation22 + $0xe8c] sm:$0xf0]  ;;  %v19603_v44 = vld [vmem:[#allocation22 + $0xe90] sm:$0xf0]  ;;  %v19609_v35 = vld [vmem:[#allocation22 + $0xd18] sm:$0xf] }
 0x8bf   :  { %v22520_v47 = vpop.eup %22519  ;;  %v22098_v36 = vld [vmem:[#allocation22 + $0xe94] sm:$0xf0]  ;;  %v22050_v37 = vld [vmem:[#allocation22 + $0xd1c] sm:$0xf]  ;;  %v9071_v41 = vperm.slane %v23465_v23, 2 }
 0x8c0   :  { %13888 = vmatpush.bf16.msrb.mxu3 %v19586_v48  ;;  %13901 = vmatpush.bf16.msra.mxu1 %v19590_v49  ;;  %v22385_v49 = vld [vmem:[#allocation22 + $0x178c] sm:$0xf0]  ;;  %v19610_v51 = vor.u32 %v22098_v36, %v19609_v35  ;;  %v18841_v7 = vld [vmem:[#allocation22 + $0x718] sm:$0xf]  ;;  %v18843_v12 = vld [vmem:[#allocation22 + $0x898] sm:$0xf0] }
 0x8c1   :  { %13914 = vmatpush.bf16.msrb.mxu0 %v19594_v54  ;;  %13927 = vmatpush.bf16.msra.mxu2 %v19598_v55  ;;  %v13675_v48 = vpop.f32.mrf.mxu2  ;;  %v18050_v54 = vor.u32 %v21711_v45, %v18049_v29  ;;  %v20761_v55 = vld [vmem:[#allocation22 + $0x1618] sm:$0xf]  ;;  %v20754_v4 = vor.u32 %v22385_v49, %v20753_v46  ;;  %v9070_v29 = vperm.slane %v23465_v23, 1  ;;  %v19601_v45 = vld [vmem:[#allocation22 + $0xd10] sm:$0xf] }
 0x8c2   :  { %v22522_v53 = vpop.eup %22521  ;;  %v20762_v9 = vor.u32 %v22386_v56, %v20761_v55  ;;  %v19602_v43 = vor.u32 %v22097_v30, %v19601_v45  ;;  %v22001_v48 = vld [vmem:[#allocation22 + $0xb8c] sm:$0xf0]  ;;  %v21953_v49 = vld [vmem:[#allocation22 + $0xa14] sm:$0xf]  ;;  %v22002_v55 = vld [vmem:[#allocation22 + $0xb94] sm:$0xf0] }
 0x8c3   :  { %v14528_v60 = vrot.slane %v22522_v53, 2  ;;  %v19219_v53 = vld [vmem:[#allocation22 + $0xb90] sm:$0xf0] }
 0x8c4   :  { %13889 = vmatpush.bf16.msrb.mxu3 %v19202_v2  ;;  %13902 = vmatpush.bf16.msra.mxu1 %v19206_v3  ;;  %v14600_v2 = vsel %vm14565_vm5, %v22520_v47, %v14526_v58  ;;  %v19217_v47 = vld [vmem:[#allocation22 + $0xa10] sm:$0xf]  ;;  %v19227_v58 = vld [vmem:[#allocation22 + $0xb98] sm:$0xf0] }
 0x8c5   :  { %13915 = vmatpush.bf16.msrb.mxu0 %v19210_v5  ;;  %13928 = vmatpush.bf16.msra.mxu2 %v19214_v6  ;;  %v14601_v3 = vsel %vm14567_vm6, %v14527_v59, %v14528_v60  ;;  %v20369_v5 = vld [vmem:[#allocation22 + $0x1310] sm:$0xf]  ;;  %v9069_v59 = vperm.slane %v23465_v23, 0  ;;  %v19218_v62 = vor.u32 %v22001_v48, %v19217_v47  ;;  %v22387_v47 = vld [vmem:[#allocation22 + $0x179c] sm:$0xf0] }
 0x8c6   :  { %v22289_v6 = vld [vmem:[#allocation22 + $0x148c] sm:$0xf0]  ;;  %v14602_v8 = vsel %vm8101_vm1, %v14600_v2, %v14601_v3  ;;  %v22339_v48 = vld [vmem:[#allocation22 + $0x1624] sm:$0xf] }
 0x8c7   :  { %14674 = vst [vmem:[#allocation25 + $0x58] sm:$0xff] %v14602_v8  ;;  %v20370_v15 = vor.u32 %v22289_v6, %v20369_v5  ;;  %v21905_v2 = vld [vmem:[#allocation22 + $0x88c] sm:$0xf0]  ;;  %v21857_v5 = vld [vmem:[#allocation22 + $0x714] sm:$0xf] }
 0x8c8   :  { %13890 = vmatpush.bf16.msrb.mxu3 %v18818_v17  ;;  %13903 = vmatpush.bf16.msra.mxu1 %v18822_v19  ;;  %v22193_v17 = vld [vmem:[#allocation22 + $0x118c] sm:$0xf0]  ;;  %v22145_v19 = vld [vmem:[#allocation22 + $0x1014] sm:$0xf] }
 0x8c9   :  { %13916 = vmatpush.bf16.msrb.mxu0 %v18826_v21  ;;  %13929 = vmatpush.bf16.msra.mxu2 %v18830_v22  ;;  %v19987_v21 = vld [vmem:[#allocation22 + $0x1190] sm:$0xf0]  ;;  %v19993_v22 = vld [vmem:[#allocation22 + $0x1018] sm:$0xf]  ;;  %v19986_v26 = vor.u32 %v22193_v17, %v19985_v18  ;;  %v18449_v18 = vld [vmem:[#allocation22 + $0x410] sm:$0xf] }
 0x8ca   :  { %v19990_v27 = vor.u32 %v22145_v19, %v19987_v21  ;;  %v19994_v31 = vor.u32 %v22194_v24, %v19993_v22  ;;  %v18835_v6 = vld [vmem:[#allocation22 + $0x890] sm:$0xf0]  ;;  %v21809_v17 = vld [vmem:[#allocation22 + $0x58c] sm:$0xf0]  ;;  %v18457_v22 = vld [vmem:[#allocation22 + $0x418] sm:$0xf] }
 0x8cb   :  { %v18451_v21 = vld [vmem:[#allocation22 + $0x590] sm:$0xf0]  ;;  %v21810_v24 = vld [vmem:[#allocation22 + $0x594] sm:$0xf0]  ;;  %v18450_v30 = vor.u32 %v21809_v17, %v18449_v18 }
 0x8cc   :  { %13891 = vmatpush.bf16.msrb.mxu3 %v18434_v32  ;;  %13904 = vmatpush.bf16.msra.mxu1 %v18438_v34  ;;  %v19998_v32 = vor.u32 %v22146_v38, %v19995_v25  ;;  %v22049_v34 = vld [vmem:[#allocation22 + $0xd14] sm:$0xf]  ;;  %v21762_v38 = vld [vmem:[#allocation22 + $0x41c] sm:$0xf]  ;;  %v18458_v36 = vor.u32 %v21810_v24, %v18457_v22  ;;  %v22148_v22 = vld [vmem:[#allocation22 + $0x102c] sm:$0xf] }
 0x8cd   :  { %13917 = vmatpush.bf16.msrb.mxu0 %v18442_v39  ;;  %13930 = vmatpush.bf16.msra.mxu2 %v18446_v40  ;;  %v19611_v39 = vld [vmem:[#allocation22 + $0xe98] sm:$0xf0]  ;;  %v19606_v46 = vor.u32 %v22049_v34, %v19603_v44  ;;  %v18073_v34 = vld [vmem:[#allocation22 + $0x118] sm:$0xf]  ;;  %v20011_v24 = vld [vmem:[#allocation22 + $0x11a8] sm:$0xf0] }
 0x8ce   :  { %v19614_v52 = vor.u32 %v22050_v37, %v19611_v39  ;;  %v18459_v25 = vld [vmem:[#allocation22 + $0x598] sm:$0xf0]  ;;  %v21714_v44 = vld [vmem:[#allocation22 + $0x294] sm:$0xf0] }
 0x8cf   :  { %v18462_v37 = vor.u32 %v21762_v38, %v18459_v25 }
 0x8d0   :  { %13892 = vmatpush.bf16.msrb.mxu3 %v18050_v54  ;;  %13905 = vmatpush.bf16.msra.mxu1 %v18054_v61  ;;  %v13699_v40 = vpop.f32.mrf.mxu1  ;;  %v19225_v54 = vld [vmem:[#allocation22 + $0xa18] sm:$0xf]  ;;  %v9072_v61 = vperm.slane %v23465_v23, 3 }
 0x8d1   :  { %13918 = vmatpush.bf16.msrb.mxu0 %v18058_v0  ;;  %13931 = vmatpush.bf16.msra.mxu2 %v18062_v1  ;;  %v13700_v56 = vadd.f32 %v13699_v40, %v9070_v29  ;;  %v19222_v0 = vor.u32 %v21953_v49, %v19219_v53  ;;  %v18833_v1 = vld [vmem:[#allocation22 + $0x710] sm:$0xf]  ;;  %v19226_v3 = vor.u32 %v22002_v55, %v19225_v54  ;;  %v21665_v29 = vld [vmem:[#allocation22 + $0x114] sm:$0xf]  ;;  %v21666_v40 = vld [vmem:[#allocation22 + $0x11c] sm:$0xf] }
 0x8d2   :  { %v20771_v49 = vld [vmem:[#allocation22 + $0x17a0] sm:$0xf0]  ;;  %v20777_v53 = vld [vmem:[#allocation22 + $0x1628] sm:$0xf]  ;;  %v22340_v55 = vld [vmem:[#allocation22 + $0x162c] sm:$0xf] }
 0x8d3   :  { %13893 = vmatmul.bf16.vlgmr.msrb.gmra.mxu3 %v23303_v63  ;;  %13906 = vmatmul.bf16.vlgmr.msra.gmra.mxu1 %v23303_v63  ;;  %v13712_v42 = vpop.f32.mrf.mxu0  ;;  %22523 = vtanh.f32 %v13700_v56  ;;  %v22388_v54 = vld [vmem:[#allocation22 + $0x17a4] sm:$0xf0] }
 0x8d4   :  { %13937 = vmatpush.bf16.msra.mxu3 %v20754_v4  ;;  %13950 = vmatpush.bf16.msrb.mxu1 %v20758_v50  ;;  %v13713_v60 = vadd.f32 %v13712_v42, %v9071_v41  ;;  %v19230_v4 = vor.u32 %v21954_v57, %v19227_v58  ;;  %v18075_v41 = vld [vmem:[#allocation22 + $0x298] sm:$0xf0]  ;;  %v20769_v42 = vld [vmem:[#allocation22 + $0x1620] sm:$0xf] }
 0x8d5   :  { %13963 = vmatpush.bf16.msra.mxu0 %v20762_v9  ;;  %13976 = vmatpush.bf16.msrb.mxu2 %v20766_v10  ;;  %v21906_v10 = vld [vmem:[#allocation22 + $0x894] sm:$0xf0] }
 0x8d6   :  { %13919 = vmatmul.bf16.vlgmr.msrb.gmra.mxu0 %v23303_v63  ;;  %13932 = vmatmul.bf16.vlgmr.msra.gmra.mxu2 %v23303_v63  ;;  %v13686_v50 = vpop.f32.mrf.mxu3  ;;  %22525 = vtanh.f32 %v13713_v60  ;;  %v18842_v19 = vor.u32 %v21906_v10, %v18841_v7  ;;  %v20779_v60 = vld [vmem:[#allocation22 + $0x17a8] sm:$0xf0]  ;;  %v20778_v7 = vor.u32 %v22388_v54, %v20777_v53  ;;  %v20393_v10 = vld [vmem:[#allocation22 + $0x1328] sm:$0xf] }
 0x8d7   :  { %v13687_v8 = vadd.f32 %v13686_v50, %v9069_v59  ;;  %v22291_v50 = vld [vmem:[#allocation22 + $0x149c] sm:$0xf0]  ;;  %v22004_v53 = vld [vmem:[#allocation22 + $0xba4] sm:$0xf0] }
 0x8d8   :  { %13938 = vmatpush.bf16.msra.mxu3 %v20370_v15  ;;  %13951 = vmatpush.bf16.msrb.mxu1 %v20374_v16  ;;  %v13701_v14 = vpop.f32.mrf.mxu1  ;;  %v18834_v15 = vor.u32 %v21905_v2, %v18833_v1  ;;  %v18838_v16 = vor.u32 %v21857_v5, %v18835_v6  ;;  %v20770_v2 = vor.u32 %v22387_v47, %v20769_v42  ;;  %v22243_v5 = vld [vmem:[#allocation22 + $0x1324] sm:$0xf] }
 0x8d9   :  { %13964 = vmatpush.bf16.msra.mxu0 %v20378_v33  ;;  %13977 = vmatpush.bf16.msrb.mxu2 %v20382_v20  ;;  %v13725_v9 = vpop.f32.mrf.mxu2  ;;  %22527 = vtanh.f32 %v13687_v8  ;;  %v18846_v33 = vor.u32 %v21858_v11, %v18843_v12  ;;  %v21761_v20 = vld [vmem:[#allocation22 + $0x414] sm:$0xf]  ;;  %v22524_v45 = vpop.eup %22523  ;;  %v20782_v8 = vor.u32 %v22340_v55, %v20779_v60  ;;  %v22292_v11 = vld [vmem:[#allocation22 + $0x14a4] sm:$0xf0]  ;;  %v22244_v12 = vld [vmem:[#allocation22 + $0x132c] sm:$0xf] }
 0x8da   :  { %v13726_v13 = vadd.f32 %v13725_v9, %v9072_v61  ;;  %v14529_v56 = vrot.slane %v22524_v45, 6  ;;  %v18074_v61 = vor.u32 %v21714_v44, %v18073_v34  ;;  %v20387_v9 = vld [vmem:[#allocation22 + $0x14a0] sm:$0xf0]  ;;  %v20394_v18 = vor.u32 %v22292_v11, %v20393_v10  ;;  %v19625_v34 = vld [vmem:[#allocation22 + $0xd28] sm:$0xf] }
 0x8db   :  { %v13714_v28 = vpop.f32.mrf.mxu0  ;;  %v22100_v44 = vld [vmem:[#allocation22 + $0xea4] sm:$0xf0]  ;;  %v21955_v47 = vld [vmem:[#allocation22 + $0xa24] sm:$0xf]  ;;  %v21956_v55 = vld [vmem:[#allocation22 + $0xa2c] sm:$0xf] }
 0x8dc   :  { %13939 = vmatpush.bf16.msra.mxu3 %v19986_v26  ;;  %13952 = vmatpush.bf16.msrb.mxu1 %v19990_v27  ;;  %22529 = vtanh.f32 %v13726_v13  ;;  %v18065_v26 = vld [vmem:[#allocation22 + $0x110] sm:$0xf]  ;;  %v22526_v35 = vpop.eup %22525  ;;  %v20395_v13 = vld [vmem:[#allocation22 + $0x14a8] sm:$0xf0]  ;;  %v20390_v28 = vor.u32 %v22243_v5, %v20387_v9  ;;  %v18857_v5 = vld [vmem:[#allocation22 + $0x728] sm:$0xf] }
 0x8dd   :  { %13965 = vmatpush.bf16.msra.mxu0 %v19994_v31  ;;  %13978 = vmatpush.bf16.msrb.mxu2 %v19998_v32  ;;  %v21713_v27 = vld [vmem:[#allocation22 + $0x28c] sm:$0xf0]  ;;  %v18454_v31 = vor.u32 %v21761_v20, %v18451_v21  ;;  %v18067_v32 = vld [vmem:[#allocation22 + $0x290] sm:$0xf0]  ;;  %v14530_v57 = vrot.slane %v22526_v35, 4  ;;  %v20398_v17 = vor.u32 %v22244_v12, %v20395_v13 }
 0x8de   :  { %v13688_v39 = vpop.f32.mrf.mxu3  ;;  %v18070_v59 = vor.u32 %v21665_v29, %v18067_v32  ;;  %v20009_v20 = vld [vmem:[#allocation22 + $0x1028] sm:$0xf]  ;;  %v22099_v29 = vld [vmem:[#allocation22 + $0xe9c] sm:$0xf0]  ;;  %v19619_v32 = vld [vmem:[#allocation22 + $0xea0] sm:$0xf0] }
 0x8df   :  { %v22196_v21 = vld [vmem:[#allocation22 + $0x11a4] sm:$0xf0]  ;;  %v22052_v35 = vld [vmem:[#allocation22 + $0xd2c] sm:$0xf]  ;;  %v9075_v39 = vperm.slane %v23465_v23, 6 }
 0x8e0   :  { %13940 = vmatpush.bf16.msra.mxu3 %v19602_v43  ;;  %13953 = vmatpush.bf16.msrb.mxu1 %v19606_v46  ;;  %v22528_v43 = vpop.eup %22527  ;;  %v20010_v45 = vor.u32 %v22196_v21, %v20009_v20  ;;  %v21860_v9 = vld [vmem:[#allocation22 + $0x72c] sm:$0xf]  ;;  %v21812_v20 = vld [vmem:[#allocation22 + $0x5a4] sm:$0xf0] }
 0x8e1   :  { %13966 = vmatpush.bf16.msra.mxu0 %v19610_v51  ;;  %13979 = vmatpush.bf16.msrb.mxu2 %v19614_v52  ;;  %v13727_v46 = vpop.f32.mrf.mxu2  ;;  %v18066_v52 = vor.u32 %v21713_v27, %v18065_v26  ;;  %v9074_v26 = vperm.slane %v23465_v23, 5  ;;  %v19617_v27 = vld [vmem:[#allocation22 + $0xd20] sm:$0xf]  ;;  %v21764_v21 = vld [vmem:[#allocation22 + $0x42c] sm:$0xf] }
 0x8e2   :  { %v22530_v51 = vpop.eup %22529  ;;  %v22003_v46 = vld [vmem:[#allocation22 + $0xb9c] sm:$0xf0] }
 0x8e3   :  { %v14531_v58 = vrot.slane %v22530_v51, 2  ;;  %v19235_v51 = vld [vmem:[#allocation22 + $0xba0] sm:$0xf0] }
 0x8e4   :  { %13941 = vmatpush.bf16.msra.mxu3 %v19218_v62  ;;  %13954 = vmatpush.bf16.msrb.mxu1 %v19222_v0  ;;  %v18078_v62 = vor.u32 %v21666_v40, %v18075_v41  ;;  %v14603_v0 = vsel %vm14565_vm5, %v22528_v43, %v14529_v56  ;;  %v19618_v41 = vor.u32 %v22099_v29, %v19617_v27  ;;  %v19233_v43 = vld [vmem:[#allocation22 + $0xa20] sm:$0xf]  ;;  %v19243_v56 = vld [vmem:[#allocation22 + $0xba8] sm:$0xf0] }
 0x8e5   :  { %13967 = vmatpush.bf16.msra.mxu0 %v19226_v3  ;;  %13980 = vmatpush.bf16.msrb.mxu2 %v19230_v4  ;;  %v14604_v1 = vsel %vm14567_vm6, %v14530_v57, %v14531_v58  ;;  %v20774_v3 = vor.u32 %v22339_v48, %v20771_v49  ;;  %v20385_v4 = vld [vmem:[#allocation22 + $0x1320] sm:$0xf]  ;;  %v19626_v48 = vor.u32 %v22100_v44, %v19625_v34  ;;  %v9073_v57 = vperm.slane %v23465_v23, 4 }
 0x8e6   :  { %v14605_v6 = vsel %vm8101_vm1, %v14603_v0, %v14604_v1  ;;  %v20386_v14 = vor.u32 %v22291_v50, %v20385_v4  ;;  %v19234_v60 = vor.u32 %v22003_v46, %v19233_v43  ;;  %v21907_v0 = vld [vmem:[#allocation22 + $0x89c] sm:$0xf0]  ;;  %v21859_v4 = vld [vmem:[#allocation22 + $0x724] sm:$0xf]  ;;  %v22341_v43 = vld [vmem:[#allocation22 + $0x1634] sm:$0xf] }
 0x8e7   :  { %14675 = vst [vmem:[#allocation25 + $0x60] sm:$0xff] %v14605_v6  ;;  %v18851_v50 = vld [vmem:[#allocation22 + $0x8a0] sm:$0xf0]  ;;  %v20787_v46 = vld [vmem:[#allocation22 + $0x17b0] sm:$0xf0] }
 0x8e8   :  { %13942 = vmatpush.bf16.msra.mxu3 %v18834_v15  ;;  %13955 = vmatpush.bf16.msrb.mxu1 %v18838_v16  ;;  %v20001_v15 = vld [vmem:[#allocation22 + $0x1020] sm:$0xf] }
 0x8e9   :  { %13968 = vmatpush.bf16.msra.mxu0 %v18842_v19  ;;  %13981 = vmatpush.bf16.msrb.mxu2 %v18846_v33  ;;  %v22195_v16 = vld [vmem:[#allocation22 + $0x119c] sm:$0xf0]  ;;  %v22147_v19 = vld [vmem:[#allocation22 + $0x1024] sm:$0xf] }
 0x8ea   :  { %v20003_v33 = vld [vmem:[#allocation22 + $0x11a0] sm:$0xf0]  ;;  %v20002_v38 = vor.u32 %v22195_v16, %v20001_v15  ;;  %v21811_v15 = vld [vmem:[#allocation22 + $0x59c] sm:$0xf0] }
 0x8eb   :  { %v20006_v25 = vor.u32 %v22147_v19, %v20003_v33  ;;  %v18467_v19 = vld [vmem:[#allocation22 + $0x5a0] sm:$0xf0]  ;;  %v18473_v33 = vld [vmem:[#allocation22 + $0x428] sm:$0xf] }
 0x8ec   :  { %13943 = vmatpush.bf16.msra.mxu3 %v18450_v30  ;;  %13956 = vmatpush.bf16.msrb.mxu1 %v18454_v31  ;;  %v20014_v30 = vor.u32 %v22148_v22, %v20011_v24  ;;  %v22051_v31 = vld [vmem:[#allocation22 + $0xd24] sm:$0xf]  ;;  %v18475_v22 = vld [vmem:[#allocation22 + $0x5a8] sm:$0xf0]  ;;  %v18081_v24 = vld [vmem:[#allocation22 + $0x120] sm:$0xf]  ;;  %v18474_v34 = vor.u32 %v21812_v20, %v18473_v33 }
 0x8ed   :  { %13969 = vmatpush.bf16.msra.mxu0 %v18458_v36  ;;  %13982 = vmatpush.bf16.msrb.mxu2 %v18462_v37  ;;  %v19627_v36 = vld [vmem:[#allocation22 + $0xea8] sm:$0xf0]  ;;  %v19622_v42 = vor.u32 %v22051_v31, %v19619_v32  ;;  %v21716_v31 = vld [vmem:[#allocation22 + $0x2a4] sm:$0xf0]  ;;  %v18478_v44 = vor.u32 %v21764_v21, %v18475_v22  ;;  %v22150_v33 = vld [vmem:[#allocation22 + $0x103c] sm:$0xf] }
 0x8ee   :  { %v19630_v49 = vor.u32 %v22052_v35, %v19627_v36  ;;  %v21668_v36 = vld [vmem:[#allocation22 + $0x12c] sm:$0xf]  ;;  %v20027_v20 = vld [vmem:[#allocation22 + $0x11b8] sm:$0xf0] }
 0x8f0   :  { %13944 = vmatpush.bf16.msra.mxu3 %v18066_v52  ;;  %13957 = vmatpush.bf16.msrb.mxu1 %v18070_v59  ;;  %v13751_v37 = vpop.f32.mrf.mxu1  ;;  %v19241_v52 = vld [vmem:[#allocation22 + $0xa28] sm:$0xf]  ;;  %v9076_v59 = vperm.slane %v23465_v23, 7  ;;  %v18859_v23 = vld [vmem:[#allocation22 + $0x8a8] sm:$0xf0] }
 0x8f1   :  { %13970 = vmatpush.bf16.msra.mxu0 %v18074_v61  ;;  %13983 = vmatpush.bf16.msrb.mxu2 %v18078_v62  ;;  %v13752_v54 = vadd.f32 %v13751_v37, %v9074_v26  ;;  %v19238_v61 = vor.u32 %v21955_v47, %v19235_v51  ;;  %v18849_v62 = vld [vmem:[#allocation22 + $0x720] sm:$0xf]  ;;  %v19242_v1 = vor.u32 %v22004_v53, %v19241_v52  ;;  %v18091_v37 = vld [vmem:[#allocation22 + $0x2a8] sm:$0xf0]  ;;  %v22390_v51 = vld [vmem:[#allocation22 + $0x17b4] sm:$0xf0] }
 0x8f2   :  { %v18850_v13 = vor.u32 %v21907_v0, %v18849_v62  ;;  %v22342_v52 = vld [vmem:[#allocation22 + $0x163c] sm:$0xf]  ;;  %v20790_v0 = vor.u32 %v22341_v43, %v20787_v46 }
 0x8f3   :  { %13945 = vmatmul.bf16.vlgmr.msra.gmra.mxu3 %v23303_v63  ;;  %13958 = vmatmul.bf16.vlgmr.msrb.gmra.mxu1 %v23303_v63  ;;  %v13764_v40 = vpop.f32.mrf.mxu0  ;;  %22531 = vtanh.f32 %v13752_v54 }
 0x8f4   :  { %13989 = vmatpush.bf16.msrb.mxu3 %v20770_v2  ;;  %14002 = vmatpush.bf16.msra.mxu1 %v20774_v3  ;;  %v13765_v58 = vadd.f32 %v13764_v40, %v9075_v39  ;;  %v19246_v2 = vor.u32 %v21956_v55, %v19243_v56  ;;  %v20785_v39 = vld [vmem:[#allocation22 + $0x1630] sm:$0xf] }
 0x8f5   :  { %14015 = vmatpush.bf16.msrb.mxu0 %v20778_v7  ;;  %14028 = vmatpush.bf16.msra.mxu2 %v20782_v8  ;;  %v21908_v8 = vld [vmem:[#allocation22 + $0x8a4] sm:$0xf0] }
 0x8f6   :  { %13971 = vmatmul.bf16.vlgmr.msra.gmra.mxu0 %v23303_v63  ;;  %13984 = vmatmul.bf16.vlgmr.msrb.gmra.mxu2 %v23303_v63  ;;  %v13738_v3 = vpop.f32.mrf.mxu3  ;;  %22533 = vtanh.f32 %v13765_v58  ;;  %v18858_v16 = vor.u32 %v21908_v8, %v18857_v5  ;;  %v22294_v8 = vld [vmem:[#allocation22 + $0x14b4] sm:$0xf0] }
 0x8f7   :  { %v13739_v6 = vadd.f32 %v13738_v3, %v9073_v57  ;;  %v20795_v57 = vld [vmem:[#allocation22 + $0x17b8] sm:$0xf0]  ;;  %v22245_v3 = vld [vmem:[#allocation22 + $0x1334] sm:$0xf] }
 0x8f8   :  { %13990 = vmatpush.bf16.msrb.mxu3 %v20386_v14  ;;  %14003 = vmatpush.bf16.msra.mxu1 %v20390_v28  ;;  %v13753_v11 = vpop.f32.mrf.mxu1  ;;  %v18854_v14 = vor.u32 %v21859_v4, %v18851_v50  ;;  %v18465_v28 = vld [vmem:[#allocation22 + $0x420] sm:$0xf]  ;;  %v20798_v5 = vor.u32 %v22342_v52, %v20795_v57  ;;  %v21958_v52 = vld [vmem:[#allocation22 + $0xa3c] sm:$0xf] }
 0x8f9   :  { %14016 = vmatpush.bf16.msrb.mxu0 %v20394_v18  ;;  %14029 = vmatpush.bf16.msra.mxu2 %v20398_v17  ;;  %v13777_v7 = vpop.f32.mrf.mxu2  ;;  %22535 = vtanh.f32 %v13739_v6  ;;  %v18862_v18 = vor.u32 %v21860_v9, %v18859_v23  ;;  %v21763_v17 = vld [vmem:[#allocation22 + $0x424] sm:$0xf]  ;;  %v22532_v26 = vpop.eup %22531  ;;  %v18466_v27 = vor.u32 %v21811_v15, %v18465_v28  ;;  %v20403_v6 = vld [vmem:[#allocation22 + $0x14b0] sm:$0xf0]  ;;  %v22246_v9 = vld [vmem:[#allocation22 + $0x133c] sm:$0xf] }
 0x8fa   :  { %v13778_v10 = vadd.f32 %v13777_v7, %v9076_v59  ;;  %v18470_v29 = vor.u32 %v21763_v17, %v18467_v19  ;;  %v14532_v53 = vrot.slane %v22532_v26, 6  ;;  %v18094_v59 = vor.u32 %v21668_v36, %v18091_v37  ;;  %v20409_v7 = vld [vmem:[#allocation22 + $0x1338] sm:$0xf]  ;;  %v20411_v23 = vld [vmem:[#allocation22 + $0x14b8] sm:$0xf0] }
 0x8fb   :  { %v13766_v12 = vpop.f32.mrf.mxu0  ;;  %v20406_v11 = vor.u32 %v22245_v3, %v20403_v6  ;;  %v20410_v28 = vor.u32 %v22294_v8, %v20409_v7  ;;  %v20414_v15 = vor.u32 %v22246_v9, %v20411_v23  ;;  %v23489_v17 = vld [vmem:[#allocation23 + $0x38] sm:$0xff] }
 0x8fc   :  { %13991 = vmatpush.bf16.msrb.mxu3 %v20002_v38  ;;  %14004 = vmatpush.bf16.msra.mxu1 %v20006_v25  ;;  %22537 = vtanh.f32 %v13778_v10  ;;  %v21715_v38 = vld [vmem:[#allocation22 + $0x29c] sm:$0xf0]  ;;  %v21667_v25 = vld [vmem:[#allocation22 + $0x124] sm:$0xf]  ;;  %v22534_v32 = vpop.eup %22533  ;;  %v20017_v12 = vld [vmem:[#allocation22 + $0x1030] sm:$0xf] }
 0x8fd   :  { %14017 = vmatpush.bf16.msrb.mxu0 %v20010_v45  ;;  %14030 = vmatpush.bf16.msra.mxu2 %v20014_v30  ;;  %v18083_v45 = vld [vmem:[#allocation22 + $0x2a0] sm:$0xf0]  ;;  %v18089_v30 = vld [vmem:[#allocation22 + $0x128] sm:$0xf]  ;;  %v14533_v54 = vrot.slane %v22534_v32, 4 }
 0x8fe   :  { %v13740_v35 = vpop.f32.mrf.mxu3  ;;  %v18086_v56 = vor.u32 %v21667_v25, %v18083_v45  ;;  %v18090_v58 = vor.u32 %v21716_v31, %v18089_v30  ;;  %v22198_v19 = vld [vmem:[#allocation22 + $0x11b4] sm:$0xf0]  ;;  %v22101_v25 = vld [vmem:[#allocation22 + $0xeac] sm:$0xf0]  ;;  %v19635_v45 = vld [vmem:[#allocation22 + $0xeb0] sm:$0xf0] }
 0x8ff   :  { %v22536_v40 = vpop.eup %22535  ;;  %v19641_v30 = vld [vmem:[#allocation22 + $0xd38] sm:$0xf]  ;;  %v22054_v32 = vld [vmem:[#allocation22 + $0xd3c] sm:$0xf]  ;;  %v9079_v35 = vperm.slane %v23489_v17, 2 }
 0x900   :  { %13992 = vmatpush.bf16.msrb.mxu3 %v19618_v41  ;;  %14005 = vmatpush.bf16.msra.mxu1 %v19622_v42  ;;  %v22389_v42 = vld [vmem:[#allocation22 + $0x17ac] sm:$0xf0]  ;;  %v22102_v31 = vld [vmem:[#allocation22 + $0xeb4] sm:$0xf0]  ;;  %v21862_v6 = vld [vmem:[#allocation22 + $0x73c] sm:$0xf] }
 0x901   :  { %14018 = vmatpush.bf16.msrb.mxu0 %v19626_v48  ;;  %14031 = vmatpush.bf16.msra.mxu2 %v19630_v49  ;;  %v13779_v41 = vpop.f32.mrf.mxu2  ;;  %v18082_v48 = vor.u32 %v21715_v38, %v18081_v24  ;;  %v20793_v49 = vld [vmem:[#allocation22 + $0x1638] sm:$0xf]  ;;  %v20786_v62 = vor.u32 %v22389_v42, %v20785_v39  ;;  %v9078_v24 = vperm.slane %v23489_v17, 1  ;;  %v19633_v38 = vld [vmem:[#allocation22 + $0xd30] sm:$0xf]  ;;  %v19642_v43 = vor.u32 %v22102_v31, %v19641_v30 }
 0x902   :  { %v22538_v47 = vpop.eup %22537  ;;  %v20794_v50 = vor.u32 %v22390_v51, %v20793_v49  ;;  %v19634_v37 = vor.u32 %v22101_v25, %v19633_v38  ;;  %v22005_v41 = vld [vmem:[#allocation22 + $0xbac] sm:$0xf0]  ;;  %v21957_v42 = vld [vmem:[#allocation22 + $0xa34] sm:$0xf]  ;;  %v22006_v49 = vld [vmem:[#allocation22 + $0xbb4] sm:$0xf0] }
 0x903   :  { %v14534_v55 = vrot.slane %v22538_v47, 2  ;;  %v19251_v47 = vld [vmem:[#allocation22 + $0xbb0] sm:$0xf0]  ;;  %v18873_v3 = vld [vmem:[#allocation22 + $0x738] sm:$0xf] }
 0x904   :  { %13993 = vmatpush.bf16.msrb.mxu3 %v19234_v60  ;;  %14006 = vmatpush.bf16.msra.mxu1 %v19238_v61  ;;  %v14606_v60 = vsel %vm14565_vm5, %v22536_v40, %v14532_v53  ;;  %v19249_v40 = vld [vmem:[#allocation22 + $0xa30] sm:$0xf]  ;;  %v19259_v53 = vld [vmem:[#allocation22 + $0xbb8] sm:$0xf0] }
 0x905   :  { %14019 = vmatpush.bf16.msrb.mxu0 %v19242_v1  ;;  %14032 = vmatpush.bf16.msra.mxu2 %v19246_v2  ;;  %v14607_v61 = vsel %vm14567_vm6, %v14533_v54, %v14534_v55  ;;  %v20401_v1 = vld [vmem:[#allocation22 + $0x1330] sm:$0xf]  ;;  %v9077_v54 = vperm.slane %v23489_v17, 0  ;;  %v19250_v57 = vor.u32 %v22005_v41, %v19249_v40  ;;  %v18875_v7 = vld [vmem:[#allocation22 + $0x8b8] sm:$0xf0] }
 0x906   :  { %v22293_v2 = vld [vmem:[#allocation22 + $0x14ac] sm:$0xf0]  ;;  %v14608_v4 = vsel %vm8101_vm1, %v14606_v60, %v14607_v61  ;;  %v22391_v40 = vld [vmem:[#allocation22 + $0x17bc] sm:$0xf0]  ;;  %v22343_v41 = vld [vmem:[#allocation22 + $0x1644] sm:$0xf] }
 0x907   :  { %14676 = vst [vmem:[#allocation25 + $0x68] sm:$0xff] %v14608_v4  ;;  %v20402_v10 = vor.u32 %v22293_v2, %v20401_v1  ;;  %v21909_v60 = vld [vmem:[#allocation22 + $0x8ac] sm:$0xf0]  ;;  %v21861_v1 = vld [vmem:[#allocation22 + $0x734] sm:$0xf] }
 0x908   :  { %13994 = vmatpush.bf16.msrb.mxu3 %v18850_v13  ;;  %14007 = vmatpush.bf16.msra.mxu1 %v18854_v14  ;;  %v22197_v13 = vld [vmem:[#allocation22 + $0x11ac] sm:$0xf0]  ;;  %v22149_v14 = vld [vmem:[#allocation22 + $0x1034] sm:$0xf] }
 0x909   :  { %14020 = vmatpush.bf16.msrb.mxu0 %v18858_v16  ;;  %14033 = vmatpush.bf16.msra.mxu2 %v18862_v18  ;;  %v20019_v16 = vld [vmem:[#allocation22 + $0x11b0] sm:$0xf0]  ;;  %v20025_v18 = vld [vmem:[#allocation22 + $0x1038] sm:$0xf]  ;;  %v20018_v21 = vor.u32 %v22197_v13, %v20017_v12  ;;  %v18481_v12 = vld [vmem:[#allocation22 + $0x430] sm:$0xf] }
 0x90a   :  { %v20022_v22 = vor.u32 %v22149_v14, %v20019_v16  ;;  %v20026_v26 = vor.u32 %v22198_v19, %v20025_v18  ;;  %v18867_v2 = vld [vmem:[#allocation22 + $0x8b0] sm:$0xf0]  ;;  %v21813_v13 = vld [vmem:[#allocation22 + $0x5ac] sm:$0xf0]  ;;  %v18489_v18 = vld [vmem:[#allocation22 + $0x438] sm:$0xf] }
 0x90b   :  { %v18483_v16 = vld [vmem:[#allocation22 + $0x5b0] sm:$0xf0]  ;;  %v21814_v19 = vld [vmem:[#allocation22 + $0x5b4] sm:$0xf0]  ;;  %v18482_v25 = vor.u32 %v21813_v13, %v18481_v12 }
 0x90c   :  { %13995 = vmatpush.bf16.msrb.mxu3 %v18466_v27  ;;  %14008 = vmatpush.bf16.msra.mxu1 %v18470_v29  ;;  %v20030_v27 = vor.u32 %v22150_v33, %v20027_v20  ;;  %v22053_v29 = vld [vmem:[#allocation22 + $0xd34] sm:$0xf]  ;;  %v21766_v33 = vld [vmem:[#allocation22 + $0x43c] sm:$0xf]  ;;  %v18490_v31 = vor.u32 %v21814_v19, %v18489_v18  ;;  %v22152_v18 = vld [vmem:[#allocation22 + $0x104c] sm:$0xf] }
 0x90d   :  { %14021 = vmatpush.bf16.msrb.mxu0 %v18474_v34  ;;  %14034 = vmatpush.bf16.msra.mxu2 %v18478_v44  ;;  %v19643_v34 = vld [vmem:[#allocation22 + $0xeb8] sm:$0xf0]  ;;  %v19638_v39 = vor.u32 %v22053_v29, %v19635_v45  ;;  %v18105_v29 = vld [vmem:[#allocation22 + $0x138] sm:$0xf]  ;;  %v20043_v19 = vld [vmem:[#allocation22 + $0x11c8] sm:$0xf0] }
 0x90e   :  { %v19646_v46 = vor.u32 %v22054_v32, %v19643_v34  ;;  %v18491_v20 = vld [vmem:[#allocation22 + $0x5b8] sm:$0xf0]  ;;  %v21718_v45 = vld [vmem:[#allocation22 + $0x2b4] sm:$0xf0] }
 0x90f   :  { %v18494_v32 = vor.u32 %v21766_v33, %v18491_v20 }
 0x910   :  { %13996 = vmatpush.bf16.msrb.mxu3 %v18082_v48  ;;  %14009 = vmatpush.bf16.msra.mxu1 %v18086_v56  ;;  %v13803_v44 = vpop.f32.mrf.mxu1  ;;  %v19257_v48 = vld [vmem:[#allocation22 + $0xa38] sm:$0xf]  ;;  %v9080_v56 = vperm.slane %v23489_v17, 3 }
 0x911   :  { %14022 = vmatpush.bf16.msrb.mxu0 %v18090_v58  ;;  %14035 = vmatpush.bf16.msra.mxu2 %v18094_v59  ;;  %v13804_v51 = vadd.f32 %v13803_v44, %v9078_v24  ;;  %v19254_v58 = vor.u32 %v21957_v42, %v19251_v47  ;;  %v18865_v59 = vld [vmem:[#allocation22 + $0x730] sm:$0xf]  ;;  %v19258_v61 = vor.u32 %v22006_v49, %v19257_v48  ;;  %v21669_v24 = vld [vmem:[#allocation22 + $0x134] sm:$0xf]  ;;  %v21670_v44 = vld [vmem:[#allocation22 + $0x13c] sm:$0xf] }
 0x912   :  { %v20803_v42 = vld [vmem:[#allocation22 + $0x17c0] sm:$0xf0]  ;;  %v20809_v47 = vld [vmem:[#allocation22 + $0x1648] sm:$0xf]  ;;  %v22344_v49 = vld [vmem:[#allocation22 + $0x164c] sm:$0xf] }
 0x913   :  { %13997 = vmatmul.bf16.vlgmr.msrb.gmra.mxu3 %v23303_v63  ;;  %14010 = vmatmul.bf16.vlgmr.msra.gmra.mxu1 %v23303_v63  ;;  %v13816_v36 = vpop.f32.mrf.mxu0  ;;  %22539 = vtanh.f32 %v13804_v51  ;;  %v22392_v48 = vld [vmem:[#allocation22 + $0x17c4] sm:$0xf0] }
 0x914   :  { %14041 = vmatpush.bf16.msra.mxu3 %v20786_v62  ;;  %14054 = vmatpush.bf16.msrb.mxu1 %v20790_v0  ;;  %v13817_v55 = vadd.f32 %v13816_v36, %v9079_v35  ;;  %v19262_v62 = vor.u32 %v21958_v52, %v19259_v53  ;;  %v18107_v35 = vld [vmem:[#allocation22 + $0x2b8] sm:$0xf0]  ;;  %v20801_v36 = vld [vmem:[#allocation22 + $0x1640] sm:$0xf] }
 0x915   :  { %14067 = vmatpush.bf16.msra.mxu0 %v20794_v50  ;;  %14080 = vmatpush.bf16.msrb.mxu2 %v20798_v5  ;;  %v21910_v5 = vld [vmem:[#allocation22 + $0x8b4] sm:$0xf0] }
 0x916   :  { %14023 = vmatmul.bf16.vlgmr.msrb.gmra.mxu0 %v23303_v63  ;;  %14036 = vmatmul.bf16.vlgmr.msra.gmra.mxu2 %v23303_v63  ;;  %v13790_v0 = vpop.f32.mrf.mxu3  ;;  %22541 = vtanh.f32 %v13817_v55  ;;  %v18874_v14 = vor.u32 %v21910_v5, %v18873_v3  ;;  %v20811_v55 = vld [vmem:[#allocation22 + $0x17c8] sm:$0xf0]  ;;  %v20810_v3 = vor.u32 %v22392_v48, %v20809_v47  ;;  %v20425_v5 = vld [vmem:[#allocation22 + $0x1348] sm:$0xf] }
 0x917   :  { %v13791_v4 = vadd.f32 %v13790_v0, %v9077_v54  ;;  %v22295_v0 = vld [vmem:[#allocation22 + $0x14bc] sm:$0xf0]  ;;  %v22008_v47 = vld [vmem:[#allocation22 + $0xbc4] sm:$0xf0] }
 0x918   :  { %14042 = vmatpush.bf16.msra.mxu3 %v20402_v10  ;;  %14055 = vmatpush.bf16.msrb.mxu1 %v20406_v11  ;;  %v13805_v9 = vpop.f32.mrf.mxu1  ;;  %v18866_v10 = vor.u32 %v21909_v60, %v18865_v59  ;;  %v18870_v11 = vor.u32 %v21861_v1, %v18867_v2  ;;  %v20802_v60 = vor.u32 %v22391_v40, %v20801_v36  ;;  %v22247_v1 = vld [vmem:[#allocation22 + $0x1344] sm:$0xf] }
 0x919   :  { %14068 = vmatpush.bf16.msra.mxu0 %v20410_v28  ;;  %14081 = vmatpush.bf16.msrb.mxu2 %v20414_v15  ;;  %v13829_v50 = vpop.f32.mrf.mxu2  ;;  %22543 = vtanh.f32 %v13791_v4  ;;  %v18878_v28 = vor.u32 %v21862_v6, %v18875_v7  ;;  %v21765_v15 = vld [vmem:[#allocation22 + $0x434] sm:$0xf]  ;;  %v22540_v38 = vpop.eup %22539  ;;  %v20814_v4 = vor.u32 %v22344_v49, %v20811_v55  ;;  %v22296_v6 = vld [vmem:[#allocation22 + $0x14c4] sm:$0xf0]  ;;  %v22248_v7 = vld [vmem:[#allocation22 + $0x134c] sm:$0xf] }
 0x91a   :  { %v13830_v8 = vadd.f32 %v13829_v50, %v9080_v56  ;;  %v14535_v51 = vrot.slane %v22540_v38, 6  ;;  %v18106_v56 = vor.u32 %v21718_v45, %v18105_v29  ;;  %v20419_v50 = vld [vmem:[#allocation22 + $0x14c0] sm:$0xf0]  ;;  %v20426_v12 = vor.u32 %v22296_v6, %v20425_v5  ;;  %v19657_v29 = vld [vmem:[#allocation22 + $0xd48] sm:$0xf] }
 0x91b   :  { %v13818_v23 = vpop.f32.mrf.mxu0  ;;  %v22104_v45 = vld [vmem:[#allocation22 + $0xec4] sm:$0xf0]  ;;  %v21959_v40 = vld [vmem:[#allocation22 + $0xa44] sm:$0xf]  ;;  %v21960_v49 = vld [vmem:[#allocation22 + $0xa4c] sm:$0xf] }
 0x91c   :  { %14043 = vmatpush.bf16.msra.mxu3 %v20018_v21  ;;  %14056 = vmatpush.bf16.msrb.mxu1 %v20022_v22  ;;  %22545 = vtanh.f32 %v13830_v8  ;;  %v18097_v21 = vld [vmem:[#allocation22 + $0x130] sm:$0xf]  ;;  %v22542_v30 = vpop.eup %22541  ;;  %v20427_v8 = vld [vmem:[#allocation22 + $0x14c8] sm:$0xf0]  ;;  %v20422_v23 = vor.u32 %v22247_v1, %v20419_v50  ;;  %v18889_v1 = vld [vmem:[#allocation22 + $0x748] sm:$0xf] }
 0x91d   :  { %14069 = vmatpush.bf16.msra.mxu0 %v20026_v26  ;;  %14082 = vmatpush.bf16.msrb.mxu2 %v20030_v27  ;;  %v21717_v22 = vld [vmem:[#allocation22 + $0x2ac] sm:$0xf0]  ;;  %v18486_v26 = vor.u32 %v21765_v15, %v18483_v16  ;;  %v18099_v27 = vld [vmem:[#allocation22 + $0x2b0] sm:$0xf0]  ;;  %v14536_v52 = vrot.slane %v22542_v30, 4  ;;  %v20430_v13 = vor.u32 %v22248_v7, %v20427_v8 }
 0x91e   :  { %v13792_v34 = vpop.f32.mrf.mxu3  ;;  %v18102_v54 = vor.u32 %v21669_v24, %v18099_v27  ;;  %v20041_v15 = vld [vmem:[#allocation22 + $0x1048] sm:$0xf]  ;;  %v22103_v24 = vld [vmem:[#allocation22 + $0xebc] sm:$0xf0]  ;;  %v19651_v27 = vld [vmem:[#allocation22 + $0xec0] sm:$0xf0] }
 0x91f   :  { %v22200_v16 = vld [vmem:[#allocation22 + $0x11c4] sm:$0xf0]  ;;  %v22056_v30 = vld [vmem:[#allocation22 + $0xd4c] sm:$0xf]  ;;  %v9083_v34 = vperm.slane %v23489_v17, 6 }
 0x920   :  { %14044 = vmatpush.bf16.msra.mxu3 %v19634_v37  ;;  %14057 = vmatpush.bf16.msrb.mxu1 %v19638_v39  ;;  %v22544_v37 = vpop.eup %22543  ;;  %v20042_v38 = vor.u32 %v22200_v16, %v20041_v15  ;;  %v21864_v50 = vld [vmem:[#allocation22 + $0x74c] sm:$0xf]  ;;  %v21816_v15 = vld [vmem:[#allocation22 + $0x5c4] sm:$0xf0] }
 0x921   :  { %14070 = vmatpush.bf16.msra.mxu0 %v19642_v43  ;;  %14083 = vmatpush.bf16.msrb.mxu2 %v19646_v46  ;;  %v13831_v39 = vpop.f32.mrf.mxu2  ;;  %v18098_v46 = vor.u32 %v21717_v22, %v18097_v21  ;;  %v9082_v21 = vperm.slane %v23489_v17, 5  ;;  %v19649_v22 = vld [vmem:[#allocation22 + $0xd40] sm:$0xf]  ;;  %v21768_v16 = vld [vmem:[#allocation22 + $0x44c] sm:$0xf] }
 0x922   :  { %v22546_v43 = vpop.eup %22545  ;;  %v22007_v39 = vld [vmem:[#allocation22 + $0xbbc] sm:$0xf0] }
 0x923   :  { %v14537_v53 = vrot.slane %v22546_v43, 2  ;;  %v19267_v43 = vld [vmem:[#allocation22 + $0xbc0] sm:$0xf0] }
 0x924   :  { %14045 = vmatpush.bf16.msra.mxu3 %v19250_v57  ;;  %14058 = vmatpush.bf16.msrb.mxu1 %v19254_v58  ;;  %v18110_v57 = vor.u32 %v21670_v44, %v18107_v35  ;;  %v14609_v58 = vsel %vm14565_vm5, %v22544_v37, %v14535_v51  ;;  %v19650_v35 = vor.u32 %v22103_v24, %v19649_v22  ;;  %v19265_v37 = vld [vmem:[#allocation22 + $0xa40] sm:$0xf]  ;;  %v19275_v51 = vld [vmem:[#allocation22 + $0xbc8] sm:$0xf0] }
 0x925   :  { %14071 = vmatpush.bf16.msra.mxu0 %v19258_v61  ;;  %14084 = vmatpush.bf16.msrb.mxu2 %v19262_v62  ;;  %v14610_v59 = vsel %vm14567_vm6, %v14536_v52, %v14537_v53  ;;  %v20806_v61 = vor.u32 %v22343_v41, %v20803_v42  ;;  %v20417_v62 = vld [vmem:[#allocation22 + $0x1340] sm:$0xf]  ;;  %v19658_v41 = vor.u32 %v22104_v45, %v19657_v29  ;;  %v9081_v52 = vperm.slane %v23489_v17, 4 }
 0x926   :  { %v14611_v2 = vsel %vm8101_vm1, %v14609_v58, %v14610_v59  ;;  %v20418_v9 = vor.u32 %v22295_v0, %v20417_v62  ;;  %v19266_v55 = vor.u32 %v22007_v39, %v19265_v37  ;;  %v21911_v58 = vld [vmem:[#allocation22 + $0x8bc] sm:$0xf0]  ;;  %v21863_v62 = vld [vmem:[#allocation22 + $0x744] sm:$0xf]  ;;  %v22345_v37 = vld [vmem:[#allocation22 + $0x1654] sm:$0xf] }
 0x927   :  { %14677 = vst [vmem:[#allocation25 + $0x70] sm:$0xff] %v14611_v2  ;;  %v18883_v0 = vld [vmem:[#allocation22 + $0x8c0] sm:$0xf0]  ;;  %v20819_v39 = vld [vmem:[#allocation22 + $0x17d0] sm:$0xf0] }
 0x928   :  { %14046 = vmatpush.bf16.msra.mxu3 %v18866_v10  ;;  %14059 = vmatpush.bf16.msrb.mxu1 %v18870_v11  ;;  %v20033_v10 = vld [vmem:[#allocation22 + $0x1040] sm:$0xf] }
 0x929   :  { %14072 = vmatpush.bf16.msra.mxu0 %v18874_v14  ;;  %14085 = vmatpush.bf16.msrb.mxu2 %v18878_v28  ;;  %v22199_v11 = vld [vmem:[#allocation22 + $0x11bc] sm:$0xf0]  ;;  %v22151_v14 = vld [vmem:[#allocation22 + $0x1044] sm:$0xf] }
 0x92a   :  { %v20035_v28 = vld [vmem:[#allocation22 + $0x11c0] sm:$0xf0]  ;;  %v20034_v33 = vor.u32 %v22199_v11, %v20033_v10  ;;  %v21815_v10 = vld [vmem:[#allocation22 + $0x5bc] sm:$0xf0] }
 0x92b   :  { %v20038_v20 = vor.u32 %v22151_v14, %v20035_v28  ;;  %v18499_v14 = vld [vmem:[#allocation22 + $0x5c0] sm:$0xf0]  ;;  %v18505_v28 = vld [vmem:[#allocation22 + $0x448] sm:$0xf] }
 0x92c   :  { %14047 = vmatpush.bf16.msra.mxu3 %v18482_v25  ;;  %14060 = vmatpush.bf16.msrb.mxu1 %v18486_v26  ;;  %v20046_v25 = vor.u32 %v22152_v18, %v20043_v19  ;;  %v22055_v26 = vld [vmem:[#allocation22 + $0xd44] sm:$0xf]  ;;  %v18507_v18 = vld [vmem:[#allocation22 + $0x5c8] sm:$0xf0]  ;;  %v18113_v19 = vld [vmem:[#allocation22 + $0x140] sm:$0xf]  ;;  %v18506_v29 = vor.u32 %v21816_v15, %v18505_v28 }
 0x92d   :  { %14073 = vmatpush.bf16.msra.mxu0 %v18490_v31  ;;  %14086 = vmatpush.bf16.msrb.mxu2 %v18494_v32  ;;  %v19659_v31 = vld [vmem:[#allocation22 + $0xec8] sm:$0xf0]  ;;  %v19654_v36 = vor.u32 %v22055_v26, %v19651_v27  ;;  %v21720_v26 = vld [vmem:[#allocation22 + $0x2c4] sm:$0xf0]  ;;  %v18510_v45 = vor.u32 %v21768_v16, %v18507_v18  ;;  %v22154_v28 = vld [vmem:[#allocation22 + $0x105c] sm:$0xf] }
 0x92e   :  { %v19662_v42 = vor.u32 %v22056_v30, %v19659_v31  ;;  %v21672_v31 = vld [vmem:[#allocation22 + $0x14c] sm:$0xf]  ;;  %v20059_v15 = vld [vmem:[#allocation22 + $0x11d8] sm:$0xf0] }
 0x930   :  { %14048 = vmatpush.bf16.msra.mxu3 %v18098_v46  ;;  %14061 = vmatpush.bf16.msrb.mxu1 %v18102_v54  ;;  %v13855_v32 = vpop.f32.mrf.mxu1  ;;  %v19273_v46 = vld [vmem:[#allocation22 + $0xa48] sm:$0xf]  ;;  %v9084_v54 = vperm.slane %v23489_v17, 7  ;;  %v18891_v17 = vld [vmem:[#allocation22 + $0x8c8] sm:$0xf0] }
 0x931   :  { %14074 = vmatpush.bf16.msra.mxu0 %v18106_v56  ;;  %14087 = vmatpush.bf16.msrb.mxu2 %v18110_v57  ;;  %v13856_v48 = vadd.f32 %v13855_v32, %v9082_v21  ;;  %v19270_v56 = vor.u32 %v21959_v40, %v19267_v43  ;;  %v18881_v57 = vld [vmem:[#allocation22 + $0x740] sm:$0xf]  ;;  %v19274_v59 = vor.u32 %v22008_v47, %v19273_v46  ;;  %v18123_v32 = vld [vmem:[#allocation22 + $0x2c8] sm:$0xf0]  ;;  %v22394_v43 = vld [vmem:[#allocation22 + $0x17d4] sm:$0xf0] }
 0x932   :  { %v18882_v8 = vor.u32 %v21911_v58, %v18881_v57  ;;  %v22346_v46 = vld [vmem:[#allocation22 + $0x165c] sm:$0xf]  ;;  %v20822_v58 = vor.u32 %v22345_v37, %v20819_v39 }
 0x933   :  { %14049 = vmatmul.bf16.vlgmr.msra.gmra.mxu3 %v23303_v63  ;;  %14062 = vmatmul.bf16.vlgmr.msrb.gmra.mxu1 %v23303_v63  ;;  %v13868_v44 = vpop.f32.mrf.mxu0  ;;  %22547 = vtanh.f32 %v13856_v48 }
 0x934   :  { %14093 = vmatpush.bf16.msrb.mxu3 %v20802_v60  ;;  %14106 = vmatpush.bf16.msra.mxu1 %v20806_v61  ;;  %v13869_v53 = vadd.f32 %v13868_v44, %v9083_v34  ;;  %v19278_v60 = vor.u32 %v21960_v49, %v19275_v51  ;;  %v20817_v34 = vld [vmem:[#allocation22 + $0x1650] sm:$0xf] }
 0x935   :  { %14119 = vmatpush.bf16.msrb.mxu0 %v20810_v3  ;;  %14132 = vmatpush.bf16.msra.mxu2 %v20814_v4  ;;  %v21912_v4 = vld [vmem:[#allocation22 + $0x8c4] sm:$0xf0] }
 0x936   :  { %14075 = vmatmul.bf16.vlgmr.msra.gmra.mxu0 %v23303_v63  ;;  %14088 = vmatmul.bf16.vlgmr.msrb.gmra.mxu2 %v23303_v63  ;;  %v13842_v61 = vpop.f32.mrf.mxu3  ;;  %22549 = vtanh.f32 %v13869_v53  ;;  %v18890_v11 = vor.u32 %v21912_v4, %v18889_v1  ;;  %v22298_v4 = vld [vmem:[#allocation22 + $0x14d4] sm:$0xf0] }
 0x937   :  { %v13843_v2 = vadd.f32 %v13842_v61, %v9081_v52  ;;  %v20827_v52 = vld [vmem:[#allocation22 + $0x17d8] sm:$0xf0]  ;;  %v22249_v61 = vld [vmem:[#allocation22 + $0x1354] sm:$0xf] }
 0x938   :  { %14094 = vmatpush.bf16.msrb.mxu3 %v20418_v9  ;;  %14107 = vmatpush.bf16.msra.mxu1 %v20422_v23  ;;  %v13857_v6 = vpop.f32.mrf.mxu1  ;;  %v18886_v9 = vor.u32 %v21863_v62, %v18883_v0  ;;  %v18497_v23 = vld [vmem:[#allocation22 + $0x440] sm:$0xf]  ;;  %v20830_v1 = vor.u32 %v22346_v46, %v20827_v52  ;;  %v21962_v46 = vld [vmem:[#allocation22 + $0xa5c] sm:$0xf] }
 0x939   :  { %14120 = vmatpush.bf16.msrb.mxu0 %v20426_v12  ;;  %14133 = vmatpush.bf16.msra.mxu2 %v20430_v13  ;;  %v13881_v3 = vpop.f32.mrf.mxu2  ;;  %22551 = vtanh.f32 %v13843_v2  ;;  %v18894_v12 = vor.u32 %v21864_v50, %v18891_v17  ;;  %v21767_v13 = vld [vmem:[#allocation22 + $0x444] sm:$0xf]  ;;  %v22548_v21 = vpop.eup %22547  ;;  %v18498_v22 = vor.u32 %v21815_v10, %v18497_v23  ;;  %v20435_v2 = vld [vmem:[#allocation22 + $0x14d0] sm:$0xf0]  ;;  %v22250_v50 = vld [vmem:[#allocation22 + $0x135c] sm:$0xf] }
 0x93a   :  { %v13882_v5 = vadd.f32 %v13881_v3, %v9084_v54  ;;  %v18502_v24 = vor.u32 %v21767_v13, %v18499_v14  ;;  %v14538_v47 = vrot.slane %v22548_v21, 6  ;;  %v18126_v54 = vor.u32 %v21672_v31, %v18123_v32  ;;  %v20441_v3 = vld [vmem:[#allocation22 + $0x1358] sm:$0xf]  ;;  %v20443_v17 = vld [vmem:[#allocation22 + $0x14d8] sm:$0xf0]  ;;  %v23513_v13 = vld [vmem:[#allocation23 + $0x40] sm:$0xff] }
 0x93b   :  { %v13870_v7 = vpop.f32.mrf.mxu0  ;;  %v20438_v6 = vor.u32 %v22249_v61, %v20435_v2  ;;  %v20442_v23 = vor.u32 %v22298_v4, %v20441_v3  ;;  %v20446_v10 = vor.u32 %v22250_v50, %v20443_v17  ;;  %v22202_v14 = vld [vmem:[#allocation22 + $0x11d4] sm:$0xf0]  ;;  %v21866_v2 = vld [vmem:[#allocation22 + $0x75c] sm:$0xf] }
 0x93c   :  { %14095 = vmatpush.bf16.msrb.mxu3 %v20034_v33  ;;  %14108 = vmatpush.bf16.msra.mxu1 %v20038_v20  ;;  %22553 = vtanh.f32 %v13882_v5  ;;  %v21719_v33 = vld [vmem:[#allocation22 + $0x2bc] sm:$0xf0]  ;;  %v21671_v20 = vld [vmem:[#allocation22 + $0x144] sm:$0xf]  ;;  %v22550_v27 = vpop.eup %22549  ;;  %v20049_v7 = vld [vmem:[#allocation22 + $0x1050] sm:$0xf] }
 0x93d   :  { %14121 = vmatpush.bf16.msrb.mxu0 %v20042_v38  ;;  %14134 = vmatpush.bf16.msra.mxu2 %v20046_v25  ;;  %v18115_v38 = vld [vmem:[#allocation22 + $0x2c0] sm:$0xf0]  ;;  %v18121_v25 = vld [vmem:[#allocation22 + $0x148] sm:$0xf]  ;;  %v14539_v48 = vrot.slane %v22550_v27, 4 }
 0x93e   :  { %v13844_v30 = vpop.f32.mrf.mxu3  ;;  %v18118_v51 = vor.u32 %v21671_v20, %v18115_v38  ;;  %v18122_v53 = vor.u32 %v21720_v26, %v18121_v25  ;;  %v22105_v20 = vld [vmem:[#allocation22 + $0xecc] sm:$0xf0]  ;;  %v19667_v38 = vld [vmem:[#allocation22 + $0xed0] sm:$0xf0]  ;;  %v19673_v25 = vld [vmem:[#allocation22 + $0xd58] sm:$0xf] }
 0x93f   :  { %v22552_v44 = vpop.eup %22551  ;;  %v22106_v26 = vld [vmem:[#allocation22 + $0xed4] sm:$0xf0]  ;;  %v22058_v27 = vld [vmem:[#allocation22 + $0xd5c] sm:$0xf]  ;;  %v9087_v30 = vperm.slane %v23513_v13, 2 }
 0x940   :  { %14096 = vmatpush.bf16.msrb.mxu3 %v19650_v35  ;;  %14109 = vmatpush.bf16.msra.mxu1 %v19654_v36  ;;  %v22393_v36 = vld [vmem:[#allocation22 + $0x17cc] sm:$0xf0]  ;;  %v19674_v37 = vor.u32 %v22106_v26, %v19673_v25  ;;  %v18905_v61 = vld [vmem:[#allocation22 + $0x758] sm:$0xf]  ;;  %v18907_v3 = vld [vmem:[#allocation22 + $0x8d8] sm:$0xf0] }
 0x941   :  { %14122 = vmatpush.bf16.msrb.mxu0 %v19658_v41  ;;  %14135 = vmatpush.bf16.msra.mxu2 %v19662_v42  ;;  %v13883_v35 = vpop.f32.mrf.mxu2  ;;  %v18114_v41 = vor.u32 %v21719_v33, %v18113_v19  ;;  %v20825_v42 = vld [vmem:[#allocation22 + $0x1658] sm:$0xf]  ;;  %v20818_v57 = vor.u32 %v22393_v36, %v20817_v34  ;;  %v9086_v19 = vperm.slane %v23513_v13, 1  ;;  %v19665_v33 = vld [vmem:[#allocation22 + $0xd50] sm:$0xf] }
 0x942   :  { %v22554_v40 = vpop.eup %22553  ;;  %v20826_v0 = vor.u32 %v22394_v43, %v20825_v42  ;;  %v19666_v32 = vor.u32 %v22105_v20, %v19665_v33  ;;  %v22009_v35 = vld [vmem:[#allocation22 + $0xbcc] sm:$0xf0]  ;;  %v21961_v36 = vld [vmem:[#allocation22 + $0xa54] sm:$0xf]  ;;  %v22010_v42 = vld [vmem:[#allocation22 + $0xbd4] sm:$0xf0] }
 0x943   :  { %v14540_v49 = vrot.slane %v22554_v40, 2  ;;  %v19283_v40 = vld [vmem:[#allocation22 + $0xbd0] sm:$0xf0] }
 0x944   :  { %14097 = vmatpush.bf16.msrb.mxu3 %v19266_v55  ;;  %14110 = vmatpush.bf16.msra.mxu1 %v19270_v56  ;;  %v14612_v55 = vsel %vm14565_vm5, %v22552_v44, %v14538_v47  ;;  %v19281_v44 = vld [vmem:[#allocation22 + $0xa50] sm:$0xf]  ;;  %v19291_v47 = vld [vmem:[#allocation22 + $0xbd8] sm:$0xf0] }
 0x945   :  { %14123 = vmatpush.bf16.msrb.mxu0 %v19274_v59  ;;  %14136 = vmatpush.bf16.msra.mxu2 %v19278_v60  ;;  %v14613_v56 = vsel %vm14567_vm6, %v14539_v48, %v14540_v49  ;;  %v20433_v59 = vld [vmem:[#allocation22 + $0x1350] sm:$0xf]  ;;  %v9085_v48 = vperm.slane %v23513_v13, 0  ;;  %v19282_v52 = vor.u32 %v22009_v35, %v19281_v44  ;;  %v22395_v44 = vld [vmem:[#allocation22 + $0x17dc] sm:$0xf0] }
 0x946   :  { %v22297_v60 = vld [vmem:[#allocation22 + $0x14cc] sm:$0xf0]  ;;  %v14614_v62 = vsel %vm8101_vm1, %v14612_v55, %v14613_v56  ;;  %v22347_v35 = vld [vmem:[#allocation22 + $0x1664] sm:$0xf] }
 0x947   :  { %14678 = vst [vmem:[#allocation25 + $0x78] sm:$0xff] %v14614_v62  ;;  %v20434_v5 = vor.u32 %v22297_v60, %v20433_v59  ;;  %v21913_v55 = vld [vmem:[#allocation22 + $0x8cc] sm:$0xf0]  ;;  %v21865_v59 = vld [vmem:[#allocation22 + $0x754] sm:$0xf] }
 0x948   :  { %14098 = vmatpush.bf16.msrb.mxu3 %v18882_v8  ;;  %14111 = vmatpush.bf16.msra.mxu1 %v18886_v9  ;;  %v22201_v8 = vld [vmem:[#allocation22 + $0x11cc] sm:$0xf0]  ;;  %v22153_v9 = vld [vmem:[#allocation22 + $0x1054] sm:$0xf] }
 0x949   :  { %14124 = vmatpush.bf16.msrb.mxu0 %v18890_v11  ;;  %14137 = vmatpush.bf16.msra.mxu2 %v18894_v12  ;;  %v20051_v11 = vld [vmem:[#allocation22 + $0x11d0] sm:$0xf0]  ;;  %v20057_v12 = vld [vmem:[#allocation22 + $0x1058] sm:$0xf]  ;;  %v20050_v16 = vor.u32 %v22201_v8, %v20049_v7  ;;  %v18513_v7 = vld [vmem:[#allocation22 + $0x450] sm:$0xf] }
 0x94a   :  { %v20054_v18 = vor.u32 %v22153_v9, %v20051_v11  ;;  %v20058_v21 = vor.u32 %v22202_v14, %v20057_v12  ;;  %v18899_v60 = vld [vmem:[#allocation22 + $0x8d0] sm:$0xf0]  ;;  %v21817_v8 = vld [vmem:[#allocation22 + $0x5cc] sm:$0xf0]  ;;  %v18521_v12 = vld [vmem:[#allocation22 + $0x458] sm:$0xf] }
 0x94b   :  { %v18515_v11 = vld [vmem:[#allocation22 + $0x5d0] sm:$0xf0]  ;;  %v21818_v14 = vld [vmem:[#allocation22 + $0x5d4] sm:$0xf0]  ;;  %v18514_v20 = vor.u32 %v21817_v8, %v18513_v7 }
 0x94c   :  { %14099 = vmatpush.bf16.msrb.mxu3 %v18498_v22  ;;  %14112 = vmatpush.bf16.msra.mxu1 %v18502_v24  ;;  %v20062_v22 = vor.u32 %v22154_v28, %v20059_v15  ;;  %v22057_v24 = vld [vmem:[#allocation22 + $0xd54] sm:$0xf]  ;;  %v21770_v28 = vld [vmem:[#allocation22 + $0x45c] sm:$0xf]  ;;  %v18522_v26 = vor.u32 %v21818_v14, %v18521_v12  ;;  %v22156_v12 = vld [vmem:[#allocation22 + $0x106c] sm:$0xf] }
 0x94d   :  { %14125 = vmatpush.bf16.msrb.mxu0 %v18506_v29  ;;  %14138 = vmatpush.bf16.msra.mxu2 %v18510_v45  ;;  %v19675_v29 = vld [vmem:[#allocation22 + $0xed8] sm:$0xf0]  ;;  %v19670_v34 = vor.u32 %v22057_v24, %v19667_v38  ;;  %v18137_v24 = vld [vmem:[#allocation22 + $0x158] sm:$0xf]  ;;  %v20075_v14 = vld [vmem:[#allocation22 + $0x11e8] sm:$0xf0] }
 0x94e   :  { %v19678_v39 = vor.u32 %v22058_v27, %v19675_v29  ;;  %v18523_v15 = vld [vmem:[#allocation22 + $0x5d8] sm:$0xf0]  ;;  %v21722_v38 = vld [vmem:[#allocation22 + $0x2d4] sm:$0xf0] }
 0x94f   :  { %v18526_v27 = vor.u32 %v21770_v28, %v18523_v15 }
 0x950   :  { %14100 = vmatpush.bf16.msrb.mxu3 %v18114_v41  ;;  %14113 = vmatpush.bf16.msra.mxu1 %v18118_v51  ;;  %v13907_v45 = vpop.f32.mrf.mxu1  ;;  %v19289_v41 = vld [vmem:[#allocation22 + $0xa58] sm:$0xf]  ;;  %v9088_v51 = vperm.slane %v23513_v13, 3 }
 0x951   :  { %14126 = vmatpush.bf16.msrb.mxu0 %v18122_v53  ;;  %14139 = vmatpush.bf16.msra.mxu2 %v18126_v54  ;;  %v13908_v43 = vadd.f32 %v13907_v45, %v9086_v19  ;;  %v19286_v53 = vor.u32 %v21961_v36, %v19283_v40  ;;  %v18897_v54 = vld [vmem:[#allocation22 + $0x750] sm:$0xf]  ;;  %v19290_v56 = vor.u32 %v22010_v42, %v19289_v41  ;;  %v21673_v19 = vld [vmem:[#allocation22 + $0x154] sm:$0xf]  ;;  %v21674_v45 = vld [vmem:[#allocation22 + $0x15c] sm:$0xf] }
 0x952   :  { %v20835_v36 = vld [vmem:[#allocation22 + $0x17e0] sm:$0xf0]  ;;  %v20841_v40 = vld [vmem:[#allocation22 + $0x1668] sm:$0xf]  ;;  %v22348_v42 = vld [vmem:[#allocation22 + $0x166c] sm:$0xf] }
 0x953   :  { %14101 = vmatmul.bf16.vlgmr.msrb.gmra.mxu3 %v23303_v63  ;;  %14114 = vmatmul.bf16.vlgmr.msra.gmra.mxu1 %v23303_v63  ;;  %v13920_v31 = vpop.f32.mrf.mxu0  ;;  %22555 = vtanh.f32 %v13908_v43  ;;  %v22396_v41 = vld [vmem:[#allocation22 + $0x17e4] sm:$0xf0] }
 0x954   :  { %14145 = vmatpush.bf16.msra.mxu3 %v20818_v57  ;;  %14158 = vmatpush.bf16.msrb.mxu1 %v20822_v58  ;;  %v13921_v49 = vadd.f32 %v13920_v31, %v9087_v30  ;;  %v19294_v57 = vor.u32 %v21962_v46, %v19291_v47  ;;  %v18139_v30 = vld [vmem:[#allocation22 + $0x2d8] sm:$0xf0]  ;;  %v20833_v31 = vld [vmem:[#allocation22 + $0x1660] sm:$0xf] }
 0x955   :  { %14171 = vmatpush.bf16.msra.mxu0 %v20826_v0  ;;  %14184 = vmatpush.bf16.msrb.mxu2 %v20830_v1  ;;  %v21914_v1 = vld [vmem:[#allocation22 + $0x8d4] sm:$0xf0] }
 0x956   :  { %14127 = vmatmul.bf16.vlgmr.msrb.gmra.mxu0 %v23303_v63  ;;  %14140 = vmatmul.bf16.vlgmr.msra.gmra.mxu2 %v23303_v63  ;;  %v13894_v58 = vpop.f32.mrf.mxu3  ;;  %22557 = vtanh.f32 %v13921_v49  ;;  %v18906_v9 = vor.u32 %v21914_v1, %v18905_v61  ;;  %v20843_v49 = vld [vmem:[#allocation22 + $0x17e8] sm:$0xf0]  ;;  %v20842_v61 = vor.u32 %v22396_v41, %v20841_v40  ;;  %v20457_v1 = vld [vmem:[#allocation22 + $0x1368] sm:$0xf] }
 0x957   :  { %v13895_v62 = vadd.f32 %v13894_v58, %v9085_v48  ;;  %v22299_v58 = vld [vmem:[#allocation22 + $0x14dc] sm:$0xf0]  ;;  %v22012_v40 = vld [vmem:[#allocation22 + $0xbe4] sm:$0xf0] }
 0x958   :  { %14146 = vmatpush.bf16.msra.mxu3 %v20434_v5  ;;  %14159 = vmatpush.bf16.msrb.mxu1 %v20438_v6  ;;  %v13909_v50 = vpop.f32.mrf.mxu1  ;;  %v18898_v5 = vor.u32 %v21913_v55, %v18897_v54  ;;  %v18902_v6 = vor.u32 %v21865_v59, %v18899_v60  ;;  %v20834_v55 = vor.u32 %v22395_v44, %v20833_v31  ;;  %v22251_v59 = vld [vmem:[#allocation22 + $0x1364] sm:$0xf] }
 0x959   :  { %14172 = vmatpush.bf16.msra.mxu0 %v20442_v23  ;;  %14185 = vmatpush.bf16.msrb.mxu2 %v20446_v10  ;;  %v13933_v0 = vpop.f32.mrf.mxu2  ;;  %22559 = vtanh.f32 %v13895_v62  ;;  %v18910_v23 = vor.u32 %v21866_v2, %v18907_v3  ;;  %v21769_v10 = vld [vmem:[#allocation22 + $0x454] sm:$0xf]  ;;  %v22556_v33 = vpop.eup %22555  ;;  %v20846_v62 = vor.u32 %v22348_v42, %v20843_v49  ;;  %v22300_v2 = vld [vmem:[#allocation22 + $0x14e4] sm:$0xf0]  ;;  %v22252_v3 = vld [vmem:[#allocation22 + $0x136c] sm:$0xf] }
 0x95a   :  { %v13934_v4 = vadd.f32 %v13933_v0, %v9088_v51  ;;  %v14541_v43 = vrot.slane %v22556_v33, 6  ;;  %v18138_v51 = vor.u32 %v21722_v38, %v18137_v24  ;;  %v20451_v0 = vld [vmem:[#allocation22 + $0x14e0] sm:$0xf0]  ;;  %v20458_v7 = vor.u32 %v22300_v2, %v20457_v1  ;;  %v19689_v24 = vld [vmem:[#allocation22 + $0xd68] sm:$0xf] }
 0x95b   :  { %v13922_v17 = vpop.f32.mrf.mxu0  ;;  %v22108_v38 = vld [vmem:[#allocation22 + $0xee4] sm:$0xf0]  ;;  %v21963_v44 = vld [vmem:[#allocation22 + $0xa64] sm:$0xf]  ;;  %v21964_v42 = vld [vmem:[#allocation22 + $0xa6c] sm:$0xf] }
 0x95c   :  { %14147 = vmatpush.bf16.msra.mxu3 %v20050_v16  ;;  %14160 = vmatpush.bf16.msrb.mxu1 %v20054_v18  ;;  %22561 = vtanh.f32 %v13934_v4  ;;  %v18129_v16 = vld [vmem:[#allocation22 + $0x150] sm:$0xf]  ;;  %v22558_v25 = vpop.eup %22557  ;;  %v20459_v4 = vld [vmem:[#allocation22 + $0x14e8] sm:$0xf0]  ;;  %v20454_v17 = vor.u32 %v22251_v59, %v20451_v0  ;;  %v18921_v59 = vld [vmem:[#allocation22 + $0x768] sm:$0xf] }
 0x95d   :  { %14173 = vmatpush.bf16.msra.mxu0 %v20058_v21  ;;  %14186 = vmatpush.bf16.msrb.mxu2 %v20062_v22  ;;  %v21721_v18 = vld [vmem:[#allocation22 + $0x2cc] sm:$0xf0]  ;;  %v18518_v21 = vor.u32 %v21769_v10, %v18515_v11  ;;  %v18131_v22 = vld [vmem:[#allocation22 + $0x2d0] sm:$0xf0]  ;;  %v14542_v46 = vrot.slane %v22558_v25, 4  ;;  %v20462_v8 = vor.u32 %v22252_v3, %v20459_v4 }
 0x95e   :  { %v13896_v29 = vpop.f32.mrf.mxu3  ;;  %v18134_v48 = vor.u32 %v21673_v19, %v18131_v22  ;;  %v20073_v10 = vld [vmem:[#allocation22 + $0x1068] sm:$0xf]  ;;  %v22107_v19 = vld [vmem:[#allocation22 + $0xedc] sm:$0xf0]  ;;  %v19683_v22 = vld [vmem:[#allocation22 + $0xee0] sm:$0xf0] }
 0x95f   :  { %v22204_v11 = vld [vmem:[#allocation22 + $0x11e4] sm:$0xf0]  ;;  %v22060_v25 = vld [vmem:[#allocation22 + $0xd6c] sm:$0xf]  ;;  %v9091_v29 = vperm.slane %v23513_v13, 6 }
 0x960   :  { %14148 = vmatpush.bf16.msra.mxu3 %v19666_v32  ;;  %14161 = vmatpush.bf16.msrb.mxu1 %v19670_v34  ;;  %v22560_v32 = vpop.eup %22559  ;;  %v20074_v33 = vor.u32 %v22204_v11, %v20073_v10  ;;  %v21868_v0 = vld [vmem:[#allocation22 + $0x76c] sm:$0xf]  ;;  %v21820_v10 = vld [vmem:[#allocation22 + $0x5e4] sm:$0xf0] }
 0x961   :  { %14174 = vmatpush.bf16.msra.mxu0 %v19674_v37  ;;  %14187 = vmatpush.bf16.msrb.mxu2 %v19678_v39  ;;  %v13935_v34 = vpop.f32.mrf.mxu2  ;;  %v18130_v39 = vor.u32 %v21721_v18, %v18129_v16  ;;  %v9090_v16 = vperm.slane %v23513_v13, 5  ;;  %v19681_v18 = vld [vmem:[#allocation22 + $0xd60] sm:$0xf]  ;;  %v21772_v11 = vld [vmem:[#allocation22 + $0x46c] sm:$0xf] }
 0x962   :  { %v22562_v37 = vpop.eup %22561  ;;  %v22011_v34 = vld [vmem:[#allocation22 + $0xbdc] sm:$0xf0] }
 0x963   :  { %v14543_v47 = vrot.slane %v22562_v37, 2  ;;  %v19299_v37 = vld [vmem:[#allocation22 + $0xbe0] sm:$0xf0] }
 0x964   :  { %14149 = vmatpush.bf16.msra.mxu3 %v19282_v52  ;;  %14162 = vmatpush.bf16.msrb.mxu1 %v19286_v53  ;;  %v18142_v52 = vor.u32 %v21674_v45, %v18139_v30  ;;  %v14615_v53 = vsel %vm14565_vm5, %v22560_v32, %v14541_v43  ;;  %v19682_v30 = vor.u32 %v22107_v19, %v19681_v18  ;;  %v19297_v32 = vld [vmem:[#allocation22 + $0xa60] sm:$0xf]  ;;  %v19307_v43 = vld [vmem:[#allocation22 + $0xbe8] sm:$0xf0] }
 0x965   :  { %14175 = vmatpush.bf16.msra.mxu0 %v19290_v56  ;;  %14188 = vmatpush.bf16.msrb.mxu2 %v19294_v57  ;;  %v14616_v54 = vsel %vm14567_vm6, %v14542_v46, %v14543_v47  ;;  %v20838_v56 = vor.u32 %v22347_v35, %v20835_v36  ;;  %v20449_v57 = vld [vmem:[#allocation22 + $0x1360] sm:$0xf]  ;;  %v19690_v35 = vor.u32 %v22108_v38, %v19689_v24  ;;  %v9089_v46 = vperm.slane %v23513_v13, 4 }
 0x966   :  { %v14617_v60 = vsel %vm8101_vm1, %v14615_v53, %v14616_v54  ;;  %v20450_v50 = vor.u32 %v22299_v58, %v20449_v57  ;;  %v19298_v49 = vor.u32 %v22011_v34, %v19297_v32  ;;  %v21915_v53 = vld [vmem:[#allocation22 + $0x8dc] sm:$0xf0]  ;;  %v21867_v57 = vld [vmem:[#allocation22 + $0x764] sm:$0xf]  ;;  %v22349_v32 = vld [vmem:[#allocation22 + $0x1674] sm:$0xf] }
 0x967   :  { %14679 = vst [vmem:[#allocation25 + $0x80] sm:$0xff] %v14617_v60  ;;  %v18915_v58 = vld [vmem:[#allocation22 + $0x8e0] sm:$0xf0]  ;;  %v20851_v34 = vld [vmem:[#allocation22 + $0x17f0] sm:$0xf0] }
 0x968   :  { %14150 = vmatpush.bf16.msra.mxu3 %v18898_v5  ;;  %14163 = vmatpush.bf16.msrb.mxu1 %v18902_v6  ;;  %v20065_v5 = vld [vmem:[#allocation22 + $0x1060] sm:$0xf] }
 0x969   :  { %14176 = vmatpush.bf16.msra.mxu0 %v18906_v9  ;;  %14189 = vmatpush.bf16.msrb.mxu2 %v18910_v23  ;;  %v22203_v6 = vld [vmem:[#allocation22 + $0x11dc] sm:$0xf0]  ;;  %v22155_v9 = vld [vmem:[#allocation22 + $0x1064] sm:$0xf] }
 0x96a   :  { %v20067_v23 = vld [vmem:[#allocation22 + $0x11e0] sm:$0xf0]  ;;  %v20066_v28 = vor.u32 %v22203_v6, %v20065_v5  ;;  %v21819_v5 = vld [vmem:[#allocation22 + $0x5dc] sm:$0xf0] }
 0x96b   :  { %v20070_v15 = vor.u32 %v22155_v9, %v20067_v23  ;;  %v18531_v9 = vld [vmem:[#allocation22 + $0x5e0] sm:$0xf0]  ;;  %v18537_v23 = vld [vmem:[#allocation22 + $0x468] sm:$0xf] }
 0x96c   :  { %14151 = vmatpush.bf16.msra.mxu3 %v18514_v20  ;;  %14164 = vmatpush.bf16.msrb.mxu1 %v18518_v21  ;;  %v20078_v20 = vor.u32 %v22156_v12, %v20075_v14  ;;  %v22059_v21 = vld [vmem:[#allocation22 + $0xd64] sm:$0xf]  ;;  %v18539_v12 = vld [vmem:[#allocation22 + $0x5e8] sm:$0xf0]  ;;  %v18145_v14 = vld [vmem:[#allocation22 + $0x160] sm:$0xf]  ;;  %v18538_v24 = vor.u32 %v21820_v10, %v18537_v23 }
 0x96d   :  { %14177 = vmatpush.bf16.msra.mxu0 %v18522_v26  ;;  %14190 = vmatpush.bf16.msrb.mxu2 %v18526_v27  ;;  %v19691_v26 = vld [vmem:[#allocation22 + $0xee8] sm:$0xf0]  ;;  %v19686_v31 = vor.u32 %v22059_v21, %v19683_v22  ;;  %v21724_v21 = vld [vmem:[#allocation22 + $0x2e4] sm:$0xf0]  ;;  %v18542_v38 = vor.u32 %v21772_v11, %v18539_v12  ;;  %v22158_v23 = vld [vmem:[#allocation22 + $0x107c] sm:$0xf] }
 0x96e   :  { %v19694_v36 = vor.u32 %v22060_v25, %v19691_v26  ;;  %v21676_v26 = vld [vmem:[#allocation22 + $0x16c] sm:$0xf]  ;;  %v20091_v10 = vld [vmem:[#allocation22 + $0x11f8] sm:$0xf0] }
 0x970   :  { %14152 = vmatpush.bf16.msra.mxu3 %v18130_v39  ;;  %14165 = vmatpush.bf16.msrb.mxu1 %v18134_v48  ;;  %v13959_v27 = vpop.f32.mrf.mxu1  ;;  %v19305_v39 = vld [vmem:[#allocation22 + $0xa68] sm:$0xf]  ;;  %v9092_v48 = vperm.slane %v23513_v13, 7  ;;  %v18923_v13 = vld [vmem:[#allocation22 + $0x8e8] sm:$0xf0] }
 0x971   :  { %14178 = vmatpush.bf16.msra.mxu0 %v18138_v51  ;;  %14191 = vmatpush.bf16.msrb.mxu2 %v18142_v52  ;;  %v13960_v41 = vadd.f32 %v13959_v27, %v9090_v16  ;;  %v19302_v51 = vor.u32 %v21963_v44, %v19299_v37  ;;  %v18913_v52 = vld [vmem:[#allocation22 + $0x760] sm:$0xf]  ;;  %v19306_v54 = vor.u32 %v22012_v40, %v19305_v39  ;;  %v18155_v27 = vld [vmem:[#allocation22 + $0x2e8] sm:$0xf0]  ;;  %v22398_v37 = vld [vmem:[#allocation22 + $0x17f4] sm:$0xf0] }
 0x972   :  { %v18914_v4 = vor.u32 %v21915_v53, %v18913_v52  ;;  %v22350_v39 = vld [vmem:[#allocation22 + $0x167c] sm:$0xf]  ;;  %v20854_v53 = vor.u32 %v22349_v32, %v20851_v34 }
 0x973   :  { %14153 = vmatmul.bf16.vlgmr.msra.gmra.mxu3 %v23303_v63  ;;  %14166 = vmatmul.bf16.vlgmr.msrb.gmra.mxu1 %v23303_v63  ;;  %v13972_v45 = vpop.f32.mrf.mxu0  ;;  %22563 = vtanh.f32 %v13960_v41 }
 0x974   :  { %14197 = vmatpush.bf16.msrb.mxu3 %v20834_v55  ;;  %14210 = vmatpush.bf16.msra.mxu1 %v20838_v56  ;;  %v13973_v47 = vadd.f32 %v13972_v45, %v9091_v29  ;;  %v19310_v55 = vor.u32 %v21964_v42, %v19307_v43  ;;  %v20849_v29 = vld [vmem:[#allocation22 + $0x1670] sm:$0xf] }
 0x975   :  { %14223 = vmatpush.bf16.msrb.mxu0 %v20842_v61  ;;  %14236 = vmatpush.bf16.msra.mxu2 %v20846_v62  ;;  %v21916_v62 = vld [vmem:[#allocation22 + $0x8e4] sm:$0xf0] }
 0x976   :  { %14179 = vmatmul.bf16.vlgmr.msra.gmra.mxu0 %v23303_v63  ;;  %14192 = vmatmul.bf16.vlgmr.msrb.gmra.mxu2 %v23303_v63  ;;  %v13946_v56 = vpop.f32.mrf.mxu3  ;;  %22565 = vtanh.f32 %v13973_v47  ;;  %v18922_v6 = vor.u32 %v21916_v62, %v18921_v59  ;;  %v22302_v62 = vld [vmem:[#allocation22 + $0x14f4] sm:$0xf0] }
 0x977   :  { %v13947_v60 = vadd.f32 %v13946_v56, %v9089_v46  ;;  %v20859_v46 = vld [vmem:[#allocation22 + $0x17f8] sm:$0xf0]  ;;  %v22253_v56 = vld [vmem:[#allocation22 + $0x1374] sm:$0xf] }
 0x978   :  { %14198 = vmatpush.bf16.msrb.mxu3 %v20450_v50  ;;  %14211 = vmatpush.bf16.msra.mxu1 %v20454_v17  ;;  %v13961_v2 = vpop.f32.mrf.mxu1  ;;  %v18918_v50 = vor.u32 %v21867_v57, %v18915_v58  ;;  %v18529_v17 = vld [vmem:[#allocation22 + $0x460] sm:$0xf]  ;;  %v20862_v59 = vor.u32 %v22350_v39, %v20859_v46  ;;  %v21966_v39 = vld [vmem:[#allocation22 + $0xa7c] sm:$0xf] }
 0x979   :  { %14224 = vmatpush.bf16.msrb.mxu0 %v20458_v7  ;;  %14237 = vmatpush.bf16.msra.mxu2 %v20462_v8  ;;  %v13985_v61 = vpop.f32.mrf.mxu2  ;;  %22567 = vtanh.f32 %v13947_v60  ;;  %v18926_v7 = vor.u32 %v21868_v0, %v18923_v13  ;;  %v21771_v8 = vld [vmem:[#allocation22 + $0x464] sm:$0xf]  ;;  %v22564_v16 = vpop.eup %22563  ;;  %v18530_v18 = vor.u32 %v21819_v5, %v18529_v17  ;;  %v20467_v60 = vld [vmem:[#allocation22 + $0x14f0] sm:$0xf0]  ;;  %v22254_v0 = vld [vmem:[#allocation22 + $0x137c] sm:$0xf] }
 0x97a   :  { %v13986_v1 = vadd.f32 %v13985_v61, %v9092_v48  ;;  %v18534_v19 = vor.u32 %v21771_v8, %v18531_v9  ;;  %v14544_v40 = vrot.slane %v22564_v16, 6  ;;  %v18158_v48 = vor.u32 %v21676_v26, %v18155_v27  ;;  %v20473_v61 = vld [vmem:[#allocation22 + $0x1378] sm:$0xf]  ;;  %v20475_v13 = vld [vmem:[#allocation22 + $0x14f8] sm:$0xf0]  ;;  %v23537_v8 = vld [vmem:[#allocation23 + $0x48] sm:$0xff] }
 0x97b   :  { %v13974_v3 = vpop.f32.mrf.mxu0  ;;  %v20470_v2 = vor.u32 %v22253_v56, %v20467_v60  ;;  %v20474_v17 = vor.u32 %v22302_v62, %v20473_v61  ;;  %v20478_v5 = vor.u32 %v22254_v0, %v20475_v13  ;;  %v22206_v9 = vld [vmem:[#allocation22 + $0x11f4] sm:$0xf0]  ;;  %v21870_v60 = vld [vmem:[#allocation22 + $0x77c] sm:$0xf] }
 0x97c   :  { %14199 = vmatpush.bf16.msrb.mxu3 %v20066_v28  ;;  %14212 = vmatpush.bf16.msra.mxu1 %v20070_v15  ;;  %22569 = vtanh.f32 %v13986_v1  ;;  %v21723_v28 = vld [vmem:[#allocation22 + $0x2dc] sm:$0xf0]  ;;  %v21675_v15 = vld [vmem:[#allocation22 + $0x164] sm:$0xf]  ;;  %v22566_v22 = vpop.eup %22565  ;;  %v20081_v3 = vld [vmem:[#allocation22 + $0x1070] sm:$0xf] }
 0x97d   :  { %14225 = vmatpush.bf16.msrb.mxu0 %v20074_v33  ;;  %14238 = vmatpush.bf16.msra.mxu2 %v20078_v20  ;;  %v18147_v33 = vld [vmem:[#allocation22 + $0x2e0] sm:$0xf0]  ;;  %v18153_v20 = vld [vmem:[#allocation22 + $0x168] sm:$0xf]  ;;  %v14545_v41 = vrot.slane %v22566_v22, 4 }
 0x97e   :  { %v13948_v25 = vpop.f32.mrf.mxu3  ;;  %v18150_v43 = vor.u32 %v21675_v15, %v18147_v33  ;;  %v18154_v47 = vor.u32 %v21724_v21, %v18153_v20  ;;  %v22109_v15 = vld [vmem:[#allocation22 + $0xeec] sm:$0xf0]  ;;  %v19699_v33 = vld [vmem:[#allocation22 + $0xef0] sm:$0xf0]  ;;  %v19705_v20 = vld [vmem:[#allocation22 + $0xd78] sm:$0xf] }
 0x97f   :  { %v22568_v45 = vpop.eup %22567  ;;  %v22110_v21 = vld [vmem:[#allocation22 + $0xef4] sm:$0xf0]  ;;  %v22062_v22 = vld [vmem:[#allocation22 + $0xd7c] sm:$0xf]  ;;  %v9095_v25 = vperm.slane %v23537_v8, 2 }
 0x980   :  { %14200 = vmatpush.bf16.msrb.mxu3 %v19682_v30  ;;  %14213 = vmatpush.bf16.msra.mxu1 %v19686_v31  ;;  %v22397_v31 = vld [vmem:[#allocation22 + $0x17ec] sm:$0xf0]  ;;  %v19706_v32 = vor.u32 %v22110_v21, %v19705_v20  ;;  %v18937_v56 = vld [vmem:[#allocation22 + $0x778] sm:$0xf]  ;;  %v18939_v61 = vld [vmem:[#allocation22 + $0x8f8] sm:$0xf0] }
 0x981   :  { %14226 = vmatpush.bf16.msrb.mxu0 %v19690_v35  ;;  %14239 = vmatpush.bf16.msra.mxu2 %v19694_v36  ;;  %v13987_v30 = vpop.f32.mrf.mxu2  ;;  %v18146_v35 = vor.u32 %v21723_v28, %v18145_v14  ;;  %v20857_v36 = vld [vmem:[#allocation22 + $0x1678] sm:$0xf]  ;;  %v20850_v52 = vor.u32 %v22397_v31, %v20849_v29  ;;  %v9094_v14 = vperm.slane %v23537_v8, 1  ;;  %v19697_v28 = vld [vmem:[#allocation22 + $0xd70] sm:$0xf] }
 0x982   :  { %v22570_v44 = vpop.eup %22569  ;;  %v20858_v58 = vor.u32 %v22398_v37, %v20857_v36  ;;  %v19698_v27 = vor.u32 %v22109_v15, %v19697_v28  ;;  %v22013_v30 = vld [vmem:[#allocation22 + $0xbec] sm:$0xf0]  ;;  %v21965_v31 = vld [vmem:[#allocation22 + $0xa74] sm:$0xf]  ;;  %v22014_v36 = vld [vmem:[#allocation22 + $0xbf4] sm:$0xf0] }
 0x983   :  { %v14546_v42 = vrot.slane %v22570_v44, 2  ;;  %v19315_v44 = vld [vmem:[#allocation22 + $0xbf0] sm:$0xf0]  ;;  %v18161_v28 = vld [vmem:[#allocation22 + $0x170] sm:$0xf] }
 0x984   :  { %14201 = vmatpush.bf16.msrb.mxu3 %v19298_v49  ;;  %14214 = vmatpush.bf16.msra.mxu1 %v19302_v51  ;;  %v14618_v49 = vsel %vm14565_vm5, %v22568_v45, %v14544_v40  ;;  %v19313_v45 = vld [vmem:[#allocation22 + $0xa70] sm:$0xf]  ;;  %v19323_v40 = vld [vmem:[#allocation22 + $0xbf8] sm:$0xf0]  ;;  %v21677_v20 = vld [vmem:[#allocation22 + $0x174] sm:$0xf] }
 0x985   :  { %14227 = vmatpush.bf16.msrb.mxu0 %v19306_v54  ;;  %14240 = vmatpush.bf16.msra.mxu2 %v19310_v55  ;;  %v14619_v51 = vsel %vm14567_vm6, %v14545_v41, %v14546_v42  ;;  %v20465_v54 = vld [vmem:[#allocation22 + $0x1370] sm:$0xf]  ;;  %v9093_v41 = vperm.slane %v23537_v8, 0  ;;  %v19314_v46 = vor.u32 %v22013_v30, %v19313_v45  ;;  %v18163_v21 = vld [vmem:[#allocation22 + $0x2f0] sm:$0xf0] }
 0x986   :  { %v22301_v55 = vld [vmem:[#allocation22 + $0x14ec] sm:$0xf0]  ;;  %v14620_v57 = vsel %vm8101_vm1, %v14618_v49, %v14619_v51 }
 0x987   :  { %14680 = vst [vmem:[#allocation25 + $0x88] sm:$0xff] %v14620_v57  ;;  %v20466_v1 = vor.u32 %v22301_v55, %v20465_v54  ;;  %v21917_v49 = vld [vmem:[#allocation22 + $0x8ec] sm:$0xf0]  ;;  %v21869_v54 = vld [vmem:[#allocation22 + $0x774] sm:$0xf] }
 0x988   :  { %14202 = vmatpush.bf16.msrb.mxu3 %v18914_v4  ;;  %14215 = vmatpush.bf16.msra.mxu1 %v18918_v50  ;;  %v22205_v4 = vld [vmem:[#allocation22 + $0x11ec] sm:$0xf0]  ;;  %v22157_v50 = vld [vmem:[#allocation22 + $0x1074] sm:$0xf] }
 0x989   :  { %14228 = vmatpush.bf16.msrb.mxu0 %v18922_v6  ;;  %14241 = vmatpush.bf16.msra.mxu2 %v18926_v7  ;;  %v20083_v6 = vld [vmem:[#allocation22 + $0x11f0] sm:$0xf0]  ;;  %v20089_v7 = vld [vmem:[#allocation22 + $0x1078] sm:$0xf]  ;;  %v20082_v11 = vor.u32 %v22205_v4, %v20081_v3  ;;  %v18545_v3 = vld [vmem:[#allocation22 + $0x470] sm:$0xf] }
 0x98a   :  { %v20086_v12 = vor.u32 %v22157_v50, %v20083_v6  ;;  %v20090_v16 = vor.u32 %v22206_v9, %v20089_v7  ;;  %v18931_v55 = vld [vmem:[#allocation22 + $0x8f0] sm:$0xf0]  ;;  %v21821_v4 = vld [vmem:[#allocation22 + $0x5ec] sm:$0xf0]  ;;  %v18553_v7 = vld [vmem:[#allocation22 + $0x478] sm:$0xf] }
 0x98b   :  { %v18547_v6 = vld [vmem:[#allocation22 + $0x5f0] sm:$0xf0]  ;;  %v21822_v9 = vld [vmem:[#allocation22 + $0x5f4] sm:$0xf0]  ;;  %v21725_v15 = vld [vmem:[#allocation22 + $0x2ec] sm:$0xf0] }
 0x98c   :  { %14203 = vmatpush.bf16.msrb.mxu3 %v18530_v18  ;;  %14216 = vmatpush.bf16.msra.mxu1 %v18534_v19  ;;  %v20094_v18 = vor.u32 %v22158_v23, %v20091_v10  ;;  %v22061_v19 = vld [vmem:[#allocation22 + $0xd74] sm:$0xf]  ;;  %v21774_v23 = vld [vmem:[#allocation22 + $0x47c] sm:$0xf]  ;;  %v18162_v45 = vor.u32 %v21725_v15, %v18161_v28 }
 0x98d   :  { %14229 = vmatpush.bf16.msrb.mxu0 %v18538_v24  ;;  %14242 = vmatpush.bf16.msra.mxu2 %v18542_v38  ;;  %v19707_v24 = vld [vmem:[#allocation22 + $0xef8] sm:$0xf0]  ;;  %v19702_v29 = vor.u32 %v22061_v19, %v19699_v33 }
 0x98e   :  { %v19710_v34 = vor.u32 %v22062_v22, %v19707_v24  ;;  %v18555_v10 = vld [vmem:[#allocation22 + $0x5f8] sm:$0xf0]  ;;  %v18169_v22 = vld [vmem:[#allocation22 + $0x178] sm:$0xf] }
 0x98f   :  { %v18558_v19 = vor.u32 %v21774_v23, %v18555_v10 }
 0x990   :  { %14204 = vmatpush.bf16.msrb.mxu3 %v18146_v35  ;;  %14217 = vmatpush.bf16.msra.mxu1 %v18150_v43  ;;  %v14011_v38 = vpop.f32.mrf.mxu1  ;;  %v19321_v35 = vld [vmem:[#allocation22 + $0xa78] sm:$0xf]  ;;  %v9096_v43 = vperm.slane %v23537_v8, 3 }
 0x991   :  { %14230 = vmatpush.bf16.msrb.mxu0 %v18154_v47  ;;  %14243 = vmatpush.bf16.msra.mxu2 %v18158_v48  ;;  %v14012_v37 = vadd.f32 %v14011_v38, %v9094_v14  ;;  %v19318_v47 = vor.u32 %v21965_v31, %v19315_v44  ;;  %v18929_v48 = vld [vmem:[#allocation22 + $0x770] sm:$0xf]  ;;  %v19322_v51 = vor.u32 %v22014_v36, %v19321_v35 }
 0x993   :  { %14205 = vmatmul.bf16.vlgmr.msrb.gmra.mxu3 %v23303_v63  ;;  %14218 = vmatmul.bf16.vlgmr.msra.gmra.mxu1 %v23303_v63  ;;  %v14024_v26 = vpop.f32.mrf.mxu0  ;;  %22571 = vtanh.f32 %v14012_v37 }
 0x994   :  { %14249 = vmatpush.bf16.msra.mxu3 %v20850_v52  ;;  %14262 = vmatpush.bf16.msrb.mxu1 %v20854_v53  ;;  %v14025_v42 = vadd.f32 %v14024_v26, %v9095_v25  ;;  %v19326_v52 = vor.u32 %v21966_v39, %v19323_v40  ;;  %v21726_v25 = vld [vmem:[#allocation22 + $0x2f4] sm:$0xf0]  ;;  %v21678_v26 = vld [vmem:[#allocation22 + $0x17c] sm:$0xf]  ;;  %v9098_v40 = vperm.slane %v23537_v8, 5 }
 0x995   :  { %14275 = vmatpush.bf16.msra.mxu0 %v20858_v58  ;;  %14288 = vmatpush.bf16.msrb.mxu2 %v20862_v59  ;;  %v21918_v59 = vld [vmem:[#allocation22 + $0x8f4] sm:$0xf0]  ;;  %v18170_v44 = vor.u32 %v21726_v25, %v18169_v22 }
 0x996   :  { %14231 = vmatmul.bf16.vlgmr.msrb.gmra.mxu0 %v23303_v63  ;;  %14244 = vmatmul.bf16.vlgmr.msra.gmra.mxu2 %v23303_v63  ;;  %v13998_v53 = vpop.f32.mrf.mxu3  ;;  %22573 = vtanh.f32 %v14025_v42  ;;  %v18938_v50 = vor.u32 %v21918_v59, %v18937_v56  ;;  %v9099_v42 = vperm.slane %v23537_v8, 6 }
 0x997   :  { %v13999_v57 = vadd.f32 %v13998_v53, %v9093_v41 }
 0x998   :  { %14250 = vmatpush.bf16.msra.mxu3 %v20466_v1  ;;  %14263 = vmatpush.bf16.msrb.mxu1 %v20470_v2  ;;  %v14013_v0 = vpop.f32.mrf.mxu1  ;;  %v18930_v1 = vor.u32 %v21917_v49, %v18929_v48  ;;  %v18934_v2 = vor.u32 %v21869_v54, %v18931_v55  ;;  %v9100_v49 = vperm.slane %v23537_v8, 7 }
 0x999   :  { %14276 = vmatpush.bf16.msra.mxu0 %v20474_v17  ;;  %14289 = vmatpush.bf16.msrb.mxu2 %v20478_v5  ;;  %v14037_v58 = vpop.f32.mrf.mxu2  ;;  %22575 = vtanh.f32 %v13999_v57  ;;  %v18942_v17 = vor.u32 %v21870_v60, %v18939_v61  ;;  %v21773_v5 = vld [vmem:[#allocation22 + $0x474] sm:$0xf] }
 0x99a   :  { %v14038_v62 = vadd.f32 %v14037_v58, %v9096_v43  ;;  %v18550_v14 = vor.u32 %v21773_v5, %v18547_v6 }
 0x99b   :  { %v14026_v13 = vpop.f32.mrf.mxu0 }
 0x99c   :  { %14251 = vmatpush.bf16.msra.mxu3 %v20082_v11  ;;  %14264 = vmatpush.bf16.msrb.mxu1 %v20086_v12  ;;  %22577 = vtanh.f32 %v14038_v62  ;;  %v22572_v11 = vpop.eup %22571  ;;  %v18546_v12 = vor.u32 %v21821_v4, %v18545_v3  ;;  %v9006_v3 = vld [vmem:[#allocation23 + $0x50] sm:$0xff] }
 0x99d   :  { %14277 = vmatpush.bf16.msra.mxu0 %v20090_v16  ;;  %14290 = vmatpush.bf16.msrb.mxu2 %v20094_v18  ;;  %v22574_v16 = vpop.eup %22573  ;;  %v18554_v18 = vor.u32 %v21822_v9, %v18553_v7  ;;  %v14547_v30 = vrot.slane %v22572_v11, 6  ;;  %v9102_v4 = vperm.slane %v9006_v3, 1  ;;  %v9101_v7 = vperm.slane %v9006_v3, 0 }
 0x99e   :  { %v14000_v33 = vpop.f32.mrf.mxu3  ;;  %v14548_v31 = vrot.slane %v22574_v16, 4  ;;  %v9104_v23 = vperm.slane %v9006_v3, 3 }
 0x99f   :  { %v22576_v24 = vpop.eup %22575 }
 0x9a0   :  { %14252 = vmatpush.bf16.msra.mxu3 %v19698_v27  ;;  %14265 = vmatpush.bf16.msrb.mxu1 %v19702_v29  ;;  %v18171_v27 = vld [vmem:[#allocation22 + $0x2f8] sm:$0xf0]  ;;  %v14621_v36 = vsel %vm14565_vm5, %v22576_v24, %v14547_v30  ;;  %v9107_v30 = vperm.slane %v9006_v3, 6 }
 0x9a1   :  { %14278 = vmatpush.bf16.msra.mxu0 %v19706_v32  ;;  %14291 = vmatpush.bf16.msrb.mxu2 %v19710_v34  ;;  %v14039_v38 = vpop.f32.mrf.mxu2  ;;  %v18166_v34 = vor.u32 %v21677_v20, %v18163_v21  ;;  %v18174_v35 = vor.u32 %v21678_v26, %v18171_v27 }
 0x9a2   :  { %v22578_v29 = vpop.eup %22577 }
 0x9a3   :  { %v14549_v32 = vrot.slane %v22578_v29, 2  ;;  %v9106_v29 = vperm.slane %v9006_v3, 5 }
 0x9a4   :  { %14253 = vmatpush.bf16.msra.mxu3 %v19314_v46  ;;  %14266 = vmatpush.bf16.msrb.mxu1 %v19318_v47  ;;  %v9097_v47 = vperm.slane %v23537_v8, 4 }
 0x9a5   :  { %14279 = vmatpush.bf16.msra.mxu0 %v19322_v51  ;;  %14292 = vmatpush.bf16.msrb.mxu2 %v19326_v52  ;;  %v14622_v37 = vsel %vm14567_vm6, %v14548_v31, %v14549_v32 }
 0x9a6   :  { %v14623_v39 = vsel %vm8101_vm1, %v14621_v36, %v14622_v37 }
 0x9a7   :  { %14681 = vst [vmem:[#allocation25 + $0x90] sm:$0xff] %v14623_v39 }
 0x9a8   :  { %14254 = vmatpush.bf16.msra.mxu3 %v18930_v1  ;;  %14267 = vmatpush.bf16.msrb.mxu1 %v18934_v2 }
 0x9a9   :  { %14280 = vmatpush.bf16.msra.mxu0 %v18938_v50  ;;  %14293 = vmatpush.bf16.msrb.mxu2 %v18942_v17  ;;  %v9103_v17 = vperm.slane %v9006_v3, 2 }
 0x9ac   :  { %14255 = vmatpush.bf16.msra.mxu3 %v18546_v12  ;;  %14268 = vmatpush.bf16.msrb.mxu1 %v18550_v14 }
 0x9ad   :  { %14281 = vmatpush.bf16.msra.mxu0 %v18554_v18  ;;  %14294 = vmatpush.bf16.msrb.mxu2 %v18558_v19 }
 0x9b0   :  { %14256 = vmatpush.bf16.msra.mxu3 %v18162_v45  ;;  %14269 = vmatpush.bf16.msrb.mxu1 %v18166_v34  ;;  %v14063_v41 = vpop.f32.mrf.mxu1  ;;  %v9105_v34 = vperm.slane %v9006_v3, 4 }
 0x9b1   :  { %14282 = vmatpush.bf16.msra.mxu0 %v18170_v44  ;;  %14295 = vmatpush.bf16.msrb.mxu2 %v18174_v35  ;;  %v14064_v46 = vadd.f32 %v14063_v41, %v9098_v40  ;;  %v9108_v35 = vperm.slane %v9006_v3, 7 }
 0x9b3   :  { %14257 = vmatmul.bf16.vlgmr.msra.gmra.mxu3 %v23303_v63  ;;  %14270 = vmatmul.bf16.vlgmr.msrb.gmra.mxu1 %v23303_v63  ;;  %v14076_v43 = vpop.f32.mrf.mxu0  ;;  %22579 = vtanh.f32 %v14064_v46 }
 0x9b4   :  { %14283 = vmatmul.bf16.vlgmr.msra.gmra.mxu0 %v23303_v63  ;;  %14296 = vmatmul.bf16.vlgmr.msrb.gmra.mxu2 %v23303_v63  ;;  %v14077_v48 = vadd.f32 %v14076_v43, %v9099_v42 }
 0x9b6   :  { %v14050_v51 = vpop.f32.mrf.mxu3  ;;  %22581 = vtanh.f32 %v14077_v48 }
 0x9b7   :  { %v14051_v52 = vadd.f32 %v14050_v51, %v9097_v47 }
 0x9b8   :  { %v14065_v55 = vpop.f32.mrf.mxu1 }
 0x9b9   :  { %v14089_v53 = vpop.f32.mrf.mxu2  ;;  %22583 = vtanh.f32 %v14051_v52  ;;  %v22580_v56 = vpop.eup %22579 }
 0x9ba   :  { %v14090_v54 = vadd.f32 %v14089_v53, %v9100_v49  ;;  %v14550_v62 = vrot.slane %v22580_v56, 6 }
 0x9bb   :  { %v14078_v63 = vpop.f32.mrf.mxu0 }
 0x9bc   :  { %22585 = vtanh.f32 %v14090_v54  ;;  %v22582_v57 = vpop.eup %22581 }
 0x9bd   :  { %v14551_v0 = vrot.slane %v22582_v57, 4  ;;  %v9007_v57 = vld [vmem:[#allocation23 + $0x58] sm:$0xff] }
 0x9be   :  { %v14052_v58 = vpop.f32.mrf.mxu3 }
 0x9bf   :  { %v22584_v59 = vpop.eup %22583  ;;  %v9110_v58 = vperm.slane %v9007_v57, 1 }
 0x9c0   :  { %v14624_v8 = vsel %vm14565_vm5, %v22584_v59, %v14550_v62 }
 0x9c1   :  { %v14091_v60 = vpop.f32.mrf.mxu2 }
 0x9c2   :  { %v22586_v61 = vpop.eup %22585  ;;  %v9111_v60 = vperm.slane %v9007_v57, 2 }
 0x9c3   :  { %v14552_v13 = vrot.slane %v22586_v61, 2 }
 0x9c5   :  { %v14625_v1 = vsel %vm14567_vm6, %v14551_v0, %v14552_v13  ;;  %v9109_v0 = vperm.slane %v9007_v57, 0 }
 0x9c6   :  { %v14626_v2 = vsel %vm8101_vm1, %v14624_v8, %v14625_v1  ;;  %v9112_v8 = vperm.slane %v9007_v57, 3 }
 0x9c7   :  { %14682 = vst [vmem:[#allocation25 + $0x98] sm:$0xff] %v14626_v2 }
 0x9d0   :  { %v14115_v50 = vpop.f32.mrf.mxu1 }
 0x9d1   :  { %v14116_v6 = vadd.f32 %v14115_v50, %v9102_v4 }
 0x9d3   :  { %v14128_v5 = vpop.f32.mrf.mxu0  ;;  %22587 = vtanh.f32 %v14116_v6 }
 0x9d4   :  { %v14129_v9 = vadd.f32 %v14128_v5, %v9103_v17 }
 0x9d6   :  { %v14102_v10 = vpop.f32.mrf.mxu3  ;;  %22589 = vtanh.f32 %v14129_v9 }
 0x9d7   :  { %v14103_v11 = vadd.f32 %v14102_v10, %v9101_v7 }
 0x9d8   :  { %v14117_v28 = vpop.f32.mrf.mxu1 }
 0x9d9   :  { %v14141_v12 = vpop.f32.mrf.mxu2  ;;  %22591 = vtanh.f32 %v14103_v11  ;;  %v22588_v16 = vpop.eup %22587 }
 0x9da   :  { %v14142_v14 = vadd.f32 %v14141_v12, %v9104_v23  ;;  %v14553_v22 = vrot.slane %v22588_v16, 6 }
 0x9db   :  { %v14130_v15 = vpop.f32.mrf.mxu0 }
 0x9dc   :  { %22593 = vtanh.f32 %v14142_v14  ;;  %v22590_v18 = vpop.eup %22589 }
 0x9dd   :  { %v14554_v24 = vrot.slane %v22590_v18, 4  ;;  %v9114_v18 = vperm.slane %v9007_v57, 5 }
 0x9de   :  { %v14104_v19 = vpop.f32.mrf.mxu3 }
 0x9df   :  { %v22592_v33 = vpop.eup %22591 }
 0x9e0   :  { %v14627_v25 = vsel %vm14565_vm5, %v22592_v33, %v14553_v22  ;;  %v9115_v33 = vperm.slane %v9007_v57, 6  ;;  %v9113_v22 = vperm.slane %v9007_v57, 4 }
 0x9e1   :  { %v14143_v20 = vpop.f32.mrf.mxu2 }
 0x9e2   :  { %v22594_v21 = vpop.eup %22593 }
 0x9e3   :  { %v14555_v38 = vrot.slane %v22594_v21, 2 }
 0x9e5   :  { %v14628_v26 = vsel %vm14567_vm6, %v14554_v24, %v14555_v38  ;;  %v9116_v38 = vperm.slane %v9007_v57, 7 }
 0x9e6   :  { %v14629_v27 = vsel %vm8101_vm1, %v14627_v25, %v14628_v26 }
 0x9e7   :  { %14683 = vst [vmem:[#allocation25 + $0xa0] sm:$0xff] %v14629_v27 }
 0x9f0   :  { %v14167_v45 = vpop.f32.mrf.mxu1 }
 0x9f1   :  { %v14168_v32 = vadd.f32 %v14167_v45, %v9106_v29 }
 0x9f3   :  { %v14180_v31 = vpop.f32.mrf.mxu0  ;;  %22595 = vtanh.f32 %v14168_v32 }
 0x9f4   :  { %v14181_v44 = vadd.f32 %v14180_v31, %v9107_v30 }
 0x9f6   :  { %v14154_v36 = vpop.f32.mrf.mxu3  ;;  %22597 = vtanh.f32 %v14181_v44 }
 0x9f7   :  { %v14155_v37 = vadd.f32 %v14154_v36, %v9105_v34 }
 0x9f8   :  { %v14169_v41 = vpop.f32.mrf.mxu1 }
 0x9f9   :  { %v14193_v39 = vpop.f32.mrf.mxu2  ;;  %22599 = vtanh.f32 %v14155_v37  ;;  %v22596_v43 = vpop.eup %22595 }
 0x9fa   :  { %v14194_v40 = vadd.f32 %v14193_v39, %v9108_v35  ;;  %v14556_v52 = vrot.slane %v22596_v43, 6 }
 0x9fb   :  { %v14182_v42 = vpop.f32.mrf.mxu0 }
 0x9fc   :  { %22601 = vtanh.f32 %v14194_v40  ;;  %v22598_v46 = vpop.eup %22597 }
 0x9fd   :  { %v14557_v53 = vrot.slane %v22598_v46, 4 }
 0x9fe   :  { %v14156_v47 = vpop.f32.mrf.mxu3 }
 0x9ff   :  { %v22600_v48 = vpop.eup %22599 }
 0xa00   :  { %v14630_v55 = vsel %vm14565_vm5, %v22600_v48, %v14556_v52 }
 0xa01   :  { %v14195_v49 = vpop.f32.mrf.mxu2 }
 0xa02   :  { %v22602_v51 = vpop.eup %22601 }
 0xa03   :  { %v14558_v54 = vrot.slane %v22602_v51, 2 }
 0xa05   :  { %v14631_v63 = vsel %vm14567_vm6, %v14557_v53, %v14558_v54 }
 0xa06   :  { %v14632_v56 = vsel %vm8101_vm1, %v14630_v55, %v14631_v63 }
 0xa07   :  { %14684 = vst [vmem:[#allocation25 + $0xa8] sm:$0xff] %v14632_v56 }
 0xa10   :  { %v14219_v59 = vpop.f32.mrf.mxu1 }
 0xa11   :  { %v14220_v62 = vadd.f32 %v14219_v59, %v9110_v58 }
 0xa13   :  { %v14232_v61 = vpop.f32.mrf.mxu0  ;;  %22603 = vtanh.f32 %v14220_v62 }
 0xa14   :  { %v14233_v13 = vadd.f32 %v14232_v61, %v9111_v60 }
 0xa16   :  { %v14206_v1 = vpop.f32.mrf.mxu3  ;;  %22605 = vtanh.f32 %v14233_v13 }
 0xa17   :  { %v14207_v2 = vadd.f32 %v14206_v1, %v9109_v0 }
 0xa18   :  { %v14221_v50 = vpop.f32.mrf.mxu1 }
 0xa19   :  { %v14245_v3 = vpop.f32.mrf.mxu2  ;;  %22607 = vtanh.f32 %v14207_v2  ;;  %v22604_v5 = vpop.eup %22603 }
 0xa1a   :  { %v14246_v4 = vadd.f32 %v14245_v3, %v9112_v8  ;;  %v14559_v11 = vrot.slane %v22604_v5, 6 }
 0xa1b   :  { %v14234_v17 = vpop.f32.mrf.mxu0 }
 0xa1c   :  { %22609 = vtanh.f32 %v14246_v4  ;;  %v22606_v6 = vpop.eup %22605 }
 0xa1d   :  { %v14560_v12 = vrot.slane %v22606_v6, 4 }
 0xa1e   :  { %v14208_v7 = vpop.f32.mrf.mxu3 }
 0xa1f   :  { %v22608_v9 = vpop.eup %22607 }
 0xa20   :  { %v14633_v28 = vsel %vm14565_vm5, %v22608_v9, %v14559_v11 }
 0xa21   :  { %v14247_v23 = vpop.f32.mrf.mxu2 }
 0xa22   :  { %v22610_v10 = vpop.eup %22609 }
 0xa23   :  { %v14561_v14 = vrot.slane %v22610_v10, 2 }
 0xa25   :  { %v14634_v15 = vsel %vm14567_vm6, %v14560_v12, %v14561_v14 }
 0xa26   :  { %v14635_v16 = vsel %vm8101_vm1, %v14633_v28, %v14634_v15 }
 0xa27   :  { %14685 = vst [vmem:[#allocation25 + $0xb0] sm:$0xff] %v14635_v16 }
 0xa30   :  { %v14271_v19 = vpop.f32.mrf.mxu1 }
 0xa31   :  { %v14284_v20 = vpop.f32.mrf.mxu0  ;;  %v14272_v21 = vadd.f32 %v14271_v19, %v9114_v18 }
 0xa32   :  { %v14285_v24 = vadd.f32 %v14284_v20, %v9115_v33 }
 0xa33   :  { %22611 = vtanh.f32 %v14272_v21 }
 0xa34   :  { %22613 = vtanh.f32 %v14285_v24 }
 0xa36   :  { %v14258_v25 = vpop.f32.mrf.mxu3 }
 0xa37   :  { %v14259_v26 = vadd.f32 %v14258_v25, %v9113_v22  ;;  %v14297_v27 = vpop.f32.mrf.mxu2 }
 0xa38   :  { %v14298_v29 = vadd.f32 %v14297_v27, %v9116_v38  ;;  %v14273_v45 = vpop.f32.mrf.mxu1 }
 0xa39   :  { %22615 = vtanh.f32 %v14259_v26  ;;  %v14286_v30 = vpop.f32.mrf.mxu0  ;;  %v22612_v31 = vpop.eup %22611 }
 0xa3a   :  { %22617 = vtanh.f32 %v14298_v29  ;;  %v22614_v32 = vpop.eup %22613  ;;  %v14562_v37 = vrot.slane %v22612_v31, 6 }
 0xa3b   :  { %v14563_v39 = vrot.slane %v22614_v32, 4 }
 0xa3e   :  { %v14260_v34 = vpop.f32.mrf.mxu3 }
 0xa3f   :  { %v22616_v44 = vpop.eup %22615  ;;  %v14299_v35 = vpop.f32.mrf.mxu2 }
 0xa40   :  { %v22618_v36 = vpop.eup %22617  ;;  %v14636_v41 = vsel %vm14565_vm5, %v22616_v44, %v14562_v37 }
 0xa41   :  { %v14564_v40 = vrot.slane %v22618_v36, 2 }
 0xa43   :  { %v14637_v42 = vsel %vm14567_vm6, %v14563_v39, %v14564_v40 }
 0xa44   :  { %v14638_v43 = vsel %vm8101_vm1, %v14636_v41, %v14637_v42 }
 0xa45   :  { %14686 = vst [vmem:[#allocation25 + $0xb8] sm:$0xff] %v14638_v43 }
 0xa46   :  { %14697 = dma.vmem_to_hbm [thread:$0]  %s14693_s7, 3072, %s14695_s20, [#allocation4]  }
 0xa47   :  { %22995 = dma.done.wait [#allocation4], 3072  }
 0xa48   :  { %22996 = vsyncadd [#allocation4], 4294964224 }
 0xa49   :  { %14702 = vsyncpa [#allocation3], 1 }
 0xa4a   :  { %14703 = vsyncpa [#allocation6], 1 }
 0xa4b   :  { %14704 = vsyncpa [#allocation9], 1 }
 0xa4c   :  { %14705 = vsyncpa [#allocation12], 1 }
 0xa4d   :  { %14706 = vsyncpa [#allocation15], 1 }
 0xa4e   :  { %14707 = vsyncpa [#allocation18], 1 }
 0xa4f   :  { %14708 = vsyncpa [#allocation21], 1 }
 0xa50   :  { %14709 = vsyncpa [#allocation24], 1 }
 0xa51   :  { %14710 = vsyncpa [#allocation4], 1 }

</bundles_post_ra>
